<compile_context>
chip_gen: v6e
topology: v6e:2x2x1
jax: 0.10.0
libtpu: 0.0.40
codegen_flags: <defaults>
</compile_context>

<pallas_src>
import functools

import jax
import jax.numpy as jnp
from jax.experimental import pallas as pl
from jax.experimental.pallas import tpu as pltpu

EPS = 1e-5  # PyTorch BatchNorm2d default eps


# ----------------------------------------------------------------------------
# Fused kernel: conv-as-matmul (+bias) + BN(training batch stats) + ReLU + 2x2 max-pool
# ----------------------------------------------------------------------------
def _fused_conv_block_kernel(p_ref, w_ref, b_ref, g_ref, be_ref, o_ref, *, inv_m):
    """p_ref : (4, Mo, K) bf16  im2col patches grouped by 2x2 pool-window position
       w_ref : (K, C)     bf16  conv weights as a matmul
       b_ref, g_ref, be_ref : (1, C) f32  bias / gamma / beta
       o_ref : (Mo, C)    f32   pooled block output (rows ordered (n, yo, xo))"""
    w = w_ref[...]
    b = b_ref[...]
    # Four (Mo, K) x (K, C) MXU matmuls, one per 2x2-window position; f32 accumulate.
    y0 = jnp.dot(p_ref[0], w, preferred_element_type=jnp.float32) + b
    y1 = jnp.dot(p_ref[1], w, preferred_element_type=jnp.float32) + b
    y2 = jnp.dot(p_ref[2], w, preferred_element_type=jnp.float32) + b
    y3 = jnp.dot(p_ref[3], w, preferred_element_type=jnp.float32) + b

    # Training-mode BatchNorm batch statistics over all M = 4*Mo conv outputs.
    s = (jnp.sum(y0, axis=0, keepdims=True) + jnp.sum(y1, axis=0, keepdims=True)
         + jnp.sum(y2, axis=0, keepdims=True) + jnp.sum(y3, axis=0, keepdims=True))
    ss = (jnp.sum(y0 * y0, axis=0, keepdims=True)
          + jnp.sum(y1 * y1, axis=0, keepdims=True)
          + jnp.sum(y2 * y2, axis=0, keepdims=True)
          + jnp.sum(y3 * y3, axis=0, keepdims=True))
    mean = s * inv_m
    var = ss * inv_m - mean * mean            # biased variance (BN training mode)
    scale = g_ref[...] * jax.lax.rsqrt(var + EPS)
    shift = be_ref[...] - mean * scale

    # BN affine + ReLU, then 2x2 max-pool == elementwise max of the four positions.
    z0 = jnp.maximum(y0 * scale + shift, 0.0)
    z1 = jnp.maximum(y1 * scale + shift, 0.0)
    z2 = jnp.maximum(y2 * scale + shift, 0.0)
    z3 = jnp.maximum(y3 * scale + shift, 0.0)
    o_ref[...] = jnp.maximum(jnp.maximum(z0, z1), jnp.maximum(z2, z3))


def fused_conv_block(patches4, w2d, bias, gamma, beta):
    """patches4: (4, Mo, K) bf16; w2d: (K, C) bf16; bias/gamma/beta: (1, C) f32.
    Returns pooled output (Mo, C) f32.  Single grid step: everything is VMEM-resident."""
    _, Mo, K = patches4.shape
    C = w2d.shape[1]
    kernel = functools.partial(_fused_conv_block_kernel, inv_m=1.0 / float(4 * Mo))
    return pl.pallas_call(
        kernel,
        out_shape=jax.ShapeDtypeStruct((Mo, C), jnp.float32),
        grid_spec=pltpu.PrefetchScalarGridSpec(
            num_scalar_prefetch=0,
            grid=(1,),
            in_specs=[pl.BlockSpec((4, Mo, K), lambda i: (0, 0, 0)),
                      pl.BlockSpec((K, C), lambda i: (0, 0)),
                      pl.BlockSpec((1, C), lambda i: (0, 0)),
                      pl.BlockSpec((1, C), lambda i: (0, 0)),
                      pl.BlockSpec((1, C), lambda i: (0, 0))],
            out_specs=pl.BlockSpec((Mo, C), lambda i: (0, 0)),
        ),
        compiler_params=pltpu.CompilerParams(
            dimension_semantics=("arbitrary",)),
    )(patches4, w2d, bias, gamma, beta)


# ----------------------------------------------------------------------------
# ConvNet encoder built around the fused kernel (layout/index glue in plain JAX)
# ----------------------------------------------------------------------------
def _im2col_pool_grouped(x_nhwc, k_pad):
    """im2col of a 3x3/pad=1 conv, with rows grouped by 2x2 pooling-window position.
    Returns (4, N*Ho*Wo, k_pad) where group q = 2*dy + dx."""
    N, H, W, Cin = x_nhwc.shape
    xp = jnp.pad(x_nhwc, ((0, 0), (1, 1), (1, 1), (0, 0)))
    cols = [xp[:, ky:ky + H, kx:kx + W, :] for ky in range(3) for kx in range(3)]
    patches = jnp.concatenate(cols, axis=-1)                     # (N, H, W, 9*Cin)
    K = 9 * Cin
    if k_pad > K:
        patches = jnp.pad(patches, ((0, 0), (0, 0), (0, 0), (0, k_pad - K)))
        K = k_pad
    Ho, Wo = H // 2, W // 2
    patches = patches.reshape(N, Ho, 2, Wo, 2, K)
    patches = jnp.transpose(patches, (2, 4, 0, 1, 3, 5))         # (2, 2, N, Ho, Wo, K)
    return patches.reshape(4, N * Ho * Wo, K)


def conv_block(x_nhwc, w, b, gamma, beta):
    """Conv2d(3x3, pad=1) -> BatchNorm2d(training batch stats) -> ReLU -> MaxPool2d(2)."""
    N, H, W, Cin = x_nhwc.shape
    Cout = w.shape[0]
    K = 9 * Cin
    k_pad = ((K + 31) // 32) * 32          # layer 1: 27 -> 32; later layers: 576 (no-op)

    patches4 = _im2col_pool_grouped(x_nhwc, k_pad).astype(jnp.bfloat16)
    # PyTorch weight layout (Cout, Cin, kH, kW) -> (kH, kW, Cin, Cout) -> (9*Cin, Cout)
    w2d = jnp.transpose(w, (2, 3, 1, 0)).reshape(K, Cout)
    if k_pad > K:
        w2d = jnp.pad(w2d, ((0, k_pad - K), (0, 0)))
    w2d = w2d.astype(jnp.bfloat16)

    pooled = fused_conv_block(
        patches4, w2d,
        b.reshape(1, Cout).astype(jnp.float32),
        gamma.reshape(1, Cout).astype(jnp.float32),
        beta.reshape(1, Cout).astype(jnp.float32))
    Ho, Wo = H // 2, W // 2
    return pooled.reshape(N, Ho, Wo, Cout)


@jax.jit
def encoder(x_nchw, params):
    """ConvNet encoder. Input NCHW (PyTorch convention), output (N, hdim=64)."""
    x = jnp.transpose(x_nchw, (0, 2, 3, 1)).astype(jnp.float32)    # -> NHWC
    for (w, b, g, be) in params:
        x = conv_block(x, w, b, g, be)
    # spatial is 1x1 for 16x16 inputs, so flatten == global pooling is a no-op
    return x.reshape(x.shape[0], -1)


# ----------------------------------------------------------------------------
# split_instances / sample_task_ids (index bookkeeping — plain JAX)
# ----------------------------------------------------------------------------
def sample_task_ids(key, support_label, num_task, num_shot, num_way, num_class):
    basis = (jnp.tile(jnp.arange(num_shot)[:, None], (1, num_way)).reshape(-1)
             * num_class).astype(jnp.int32)
    ids, labels = [], []
    for _ in range(num_task):
        key, sub = jax.random.split(key)
        clsmap = jax.random.permutation(sub, num_class)[:num_way].astype(jnp.int32)
        labels.append(support_label[clsmap])
        ids.append(basis + jnp.tile(clsmap, (num_shot,)))
    return jnp.stack(ids), jnp.stack(labels)


def split_instances(key, support_label, args, training=True):
    shot = args["shot"] if training else args["eval_shot"]
    way = args["way"] if training else args["eval_way"]
    permuted_ids, permuted_labels = sample_task_ids(
        key, support_label, args["num_tasks"], shot, way, args["sample_class"])
    return (permuted_ids.reshape(args["num_tasks"], shot, way), permuted_labels)


# ----------------------------------------------------------------------------
# GeneralizedFewShotModel.forward
# ----------------------------------------------------------------------------
def generalized_few_shot_forward(params, x_shot, x_query, shot_label, args, key):
    # Kept as two encoder calls (matches PyTorch forward); batching support+query
    # together would change training-mode BN batch statistics.
    support_emb = encoder(x_shot, params)          # (Ns, 64)
    query_emb = encoder(x_query, params)           # (Nq, 64)
    index_label = split_instances(key, shot_label, args, training=True)
    # TODO(synk): base-class `_forward` raises NotImplementedError (abstract); no logits
    # computation exists to translate, so return the encoder embeddings + index_label.
    return support_emb, query_emb, index_label


def init_params(key):
    """4 conv blocks: 3->64, 64->64, 64->64, 64->64 (deterministic init)."""
    params = []
    cin = 3
    for _ in range(4):
        key, kw = jax.random.split(key)
        w = 0.1 * jax.random.normal(kw, (64, cin, 3, 3), dtype=jnp.float32)
        b = jnp.zeros((64,), jnp.float32)
        gamma = jnp.ones((64,), jnp.float32)
        beta = jnp.zeros((64,), jnp.float32)
        params.append((w, b, gamma, beta))
        cin = 64
    return params


if __name__ == "__main__":
    key = jax.random.PRNGKey(0)
    k_params, k_shot, k_query, k_task = jax.random.split(key, 4)

    args = dict(num_tasks=2, shot=1, way=2, eval_shot=1, eval_way=2, sample_class=4)

    params = init_params(k_params)
    # PyTorch NCHW inputs: sample_class*shot support images, 6 query images, 3x16x16
    x_shot = jax.random.normal(k_shot, (4, 3, 16, 16), dtype=jnp.float32)
    x_query = jax.random.normal(k_query, (6, 3, 16, 16), dtype=jnp.float32)
    shot_label = jnp.arange(4, dtype=jnp.int32)

    support_emb, query_emb, index_label = generalized_few_shot_forward(
        params, x_shot, x_query, shot_label, args, k_task)

    jax.block_until_ready(support_emb)
    jax.block_until_ready(query_emb)
    jax.block_until_ready(index_label[0])
    jax.block_until_ready(index_label[1])

    assert support_emb.shape == (4, 64)
    assert query_emb.shape == (6, 64)
    assert index_label[0].shape == (args["num_tasks"], args["shot"], args["way"])
    print("KERNEL_OK")
</pallas_src>

<mosaic_0001>
module attributes {stable_mosaic.version = 11 : i64} {
  func.func @_fused_conv_block_kernel(%arg0: i32, %arg1: memref<4x256x32xbf16, #tpu.memory_space<vmem>>, %arg2: memref<32x64xbf16, #tpu.memory_space<vmem>>, %arg3: memref<1x64xf32, #tpu.memory_space<vmem>>, %arg4: memref<1x64xf32, #tpu.memory_space<vmem>>, %arg5: memref<1x64xf32, #tpu.memory_space<vmem>>, %arg6: memref<256x64xf32, #tpu.memory_space<vmem>>) attributes {dimension_semantics = [#tpu.dimension_semantics<arbitrary>], iteration_bounds = array<i64: 1>, scalar_prefetch = 0 : i64, scratch_operands = 0 : i64, tpu.core_type = #tpu.core_type<tc>, window_params = [{pipeline_mode = #tpu.pipeline_mode<synchronous>, transform_indices = @transform_0, window_bounds = array<i64: 4, 256, 32>}, {pipeline_mode = #tpu.pipeline_mode<synchronous>, transform_indices = @transform_1, window_bounds = array<i64: 32, 64>}, {pipeline_mode = #tpu.pipeline_mode<synchronous>, transform_indices = @transform_2, window_bounds = array<i64: 1, 64>}, {pipeline_mode = #tpu.pipeline_mode<synchronous>, transform_indices = @transform_3, window_bounds = array<i64: 1, 64>}, {pipeline_mode = #tpu.pipeline_mode<synchronous>, transform_indices = @transform_4, window_bounds = array<i64: 1, 64>}, {pipeline_mode = #tpu.pipeline_mode<synchronous>, transform_indices = @transform_5, window_bounds = array<i64: 256, 64>}]} {
    %c0 = arith.constant 0 : index
    %c0_0 = arith.constant 0 : index
    %0 = vector.load %arg2[%c0, %c0_0] : memref<32x64xbf16, #tpu.memory_space<vmem>>, vector<32x64xbf16>
    %c0_1 = arith.constant 0 : index
    %c0_2 = arith.constant 0 : index
    %1 = vector.load %arg3[%c0_1, %c0_2] : memref<1x64xf32, #tpu.memory_space<vmem>>, vector<1x64xf32>
    %c0_3 = arith.constant 0 : index
    %c0_4 = arith.constant 0 : index
    %c0_5 = arith.constant 0 : index
    %2 = vector.load %arg1[%c0_3, %c0_4, %c0_5] : memref<4x256x32xbf16, #tpu.memory_space<vmem>>, vector<1x256x32xbf16>
    %3 = vector.shape_cast %2 : vector<1x256x32xbf16> to vector<256x32xbf16>
    %cst = arith.constant dense<0.000000e+00> : vector<256x64xf32>
    %4 = tpu.matmul %3, %0, %cst {dimension_numbers = #tpu.dot_dimension_numbers<[1], [0], [0], [1], [0, 0, 1, 1], [], []>} : vector<256x32xbf16>, vector<32x64xbf16>, vector<256x64xf32> -> vector<256x64xf32>
    %5 = vector.broadcast %1 : vector<1x64xf32> to vector<256x64xf32>
    %6 = arith.addf %4, %5 : vector<256x64xf32>
    %c1 = arith.constant 1 : index
    %c0_6 = arith.constant 0 : index
    %c0_7 = arith.constant 0 : index
    %7 = vector.load %arg1[%c1, %c0_6, %c0_7] : memref<4x256x32xbf16, #tpu.memory_space<vmem>>, vector<1x256x32xbf16>
    %8 = vector.shape_cast %7 : vector<1x256x32xbf16> to vector<256x32xbf16>
    %cst_8 = arith.constant dense<0.000000e+00> : vector<256x64xf32>
    %9 = tpu.matmul %8, %0, %cst_8 {dimension_numbers = #tpu.dot_dimension_numbers<[1], [0], [0], [1], [0, 0, 1, 1], [], []>} : vector<256x32xbf16>, vector<32x64xbf16>, vector<256x64xf32> -> vector<256x64xf32>
    %10 = vector.broadcast %1 : vector<1x64xf32> to vector<256x64xf32>
    %11 = arith.addf %9, %10 : vector<256x64xf32>
    %c2 = arith.constant 2 : index
    %c0_9 = arith.constant 0 : index
    %c0_10 = arith.constant 0 : index
    %12 = vector.load %arg1[%c2, %c0_9, %c0_10] : memref<4x256x32xbf16, #tpu.memory_space<vmem>>, vector<1x256x32xbf16>
    %13 = vector.shape_cast %12 : vector<1x256x32xbf16> to vector<256x32xbf16>
    %cst_11 = arith.constant dense<0.000000e+00> : vector<256x64xf32>
    %14 = tpu.matmul %13, %0, %cst_11 {dimension_numbers = #tpu.dot_dimension_numbers<[1], [0], [0], [1], [0, 0, 1, 1], [], []>} : vector<256x32xbf16>, vector<32x64xbf16>, vector<256x64xf32> -> vector<256x64xf32>
    %15 = vector.broadcast %1 : vector<1x64xf32> to vector<256x64xf32>
    %16 = arith.addf %14, %15 : vector<256x64xf32>
    %c3 = arith.constant 3 : index
    %c0_12 = arith.constant 0 : index
    %c0_13 = arith.constant 0 : index
    %17 = vector.load %arg1[%c3, %c0_12, %c0_13] : memref<4x256x32xbf16, #tpu.memory_space<vmem>>, vector<1x256x32xbf16>
    %18 = vector.shape_cast %17 : vector<1x256x32xbf16> to vector<256x32xbf16>
    %cst_14 = arith.constant dense<0.000000e+00> : vector<256x64xf32>
    %19 = tpu.matmul %18, %0, %cst_14 {dimension_numbers = #tpu.dot_dimension_numbers<[1], [0], [0], [1], [0, 0, 1, 1], [], []>} : vector<256x32xbf16>, vector<32x64xbf16>, vector<256x64xf32> -> vector<256x64xf32>
    %20 = vector.broadcast %1 : vector<1x64xf32> to vector<256x64xf32>
    %21 = arith.addf %19, %20 : vector<256x64xf32>
    %cst_15 = arith.constant dense<0.000000e+00> : vector<64xf32>
    %22 = vector.multi_reduction <add>, %6, %cst_15 [0] : vector<256x64xf32> to vector<64xf32>
    %23 = vector.shape_cast %22 : vector<64xf32> to vector<1x64xf32>
    %cst_16 = arith.constant dense<0.000000e+00> : vector<64xf32>
    %24 = vector.multi_reduction <add>, %11, %cst_16 [0] : vector<256x64xf32> to vector<64xf32>
    %25 = vector.shape_cast %24 : vector<64xf32> to vector<1x64xf32>
    %26 = arith.addf %23, %25 : vector<1x64xf32>
    %cst_17 = arith.constant dense<0.000000e+00> : vector<64xf32>
    %27 = vector.multi_reduction <add>, %16, %cst_17 [0] : vector<256x64xf32> to vector<64xf32>
    %28 = vector.shape_cast %27 : vector<64xf32> to vector<1x64xf32>
    %29 = arith.addf %26, %28 : vector<1x64xf32>
    %cst_18 = arith.constant dense<0.000000e+00> : vector<64xf32>
    %30 = vector.multi_reduction <add>, %21, %cst_18 [0] : vector<256x64xf32> to vector<64xf32>
    %31 = vector.shape_cast %30 : vector<64xf32> to vector<1x64xf32>
    %32 = arith.addf %29, %31 : vector<1x64xf32>
    %33 = arith.mulf %6, %6 : vector<256x64xf32>
    %cst_19 = arith.constant dense<0.000000e+00> : vector<64xf32>
    %34 = vector.multi_reduction <add>, %33, %cst_19 [0] : vector<256x64xf32> to vector<64xf32>
    %35 = vector.shape_cast %34 : vector<64xf32> to vector<1x64xf32>
    %36 = arith.mulf %11, %11 : vector<256x64xf32>
    %cst_20 = arith.constant dense<0.000000e+00> : vector<64xf32>
    %37 = vector.multi_reduction <add>, %36, %cst_20 [0] : vector<256x64xf32> to vector<64xf32>
    %38 = vector.shape_cast %37 : vector<64xf32> to vector<1x64xf32>
    %39 = arith.addf %35, %38 : vector<1x64xf32>
    %40 = arith.mulf %16, %16 : vector<256x64xf32>
    %cst_21 = arith.constant dense<0.000000e+00> : vector<64xf32>
    %41 = vector.multi_reduction <add>, %40, %cst_21 [0] : vector<256x64xf32> to vector<64xf32>
    %42 = vector.shape_cast %41 : vector<64xf32> to vector<1x64xf32>
    %43 = arith.addf %39, %42 : vector<1x64xf32>
    %44 = arith.mulf %21, %21 : vector<256x64xf32>
    %cst_22 = arith.constant dense<0.000000e+00> : vector<64xf32>
    %45 = vector.multi_reduction <add>, %44, %cst_22 [0] : vector<256x64xf32> to vector<64xf32>
    %46 = vector.shape_cast %45 : vector<64xf32> to vector<1x64xf32>
    %47 = arith.addf %43, %46 : vector<1x64xf32>
    %cst_23 = arith.constant 9.765625E-4 : f32
    %48 = vector.broadcast %cst_23 : f32 to vector<1x64xf32>
    %49 = arith.mulf %32, %48 : vector<1x64xf32>
    %cst_24 = arith.constant 9.765625E-4 : f32
    %50 = vector.broadcast %cst_24 : f32 to vector<1x64xf32>
    %51 = arith.mulf %47, %50 : vector<1x64xf32>
    %52 = arith.mulf %49, %49 : vector<1x64xf32>
    %53 = arith.subf %51, %52 : vector<1x64xf32>
    %c0_25 = arith.constant 0 : index
    %c0_26 = arith.constant 0 : index
    %54 = vector.load %arg4[%c0_25, %c0_26] : memref<1x64xf32, #tpu.memory_space<vmem>>, vector<1x64xf32>
    %cst_27 = arith.constant 9.99999974E-6 : f32
    %55 = vector.broadcast %cst_27 : f32 to vector<1x64xf32>
    %56 = arith.addf %53, %55 : vector<1x64xf32>
    %57 = math.rsqrt %56 : vector<1x64xf32>
    %58 = arith.mulf %54, %57 : vector<1x64xf32>
    %c0_28 = arith.constant 0 : index
    %c0_29 = arith.constant 0 : index
    %59 = vector.load %arg5[%c0_28, %c0_29] : memref<1x64xf32, #tpu.memory_space<vmem>>, vector<1x64xf32>
    %60 = arith.mulf %49, %58 : vector<1x64xf32>
    %61 = arith.subf %59, %60 : vector<1x64xf32>
    %62 = vector.broadcast %58 : vector<1x64xf32> to vector<256x64xf32>
    %63 = arith.mulf %6, %62 : vector<256x64xf32>
    %64 = vector.broadcast %61 : vector<1x64xf32> to vector<256x64xf32>
    %65 = arith.addf %63, %64 : vector<256x64xf32>
    %cst_30 = arith.constant 0.000000e+00 : f32
    %66 = vector.broadcast %cst_30 : f32 to vector<256x64xf32>
    %67 = arith.maximumf %65, %66 : vector<256x64xf32>
    %68 = vector.broadcast %58 : vector<1x64xf32> to vector<256x64xf32>
    %69 = arith.mulf %11, %68 : vector<256x64xf32>
    %70 = vector.broadcast %61 : vector<1x64xf32> to vector<256x64xf32>
    %71 = arith.addf %69, %70 : vector<256x64xf32>
    %cst_31 = arith.constant 0.000000e+00 : f32
    %72 = vector.broadcast %cst_31 : f32 to vector<256x64xf32>
    %73 = arith.maximumf %71, %72 : vector<256x64xf32>
    %74 = vector.broadcast %58 : vector<1x64xf32> to vector<256x64xf32>
    %75 = arith.mulf %16, %74 : vector<256x64xf32>
    %76 = vector.broadcast %61 : vector<1x64xf32> to vector<256x64xf32>
    %77 = arith.addf %75, %76 : vector<256x64xf32>
    %cst_32 = arith.constant 0.000000e+00 : f32
    %78 = vector.broadcast %cst_32 : f32 to vector<256x64xf32>
    %79 = arith.maximumf %77, %78 : vector<256x64xf32>
    %80 = vector.broadcast %58 : vector<1x64xf32> to vector<256x64xf32>
    %81 = arith.mulf %21, %80 : vector<256x64xf32>
    %82 = vector.broadcast %61 : vector<1x64xf32> to vector<256x64xf32>
    %83 = arith.addf %81, %82 : vector<256x64xf32>
    %cst_33 = arith.constant 0.000000e+00 : f32
    %84 = vector.broadcast %cst_33 : f32 to vector<256x64xf32>
    %85 = arith.maximumf %83, %84 : vector<256x64xf32>
    %86 = arith.maximumf %67, %73 : vector<256x64xf32>
    %87 = arith.maximumf %79, %85 : vector<256x64xf32>
    %88 = arith.maximumf %86, %87 : vector<256x64xf32>
    %c0_34 = arith.constant 0 : index
    %c0_35 = arith.constant 0 : index
    %89 = vector.load %arg6[%c0_34, %c0_35] : memref<256x64xf32, #tpu.memory_space<vmem>>, vector<256x64xf32>
    tpu.vector_store %arg6[%c0_34, %c0_35], %88 {strides = array<i32>} : memref<256x64xf32, #tpu.memory_space<vmem>>, vector<256x64xf32>,
    return
  }
  func.func @transform_0(%arg0: i32) -> (i32, i32, i32) {
    %c0_i32 = arith.constant 0 : i32
    %c0_i32_0 = arith.constant 0 : i32
    %c0_i32_1 = arith.constant 0 : i32
    %c0_i32_2 = arith.constant 0 : i32
    return %c0_i32, %c0_i32_0, %c0_i32_1 : i32, i32, i32
  }
  func.func @transform_1(%arg0: i32) -> (i32, i32) {
    %c0_i32 = arith.constant 0 : i32
    %c0_i32_0 = arith.constant 0 : i32
    %c0_i32_1 = arith.constant 0 : i32
    return %c0_i32, %c0_i32_0 : i32, i32
  }
  func.func @transform_2(%arg0: i32) -> (i32, i32) {
    %c0_i32 = arith.constant 0 : i32
    %c0_i32_0 = arith.constant 0 : i32
    %c0_i32_1 = arith.constant 0 : i32
    return %c0_i32, %c0_i32_0 : i32, i32
  }
  func.func @transform_3(%arg0: i32) -> (i32, i32) {
    %c0_i32 = arith.constant 0 : i32
    %c0_i32_0 = arith.constant 0 : i32
    %c0_i32_1 = arith.constant 0 : i32
    return %c0_i32, %c0_i32_0 : i32, i32
  }
  func.func @transform_4(%arg0: i32) -> (i32, i32) {
    %c0_i32 = arith.constant 0 : i32
    %c0_i32_0 = arith.constant 0 : i32
    %c0_i32_1 = arith.constant 0 : i32
    return %c0_i32, %c0_i32_0 : i32, i32
  }
  func.func @transform_5(%arg0: i32) -> (i32, i32) {
    %c0_i32 = arith.constant 0 : i32
    %c0_i32_0 = arith.constant 0 : i32
    %c0_i32_1 = arith.constant 0 : i32
    return %c0_i32, %c0_i32_0 : i32, i32
  }
}

module attributes {stable_mosaic.version = 11 : i64} {
  func.func @_fused_conv_block_kernel(%arg0: i32, %arg1: memref<4x64x576xbf16, #tpu.memory_space<vmem>>, %arg2: memref<576x64xbf16, #tpu.memory_space<vmem>>, %arg3: memref<1x64xf32, #tpu.memory_space<vmem>>, %arg4: memref<1x64xf32, #tpu.memory_space<vmem>>, %arg5: memref<1x64xf32, #tpu.memory_space<vmem>>, %arg6: memref<64x64xf32, #tpu.memory_space<vmem>>) attributes {dimension_semantics = [#tpu.dimension_semantics<arbitrary>], iteration_bounds = array<i64: 1>, scalar_prefetch = 0 : i64, scratch_operands = 0 : i64, tpu.core_type = #tpu.core_type<tc>, window_params = [{pipeline_mode = #tpu.pipeline_mode<synchronous>, transform_indices = @transform_0, window_bounds = array<i64: 4, 64, 576>}, {pipeline_mode = #tpu.pipeline_mode<synchronous>, transform_indices = @transform_1, window_bounds = array<i64: 576, 64>}, {pipeline_mode = #tpu.pipeline_mode<synchronous>, transform_indices = @transform_2, window_bounds = array<i64: 1, 64>}, {pipeline_mode = #tpu.pipeline_mode<synchronous>, transform_indices = @transform_3, window_bounds = array<i64: 1, 64>}, {pipeline_mode = #tpu.pipeline_mode<synchronous>, transform_indices = @transform_4, window_bounds = array<i64: 1, 64>}, {pipeline_mode = #tpu.pipeline_mode<synchronous>, transform_indices = @transform_5, window_bounds = array<i64: 64, 64>}]} {
    %c0 = arith.constant 0 : index
    %c0_0 = arith.constant 0 : index
    %0 = vector.load %arg2[%c0, %c0_0] : memref<576x64xbf16, #tpu.memory_space<vmem>>, vector<576x64xbf16>
    %c0_1 = arith.constant 0 : index
    %c0_2 = arith.constant 0 : index
    %1 = vector.load %arg3[%c0_1, %c0_2] : memref<1x64xf32, #tpu.memory_space<vmem>>, vector<1x64xf32>
    %c0_3 = arith.constant 0 : index
    %c0_4 = arith.constant 0 : index
    %c0_5 = arith.constant 0 : index
    %2 = vector.load %arg1[%c0_3, %c0_4, %c0_5] : memref<4x64x576xbf16, #tpu.memory_space<vmem>>, vector<1x64x576xbf16>
    %3 = vector.shape_cast %2 : vector<1x64x576xbf16> to vector<64x576xbf16>
    %cst = arith.constant dense<0.000000e+00> : vector<64x64xf32>
    %4 = tpu.matmul %3, %0, %cst {dimension_numbers = #tpu.dot_dimension_numbers<[1], [0], [0], [1], [0, 0, 1, 1], [], []>} : vector<64x576xbf16>, vector<576x64xbf16>, vector<64x64xf32> -> vector<64x64xf32>
    %5 = vector.broadcast %1 : vector<1x64xf32> to vector<64x64xf32>
    %6 = arith.addf %4, %5 : vector<64x64xf32>
    %c1 = arith.constant 1 : index
    %c0_6 = arith.constant 0 : index
    %c0_7 = arith.constant 0 : index
    %7 = vector.load %arg1[%c1, %c0_6, %c0_7] : memref<4x64x576xbf16, #tpu.memory_space<vmem>>, vector<1x64x576xbf16>
    %8 = vector.shape_cast %7 : vector<1x64x576xbf16> to vector<64x576xbf16>
    %cst_8 = arith.constant dense<0.000000e+00> : vector<64x64xf32>
    %9 = tpu.matmul %8, %0, %cst_8 {dimension_numbers = #tpu.dot_dimension_numbers<[1], [0], [0], [1], [0, 0, 1, 1], [], []>} : vector<64x576xbf16>, vector<576x64xbf16>, vector<64x64xf32> -> vector<64x64xf32>
    %10 = vector.broadcast %1 : vector<1x64xf32> to vector<64x64xf32>
    %11 = arith.addf %9, %10 : vector<64x64xf32>
    %c2 = arith.constant 2 : index
    %c0_9 = arith.constant 0 : index
    %c0_10 = arith.constant 0 : index
    %12 = vector.load %arg1[%c2, %c0_9, %c0_10] : memref<4x64x576xbf16, #tpu.memory_space<vmem>>, vector<1x64x576xbf16>
    %13 = vector.shape_cast %12 : vector<1x64x576xbf16> to vector<64x576xbf16>
    %cst_11 = arith.constant dense<0.000000e+00> : vector<64x64xf32>
    %14 = tpu.matmul %13, %0, %cst_11 {dimension_numbers = #tpu.dot_dimension_numbers<[1], [0], [0], [1], [0, 0, 1, 1], [], []>} : vector<64x576xbf16>, vector<576x64xbf16>, vector<64x64xf32> -> vector<64x64xf32>
    %15 = vector.broadcast %1 : vector<1x64xf32> to vector<64x64xf32>
    %16 = arith.addf %14, %15 : vector<64x64xf32>
    %c3 = arith.constant 3 : index
    %c0_12 = arith.constant 0 : index
    %c0_13 = arith.constant 0 : index
    %17 = vector.load %arg1[%c3, %c0_12, %c0_13] : memref<4x64x576xbf16, #tpu.memory_space<vmem>>, vector<1x64x576xbf16>
    %18 = vector.shape_cast %17 : vector<1x64x576xbf16> to vector<64x576xbf16>
    %cst_14 = arith.constant dense<0.000000e+00> : vector<64x64xf32>
    %19 = tpu.matmul %18, %0, %cst_14 {dimension_numbers = #tpu.dot_dimension_numbers<[1], [0], [0], [1], [0, 0, 1, 1], [], []>} : vector<64x576xbf16>, vector<576x64xbf16>, vector<64x64xf32> -> vector<64x64xf32>
    %20 = vector.broadcast %1 : vector<1x64xf32> to vector<64x64xf32>
    %21 = arith.addf %19, %20 : vector<64x64xf32>
    %cst_15 = arith.constant dense<0.000000e+00> : vector<64xf32>
    %22 = vector.multi_reduction <add>, %6, %cst_15 [0] : vector<64x64xf32> to vector<64xf32>
    %23 = vector.shape_cast %22 : vector<64xf32> to vector<1x64xf32>
    %cst_16 = arith.constant dense<0.000000e+00> : vector<64xf32>
    %24 = vector.multi_reduction <add>, %11, %cst_16 [0] : vector<64x64xf32> to vector<64xf32>
    %25 = vector.shape_cast %24 : vector<64xf32> to vector<1x64xf32>
    %26 = arith.addf %23, %25 : vector<1x64xf32>
    %cst_17 = arith.constant dense<0.000000e+00> : vector<64xf32>
    %27 = vector.multi_reduction <add>, %16, %cst_17 [0] : vector<64x64xf32> to vector<64xf32>
    %28 = vector.shape_cast %27 : vector<64xf32> to vector<1x64xf32>
    %29 = arith.addf %26, %28 : vector<1x64xf32>
    %cst_18 = arith.constant dense<0.000000e+00> : vector<64xf32>
    %30 = vector.multi_reduction <add>, %21, %cst_18 [0] : vector<64x64xf32> to vector<64xf32>
    %31 = vector.shape_cast %30 : vector<64xf32> to vector<1x64xf32>
    %32 = arith.addf %29, %31 : vector<1x64xf32>
    %33 = arith.mulf %6, %6 : vector<64x64xf32>
    %cst_19 = arith.constant dense<0.000000e+00> : vector<64xf32>
    %34 = vector.multi_reduction <add>, %33, %cst_19 [0] : vector<64x64xf32> to vector<64xf32>
    %35 = vector.shape_cast %34 : vector<64xf32> to vector<1x64xf32>
    %36 = arith.mulf %11, %11 : vector<64x64xf32>
    %cst_20 = arith.constant dense<0.000000e+00> : vector<64xf32>
    %37 = vector.multi_reduction <add>, %36, %cst_20 [0] : vector<64x64xf32> to vector<64xf32>
    %38 = vector.shape_cast %37 : vector<64xf32> to vector<1x64xf32>
    %39 = arith.addf %35, %38 : vector<1x64xf32>
    %40 = arith.mulf %16, %16 : vector<64x64xf32>
    %cst_21 = arith.constant dense<0.000000e+00> : vector<64xf32>
    %41 = vector.multi_reduction <add>, %40, %cst_21 [0] : vector<64x64xf32> to vector<64xf32>
    %42 = vector.shape_cast %41 : vector<64xf32> to vector<1x64xf32>
    %43 = arith.addf %39, %42 : vector<1x64xf32>
    %44 = arith.mulf %21, %21 : vector<64x64xf32>
    %cst_22 = arith.constant dense<0.000000e+00> : vector<64xf32>
    %45 = vector.multi_reduction <add>, %44, %cst_22 [0] : vector<64x64xf32> to vector<64xf32>
    %46 = vector.shape_cast %45 : vector<64xf32> to vector<1x64xf32>
    %47 = arith.addf %43, %46 : vector<1x64xf32>
    %cst_23 = arith.constant 3.906250e-03 : f32
    %48 = vector.broadcast %cst_23 : f32 to vector<1x64xf32>
    %49 = arith.mulf %32, %48 : vector<1x64xf32>
    %cst_24 = arith.constant 3.906250e-03 : f32
    %50 = vector.broadcast %cst_24 : f32 to vector<1x64xf32>
    %51 = arith.mulf %47, %50 : vector<1x64xf32>
    %52 = arith.mulf %49, %49 : vector<1x64xf32>
    %53 = arith.subf %51, %52 : vector<1x64xf32>
    %c0_25 = arith.constant 0 : index
    %c0_26 = arith.constant 0 : index
    %54 = vector.load %arg4[%c0_25, %c0_26] : memref<1x64xf32, #tpu.memory_space<vmem>>, vector<1x64xf32>
    %cst_27 = arith.constant 9.99999974E-6 : f32
    %55 = vector.broadcast %cst_27 : f32 to vector<1x64xf32>
    %56 = arith.addf %53, %55 : vector<1x64xf32>
    %57 = math.rsqrt %56 : vector<1x64xf32>
    %58 = arith.mulf %54, %57 : vector<1x64xf32>
    %c0_28 = arith.constant 0 : index
    %c0_29 = arith.constant 0 : index
    %59 = vector.load %arg5[%c0_28, %c0_29] : memref<1x64xf32, #tpu.memory_space<vmem>>, vector<1x64xf32>
    %60 = arith.mulf %49, %58 : vector<1x64xf32>
    %61 = arith.subf %59, %60 : vector<1x64xf32>
    %62 = vector.broadcast %58 : vector<1x64xf32> to vector<64x64xf32>
    %63 = arith.mulf %6, %62 : vector<64x64xf32>
    %64 = vector.broadcast %61 : vector<1x64xf32> to vector<64x64xf32>
    %65 = arith.addf %63, %64 : vector<64x64xf32>
    %cst_30 = arith.constant 0.000000e+00 : f32
    %66 = vector.broadcast %cst_30 : f32 to vector<64x64xf32>
    %67 = arith.maximumf %65, %66 : vector<64x64xf32>
    %68 = vector.broadcast %58 : vector<1x64xf32> to vector<64x64xf32>
    %69 = arith.mulf %11, %68 : vector<64x64xf32>
    %70 = vector.broadcast %61 : vector<1x64xf32> to vector<64x64xf32>
    %71 = arith.addf %69, %70 : vector<64x64xf32>
    %cst_31 = arith.constant 0.000000e+00 : f32
    %72 = vector.broadcast %cst_31 : f32 to vector<64x64xf32>
    %73 = arith.maximumf %71, %72 : vector<64x64xf32>
    %74 = vector.broadcast %58 : vector<1x64xf32> to vector<64x64xf32>
    %75 = arith.mulf %16, %74 : vector<64x64xf32>
    %76 = vector.broadcast %61 : vector<1x64xf32> to vector<64x64xf32>
    %77 = arith.addf %75, %76 : vector<64x64xf32>
    %cst_32 = arith.constant 0.000000e+00 : f32
    %78 = vector.broadcast %cst_32 : f32 to vector<64x64xf32>
    %79 = arith.maximumf %77, %78 : vector<64x64xf32>
    %80 = vector.broadcast %58 : vector<1x64xf32> to vector<64x64xf32>
    %81 = arith.mulf %21, %80 : vector<64x64xf32>
    %82 = vector.broadcast %61 : vector<1x64xf32> to vector<64x64xf32>
    %83 = arith.addf %81, %82 : vector<64x64xf32>
    %cst_33 = arith.constant 0.000000e+00 : f32
    %84 = vector.broadcast %cst_33 : f32 to vector<64x64xf32>
    %85 = arith.maximumf %83, %84 : vector<64x64xf32>
    %86 = arith.maximumf %67, %73 : vector<64x64xf32>
    %87 = arith.maximumf %79, %85 : vector<64x64xf32>
    %88 = arith.maximumf %86, %87 : vector<64x64xf32>
    %c0_34 = arith.constant 0 : index
    %c0_35 = arith.constant 0 : index
    %89 = vector.load %arg6[%c0_34, %c0_35] : memref<64x64xf32, #tpu.memory_space<vmem>>, vector<64x64xf32>
    tpu.vector_store %arg6[%c0_34, %c0_35], %88 {strides = array<i32>} : memref<64x64xf32, #tpu.memory_space<vmem>>, vector<64x64xf32>,
    return
  }
  func.func @transform_0(%arg0: i32) -> (i32, i32, i32) {
    %c0_i32 = arith.constant 0 : i32
    %c0_i32_0 = arith.constant 0 : i32
    %c0_i32_1 = arith.constant 0 : i32
    %c0_i32_2 = arith.constant 0 : i32
    return %c0_i32, %c0_i32_0, %c0_i32_1 : i32, i32, i32
  }
  func.func @transform_1(%arg0: i32) -> (i32, i32) {
    %c0_i32 = arith.constant 0 : i32
    %c0_i32_0 = arith.constant 0 : i32
    %c0_i32_1 = arith.constant 0 : i32
    return %c0_i32, %c0_i32_0 : i32, i32
  }
  func.func @transform_2(%arg0: i32) -> (i32, i32) {
    %c0_i32 = arith.constant 0 : i32
    %c0_i32_0 = arith.constant 0 : i32
    %c0_i32_1 = arith.constant 0 : i32
    return %c0_i32, %c0_i32_0 : i32, i32
  }
  func.func @transform_3(%arg0: i32) -> (i32, i32) {
    %c0_i32 = arith.constant 0 : i32
    %c0_i32_0 = arith.constant 0 : i32
    %c0_i32_1 = arith.constant 0 : i32
    return %c0_i32, %c0_i32_0 : i32, i32
  }
  func.func @transform_4(%arg0: i32) -> (i32, i32) {
    %c0_i32 = arith.constant 0 : i32
    %c0_i32_0 = arith.constant 0 : i32
    %c0_i32_1 = arith.constant 0 : i32
    return %c0_i32, %c0_i32_0 : i32, i32
  }
  func.func @transform_5(%arg0: i32) -> (i32, i32) {
    %c0_i32 = arith.constant 0 : i32
    %c0_i32_0 = arith.constant 0 : i32
    %c0_i32_1 = arith.constant 0 : i32
    return %c0_i32, %c0_i32_0 : i32, i32
  }
}

module attributes {stable_mosaic.version = 11 : i64} {
  func.func @_fused_conv_block_kernel(%arg0: i32, %arg1: memref<4x16x576xbf16, #tpu.memory_space<vmem>>, %arg2: memref<576x64xbf16, #tpu.memory_space<vmem>>, %arg3: memref<1x64xf32, #tpu.memory_space<vmem>>, %arg4: memref<1x64xf32, #tpu.memory_space<vmem>>, %arg5: memref<1x64xf32, #tpu.memory_space<vmem>>, %arg6: memref<16x64xf32, #tpu.memory_space<vmem>>) attributes {dimension_semantics = [#tpu.dimension_semantics<arbitrary>], iteration_bounds = array<i64: 1>, scalar_prefetch = 0 : i64, scratch_operands = 0 : i64, tpu.core_type = #tpu.core_type<tc>, window_params = [{pipeline_mode = #tpu.pipeline_mode<synchronous>, transform_indices = @transform_0, window_bounds = array<i64: 4, 16, 576>}, {pipeline_mode = #tpu.pipeline_mode<synchronous>, transform_indices = @transform_1, window_bounds = array<i64: 576, 64>}, {pipeline_mode = #tpu.pipeline_mode<synchronous>, transform_indices = @transform_2, window_bounds = array<i64: 1, 64>}, {pipeline_mode = #tpu.pipeline_mode<synchronous>, transform_indices = @transform_3, window_bounds = array<i64: 1, 64>}, {pipeline_mode = #tpu.pipeline_mode<synchronous>, transform_indices = @transform_4, window_bounds = array<i64: 1, 64>}, {pipeline_mode = #tpu.pipeline_mode<synchronous>, transform_indices = @transform_5, window_bounds = array<i64: 16, 64>}]} {
    %c0 = arith.constant 0 : index
    %c0_0 = arith.constant 0 : index
    %0 = vector.load %arg2[%c0, %c0_0] : memref<576x64xbf16, #tpu.memory_space<vmem>>, vector<576x64xbf16>
    %c0_1 = arith.constant 0 : index
    %c0_2 = arith.constant 0 : index
    %1 = vector.load %arg3[%c0_1, %c0_2] : memref<1x64xf32, #tpu.memory_space<vmem>>, vector<1x64xf32>
    %c0_3 = arith.constant 0 : index
    %c0_4 = arith.constant 0 : index
    %c0_5 = arith.constant 0 : index
    %2 = vector.load %arg1[%c0_3, %c0_4, %c0_5] : memref<4x16x576xbf16, #tpu.memory_space<vmem>>, vector<1x16x576xbf16>
    %3 = vector.shape_cast %2 : vector<1x16x576xbf16> to vector<16x576xbf16>
    %cst = arith.constant dense<0.000000e+00> : vector<16x64xf32>
    %4 = tpu.matmul %3, %0, %cst {dimension_numbers = #tpu.dot_dimension_numbers<[1], [0], [0], [1], [0, 0, 1, 1], [], []>} : vector<16x576xbf16>, vector<576x64xbf16>, vector<16x64xf32> -> vector<16x64xf32>
    %5 = vector.broadcast %1 : vector<1x64xf32> to vector<16x64xf32>
    %6 = arith.addf %4, %5 : vector<16x64xf32>
    %c1 = arith.constant 1 : index
    %c0_6 = arith.constant 0 : index
    %c0_7 = arith.constant 0 : index
    %7 = vector.load %arg1[%c1, %c0_6, %c0_7] : memref<4x16x576xbf16, #tpu.memory_space<vmem>>, vector<1x16x576xbf16>
    %8 = vector.shape_cast %7 : vector<1x16x576xbf16> to vector<16x576xbf16>
    %cst_8 = arith.constant dense<0.000000e+00> : vector<16x64xf32>
    %9 = tpu.matmul %8, %0, %cst_8 {dimension_numbers = #tpu.dot_dimension_numbers<[1], [0], [0], [1], [0, 0, 1, 1], [], []>} : vector<16x576xbf16>, vector<576x64xbf16>, vector<16x64xf32> -> vector<16x64xf32>
    %10 = vector.broadcast %1 : vector<1x64xf32> to vector<16x64xf32>
    %11 = arith.addf %9, %10 : vector<16x64xf32>
    %c2 = arith.constant 2 : index
    %c0_9 = arith.constant 0 : index
    %c0_10 = arith.constant 0 : index
    %12 = vector.load %arg1[%c2, %c0_9, %c0_10] : memref<4x16x576xbf16, #tpu.memory_space<vmem>>, vector<1x16x576xbf16>
    %13 = vector.shape_cast %12 : vector<1x16x576xbf16> to vector<16x576xbf16>
    %cst_11 = arith.constant dense<0.000000e+00> : vector<16x64xf32>
    %14 = tpu.matmul %13, %0, %cst_11 {dimension_numbers = #tpu.dot_dimension_numbers<[1], [0], [0], [1], [0, 0, 1, 1], [], []>} : vector<16x576xbf16>, vector<576x64xbf16>, vector<16x64xf32> -> vector<16x64xf32>
    %15 = vector.broadcast %1 : vector<1x64xf32> to vector<16x64xf32>
    %16 = arith.addf %14, %15 : vector<16x64xf32>
    %c3 = arith.constant 3 : index
    %c0_12 = arith.constant 0 : index
    %c0_13 = arith.constant 0 : index
    %17 = vector.load %arg1[%c3, %c0_12, %c0_13] : memref<4x16x576xbf16, #tpu.memory_space<vmem>>, vector<1x16x576xbf16>
    %18 = vector.shape_cast %17 : vector<1x16x576xbf16> to vector<16x576xbf16>
    %cst_14 = arith.constant dense<0.000000e+00> : vector<16x64xf32>
    %19 = tpu.matmul %18, %0, %cst_14 {dimension_numbers = #tpu.dot_dimension_numbers<[1], [0], [0], [1], [0, 0, 1, 1], [], []>} : vector<16x576xbf16>, vector<576x64xbf16>, vector<16x64xf32> -> vector<16x64xf32>
    %20 = vector.broadcast %1 : vector<1x64xf32> to vector<16x64xf32>
    %21 = arith.addf %19, %20 : vector<16x64xf32>
    %cst_15 = arith.constant dense<0.000000e+00> : vector<64xf32>
    %22 = vector.multi_reduction <add>, %6, %cst_15 [0] : vector<16x64xf32> to vector<64xf32>
    %23 = vector.shape_cast %22 : vector<64xf32> to vector<1x64xf32>
    %cst_16 = arith.constant dense<0.000000e+00> : vector<64xf32>
    %24 = vector.multi_reduction <add>, %11, %cst_16 [0] : vector<16x64xf32> to vector<64xf32>
    %25 = vector.shape_cast %24 : vector<64xf32> to vector<1x64xf32>
    %26 = arith.addf %23, %25 : vector<1x64xf32>
    %cst_17 = arith.constant dense<0.000000e+00> : vector<64xf32>
    %27 = vector.multi_reduction <add>, %16, %cst_17 [0] : vector<16x64xf32> to vector<64xf32>
    %28 = vector.shape_cast %27 : vector<64xf32> to vector<1x64xf32>
    %29 = arith.addf %26, %28 : vector<1x64xf32>
    %cst_18 = arith.constant dense<0.000000e+00> : vector<64xf32>
    %30 = vector.multi_reduction <add>, %21, %cst_18 [0] : vector<16x64xf32> to vector<64xf32>
    %31 = vector.shape_cast %30 : vector<64xf32> to vector<1x64xf32>
    %32 = arith.addf %29, %31 : vector<1x64xf32>
    %33 = arith.mulf %6, %6 : vector<16x64xf32>
    %cst_19 = arith.constant dense<0.000000e+00> : vector<64xf32>
    %34 = vector.multi_reduction <add>, %33, %cst_19 [0] : vector<16x64xf32> to vector<64xf32>
    %35 = vector.shape_cast %34 : vector<64xf32> to vector<1x64xf32>
    %36 = arith.mulf %11, %11 : vector<16x64xf32>
    %cst_20 = arith.constant dense<0.000000e+00> : vector<64xf32>
    %37 = vector.multi_reduction <add>, %36, %cst_20 [0] : vector<16x64xf32> to vector<64xf32>
    %38 = vector.shape_cast %37 : vector<64xf32> to vector<1x64xf32>
    %39 = arith.addf %35, %38 : vector<1x64xf32>
    %40 = arith.mulf %16, %16 : vector<16x64xf32>
    %cst_21 = arith.constant dense<0.000000e+00> : vector<64xf32>
    %41 = vector.multi_reduction <add>, %40, %cst_21 [0] : vector<16x64xf32> to vector<64xf32>
    %42 = vector.shape_cast %41 : vector<64xf32> to vector<1x64xf32>
    %43 = arith.addf %39, %42 : vector<1x64xf32>
    %44 = arith.mulf %21, %21 : vector<16x64xf32>
    %cst_22 = arith.constant dense<0.000000e+00> : vector<64xf32>
    %45 = vector.multi_reduction <add>, %44, %cst_22 [0] : vector<16x64xf32> to vector<64xf32>
    %46 = vector.shape_cast %45 : vector<64xf32> to vector<1x64xf32>
    %47 = arith.addf %43, %46 : vector<1x64xf32>
    %cst_23 = arith.constant 1.562500e-02 : f32
    %48 = vector.broadcast %cst_23 : f32 to vector<1x64xf32>
    %49 = arith.mulf %32, %48 : vector<1x64xf32>
    %cst_24 = arith.constant 1.562500e-02 : f32
    %50 = vector.broadcast %cst_24 : f32 to vector<1x64xf32>
    %51 = arith.mulf %47, %50 : vector<1x64xf32>
    %52 = arith.mulf %49, %49 : vector<1x64xf32>
    %53 = arith.subf %51, %52 : vector<1x64xf32>
    %c0_25 = arith.constant 0 : index
    %c0_26 = arith.constant 0 : index
    %54 = vector.load %arg4[%c0_25, %c0_26] : memref<1x64xf32, #tpu.memory_space<vmem>>, vector<1x64xf32>
    %cst_27 = arith.constant 9.99999974E-6 : f32
    %55 = vector.broadcast %cst_27 : f32 to vector<1x64xf32>
    %56 = arith.addf %53, %55 : vector<1x64xf32>
    %57 = math.rsqrt %56 : vector<1x64xf32>
    %58 = arith.mulf %54, %57 : vector<1x64xf32>
    %c0_28 = arith.constant 0 : index
    %c0_29 = arith.constant 0 : index
    %59 = vector.load %arg5[%c0_28, %c0_29] : memref<1x64xf32, #tpu.memory_space<vmem>>, vector<1x64xf32>
    %60 = arith.mulf %49, %58 : vector<1x64xf32>
    %61 = arith.subf %59, %60 : vector<1x64xf32>
    %62 = vector.broadcast %58 : vector<1x64xf32> to vector<16x64xf32>
    %63 = arith.mulf %6, %62 : vector<16x64xf32>
    %64 = vector.broadcast %61 : vector<1x64xf32> to vector<16x64xf32>
    %65 = arith.addf %63, %64 : vector<16x64xf32>
    %cst_30 = arith.constant 0.000000e+00 : f32
    %66 = vector.broadcast %cst_30 : f32 to vector<16x64xf32>
    %67 = arith.maximumf %65, %66 : vector<16x64xf32>
    %68 = vector.broadcast %58 : vector<1x64xf32> to vector<16x64xf32>
    %69 = arith.mulf %11, %68 : vector<16x64xf32>
    %70 = vector.broadcast %61 : vector<1x64xf32> to vector<16x64xf32>
    %71 = arith.addf %69, %70 : vector<16x64xf32>
    %cst_31 = arith.constant 0.000000e+00 : f32
    %72 = vector.broadcast %cst_31 : f32 to vector<16x64xf32>
    %73 = arith.maximumf %71, %72 : vector<16x64xf32>
    %74 = vector.broadcast %58 : vector<1x64xf32> to vector<16x64xf32>
    %75 = arith.mulf %16, %74 : vector<16x64xf32>
    %76 = vector.broadcast %61 : vector<1x64xf32> to vector<16x64xf32>
    %77 = arith.addf %75, %76 : vector<16x64xf32>
    %cst_32 = arith.constant 0.000000e+00 : f32
    %78 = vector.broadcast %cst_32 : f32 to vector<16x64xf32>
    %79 = arith.maximumf %77, %78 : vector<16x64xf32>
    %80 = vector.broadcast %58 : vector<1x64xf32> to vector<16x64xf32>
    %81 = arith.mulf %21, %80 : vector<16x64xf32>
    %82 = vector.broadcast %61 : vector<1x64xf32> to vector<16x64xf32>
    %83 = arith.addf %81, %82 : vector<16x64xf32>
    %cst_33 = arith.constant 0.000000e+00 : f32
    %84 = vector.broadcast %cst_33 : f32 to vector<16x64xf32>
    %85 = arith.maximumf %83, %84 : vector<16x64xf32>
    %86 = arith.maximumf %67, %73 : vector<16x64xf32>
    %87 = arith.maximumf %79, %85 : vector<16x64xf32>
    %88 = arith.maximumf %86, %87 : vector<16x64xf32>
    %c0_34 = arith.constant 0 : index
    %c0_35 = arith.constant 0 : index
    %89 = vector.load %arg6[%c0_34, %c0_35] : memref<16x64xf32, #tpu.memory_space<vmem>>, vector<16x64xf32>
    tpu.vector_store %arg6[%c0_34, %c0_35], %88 {strides = array<i32>} : memref<16x64xf32, #tpu.memory_space<vmem>>, vector<16x64xf32>,
    return
  }
  func.func @transform_0(%arg0: i32) -> (i32, i32, i32) {
    %c0_i32 = arith.constant 0 : i32
    %c0_i32_0 = arith.constant 0 : i32
    %c0_i32_1 = arith.constant 0 : i32
    %c0_i32_2 = arith.constant 0 : i32
    return %c0_i32, %c0_i32_0, %c0_i32_1 : i32, i32, i32
  }
  func.func @transform_1(%arg0: i32) -> (i32, i32) {
    %c0_i32 = arith.constant 0 : i32
    %c0_i32_0 = arith.constant 0 : i32
    %c0_i32_1 = arith.constant 0 : i32
    return %c0_i32, %c0_i32_0 : i32, i32
  }
  func.func @transform_2(%arg0: i32) -> (i32, i32) {
    %c0_i32 = arith.constant 0 : i32
    %c0_i32_0 = arith.constant 0 : i32
    %c0_i32_1 = arith.constant 0 : i32
    return %c0_i32, %c0_i32_0 : i32, i32
  }
  func.func @transform_3(%arg0: i32) -> (i32, i32) {
    %c0_i32 = arith.constant 0 : i32
    %c0_i32_0 = arith.constant 0 : i32
    %c0_i32_1 = arith.constant 0 : i32
    return %c0_i32, %c0_i32_0 : i32, i32
  }
  func.func @transform_4(%arg0: i32) -> (i32, i32) {
    %c0_i32 = arith.constant 0 : i32
    %c0_i32_0 = arith.constant 0 : i32
    %c0_i32_1 = arith.constant 0 : i32
    return %c0_i32, %c0_i32_0 : i32, i32
  }
  func.func @transform_5(%arg0: i32) -> (i32, i32) {
    %c0_i32 = arith.constant 0 : i32
    %c0_i32_0 = arith.constant 0 : i32
    %c0_i32_1 = arith.constant 0 : i32
    return %c0_i32, %c0_i32_0 : i32, i32
  }
}

module attributes {stable_mosaic.version = 11 : i64} {
  func.func @_fused_conv_block_kernel(%arg0: i32, %arg1: memref<4x4x576xbf16, #tpu.memory_space<vmem>>, %arg2: memref<576x64xbf16, #tpu.memory_space<vmem>>, %arg3: memref<1x64xf32, #tpu.memory_space<vmem>>, %arg4: memref<1x64xf32, #tpu.memory_space<vmem>>, %arg5: memref<1x64xf32, #tpu.memory_space<vmem>>, %arg6: memref<4x64xf32, #tpu.memory_space<vmem>>) attributes {dimension_semantics = [#tpu.dimension_semantics<arbitrary>], iteration_bounds = array<i64: 1>, scalar_prefetch = 0 : i64, scratch_operands = 0 : i64, tpu.core_type = #tpu.core_type<tc>, window_params = [{pipeline_mode = #tpu.pipeline_mode<synchronous>, transform_indices = @transform_0, window_bounds = array<i64: 4, 4, 576>}, {pipeline_mode = #tpu.pipeline_mode<synchronous>, transform_indices = @transform_1, window_bounds = array<i64: 576, 64>}, {pipeline_mode = #tpu.pipeline_mode<synchronous>, transform_indices = @transform_2, window_bounds = array<i64: 1, 64>}, {pipeline_mode = #tpu.pipeline_mode<synchronous>, transform_indices = @transform_3, window_bounds = array<i64: 1, 64>}, {pipeline_mode = #tpu.pipeline_mode<synchronous>, transform_indices = @transform_4, window_bounds = array<i64: 1, 64>}, {pipeline_mode = #tpu.pipeline_mode<synchronous>, transform_indices = @transform_5, window_bounds = array<i64: 4, 64>}]} {
    %c0 = arith.constant 0 : index
    %c0_0 = arith.constant 0 : index
    %0 = vector.load %arg2[%c0, %c0_0] : memref<576x64xbf16, #tpu.memory_space<vmem>>, vector<576x64xbf16>
    %c0_1 = arith.constant 0 : index
    %c0_2 = arith.constant 0 : index
    %1 = vector.load %arg3[%c0_1, %c0_2] : memref<1x64xf32, #tpu.memory_space<vmem>>, vector<1x64xf32>
    %c0_3 = arith.constant 0 : index
    %c0_4 = arith.constant 0 : index
    %c0_5 = arith.constant 0 : index
    %2 = vector.load %arg1[%c0_3, %c0_4, %c0_5] : memref<4x4x576xbf16, #tpu.memory_space<vmem>>, vector<1x4x576xbf16>
    %3 = vector.shape_cast %2 : vector<1x4x576xbf16> to vector<4x576xbf16>
    %cst = arith.constant dense<0.000000e+00> : vector<4x64xf32>
    %4 = tpu.matmul %3, %0, %cst {dimension_numbers = #tpu.dot_dimension_numbers<[1], [0], [0], [1], [0, 0, 1, 1], [], []>} : vector<4x576xbf16>, vector<576x64xbf16>, vector<4x64xf32> -> vector<4x64xf32>
    %5 = vector.broadcast %1 : vector<1x64xf32> to vector<4x64xf32>
    %6 = arith.addf %4, %5 : vector<4x64xf32>
    %c1 = arith.constant 1 : index
    %c0_6 = arith.constant 0 : index
    %c0_7 = arith.constant 0 : index
    %7 = vector.load %arg1[%c1, %c0_6, %c0_7] : memref<4x4x576xbf16, #tpu.memory_space<vmem>>, vector<1x4x576xbf16>
    %8 = vector.shape_cast %7 : vector<1x4x576xbf16> to vector<4x576xbf16>
    %cst_8 = arith.constant dense<0.000000e+00> : vector<4x64xf32>
    %9 = tpu.matmul %8, %0, %cst_8 {dimension_numbers = #tpu.dot_dimension_numbers<[1], [0], [0], [1], [0, 0, 1, 1], [], []>} : vector<4x576xbf16>, vector<576x64xbf16>, vector<4x64xf32> -> vector<4x64xf32>
    %10 = vector.broadcast %1 : vector<1x64xf32> to vector<4x64xf32>
    %11 = arith.addf %9, %10 : vector<4x64xf32>
    %c2 = arith.constant 2 : index
    %c0_9 = arith.constant 0 : index
    %c0_10 = arith.constant 0 : index
    %12 = vector.load %arg1[%c2, %c0_9, %c0_10] : memref<4x4x576xbf16, #tpu.memory_space<vmem>>, vector<1x4x576xbf16>
    %13 = vector.shape_cast %12 : vector<1x4x576xbf16> to vector<4x576xbf16>
    %cst_11 = arith.constant dense<0.000000e+00> : vector<4x64xf32>
    %14 = tpu.matmul %13, %0, %cst_11 {dimension_numbers = #tpu.dot_dimension_numbers<[1], [0], [0], [1], [0, 0, 1, 1], [], []>} : vector<4x576xbf16>, vector<576x64xbf16>, vector<4x64xf32> -> vector<4x64xf32>
    %15 = vector.broadcast %1 : vector<1x64xf32> to vector<4x64xf32>
    %16 = arith.addf %14, %15 : vector<4x64xf32>
    %c3 = arith.constant 3 : index
    %c0_12 = arith.constant 0 : index
    %c0_13 = arith.constant 0 : index
    %17 = vector.load %arg1[%c3, %c0_12, %c0_13] : memref<4x4x576xbf16, #tpu.memory_space<vmem>>, vector<1x4x576xbf16>
    %18 = vector.shape_cast %17 : vector<1x4x576xbf16> to vector<4x576xbf16>
    %cst_14 = arith.constant dense<0.000000e+00> : vector<4x64xf32>
    %19 = tpu.matmul %18, %0, %cst_14 {dimension_numbers = #tpu.dot_dimension_numbers<[1], [0], [0], [1], [0, 0, 1, 1], [], []>} : vector<4x576xbf16>, vector<576x64xbf16>, vector<4x64xf32> -> vector<4x64xf32>
    %20 = vector.broadcast %1 : vector<1x64xf32> to vector<4x64xf32>
    %21 = arith.addf %19, %20 : vector<4x64xf32>
    %cst_15 = arith.constant dense<0.000000e+00> : vector<64xf32>
    %22 = vector.multi_reduction <add>, %6, %cst_15 [0] : vector<4x64xf32> to vector<64xf32>
    %23 = vector.shape_cast %22 : vector<64xf32> to vector<1x64xf32>
    %cst_16 = arith.constant dense<0.000000e+00> : vector<64xf32>
    %24 = vector.multi_reduction <add>, %11, %cst_16 [0] : vector<4x64xf32> to vector<64xf32>
    %25 = vector.shape_cast %24 : vector<64xf32> to vector<1x64xf32>
    %26 = arith.addf %23, %25 : vector<1x64xf32>
    %cst_17 = arith.constant dense<0.000000e+00> : vector<64xf32>
    %27 = vector.multi_reduction <add>, %16, %cst_17 [0] : vector<4x64xf32> to vector<64xf32>
    %28 = vector.shape_cast %27 : vector<64xf32> to vector<1x64xf32>
    %29 = arith.addf %26, %28 : vector<1x64xf32>
    %cst_18 = arith.constant dense<0.000000e+00> : vector<64xf32>
    %30 = vector.multi_reduction <add>, %21, %cst_18 [0] : vector<4x64xf32> to vector<64xf32>
    %31 = vector.shape_cast %30 : vector<64xf32> to vector<1x64xf32>
    %32 = arith.addf %29, %31 : vector<1x64xf32>
    %33 = arith.mulf %6, %6 : vector<4x64xf32>
    %cst_19 = arith.constant dense<0.000000e+00> : vector<64xf32>
    %34 = vector.multi_reduction <add>, %33, %cst_19 [0] : vector<4x64xf32> to vector<64xf32>
    %35 = vector.shape_cast %34 : vector<64xf32> to vector<1x64xf32>
    %36 = arith.mulf %11, %11 : vector<4x64xf32>
    %cst_20 = arith.constant dense<0.000000e+00> : vector<64xf32>
    %37 = vector.multi_reduction <add>, %36, %cst_20 [0] : vector<4x64xf32> to vector<64xf32>
    %38 = vector.shape_cast %37 : vector<64xf32> to vector<1x64xf32>
    %39 = arith.addf %35, %38 : vector<1x64xf32>
    %40 = arith.mulf %16, %16 : vector<4x64xf32>
    %cst_21 = arith.constant dense<0.000000e+00> : vector<64xf32>
    %41 = vector.multi_reduction <add>, %40, %cst_21 [0] : vector<4x64xf32> to vector<64xf32>
    %42 = vector.shape_cast %41 : vector<64xf32> to vector<1x64xf32>
    %43 = arith.addf %39, %42 : vector<1x64xf32>
    %44 = arith.mulf %21, %21 : vector<4x64xf32>
    %cst_22 = arith.constant dense<0.000000e+00> : vector<64xf32>
    %45 = vector.multi_reduction <add>, %44, %cst_22 [0] : vector<4x64xf32> to vector<64xf32>
    %46 = vector.shape_cast %45 : vector<64xf32> to vector<1x64xf32>
    %47 = arith.addf %43, %46 : vector<1x64xf32>
    %cst_23 = arith.constant 6.250000e-02 : f32
    %48 = vector.broadcast %cst_23 : f32 to vector<1x64xf32>
    %49 = arith.mulf %32, %48 : vector<1x64xf32>
    %cst_24 = arith.constant 6.250000e-02 : f32
    %50 = vector.broadcast %cst_24 : f32 to vector<1x64xf32>
    %51 = arith.mulf %47, %50 : vector<1x64xf32>
    %52 = arith.mulf %49, %49 : vector<1x64xf32>
    %53 = arith.subf %51, %52 : vector<1x64xf32>
    %c0_25 = arith.constant 0 : index
    %c0_26 = arith.constant 0 : index
    %54 = vector.load %arg4[%c0_25, %c0_26] : memref<1x64xf32, #tpu.memory_space<vmem>>, vector<1x64xf32>
    %cst_27 = arith.constant 9.99999974E-6 : f32
    %55 = vector.broadcast %cst_27 : f32 to vector<1x64xf32>
    %56 = arith.addf %53, %55 : vector<1x64xf32>
    %57 = math.rsqrt %56 : vector<1x64xf32>
    %58 = arith.mulf %54, %57 : vector<1x64xf32>
    %c0_28 = arith.constant 0 : index
    %c0_29 = arith.constant 0 : index
    %59 = vector.load %arg5[%c0_28, %c0_29] : memref<1x64xf32, #tpu.memory_space<vmem>>, vector<1x64xf32>
    %60 = arith.mulf %49, %58 : vector<1x64xf32>
    %61 = arith.subf %59, %60 : vector<1x64xf32>
    %62 = vector.broadcast %58 : vector<1x64xf32> to vector<4x64xf32>
    %63 = arith.mulf %6, %62 : vector<4x64xf32>
    %64 = vector.broadcast %61 : vector<1x64xf32> to vector<4x64xf32>
    %65 = arith.addf %63, %64 : vector<4x64xf32>
    %cst_30 = arith.constant 0.000000e+00 : f32
    %66 = vector.broadcast %cst_30 : f32 to vector<4x64xf32>
    %67 = arith.maximumf %65, %66 : vector<4x64xf32>
    %68 = vector.broadcast %58 : vector<1x64xf32> to vector<4x64xf32>
    %69 = arith.mulf %11, %68 : vector<4x64xf32>
    %70 = vector.broadcast %61 : vector<1x64xf32> to vector<4x64xf32>
    %71 = arith.addf %69, %70 : vector<4x64xf32>
    %cst_31 = arith.constant 0.000000e+00 : f32
    %72 = vector.broadcast %cst_31 : f32 to vector<4x64xf32>
    %73 = arith.maximumf %71, %72 : vector<4x64xf32>
    %74 = vector.broadcast %58 : vector<1x64xf32> to vector<4x64xf32>
    %75 = arith.mulf %16, %74 : vector<4x64xf32>
    %76 = vector.broadcast %61 : vector<1x64xf32> to vector<4x64xf32>
    %77 = arith.addf %75, %76 : vector<4x64xf32>
    %cst_32 = arith.constant 0.000000e+00 : f32
    %78 = vector.broadcast %cst_32 : f32 to vector<4x64xf32>
    %79 = arith.maximumf %77, %78 : vector<4x64xf32>
    %80 = vector.broadcast %58 : vector<1x64xf32> to vector<4x64xf32>
    %81 = arith.mulf %21, %80 : vector<4x64xf32>
    %82 = vector.broadcast %61 : vector<1x64xf32> to vector<4x64xf32>
    %83 = arith.addf %81, %82 : vector<4x64xf32>
    %cst_33 = arith.constant 0.000000e+00 : f32
    %84 = vector.broadcast %cst_33 : f32 to vector<4x64xf32>
    %85 = arith.maximumf %83, %84 : vector<4x64xf32>
    %86 = arith.maximumf %67, %73 : vector<4x64xf32>
    %87 = arith.maximumf %79, %85 : vector<4x64xf32>
    %88 = arith.maximumf %86, %87 : vector<4x64xf32>
    %c0_34 = arith.constant 0 : index
    %c0_35 = arith.constant 0 : index
    %89 = vector.load %arg6[%c0_34, %c0_35] : memref<4x64xf32, #tpu.memory_space<vmem>>, vector<4x64xf32>
    tpu.vector_store %arg6[%c0_34, %c0_35], %88 {strides = array<i32>} : memref<4x64xf32, #tpu.memory_space<vmem>>, vector<4x64xf32>,
    return
  }
  func.func @transform_0(%arg0: i32) -> (i32, i32, i32) {
    %c0_i32 = arith.constant 0 : i32
    %c0_i32_0 = arith.constant 0 : i32
    %c0_i32_1 = arith.constant 0 : i32
    %c0_i32_2 = arith.constant 0 : i32
    return %c0_i32, %c0_i32_0, %c0_i32_1 : i32, i32, i32
  }
  func.func @transform_1(%arg0: i32) -> (i32, i32) {
    %c0_i32 = arith.constant 0 : i32
    %c0_i32_0 = arith.constant 0 : i32
    %c0_i32_1 = arith.constant 0 : i32
    return %c0_i32, %c0_i32_0 : i32, i32
  }
  func.func @transform_2(%arg0: i32) -> (i32, i32) {
    %c0_i32 = arith.constant 0 : i32
    %c0_i32_0 = arith.constant 0 : i32
    %c0_i32_1 = arith.constant 0 : i32
    return %c0_i32, %c0_i32_0 : i32, i32
  }
  func.func @transform_3(%arg0: i32) -> (i32, i32) {
    %c0_i32 = arith.constant 0 : i32
    %c0_i32_0 = arith.constant 0 : i32
    %c0_i32_1 = arith.constant 0 : i32
    return %c0_i32, %c0_i32_0 : i32, i32
  }
  func.func @transform_4(%arg0: i32) -> (i32, i32) {
    %c0_i32 = arith.constant 0 : i32
    %c0_i32_0 = arith.constant 0 : i32
    %c0_i32_1 = arith.constant 0 : i32
    return %c0_i32, %c0_i32_0 : i32, i32
  }
  func.func @transform_5(%arg0: i32) -> (i32, i32) {
    %c0_i32 = arith.constant 0 : i32
    %c0_i32_0 = arith.constant 0 : i32
    %c0_i32_1 = arith.constant 0 : i32
    return %c0_i32, %c0_i32_0 : i32, i32
  }
}

</mosaic_0001>

<bundles_post_ra>
// kernel: encoder.4
= control target key start
LH: loop header
LB: loop body
LE: loop exit
PB: predicated region body
PF: predicated region fallthrough
CT: control target
= control target key end

     0   :  { %vm156_vm0 = vcmask 261120   ;;  %vm1332_vm1 = vcmask 523264   ;;  %s5960_s1 = inlined_call_operand.vmem [shape: bf16[32,64], index: 1, kind: input, shape index: {}]   ;;  %s5961_s0 = inlined_call_operand.vmem [shape: bf16[4,256,32], index: 0, kind: input, shape index: {}]   ;;  %s5962_s2 = inlined_call_operand.vmem [shape: f32[1,64], index: 2, kind: input, shape index: {}]   ;;  %s5963_s3 = inlined_call_operand.vmem [shape: f32[1,64], index: 3, kind: input, shape index: {}]   ;;  %s5964_s4 = inlined_call_operand.vmem [shape: f32[1,64], index: 4, kind: input, shape index: {}]   ;;  %s5965_s5 = inlined_call_operand.vmem [shape: f32[256,64], index: 5, kind: output, shape index: {}]  }
   0x1   :  { %v3001_v0 = vld [vmem:[%s5960_s1 + $0x8] sm:$0xff]   ;;  %v3002_v1 = vld [vmem:[%s5960_s1] sm:$0xff]   ;;  %v3007_v6 = vld [vmem:[%s5961_s0 + $0x10] sm:$0xff]  }
   0x2   :  { %2857 = vmatprep.subr.bf16.mxu0 %v3001_v0  ;;  %2893 = vmatprep.subr.bf16.mxu1 %v3001_v0  ;;  %v3003_v2 = vld [vmem:[%s5961_s0] sm:$0xff]   ;;  %v3005_v4 = vld [vmem:[%s5961_s0 + $0x8] sm:$0xff]   ;;  %v3008_v7 = vld [vmem:[%s5961_s0 + $0x90] sm:$0xff]  }
   0x3   :  { %2858 = vmatpush3.bf16.msra.mxu0 %v3001_v0  ;;  %2894 = vmatpush3.bf16.msra.mxu1 %v3001_v0  ;;  %v3004_v3 = vld [vmem:[%s5961_s0 + $0x80] sm:$0xff]   ;;  %v3006_v5 = vld [vmem:[%s5961_s0 + $0x88] sm:$0xff]   ;;  %v3009_v8 = vld [vmem:[%s5961_s0 + $0x18] sm:$0xff]  }
   0x4   :  { %2859 = vmatprep.subr.bf16.mxu0 %v3002_v1  ;;  %2895 = vmatprep.subr.bf16.mxu1 %v3002_v1  ;;  %v3010_v9 = vld [vmem:[%s5961_s0 + $0x98] sm:$0xff]   ;;  %v3011_v10 = vld [vmem:[%s5961_s0 + $0x20] sm:$0xff]   ;;  %v3013_v12 = vld [vmem:[%s5961_s0 + $0x28] sm:$0xff]  }
   0x5   :  { %2861 = vmatprep.mubr.msk.bf16.mxu0 %vm156_vm0, %v3003_v2  ;;  %2897 = vmatprep.mubr.msk.bf16.mxu1 %vm156_vm0, %v3004_v3  ;;  %v3012_v11 = vld [vmem:[%s5961_s0 + $0xa0] sm:$0xff]   ;;  %v3014_v13 = vld [vmem:[%s5961_s0 + $0xa8] sm:$0xff]   ;;  %v3015_v14 = vld [vmem:[%s5961_s0 + $0x30] sm:$0xff]  }
   0x6   :  { %v3016_v15 = vld [vmem:[%s5961_s0 + $0xb0] sm:$0xff]   ;;  %v3017_v16 = vld [vmem:[%s5961_s0 + $0x38] sm:$0xff]   ;;  %v3019_v18 = vld [vmem:[%s5961_s0 + $0x40] sm:$0xff]  }
   0x7   :  { %2860 = vmatpush3.bf16.msra.mxu0 %v3002_v1  ;;  %2896 = vmatpush3.bf16.msra.mxu1 %v3002_v1  ;;  %v3018_v17 = vld [vmem:[%s5961_s0 + $0xb8] sm:$0xff]   ;;  %v3020_v19 = vld [vmem:[%s5961_s0 + $0xc0] sm:$0xff]   ;;  %v3021_v20 = vld [vmem:[%s5961_s0 + $0x48] sm:$0xff]  }
   0x8   :  { %2929 = vmatprep.subr.bf16.mxu0 %v3001_v0  ;;  %2965 = vmatprep.subr.bf16.mxu1 %v3001_v0  ;;  %v3022_v21 = vld [vmem:[%s5961_s0 + $0xc8] sm:$0xff]   ;;  %v3023_v22 = vld [vmem:[%s5961_s0 + $0x50] sm:$0xff]   ;;  %v3025_v24 = vld [vmem:[%s5961_s0 + $0x58] sm:$0xff]  }
   0x9   :  { %v3024_v23 = vld [vmem:[%s5961_s0 + $0xd0] sm:$0xff]   ;;  %v3026_v25 = vld [vmem:[%s5961_s0 + $0xd8] sm:$0xff]   ;;  %v3027_v26 = vld [vmem:[%s5961_s0 + $0x60] sm:$0xff]  }
   0xa   :  { %2862 = vmatmul.mubr.msk.bf16.vlgmr.msra.gmra.mxu0 %vm156_vm0, %v3005_v4  ;;  %2898 = vmatmul.mubr.msk.bf16.vlgmr.msra.gmra.mxu1 %vm156_vm0, %v3006_v5  ;;  %v3028_v27 = vld [vmem:[%s5961_s0 + $0xe0] sm:$0xff]   ;;  %v3029_v28 = vld [vmem:[%s5961_s0 + $0x68] sm:$0xff]   ;;  %v3031_v30 = vld [vmem:[%s5961_s0 + $0x70] sm:$0xff]  }
   0xb   :  { %2930 = vmatpush3.bf16.msra.mxu0 %v3001_v0  ;;  %2966 = vmatpush3.bf16.msra.mxu1 %v3001_v0  ;;  %v3030_v29 = vld [vmem:[%s5961_s0 + $0xe8] sm:$0xff]   ;;  %v3032_v31 = vld [vmem:[%s5961_s0 + $0xf0] sm:$0xff]   ;;  %v3033_v32 = vld [vmem:[%s5961_s0 + $0x78] sm:$0xff]  }
   0xc   :  { %2865 = vmatprep.mubr.msk.bf16.mxu0 %vm156_vm0, %v3007_v6  ;;  %2901 = vmatprep.mubr.msk.bf16.mxu1 %vm156_vm0, %v3008_v7  ;;  %v3034_v33 = vld [vmem:[%s5961_s0 + $0xf8] sm:$0xff]   ;;  %v3035_v34 = vld [vmem:[%s5961_s0 + $0x100] sm:$0xff]   ;;  %v3037_v36 = vld [vmem:[%s5961_s0 + $0x108] sm:$0xff]  }
   0xd   :  { %2931 = vmatprep.subr.bf16.mxu0 %v3002_v1  ;;  %2967 = vmatprep.subr.bf16.mxu1 %v3002_v1  ;;  %v3036_v35 = vld [vmem:[%s5961_s0 + $0x180] sm:$0xff]   ;;  %v3038_v37 = vld [vmem:[%s5961_s0 + $0x188] sm:$0xff]   ;;  %v3039_v38 = vld [vmem:[%s5961_s0 + $0x110] sm:$0xff]  }
   0xe   :  { %v3040_v39 = vld [vmem:[%s5961_s0 + $0x190] sm:$0xff]   ;;  %v3041_v40 = vld [vmem:[%s5961_s0 + $0x118] sm:$0xff]   ;;  %v3043_v42 = vld [vmem:[%s5961_s0 + $0x120] sm:$0xff]  }
   0xf   :  { %2932 = vmatpush3.bf16.msra.mxu0 %v3002_v1  ;;  %2968 = vmatpush3.bf16.msra.mxu1 %v3002_v1  ;;  %v3042_v41 = vld [vmem:[%s5961_s0 + $0x198] sm:$0xff]   ;;  %v3044_v43 = vld [vmem:[%s5961_s0 + $0x1a0] sm:$0xff]   ;;  %v3045_v44 = vld [vmem:[%s5961_s0 + $0x128] sm:$0xff]  }
  0x10   :  { %v3046_v45 = vld [vmem:[%s5961_s0 + $0x1a8] sm:$0xff]   ;;  %v3047_v46 = vld [vmem:[%s5961_s0 + $0x130] sm:$0xff]   ;;  %v3049_v48 = vld [vmem:[%s5961_s0 + $0x138] sm:$0xff]  }
  0x11   :  { %v3048_v47 = vld [vmem:[%s5961_s0 + $0x1b0] sm:$0xff]   ;;  %v3050_v49 = vld [vmem:[%s5961_s0 + $0x1b8] sm:$0xff]   ;;  %v3051_v50 = vld [vmem:[%s5961_s0 + $0x140] sm:$0xff]  }
  0x12   :  { %2866 = vmatmul.mubr.msk.bf16.gmra.mxu0 %vm156_vm0, %v3009_v8  ;;  %2902 = vmatmul.mubr.msk.bf16.gmra.mxu1 %vm156_vm0, %v3010_v9  ;;  %v3052_v51 = vld [vmem:[%s5961_s0 + $0x1c0] sm:$0xff]   ;;  %v3053_v52 = vld [vmem:[%s5961_s0 + $0x148] sm:$0xff]   ;;  %v3055_v54 = vld [vmem:[%s5961_s0 + $0x150] sm:$0xff]  }
  0x13   :  { %2869 = vmatprep.mubr.msk.bf16.mxu0 %vm156_vm0, %v3011_v10  ;;  %2905 = vmatprep.mubr.msk.bf16.mxu1 %vm156_vm0, %v3012_v11  ;;  %v3054_v53 = vld [vmem:[%s5961_s0 + $0x1c8] sm:$0xff]   ;;  %v3056_v55 = vld [vmem:[%s5961_s0 + $0x1d0] sm:$0xff]   ;;  %v3057_v56 = vld [vmem:[%s5961_s0 + $0x158] sm:$0xff]  }
  0x14   :  { %v3058_v57 = vld [vmem:[%s5961_s0 + $0x1d8] sm:$0xff]   ;;  %v3059_v58 = vld [vmem:[%s5961_s0 + $0x160] sm:$0xff]   ;;  %v3061_v60 = vld [vmem:[%s5961_s0 + $0x168] sm:$0xff]  }
  0x15   :  { %v3060_v59 = vld [vmem:[%s5961_s0 + $0x1e0] sm:$0xff]   ;;  %v3062_v61 = vld [vmem:[%s5961_s0 + $0x1e8] sm:$0xff]   ;;  %v3063_v62 = vld [vmem:[%s5961_s0 + $0x170] sm:$0xff]  }
  0x16   :  { %v3064_v63 = vld [vmem:[%s5961_s0 + $0x1f0] sm:$0xff]   ;;  %v3065_v0 = vld [vmem:[%s5961_s0 + $0x178] sm:$0xff]   ;;  %v3365_v2 = vld [vmem:[%s5962_s2] ss:$0 sm:$0xff] }
  0x17   :  { %v3066_v1 = vld [vmem:[%s5961_s0 + $0x1f8] sm:$0xff]  }
  0x1a   :  { %2870 = vmatmul.mubr.msk.bf16.gmra.mxu0 %vm156_vm0, %v3013_v12  ;;  %2906 = vmatmul.mubr.msk.bf16.gmra.mxu1 %vm156_vm0, %v3014_v13 }
  0x1b   :  { %2873 = vmatprep.mubr.msk.bf16.mxu0 %vm156_vm0, %v3015_v14  ;;  %2909 = vmatprep.mubr.msk.bf16.mxu1 %vm156_vm0, %v3016_v15 }
  0x22   :  { %2874 = vmatmul.mubr.msk.bf16.gmra.mxu0 %vm156_vm0, %v3017_v16  ;;  %2910 = vmatmul.mubr.msk.bf16.gmra.mxu1 %vm156_vm0, %v3018_v17 }
  0x23   :  { %2877 = vmatprep.mubr.msk.bf16.mxu0 %vm156_vm0, %v3019_v18  ;;  %2913 = vmatprep.mubr.msk.bf16.mxu1 %vm156_vm0, %v3020_v19 }
  0x2a   :  { %2878 = vmatmul.mubr.msk.bf16.gmra.mxu0 %vm156_vm0, %v3021_v20  ;;  %2914 = vmatmul.mubr.msk.bf16.gmra.mxu1 %vm156_vm0, %v3022_v21 }
  0x2b   :  { %2881 = vmatprep.mubr.msk.bf16.mxu0 %vm156_vm0, %v3023_v22  ;;  %2917 = vmatprep.mubr.msk.bf16.mxu1 %vm156_vm0, %v3024_v23 }
  0x32   :  { %2882 = vmatmul.mubr.msk.bf16.gmra.mxu0 %vm156_vm0, %v3025_v24  ;;  %2918 = vmatmul.mubr.msk.bf16.gmra.mxu1 %vm156_vm0, %v3026_v25 }
  0x33   :  { %2885 = vmatprep.mubr.msk.bf16.mxu0 %vm156_vm0, %v3027_v26  ;;  %2921 = vmatprep.mubr.msk.bf16.mxu1 %vm156_vm0, %v3028_v27 }
  0x3a   :  { %2886 = vmatmul.mubr.msk.bf16.gmra.mxu0 %vm156_vm0, %v3029_v28  ;;  %2922 = vmatmul.mubr.msk.bf16.gmra.mxu1 %vm156_vm0, %v3030_v29 }
  0x3b   :  { %2889 = vmatprep.mubr.msk.bf16.mxu0 %vm156_vm0, %v3031_v30  ;;  %2925 = vmatprep.mubr.msk.bf16.mxu1 %vm156_vm0, %v3032_v31 }
  0x42   :  { %2890 = vmatmul.mubr.msk.bf16.gmra.mxu0 %vm156_vm0, %v3033_v32  ;;  %2926 = vmatmul.mubr.msk.bf16.gmra.mxu1 %vm156_vm0, %v3034_v33 }
  0x43   :  { %2933 = vmatprep.mubr.msk.bf16.mxu0 %vm156_vm0, %v3035_v34  ;;  %2969 = vmatprep.mubr.msk.bf16.mxu1 %vm156_vm0, %v3036_v35 }
  0x4a   :  { %2934 = vmatmul.mubr.msk.bf16.vlgmr.msra.gmra.mxu0 %vm156_vm0, %v3037_v36  ;;  %2970 = vmatmul.mubr.msk.bf16.vlgmr.msra.gmra.mxu1 %vm156_vm0, %v3038_v37 }
  0x4b   :  { %2937 = vmatprep.mubr.msk.bf16.mxu0 %vm156_vm0, %v3039_v38  ;;  %2973 = vmatprep.mubr.msk.bf16.mxu1 %vm156_vm0, %v3040_v39 }
  0x52   :  { %2938 = vmatmul.mubr.msk.bf16.gmra.mxu0 %vm156_vm0, %v3041_v40  ;;  %2974 = vmatmul.mubr.msk.bf16.gmra.mxu1 %vm156_vm0, %v3042_v41 }
  0x53   :  { %2941 = vmatprep.mubr.msk.bf16.mxu0 %vm156_vm0, %v3043_v42  ;;  %2977 = vmatprep.mubr.msk.bf16.mxu1 %vm156_vm0, %v3044_v43 }
  0x5a   :  { %2942 = vmatmul.mubr.msk.bf16.gmra.mxu0 %vm156_vm0, %v3045_v44  ;;  %2978 = vmatmul.mubr.msk.bf16.gmra.mxu1 %vm156_vm0, %v3046_v45 }
  0x5b   :  { %2945 = vmatprep.mubr.msk.bf16.mxu0 %vm156_vm0, %v3047_v46  ;;  %2981 = vmatprep.mubr.msk.bf16.mxu1 %vm156_vm0, %v3048_v47 }
  0x62   :  { %2946 = vmatmul.mubr.msk.bf16.gmra.mxu0 %vm156_vm0, %v3049_v48  ;;  %2982 = vmatmul.mubr.msk.bf16.gmra.mxu1 %vm156_vm0, %v3050_v49 }
  0x63   :  { %2949 = vmatprep.mubr.msk.bf16.mxu0 %vm156_vm0, %v3051_v50  ;;  %2985 = vmatprep.mubr.msk.bf16.mxu1 %vm156_vm0, %v3052_v51 }
  0x6a   :  { %2950 = vmatmul.mubr.msk.bf16.gmra.mxu0 %vm156_vm0, %v3053_v52  ;;  %2986 = vmatmul.mubr.msk.bf16.gmra.mxu1 %vm156_vm0, %v3054_v53 }
  0x6b   :  { %2953 = vmatprep.mubr.msk.bf16.mxu0 %vm156_vm0, %v3055_v54  ;;  %2989 = vmatprep.mubr.msk.bf16.mxu1 %vm156_vm0, %v3056_v55 }
  0x72   :  { %2954 = vmatmul.mubr.msk.bf16.gmra.mxu0 %vm156_vm0, %v3057_v56  ;;  %2990 = vmatmul.mubr.msk.bf16.gmra.mxu1 %vm156_vm0, %v3058_v57 }
  0x73   :  { %2957 = vmatprep.mubr.msk.bf16.mxu0 %vm156_vm0, %v3059_v58  ;;  %2993 = vmatprep.mubr.msk.bf16.mxu1 %vm156_vm0, %v3060_v59 }
  0x7a   :  { %2958 = vmatmul.mubr.msk.bf16.gmra.mxu0 %vm156_vm0, %v3061_v60  ;;  %2994 = vmatmul.mubr.msk.bf16.gmra.mxu1 %vm156_vm0, %v3062_v61 }
  0x7b   :  { %2961 = vmatprep.mubr.msk.bf16.mxu0 %vm156_vm0, %v3063_v62  ;;  %2997 = vmatprep.mubr.msk.bf16.mxu1 %vm156_vm0, %v3064_v63 }
  0x82   :  { %2962 = vmatmul.mubr.msk.bf16.gmra.mxu0 %vm156_vm0, %v3065_v0  ;;  %2998 = vmatmul.mubr.msk.bf16.gmra.mxu1 %vm156_vm0, %v3066_v1 }
  0xca   :  { %v2863_v3 = vpop.f32.mrf.mxu0  ;;  %v2899_v4 = vpop.f32.mrf.mxu1 }
  0xcb   :  { %v3368_v5 = vadd.f32 %v2863_v3, %v3365_v2  ;;  %v3371_v6 = vadd.f32 %v2899_v4, %v3365_v2 }
  0xcc   :  { %v239_v7 = vpop.f32.mrf.mxu0  ;;  %v561_v8 = vpop.f32.mrf.mxu1 }
  0xcd   :  { %6139 = vst [vmem:[#allocation2_spill] sm:$0xff] %v3371_v6  ;;  %v1614_v9 = vmul.f32 %v3368_v5, %v3368_v5  ;;  %v1715_v10 = vmul.f32 %v3371_v6, %v3371_v6  ;;  %v3378_v11 = vadd.f32 %v3365_v2, %v239_v7  ;;  %v3381_v12 = vadd.f32 %v3365_v2, %v561_v8 }
  0xce   :  { %v2864_v13 = vpop.f32.mrf.mxu0  ;;  %v2900_v14 = vpop.f32.mrf.mxu1  ;;  %v1336_v17 = vsel %vm1332_vm1, %v3368_v5, 0.0  ;;  %v1405_v19 = vsel %vm1332_vm1, %v3371_v6, 0.0 }
  0xcf   :  { %6140 = vst [vmem:[#allocation3_spill] sm:$0xff] %v3381_v12  ;;  %v3384_v15 = vadd.f32 %v2864_v13, %v3365_v2  ;;  %v3387_v16 = vadd.f32 %v2900_v14, %v3365_v2  ;;  %v1647_v18 = vsel %vm1332_vm1, %v1614_v9, 0.0  ;;  %v1612_v20 = vmul.f32 %v3378_v11, %v3378_v11 }
  0xd0   :  { %v242_v21 = vpop.f32.mrf.mxu0  ;;  %v564_v22 = vpop.f32.mrf.mxu1  ;;  %v1748_v23 = vsel %vm1332_vm1, %v1715_v10, 0.0  ;;  %v1333_v24 = vsel %vm1332_vm1, %v3378_v11, 0.0  ;;  %v1713_v25 = vmul.f32 %v3381_v12, %v3381_v12  ;;  %v1402_v27 = vsel %vm1332_vm1, %v3381_v12, 0.0 }
  0xd1   :  { %6141 = vst [vmem:[#allocation4_spill] sm:$0xff] %v3387_v16  ;;  %v1615_v26 = vmul.f32 %v3384_v15, %v3384_v15  ;;  %v1716_v28 = vmul.f32 %v3387_v16, %v3387_v16  ;;  %v3408_v29 = vadd.f32 %v3365_v2, %v242_v21  ;;  %v3411_v30 = vadd.f32 %v3365_v2, %v564_v22 }
  0xd2   :  { %v2867_v31 = vpop.f32.mrf.mxu0  ;;  %v2903_v32 = vpop.f32.mrf.mxu1  ;;  %v1644_v33 = vsel %vm1332_vm1, %v1612_v20, 0.0  ;;  %v1338_v34 = vsel %vm1332_vm1, %v3384_v15, 0.0  ;;  %v1407_v35 = vsel %vm1332_vm1, %v3387_v16, 0.0  ;;  %v1745_v43 = vsel %vm1332_vm1, %v1713_v25, 0.0 }
  0xd3   :  { %6142 = vst [vmem:[#allocation5_spill] sm:$0xff] %v3411_v30  ;;  %v3419_v36 = vadd.f32 %v2867_v31, %v3365_v2  ;;  %v1334_v37 = vsel %vm1332_vm1, %v3408_v29, 0.0  ;;  %v1613_v38 = vmul.f32 %v3408_v29, %v3408_v29  ;;  %v1403_v39 = vsel %vm1332_vm1, %v3411_v30, 0.0 }
  0xd4   :  { %v1714_v40 = vmul.f32 %v3411_v30, %v3411_v30  ;;  %v255_v41 = vpop.f32.mrf.mxu0  ;;  %v577_v42 = vpop.f32.mrf.mxu1  ;;  %v1649_v44 = vsel %vm1332_vm1, %v1615_v26, 0.0  ;;  %v1335_v45 = vadd.f32 %v1334_v37, %v1333_v24  ;;  %v1404_v46 = vadd.f32 %v1403_v39, %v1402_v27 }
  0xd5   :  { %v1750_v47 = vsel %vm1332_vm1, %v1716_v28, 0.0  ;;  %v1645_v48 = vsel %vm1332_vm1, %v1613_v38, 0.0  ;;  %v3435_v50 = vadd.f32 %v2903_v32, %v3365_v2  ;;  %v1344_v57 = vsel %vm1332_vm1, %v3419_v36, 0.0 }
  0xd6   :  { %v1746_v49 = vsel %vm1332_vm1, %v1714_v40, 0.0  ;;  %v2868_v51 = vpop.f32.mrf.mxu0  ;;  %v2904_v52 = vpop.f32.mrf.mxu1  ;;  %v1337_v53 = vadd.f32 %v1336_v17, %v1335_v45  ;;  %v1646_v54 = vadd.f32 %v1645_v48, %v1644_v33  ;;  %v1406_v55 = vadd.f32 %v1405_v19, %v1404_v46 }
  0xd7   :  { %6143 = vst [vmem:[#allocation6_spill] sm:$0xff] %v3435_v50  ;;  %v1747_v56 = vadd.f32 %v1746_v49, %v1745_v43  ;;  %v1618_v58 = vmul.f32 %v3419_v36, %v3419_v36  ;;  %v3442_v59 = vadd.f32 %v3365_v2, %v255_v41  ;;  %v3445_v60 = vadd.f32 %v3365_v2, %v577_v42 }
  0xd8   :  { %v258_v61 = vpop.f32.mrf.mxu0  ;;  %v580_v62 = vpop.f32.mrf.mxu1  ;;  %v1648_v63 = vadd.f32 %v1647_v18, %v1646_v54  ;;  %v1339_v1 = vadd.f32 %v1338_v34, %v1337_v53  ;;  %v1408_v3 = vadd.f32 %v1407_v35, %v1406_v55  ;;  %v1413_v4 = vsel %vm1332_vm1, %v3435_v50, 0.0 }
  0xd9   :  { %6144 = vst [vmem:[#allocation7_spill] sm:$0xff] %v3445_v60  ;;  %v1749_v0 = vadd.f32 %v1748_v23, %v1747_v56  ;;  %v1719_v7 = vmul.f32 %v3435_v50, %v3435_v50  ;;  %v1616_v8 = vmul.f32 %v3442_v59, %v3442_v59  ;;  %v1717_v9 = vmul.f32 %v3445_v60, %v3445_v60 }
  0xda   :  { %v2871_v10 = vpop.f32.mrf.mxu0  ;;  %v2907_v13 = vpop.f32.mrf.mxu1  ;;  %v1340_v14 = vsel %vm1332_vm1, %v3442_v59, 0.0  ;;  %v1650_v17 = vadd.f32 %v1649_v44, %v1648_v63  ;;  %v1409_v18 = vsel %vm1332_vm1, %v3445_v60, 0.0  ;;  %v3460_v22 = vadd.f32 %v2868_v51, %v3365_v2 }
  0xdb   :  { %v1751_v19 = vadd.f32 %v1750_v47, %v1749_v0  ;;  %v1341_v20 = vadd.f32 %v1340_v14, %v1339_v1  ;;  %v1410_v21 = vadd.f32 %v1409_v18, %v1408_v3  ;;  %v3463_v23 = vadd.f32 %v2904_v52, %v3365_v2 }
  0xdc   :  { %v271_v24 = vpop.f32.mrf.mxu0  ;;  %v593_v25 = vpop.f32.mrf.mxu1  ;;  %v1651_v26 = vsel %vm1332_vm1, %v1616_v8, 0.0  ;;  %v1752_v27 = vsel %vm1332_vm1, %v1717_v9, 0.0  ;;  %v3468_v28 = vadd.f32 %v3365_v2, %v258_v61  ;;  %v3471_v31 = vadd.f32 %v3365_v2, %v580_v62 }
  0xdd   :  { %6145 = vst [vmem:[#allocation8_spill] sm:$0xff] %v3463_v23  ;;  %v1652_v32 = vadd.f32 %v1651_v26, %v1650_v17  ;;  %v1753_v33 = vadd.f32 %v1752_v27, %v1751_v19  ;;  %v1619_v34 = vmul.f32 %v3460_v22, %v3460_v22  ;;  %v1720_v35 = vmul.f32 %v3463_v23, %v3463_v23 }
  0xde   :  { %6146 = vst [vmem:[#allocation9_spill] sm:$0xff] %v3471_v31  ;;  %v2872_v37 = vpop.f32.mrf.mxu0  ;;  %v2908_v38 = vpop.f32.mrf.mxu1  ;;  %v1342_v39 = vsel %vm1332_vm1, %v3468_v28, 0.0  ;;  %v1617_v40 = vmul.f32 %v3468_v28, %v3468_v28  ;;  %v1411_v41 = vsel %vm1332_vm1, %v3471_v31, 0.0  ;;  %v1718_v42 = vmul.f32 %v3471_v31, %v3471_v31 }
  0xdf   :  { %v1655_v43 = vsel %vm1332_vm1, %v1618_v58, 0.0  ;;  %v1756_v44 = vsel %vm1332_vm1, %v1719_v7, 0.0  ;;  %v1343_v45 = vadd.f32 %v1342_v39, %v1341_v20  ;;  %v1412_v46 = vadd.f32 %v1411_v41, %v1410_v21 }
  0xe0   :  { %v274_v47 = vpop.f32.mrf.mxu0  ;;  %v596_v48 = vpop.f32.mrf.mxu1  ;;  %v1653_v49 = vsel %vm1332_vm1, %v1617_v40, 0.0  ;;  %v1754_v51 = vsel %vm1332_vm1, %v1718_v42, 0.0  ;;  %v3490_v52 = vadd.f32 %v2871_v10, %v3365_v2  ;;  %v3493_v53 = vadd.f32 %v2907_v13, %v3365_v2 }
  0xe1   :  { %v1345_v54 = vadd.f32 %v1344_v57, %v1343_v45  ;;  %v1654_v55 = vadd.f32 %v1653_v49, %v1652_v32  ;;  %v1414_v56 = vadd.f32 %v1413_v4, %v1412_v46  ;;  %v1755_v58 = vadd.f32 %v1754_v51, %v1753_v33 }
  0xe2   :  { %6147 = vst [vmem:[#allocation10_spill] sm:$0xff] %v3493_v53  ;;  %v2875_v61 = vpop.f32.mrf.mxu0  ;;  %v2911_v62 = vpop.f32.mrf.mxu1  ;;  %v1346_v63 = vsel %vm1332_vm1, %v3460_v22, 0.0  ;;  %v1657_v0 = vsel %vm1332_vm1, %v1619_v34, 0.0  ;;  %v1415_v1 = vsel %vm1332_vm1, %v3463_v23, 0.0  ;;  %v1758_v3 = vsel %vm1332_vm1, %v1720_v35, 0.0 }
  0xe3   :  { %v1656_v7 = vadd.f32 %v1655_v43, %v1654_v55  ;;  %v1757_v8 = vadd.f32 %v1756_v44, %v1755_v58  ;;  %v3502_v9 = vadd.f32 %v3365_v2, %v271_v24  ;;  %v1347_v57 = vadd.f32 %v1346_v63, %v1345_v54 }
  0xe4   :  { %v287_v4 = vpop.f32.mrf.mxu0  ;;  %v3504_v10 = vpop.f32.mrf.mxu1  ;;  %v1622_v13 = vmul.f32 %v3490_v52, %v3490_v52  ;;  %v1723_v14 = vmul.f32 %v3493_v53, %v3493_v53  ;;  %v3511_v17 = vadd.f32 %v3365_v2, %v593_v25  ;;  %v1416_v18 = vadd.f32 %v1415_v1, %v1414_v56 }
  0xe5   :  { %v1352_v19 = vsel %vm1332_vm1, %v3490_v52, 0.0  ;;  %v1348_v20 = vsel %vm1332_vm1, %v3502_v9, 0.0  ;;  %v1620_v21 = vmul.f32 %v3502_v9, %v3502_v9  ;;  %v1658_v24 = vadd.f32 %v1657_v0, %v1656_v7 }
  0xe6   :  { %6148 = vst [vmem:[#allocation11_spill] sm:$0xff] %v3511_v17  ;;  %v3519_v26 = vpop.f32.mrf.mxu0  ;;  %v3521_v27 = vpop.f32.mrf.mxu1  ;;  %v1421_v32 = vsel %vm1332_vm1, %v3493_v53, 0.0  ;;  %v1349_v25 = vadd.f32 %v1348_v20, %v1347_v57  ;;  %v1721_v33 = vmul.f32 %v3511_v17, %v3511_v17  ;;  %v3528_v34 = vadd.f32 %v2872_v37, %v3365_v2 }
  0xe7   :  { %v1417_v35 = vsel %vm1332_vm1, %v3511_v17, 0.0  ;;  %v1759_v39 = vadd.f32 %v1758_v3, %v1757_v8  ;;  %v3533_v40 = vadd.f32 %v2908_v38, %v3365_v2  ;;  %v3536_v41 = vadd.f32 %v3365_v2, %v274_v47 }
  0xe8   :  { %v3538_v42 = vpop.f32.mrf.mxu0  ;;  %v3540_v43 = vpop.f32.mrf.mxu1  ;;  %v1663_v44 = vsel %vm1332_vm1, %v1622_v13, 0.0  ;;  %v1764_v45 = vsel %vm1332_vm1, %v1723_v14, 0.0  ;;  %v1659_v37 = vsel %vm1332_vm1, %v1620_v21, 0.0  ;;  %v1418_v46 = vadd.f32 %v1417_v35, %v1416_v18 }
  0xe9   :  { %6149 = vst [vmem:[#allocation12_spill] sm:$0xff] %v3533_v40  ;;  %v1660_v49 = vadd.f32 %v1659_v37, %v1658_v24  ;;  %v1760_v51 = vsel %vm1332_vm1, %v1721_v33, 0.0  ;;  %v1623_v38 = vmul.f32 %v3528_v34, %v3528_v34  ;;  %v1350_v47 = vsel %vm1332_vm1, %v3536_v41, 0.0 }
  0xea   :  { %v3550_v54 = vpop.f32.mrf.mxu0  ;;  %v3552_v55 = vpop.f32.mrf.mxu1  ;;  %v1724_v56 = vmul.f32 %v3533_v40, %v3533_v40  ;;  %v1351_v58 = vadd.f32 %v1350_v47, %v1349_v25  ;;  %v1621_v63 = vmul.f32 %v3536_v41, %v3536_v41  ;;  %v3559_v0 = vadd.f32 %v3365_v2, %v596_v48 }
  0xeb   :  { %v1761_v1 = vadd.f32 %v1760_v51, %v1759_v39  ;;  %v3562_v3 = vadd.f32 %v2875_v61, %v3365_v2  ;;  %v3565_v7 = vadd.f32 %v2911_v62, %v3365_v2  ;;  %v3568_v8 = vadd.f32 %v3365_v2, %v287_v4 }
  0xec   :  { %6150 = vst [vmem:[#allocation13_spill] sm:$0xff] %v3559_v0  ;;  %v3570_v57 = vpop.f32.mrf.mxu0  ;;  %v3572_v13 = vpop.f32.mrf.mxu1  ;;  %v1353_v14 = vadd.f32 %v1352_v19, %v1351_v58  ;;  %v1661_v18 = vsel %vm1332_vm1, %v1621_v63, 0.0  ;;  %v1419_v48 = vsel %vm1332_vm1, %v3559_v0, 0.0  ;;  %v1722_v61 = vmul.f32 %v3559_v0, %v3559_v0 }
  0xed   :  { %6151 = vst [vmem:[#allocation14_spill] sm:$0xff] %v3565_v7  ;;  %v1354_v62 = vsel %vm1332_vm1, %v3528_v34, 0.0  ;;  %v1423_v4 = vsel %vm1332_vm1, %v3533_v40, 0.0  ;;  %v1662_v20 = vadd.f32 %v1661_v18, %v1660_v49  ;;  %v1420_v21 = vadd.f32 %v1419_v48, %v1418_v46 }
  0xee   :  { %v3583_v24 = vpop.f32.mrf.mxu0  ;;  %v3585_v25 = vpop.f32.mrf.mxu1  ;;  %v1665_v19 = vsel %vm1332_vm1, %v1623_v38, 0.0  ;;  %v1766_v33 = vsel %vm1332_vm1, %v1724_v56, 0.0  ;;  %v1762_v35 = vsel %vm1332_vm1, %v1722_v61, 0.0  ;;  %v1626_v39 = vmul.f32 %v3562_v3, %v3562_v3 }
  0xef   :  { %v1664_v37 = vadd.f32 %v1663_v44, %v1662_v20  ;;  %v1422_v51 = vadd.f32 %v1421_v32, %v1420_v21  ;;  %v1763_v47 = vadd.f32 %v1762_v35, %v1761_v1  ;;  %v1355_v58 = vadd.f32 %v1354_v62, %v1353_v14 }
  0xf0   :  { %v3592_v63 = vpop.f32.mrf.mxu0  ;;  %v3594_v46 = vpop.f32.mrf.mxu1  ;;  %v1360_v49 = vsel %vm1332_vm1, %v3562_v3, 0.0  ;;  %v1727_v38 = vmul.f32 %v3565_v7, %v3565_v7  ;;  %v1624_v56 = vmul.f32 %v3568_v8, %v3568_v8  ;;  %v3604_v18 = vadd.f32 %v3365_v2, %v3504_v10 }
  0xf1   :  { %v1765_v32 = vadd.f32 %v1764_v45, %v1763_v47  ;;  %v1429_v44 = vsel %vm1332_vm1, %v3565_v7, 0.0  ;;  %v1666_v1 = vadd.f32 %v1665_v19, %v1664_v37  ;;  %v1424_v14 = vadd.f32 %v1423_v4, %v1422_v51 }
  0xf2   :  { %6152 = vst [vmem:[#allocation15_spill] sm:$0xff] %v3604_v18  ;;  %v3608_v48 = vpop.f32.mrf.mxu0  ;;  %v3610_v61 = vpop.f32.mrf.mxu1  ;;  %v1671_v62 = vsel %vm1332_vm1, %v1626_v39, 0.0  ;;  %v1356_v20 = vsel %vm1332_vm1, %v3568_v8, 0.0  ;;  %v1725_v21 = vmul.f32 %v3604_v18, %v3604_v18  ;;  %v3619_v10 = vadd.f32 %v3519_v26, %v3365_v2 }
  0xf3   :  { %v1357_v45 = vadd.f32 %v1356_v20, %v1355_v58  ;;  %v1425_v4 = vsel %vm1332_vm1, %v3604_v18, 0.0  ;;  %v1767_v19 = vadd.f32 %v1766_v33, %v1765_v32  ;;  %v3625_v35 = vadd.f32 %v3521_v27, %v3365_v2 }
  0xf4   :  { %v3627_v39 = vpop.f32.mrf.mxu0  ;;  %v3629_v37 = vpop.f32.mrf.mxu1  ;;  %v1772_v51 = vsel %vm1332_vm1, %v1727_v38, 0.0  ;;  %v1667_v47 = vsel %vm1332_vm1, %v1624_v56, 0.0  ;;  %v1426_v7 = vadd.f32 %v1425_v4, %v1424_v14  ;;  %v3635_v26 = vadd.f32 %v3365_v2, %v3538_v42 }
  0xf5   :  { %6153 = vst [vmem:[#allocation16_spill] sm:$0xff] %v3625_v35  ;;  %v1668_v58 = vadd.f32 %v1667_v47, %v1666_v1  ;;  %v1768_v33 = vsel %vm1332_vm1, %v1725_v21, 0.0  ;;  %v1627_v27 = vmul.f32 %v3619_v10, %v3619_v10  ;;  %v3642_v32 = vadd.f32 %v3365_v2, %v3540_v43 }
  0xf6   :  { %v3644_v20 = vpop.f32.mrf.mxu0  ;;  %v3646_v38 = vpop.f32.mrf.mxu1  ;;  %v1769_v56 = vadd.f32 %v1768_v33, %v1767_v19  ;;  %v1358_v14 = vsel %vm1332_vm1, %v3635_v26, 0.0  ;;  %v1625_v42 = vmul.f32 %v3635_v26, %v3635_v26  ;;  %v3654_v1 = vadd.f32 %v3550_v54, %v3365_v2 }
  0xf7   :  { %6154 = vst [vmem:[#allocation17_spill] sm:$0xff] %v3642_v32  ;;  %v1728_v21 = vmul.f32 %v3625_v35, %v3625_v35  ;;  %v1359_v43 = vadd.f32 %v1358_v14, %v1357_v45  ;;  %v1427_v4 = vsel %vm1332_vm1, %v3642_v32, 0.0  ;;  %v1726_v19 = vmul.f32 %v3642_v32, %v3642_v32 }
  0xf8   :  { %6155 = vst [vmem:[#allocation18_spill] sm:$0xff] %v3654_v1  ;;  %v3662_v47 = vpop.f32.mrf.mxu0  ;;  %v3664_v33 = vpop.f32.mrf.mxu1  ;;  %v1362_v18 = vsel %vm1332_vm1, %v3619_v10, 0.0  ;;  %v1669_v54 = vsel %vm1332_vm1, %v1625_v42, 0.0  ;;  %v1428_v40 = vadd.f32 %v1427_v4, %v1426_v7  ;;  %v1630_v53 = vmul.f32 %v3654_v1, %v3654_v1 }
  0xf9   :  { %v1361_v45 = vadd.f32 %v1360_v49, %v1359_v43  ;;  %v1670_v14 = vadd.f32 %v1669_v54, %v1668_v58  ;;  %v1770_v0 = vsel %vm1332_vm1, %v1726_v19, 0.0  ;;  %v3674_v32 = vadd.f32 %v3552_v55, %v3365_v2 }
  0xfa   :  { %v3676_v17 = vpop.f32.mrf.mxu0  ;;  %v3678_v23 = vpop.f32.mrf.mxu1  ;;  %v1431_v50 = vsel %vm1332_vm1, %v3625_v35, 0.0  ;;  %v1430_v42 = vadd.f32 %v1429_v44, %v1428_v40  ;;  %v1771_v7 = vadd.f32 %v1770_v0, %v1769_v56  ;;  %v3684_v4 = vadd.f32 %v3365_v2, %v3570_v57 }
  0xfb   :  { %6156 = vst [vmem:[#allocation19_spill] sm:$0xff] %v3674_v32  ;;  %v1673_v49 = vsel %vm1332_vm1, %v1627_v27, 0.0  ;;  %v1774_v58 = vsel %vm1332_vm1, %v1728_v21, 0.0  ;;  %v1672_v43 = vadd.f32 %v1671_v62, %v1670_v14  ;;  %v1363_v55 = vadd.f32 %v1362_v18, %v1361_v45 }
  0xfc   :  { %6157 = vst [vmem:[#allocation20_spill] sm:$0xff] %v3684_v4  ;;  %v3688_v19 = vpop.f32.mrf.mxu0  ;;  %v3690_v54 = vpop.f32.mrf.mxu1  ;;  %v1773_v31 = vadd.f32 %v1772_v51, %v1771_v7  ;;  %v1368_v35 = vsel %vm1332_vm1, %v3654_v1, 0.0  ;;  %v1628_v40 = vmul.f32 %v3684_v4, %v3684_v4  ;;  %v3698_v0 = vadd.f32 %v3365_v2, %v3572_v13 }
  0xfd   :  { %v1679_v57 = vsel %vm1332_vm1, %v1630_v53, 0.0  ;;  %v1731_v18 = vmul.f32 %v3674_v32, %v3674_v32  ;;  %v1674_v44 = vadd.f32 %v1673_v49, %v1672_v43  ;;  %v1432_v62 = vadd.f32 %v1431_v50, %v1430_v42 }
  0xfe   :  { %6158 = vst [vmem:[#allocation21_spill] sm:$0xff] %v3698_v0  ;;  %v3703_v27 = vpop.f32.mrf.mxu0  ;;  %v3705_v51 = vpop.f32.mrf.mxu1  ;;  %v1364_v56 = vsel %vm1332_vm1, %v3684_v4, 0.0  ;;  %v1433_v21 = vsel %vm1332_vm1, %v3698_v0, 0.0  ;;  %v1729_v13 = vmul.f32 %v3698_v0, %v3698_v0  ;;  %v1775_v45 = vadd.f32 %v1774_v58, %v1773_v31 }
  0xff   :  { %v1365_v53 = vadd.f32 %v1364_v56, %v1363_v55  ;;  %v1675_v14 = vsel %vm1332_vm1, %v1628_v40, 0.0  ;;  %v1434_v7 = vadd.f32 %v1433_v21, %v1432_v62  ;;  %v3716_v50 = vadd.f32 %v3583_v24, %v3365_v2 }
 0x100   :  { %v3718_v42 = vpop.f32.mrf.mxu0  ;;  %v3720_v49 = vpop.f32.mrf.mxu1  ;;  %v3724_v43 = vadd.f32 %v3585_v25, %v3365_v2  ;;  %v3728_v0 = vadd.f32 %v3365_v2, %v3592_v63  ;;  %v3732_v31 = vadd.f32 %v3365_v2, %v3594_v46  ;;  %v3736_v24 = vadd.f32 %v3608_v48, %v3365_v2 }
 0x101   :  { %6159 = vst [vmem:[#allocation22_spill] sm:$0xff] %v3716_v50  ;;  %v1437_v58 = vsel %vm1332_vm1, %v3674_v32, 0.0  ;;  %v1780_v55 = vsel %vm1332_vm1, %v1731_v18, 0.0  ;;  %v1676_v40 = vadd.f32 %v1675_v14, %v1674_v44  ;;  %v1776_v25 = vsel %vm1332_vm1, %v1729_v13, 0.0 }
 0x102   :  { %6160 = vst [vmem:[#allocation23_spill] sm:$0xff] %v3724_v43  ;;  %6161 = vst [vmem:[#allocation24_spill] sm:$0xff] %v3728_v0  ;;  %v3742_v62 = vpop.f32.mrf.mxu0  ;;  %v3744_v63 = vpop.f32.mrf.mxu1  ;;  %v1777_v56 = vadd.f32 %v1776_v25, %v1775_v45  ;;  %v1366_v46 = vsel %vm1332_vm1, %v3728_v0, 0.0  ;;  %v1629_v48 = vmul.f32 %v3728_v0, %v3728_v0  ;;  %v1435_v21 = vsel %vm1332_vm1, %v3732_v31, 0.0 }
 0x103   :  { %6162 = vst [vmem:[#allocation25_spill] sm:$0xff] %v3732_v31  ;;  %6163 = vst [vmem:[#allocation26_spill] sm:$0xff] %v3736_v24  ;;  %v1370_v18 = vsel %vm1332_vm1, %v3716_v50, 0.0  ;;  %v1367_v44 = vadd.f32 %v1366_v46, %v1365_v53  ;;  %v1436_v14 = vadd.f32 %v1435_v21, %v1434_v7  ;;  %v1730_v13 = vmul.f32 %v3732_v31, %v3732_v31 }
 0x104   :  { %v3756_v32 = vpop.f32.mrf.mxu0  ;;  %v3758_v45 = vpop.f32.mrf.mxu1  ;;  %v1631_v25 = vmul.f32 %v3716_v50, %v3716_v50  ;;  %v1732_v60 = vmul.f32 %v3724_v43, %v3724_v43  ;;  %v1677_v16 = vsel %vm1332_vm1, %v1629_v48, 0.0  ;;  %v1634_v6 = vmul.f32 %v3736_v24, %v3736_v24 }
 0x105   :  { %v1369_v53 = vadd.f32 %v1368_v35, %v1367_v44  ;;  %v1678_v7 = vadd.f32 %v1677_v16, %v1676_v40  ;;  %v1438_v46 = vadd.f32 %v1437_v58, %v1436_v14  ;;  %v1778_v21 = vsel %vm1332_vm1, %v1730_v13, 0.0 }
 0x106   :  { %v3768_v31 = vpop.f32.mrf.mxu0  ;;  %v3770_v30 = vpop.f32.mrf.mxu1  ;;  %v1439_v12 = vsel %vm1332_vm1, %v3724_v43, 0.0  ;;  %v1779_v50 = vadd.f32 %v1778_v21, %v1777_v56  ;;  %v3776_v1 = vadd.f32 %v3610_v61, %v3365_v2  ;;  %v3780_v48 = vadd.f32 %v3365_v2, %v3627_v39 }
 0x107   :  { %v1680_v16 = vadd.f32 %v1679_v57, %v1678_v7  ;;  %v1371_v35 = vadd.f32 %v1370_v18, %v1369_v53  ;;  %v3784_v58 = vadd.f32 %v3365_v2, %v3629_v37  ;;  %v1440_v40 = vadd.f32 %v1439_v12, %v1438_v46 }
 0x108   :  { %6164 = vst [vmem:[#allocation27_spill] sm:$0xff] %v3776_v1  ;;  %6165 = vst [vmem:[#allocation28_spill] sm:$0xff] %v3780_v48  ;;  %v3786_v44 = vpop.f32.mrf.mxu0  ;;  %v1681_v14 = vsel %vm1332_vm1, %v1631_v25, 0.0  ;;  %v1782_v56 = vsel %vm1332_vm1, %v1732_v60, 0.0  ;;  %v1781_v13 = vadd.f32 %v1780_v55, %v1779_v50  ;;  %v1376_v61 = vsel %vm1332_vm1, %v3736_v24, 0.0  ;;  %v3792_v21 = vpop.f32.mrf.mxu1 }
 0x109   :  { %6166 = vst [vmem:[#allocation29_spill] sm:$0xff] %v3784_v58  ;;  %v1687_v39 = vsel %vm1332_vm1, %v1634_v6, 0.0  ;;  %v1735_v57 = vmul.f32 %v3776_v1, %v3776_v1  ;;  %v1632_v12 = vmul.f32 %v3780_v48, %v3780_v48  ;;  %v1682_v37 = vadd.f32 %v1681_v14, %v1680_v16 }
 0x10a   :  { %v1372_v18 = vsel %vm1332_vm1, %v3780_v48, 0.0  ;;  %v1441_v60 = vsel %vm1332_vm1, %v3784_v58, 0.0  ;;  %v1733_v50 = vmul.f32 %v3784_v58, %v3784_v58  ;;  %v1783_v55 = vadd.f32 %v1782_v56, %v1781_v13  ;;  %v3805_v25 = vpop.f32.mrf.mxu0 }
 0x10b   :  { %v1373_v6 = vadd.f32 %v1372_v18, %v1371_v35  ;;  %v1442_v53 = vadd.f32 %v1441_v60, %v1440_v40  ;;  %v3809_v7 = vadd.f32 %v3644_v20, %v3365_v2  ;;  %v3813_v46 = vadd.f32 %v3365_v2, %v3662_v47  ;;  %v3826_v40 = vpop.f32.mrf.mxu1 }
 0x10c   :  { %v1445_v16 = vsel %vm1332_vm1, %v3776_v1, 0.0  ;;  %v1683_v14 = vsel %vm1332_vm1, %v1632_v12, 0.0  ;;  %v3820_v56 = vadd.f32 %v3646_v38, %v3365_v2  ;;  %v3824_v35 = vadd.f32 %v3365_v2, %v3664_v33  ;;  %v3840_v1 = vpop.f32.mrf.mxu0 }
 0x10d   :  { %6167 = vst [vmem:[#allocation30_spill] sm:$0xff] %v3809_v7  ;;  %6168 = vst [vmem:[#allocation31_spill] sm:$0xff] %v3813_v46  ;;  %v1788_v20 = vsel %vm1332_vm1, %v1735_v57, 0.0  ;;  %v1684_v13 = vadd.f32 %v1683_v14, %v1682_v37  ;;  %v1784_v47 = vsel %vm1332_vm1, %v1733_v50, 0.0  ;;  %v3832_v18 = vadd.f32 %v3676_v17, %v3365_v2  ;;  %v3853_v43 = vpop.f32.mrf.mxu1 }
 0x10e   :  { %6169 = vst [vmem:[#allocation32_spill] sm:$0xff] %v3820_v56  ;;  %6170 = vst [vmem:[#allocation33_spill] sm:$0xff] %v3824_v35  ;;  %v1785_v12 = vadd.f32 %v1784_v47, %v1783_v55  ;;  %v1374_v38 = vsel %vm1332_vm1, %v3813_v46, 0.0  ;;  %v1633_v60 = vmul.f32 %v3813_v46, %v3813_v46  ;;  %v1443_v33 = vsel %vm1332_vm1, %v3824_v35, 0.0 }
 0x10f   :  { %6171 = vst [vmem:[#allocation34_spill] sm:$0xff] %v3832_v18  ;;  %v1378_v57 = vsel %vm1332_vm1, %v3809_v7, 0.0  ;;  %v1375_v37 = vadd.f32 %v1374_v38, %v1373_v6  ;;  %v1444_v50 = vadd.f32 %v1443_v33, %v1442_v53  ;;  %v1734_v17 = vmul.f32 %v3824_v35, %v3824_v35 }
 0x110   :  { %v1635_v55 = vmul.f32 %v3809_v7, %v3809_v7  ;;  %v1447_v14 = vsel %vm1332_vm1, %v3820_v56, 0.0  ;;  %v1736_v47 = vmul.f32 %v3820_v56, %v3820_v56  ;;  %v1685_v58 = vsel %vm1332_vm1, %v1633_v60, 0.0  ;;  %v3866_v60 = vpop.f32.mrf.mxu0 }
 0x111   :  { %v1377_v24 = vadd.f32 %v1376_v61, %v1375_v37  ;;  %v1686_v46 = vadd.f32 %v1685_v58, %v1684_v13  ;;  %v1446_v6 = vadd.f32 %v1445_v16, %v1444_v50  ;;  %v1786_v53 = vsel %vm1332_vm1, %v1734_v17, 0.0 }
 0x112   :  { %v1787_v38 = vadd.f32 %v1786_v53, %v1785_v12  ;;  %v1638_v33 = vmul.f32 %v3832_v18, %v3832_v18  ;;  %v3860_v35 = vadd.f32 %v3678_v23, %v3365_v2  ;;  %v3864_v56 = vadd.f32 %v3365_v2, %v3688_v19  ;;  %v3874_v23 = vpop.f32.mrf.mxu1  ;;  %v3888_v17 = vpop.f32.mrf.mxu0 }
 0x113   :  { %v1688_v7 = vadd.f32 %v1687_v39, %v1686_v46  ;;  %v1379_v61 = vadd.f32 %v1378_v57, %v1377_v24  ;;  %v3870_v58 = vadd.f32 %v3365_v2, %v3690_v54  ;;  %v1448_v16 = vadd.f32 %v1447_v14, %v1446_v6 }
 0x114   :  { %6172 = vst [vmem:[#allocation35_spill] sm:$0xff] %v3860_v35  ;;  %6173 = vst [vmem:[#allocation36_spill] sm:$0xff] %v3864_v56  ;;  %v1689_v13 = vsel %vm1332_vm1, %v1635_v55, 0.0  ;;  %v1790_v12 = vsel %vm1332_vm1, %v1736_v47, 0.0  ;;  %v1789_v37 = vadd.f32 %v1788_v20, %v1787_v38  ;;  %v1384_v19 = vsel %vm1332_vm1, %v3832_v18, 0.0 }
 0x115   :  { %6174 = vst [vmem:[#allocation37_spill] sm:$0xff] %v3870_v58  ;;  %v1739_v50 = vmul.f32 %v3860_v35, %v3860_v35  ;;  %v1636_v24 = vmul.f32 %v3864_v56, %v3864_v56  ;;  %v1690_v39 = vadd.f32 %v1689_v13, %v1688_v7  ;;  %v1380_v54 = vsel %vm1332_vm1, %v3864_v56, 0.0 }
 0x116   :  { %v1449_v46 = vsel %vm1332_vm1, %v3870_v58, 0.0  ;;  %v1737_v20 = vmul.f32 %v3870_v58, %v3870_v58  ;;  %v1791_v57 = vadd.f32 %v1790_v12, %v1789_v37  ;;  %v1695_v55 = vsel %vm1332_vm1, %v1638_v33, 0.0  ;;  %v3908_v33 = vpop.f32.mrf.mxu1 }
 0x117   :  { %v1381_v14 = vadd.f32 %v1380_v54, %v1379_v61  ;;  %v1450_v47 = vadd.f32 %v1449_v46, %v1448_v16  ;;  %v3893_v6 = vadd.f32 %v3365_v2, %v3718_v42  ;;  %v1691_v7 = vsel %vm1332_vm1, %v1636_v24, 0.0  ;;  %v3920_v24 = vpop.f32.mrf.mxu0 }
 0x118   :  { %v3898_v53 = vadd.f32 %v3703_v27, %v3365_v2  ;;  %v3902_v38 = vadd.f32 %v3705_v51, %v3365_v2  ;;  %v3906_v13 = vadd.f32 %v3365_v2, %v3720_v49  ;;  %v1453_v42 = vsel %vm1332_vm1, %v3860_v35, 0.0 }
 0x119   :  { %6175 = vst [vmem:[#allocation38_spill] sm:$0xff] %v3893_v6  ;;  %v1796_v61 = vsel %vm1332_vm1, %v1739_v50, 0.0  ;;  %v1692_v16 = vadd.f32 %v1691_v7, %v1690_v39  ;;  %v1792_v12 = vsel %vm1332_vm1, %v1737_v20, 0.0  ;;  %v1382_v37 = vsel %vm1332_vm1, %v3893_v6, 0.0 }
 0x11a   :  { %6176 = vst [vmem:[#allocation39_spill] sm:$0xff] %v3898_v53  ;;  %6177 = vst [vmem:[#allocation40_spill] sm:$0xff] %v3902_v38  ;;  %v1793_v27 = vadd.f32 %v1792_v12, %v1791_v57  ;;  %v1637_v51 = vmul.f32 %v3893_v6, %v3893_v6  ;;  %v1451_v49 = vsel %vm1332_vm1, %v3906_v13, 0.0  ;;  %v1383_v54 = vadd.f32 %v1382_v37, %v1381_v14  ;;  %v3935_v14 = vpop.f32.mrf.mxu1 }
 0x11b   :  { %6178 = vst [vmem:[#allocation41_spill] sm:$0xff] %v3906_v13  ;;  %v1452_v46 = vadd.f32 %v1451_v49, %v1450_v47  ;;  %v1738_v50 = vmul.f32 %v3906_v13, %v3906_v13  ;;  %v3926_v39 = vadd.f32 %v3742_v62, %v3365_v2  ;;  %v1386_v20 = vsel %vm1332_vm1, %v3898_v53, 0.0 }
 0x11c   :  { %v1639_v57 = vmul.f32 %v3898_v53, %v3898_v53  ;;  %v1740_v7 = vmul.f32 %v3902_v38, %v3902_v38  ;;  %v1693_v12 = vsel %vm1332_vm1, %v1637_v51, 0.0  ;;  %v1385_v47 = vadd.f32 %v1384_v19, %v1383_v54  ;;  %v3948_v51 = vpop.f32.mrf.mxu0 }
 0x11d   :  { %6179 = vst [vmem:[#allocation42_spill] sm:$0xff] %v3926_v39  ;;  %v1694_v37 = vadd.f32 %v1693_v12, %v1692_v16  ;;  %v1454_v49 = vadd.f32 %v1453_v42, %v1452_v46  ;;  %v1794_v35 = vsel %vm1332_vm1, %v1738_v50, 0.0  ;;  %v1455_v62 = vsel %vm1332_vm1, %v3902_v38, 0.0  ;;  %v3958_v46 = vpop.f32.mrf.mxu1 }
 0x11e   :  { %v1795_v13 = vadd.f32 %v1794_v35, %v1793_v27  ;;  %v3942_v58 = vadd.f32 %v3744_v63, %v3365_v2  ;;  %v3946_v53 = vadd.f32 %v3365_v2, %v3756_v32  ;;  %v1387_v19 = vadd.f32 %v1386_v20, %v1385_v47 }
 0x11f   :  { %v1696_v18 = vadd.f32 %v1695_v55, %v1694_v37  ;;  %v3952_v42 = vadd.f32 %v3365_v2, %v3758_v45  ;;  %v1456_v16 = vadd.f32 %v1455_v62, %v1454_v49  ;;  %v1697_v54 = vsel %vm1332_vm1, %v1639_v57, 0.0 }
 0x120   :  { %6180 = vst [vmem:[#allocation43_spill] sm:$0xff] %v3942_v58  ;;  %6181 = vst [vmem:[#allocation44_spill] sm:$0xff] %v3946_v53  ;;  %v1798_v35 = vsel %vm1332_vm1, %v1740_v7, 0.0  ;;  %v1797_v27 = vadd.f32 %v1796_v61, %v1795_v13  ;;  %v1388_v63 = vsel %vm1332_vm1, %v3946_v53, 0.0  ;;  %v1642_v32 = vmul.f32 %v3926_v39, %v3926_v39  ;;  %v3970_v7 = vpop.f32.mrf.mxu0 }
 0x121   :  { %6182 = vst [vmem:[#allocation45_spill] sm:$0xff] %v3952_v42  ;;  %v1389_v55 = vadd.f32 %v1388_v63, %v1387_v19  ;;  %v1640_v50 = vmul.f32 %v3946_v53, %v3946_v53  ;;  %v1698_v45 = vadd.f32 %v1697_v54, %v1696_v18  ;;  %v1392_v20 = vsel %vm1332_vm1, %v3926_v39, 0.0 }
 0x122   :  { %v1457_v57 = vsel %vm1332_vm1, %v3952_v42, 0.0  ;;  %v1741_v13 = vmul.f32 %v3952_v42, %v3952_v42  ;;  %v1799_v61 = vadd.f32 %v1798_v35, %v1797_v27  ;;  %v1743_v12 = vmul.f32 %v3942_v58, %v3942_v58  ;;  %v3991_v35 = vpop.f32.mrf.mxu1 }
 0x123   :  { %v1699_v47 = vsel %vm1332_vm1, %v1640_v50, 0.0  ;;  %v1458_v37 = vadd.f32 %v1457_v57, %v1456_v16  ;;  %v3977_v18 = vadd.f32 %v3365_v2, %v3786_v44  ;;  %v3981_v62 = vadd.f32 %v3768_v31, %v3365_v2 }
 0x124   :  { %v1700_v49 = vadd.f32 %v1699_v47, %v1698_v45  ;;  %v3985_v19 = vadd.f32 %v3770_v30, %v3365_v2  ;;  %v3989_v54 = vadd.f32 %v3365_v2, %v3792_v21  ;;  %v1703_v16 = vsel %vm1332_vm1, %v1642_v32, 0.0  ;;  %v4007_v32 = vpop.f32.mrf.mxu0  ;;  %v4019_v42 = vpop.f32.mrf.mxu1 }
 0x125   :  { %6183 = vst [vmem:[#allocation46_spill] sm:$0xff] %v3977_v18  ;;  %6184 = vst [vmem:[#allocation47_spill] sm:$0xff] %v3981_v62  ;;  %v1461_v44 = vsel %vm1332_vm1, %v3942_v58, 0.0  ;;  %v1800_v27 = vsel %vm1332_vm1, %v1741_v13, 0.0  ;;  %v3999_v31 = vadd.f32 %v3805_v25, %v3365_v2  ;;  %v1390_v30 = vsel %vm1332_vm1, %v3977_v18, 0.0 }
 0x126   :  { %6185 = vst [vmem:[#allocation48_spill] sm:$0xff] %v3985_v19  ;;  %6186 = vst [vmem:[#allocation49_spill] sm:$0xff] %v3989_v54  ;;  %v1801_v63 = vadd.f32 %v1800_v27, %v1799_v61  ;;  %v1641_v21 = vmul.f32 %v3977_v18, %v3977_v18  ;;  %v1459_v50 = vsel %vm1332_vm1, %v3989_v54, 0.0  ;;  %v1804_v45 = vsel %vm1332_vm1, %v1743_v12, 0.0  ;;  %v4030_v39 = vpop.f32.mrf.mxu0 }
 0x127   :  { %6187 = vst [vmem:[#allocation50_spill] sm:$0xff] %v3999_v31  ;;  %v1391_v57 = vadd.f32 %v1390_v30, %v1389_v55  ;;  %v1460_v13 = vadd.f32 %v1459_v50, %v1458_v37  ;;  %v1742_v25 = vmul.f32 %v3989_v54, %v3989_v54  ;;  %v1394_v61 = vsel %vm1332_vm1, %v3981_v62, 0.0 }
 0x128   :  { %v1643_v47 = vmul.f32 %v3981_v62, %v3981_v62  ;;  %v1744_v27 = vmul.f32 %v3985_v19, %v3985_v19  ;;  %v1701_v58 = vsel %vm1332_vm1, %v1641_v21, 0.0  ;;  %v1463_v30 = vsel %vm1332_vm1, %v3985_v19, 0.0 }
 0x129   :  { %v1393_v38 = vadd.f32 %v1392_v20, %v1391_v57  ;;  %v1702_v12 = vadd.f32 %v1701_v58, %v1700_v49  ;;  %v1462_v55 = vadd.f32 %v1461_v44, %v1460_v13  ;;  %v1802_v37 = vsel %vm1332_vm1, %v1742_v25, 0.0  ;;  %v4041_v57 = vpop.f32.mrf.mxu1 }
 0x12a   :  { %v1803_v50 = vadd.f32 %v1802_v37, %v1801_v63  ;;  %v1817_v54 = vmul.f32 %v3999_v31, %v3999_v31  ;;  %v4028_v62 = vadd.f32 %v3365_v2, %v3840_v1  ;;  %v4034_v58 = vadd.f32 %v3365_v2, %v3853_v43 }
 0x12b   :  { %v1395_v21 = vadd.f32 %v1394_v61, %v1393_v38  ;;  %v1704_v18 = vadd.f32 %v1703_v16, %v1702_v12  ;;  %v1464_v20 = vadd.f32 %v1463_v30, %v1462_v55  ;;  %v1705_v49 = vsel %vm1332_vm1, %v1643_v47, 0.0  ;;  %v4049_v47 = vpop.f32.mrf.mxu0 }
 0x12c   :  { %6188 = vst [vmem:[#allocation51_spill] sm:$0xff] %v4028_v62  ;;  %6189 = vst [vmem:[#allocation52_spill] sm:$0xff] %v4034_v58  ;;  %v1805_v44 = vadd.f32 %v1804_v45, %v1803_v50  ;;  %v4039_v63 = vadd.f32 %v3826_v40, %v3365_v2  ;;  %v1806_v1 = vsel %vm1332_vm1, %v1744_v27, 0.0  ;;  %v1475_v61 = vsel %vm1332_vm1, %v3999_v31, 0.0  ;;  %v4061_v50 = vpop.f32.mrf.mxu1 }
 0x12d   :  { %v1396_v13 = vrot.slane %v1395_v21, 4  ;;  %v1706_v25 = vadd.f32 %v1705_v49, %v1704_v18  ;;  %v1465_v38 = vrot.slane %v1464_v20, 4  ;;  %v1850_v43 = vsel %vm1332_vm1, %v1817_v54, 0.0 }
 0x12e   :  { %6190 = vst [vmem:[#allocation53_spill] sm:$0xff] %v4039_v63  ;;  %v1807_v16 = vadd.f32 %v1806_v1, %v1805_v44  ;;  %v1815_v45 = vmul.f32 %v4028_v62, %v4028_v62  ;;  %v1917_v27 = vmul.f32 %v4034_v58, %v4034_v58  ;;  %v1545_v18 = vsel %vm1332_vm1, %v4039_v63, 0.0 }
 0x12f   :  { %v1397_v40 = vadd.f32 %v1396_v13, %v1395_v21  ;;  %v1707_v12 = vrot.slane %v1706_v25, 4  ;;  %v1466_v55 = vadd.f32 %v1465_v38, %v1464_v20  ;;  %v1919_v30 = vmul.f32 %v4039_v63, %v4039_v63 }
 0x130   :  { %v1808_v37 = vrot.slane %v1807_v16, 4  ;;  %v4059_v54 = vadd.f32 %v3866_v60, %v3365_v2  ;;  %v4065_v20 = vadd.f32 %v3365_v2, %v3888_v17  ;;  %v1472_v13 = vsel %vm1332_vm1, %v4028_v62, 0.0  ;;  %v4072_v60 = vpop.f32.mrf.mxu0 }
 0x131   :  { %v1398_v49 = vrot.slane %v1397_v40, 2  ;;  %v1708_v21 = vadd.f32 %v1707_v12, %v1706_v25  ;;  %v1467_v44 = vrot.slane %v1466_v55, 2  ;;  %v1847_v38 = vsel %vm1332_vm1, %v1815_v45, 0.0 }
 0x132   :  { %6191 = vst [vmem:[#allocation54_spill] sm:$0xff] %v4065_v20  ;;  %v1809_v1 = vadd.f32 %v1808_v37, %v1807_v16  ;;  %v1542_v63 = vsel %vm1332_vm1, %v4034_v58, 0.0  ;;  %v1949_v25 = vsel %vm1332_vm1, %v1917_v27, 0.0  ;;  %v4077_v17 = vadd.f32 %v3874_v23, %v3365_v2  ;;  %v4083_v37 = vpop.f32.mrf.mxu1  ;;  %v4092_v6 = vpop.f32.mrf.mxu0 }
 0x133   :  { %v1399_v31 = vadd.f32 %v1398_v49, %v1397_v40  ;;  %v1709_v19 = vrot.slane %v1708_v21, 2  ;;  %v1468_v53 = vadd.f32 %v1467_v44, %v1466_v55  ;;  %v1473_v16 = vsel %vm1332_vm1, %v4065_v20, 0.0 }
 0x134   :  { %v1810_v12 = vrot.slane %v1809_v1, 2  ;;  %6192 = vst [vmem:[#allocation55_spill] sm:$0xff] %v4077_v17  ;;  %v1816_v45 = vmul.f32 %v4065_v20, %v4065_v20  ;;  %v1818_v55 = vmul.f32 %v4059_v54, %v4059_v54  ;;  %v1474_v49 = vadd.f32 %v1473_v16, %v1472_v13  ;;  %v4098_v13 = vpop.f32.mrf.mxu1 }
 0x135   :  { %v1400_v58 = vrot.slane %v1399_v31, 1  ;;  %v1710_v62 = vadd.f32 %v1709_v19, %v1708_v21  ;;  %v1469_v40 = vrot.slane %v1468_v53, 1  ;;  %v4090_v23 = vadd.f32 %v3365_v2, %v3908_v33 }
 0x136   :  { %v1811_v27 = vadd.f32 %v1810_v12, %v1809_v1  ;;  %v1848_v44 = vsel %vm1332_vm1, %v1816_v45, 0.0  ;;  %v1476_v19 = vadd.f32 %v1475_v61, %v1474_v49  ;;  %v1920_v2 = vmul.f32 %v4077_v17, %v4077_v17  ;;  %v4110_v61 = vld [vmem:[%s5962_s2] ss:$0 sm:$0xff] }
 0x137   :  { %6193 = vst [vmem:[#allocation56_spill] sm:$0xff] %v4090_v23  ;;  %v1401_v56 = vadd.f32 %v1400_v58, %v1399_v31  ;;  %v1711_v20 = vrot.slane %v1710_v62, 1  ;;  %v1470_v48 = vadd.f32 %v1469_v40, %v1468_v53  ;;  %v1849_v0 = vadd.f32 %v1848_v44, %v1847_v38 }
 0x138   :  { %v1812_v4 = vrot.slane %v1811_v27, 1  ;;  %v1543_v21 = vsel %vm1332_vm1, %v4090_v23, 0.0  ;;  %v1918_v1 = vmul.f32 %v4090_v23, %v4090_v23  ;;  %v1477_v53 = vsel %vm1332_vm1, %v4059_v54, 0.0 }
 0x139   :  { %v1712_v12 = vadd.f32 %v1711_v20, %v1710_v62  ;;  %v4100_v16 = vadd.f32 %v1470_v48, %v1401_v56  ;;  %v1544_v33 = vadd.f32 %v1543_v21, %v1542_v63  ;;  %v4114_v62 = vadd.f32 %v4110_v61, %v3920_v24  ;;  %v4116_v48 = vpop.f32.mrf.mxu0 }
 0x13a   :  { %v1813_v31 = vadd.f32 %v1812_v4, %v1811_v27  ;;  %v1950_v58 = vsel %vm1332_vm1, %v1918_v1, 0.0  ;;  %v1851_v56 = vadd.f32 %v1850_v43, %v1849_v0  ;;  %v4120_v4 = vadd.f32 %v4110_v61, %v3948_v51  ;;  %v4125_v27 = vpop.f32.mrf.mxu1 }
 0x13b   :  { %v1546_v20 = vadd.f32 %v1545_v18, %v1544_v33  ;;  %v1951_v63 = vadd.f32 %v1950_v58, %v1949_v25  ;;  %v1952_v45 = vsel %vm1332_vm1, %v1919_v30, 0.0  ;;  %v1478_v40 = vadd.f32 %v1477_v53, %v1476_v19 }
 0x13c   :  { %v4122_v38 = vadd.f32 %v1813_v31, %v1712_v12  ;;  %v1852_v49 = vsel %vm1332_vm1, %v1818_v55, 0.0  ;;  %v1547_v24 = vsel %vm1332_vm1, %v4077_v17, 0.0  ;;  %v1954_v0 = vsel %vm1332_vm1, %v1920_v2, 0.0  ;;  %v4143_v55 = vpop.f32.mrf.mxu0 }
 0x13d   :  { %v1953_v43 = vadd.f32 %v1952_v45, %v1951_v63  ;;  %v1483_v18 = vsel %vm1332_vm1, %v4114_v62, 0.0  ;;  %v4135_v51 = vadd.f32 %v4110_v61, %v3935_v14  ;;  %v1819_v30 = vmul.f32 %v4120_v4, %v4120_v4 }
 0x13e   :  { %v4141_v25 = vadd.f32 %v4110_v61, %v3958_v46  ;;  %v1821_v44 = vmul.f32 %v4114_v62, %v4114_v62  ;;  %v1479_v19 = vsel %vm1332_vm1, %v4120_v4, 0.0  ;;  %v1853_v21 = vadd.f32 %v1852_v49, %v1851_v56  ;;  %v4153_v46 = vpop.f32.mrf.mxu1 }
 0x13f   :  { %6194 = vst [vmem:[#allocation57_spill] sm:$0xff] %v4135_v51  ;;  %v1548_v1 = vadd.f32 %v1547_v24, %v1546_v20  ;;  %v1480_v12 = vadd.f32 %v1479_v19, %v1478_v40  ;;  %v1955_v33 = vadd.f32 %v1954_v0, %v1953_v43  ;;  %v4157_v53 = vadd.f32 %v4110_v61, %v3970_v7  ;;  %v4176_v40 = vpop.f32.mrf.mxu0 }
 0x140   :  { %6195 = vst [vmem:[#allocation58_spill] sm:$0xff] %v4141_v25  ;;  %v1549_v14 = vsel %vm1332_vm1, %v4141_v25, 0.0  ;;  %v1921_v2 = vmul.f32 %v4141_v25, %v4141_v25  ;;  %v4161_v58 = vadd.f32 %v4110_v61, %v4007_v32  ;;  %v4165_v56 = vadd.f32 %v4110_v61, %v4019_v42 }
 0x141   :  { %v1550_v31 = vadd.f32 %v1549_v14, %v1548_v1  ;;  %v1553_v20 = vsel %vm1332_vm1, %v4135_v51, 0.0  ;;  %v1923_v63 = vmul.f32 %v4135_v51, %v4135_v51  ;;  %v1854_v45 = vsel %vm1332_vm1, %v1819_v30, 0.0 }
 0x142   :  { %6196 = vst [vmem:[#allocation59_spill] sm:$0xff] %v4165_v56  ;;  %v4174_v7 = vadd.f32 %v4110_v61, %v3991_v35  ;;  %v1858_v32 = vsel %vm1332_vm1, %v1821_v44, 0.0  ;;  %v1855_v49 = vadd.f32 %v1854_v45, %v1853_v21  ;;  %v1956_v42 = vsel %vm1332_vm1, %v1921_v2, 0.0  ;;  %v4186_v35 = vpop.f32.mrf.mxu1 }
 0x143   :  { %v1481_v24 = vsel %vm1332_vm1, %v4161_v58, 0.0  ;;  %v1957_v0 = vadd.f32 %v1956_v42, %v1955_v33  ;;  %v1820_v19 = vmul.f32 %v4161_v58, %v4161_v58  ;;  %v1551_v30 = vsel %vm1332_vm1, %v4165_v56, 0.0  ;;  %v4200_v42 = vpop.f32.mrf.mxu0 }
 0x144   :  { %6197 = vst [vmem:[#allocation60_spill] sm:$0xff] %v4174_v7  ;;  %v1482_v43 = vadd.f32 %v1481_v24, %v1480_v12  ;;  %v1822_v1 = vmul.f32 %v4157_v53, %v4157_v53  ;;  %v1552_v44 = vadd.f32 %v1551_v30, %v1550_v31  ;;  %v1922_v21 = vmul.f32 %v4165_v56, %v4165_v56 }
 0x145   :  { %v4194_v14 = vadd.f32 %v4110_v61, %v4030_v39  ;;  %v1960_v12 = vsel %vm1332_vm1, %v1923_v63, 0.0  ;;  %v1924_v2 = vmul.f32 %v4174_v7, %v4174_v7  ;;  %v1856_v45 = vsel %vm1332_vm1, %v1820_v19, 0.0 }
 0x146   :  { %v1484_v33 = vadd.f32 %v1483_v18, %v1482_v43  ;;  %v1857_v24 = vadd.f32 %v1856_v45, %v1855_v49  ;;  %v1554_v51 = vadd.f32 %v1553_v20, %v1552_v44  ;;  %v1958_v31 = vsel %vm1332_vm1, %v1922_v21, 0.0  ;;  %v4215_v43 = vpop.f32.mrf.mxu1 }
 0x147   :  { %6198 = vst [vmem:[#allocation61_spill] sm:$0xff] %v4194_v14  ;;  %v4205_v30 = vadd.f32 %v4110_v61, %v4049_v47  ;;  %v1485_v39 = vsel %vm1332_vm1, %v4157_v53, 0.0  ;;  %v1555_v63 = vsel %vm1332_vm1, %v4174_v7, 0.0  ;;  %v1959_v56 = vadd.f32 %v1958_v31, %v1957_v0 }
 0x148   :  { %v4213_v18 = vadd.f32 %v4110_v61, %v4041_v57  ;;  %v1860_v20 = vsel %vm1332_vm1, %v1822_v1, 0.0  ;;  %v1859_v49 = vadd.f32 %v1858_v32, %v1857_v24  ;;  %v1825_v47 = vmul.f32 %v4194_v14, %v4194_v14  ;;  %v4226_v57 = vpop.f32.mrf.mxu0  ;;  %v4237_v24 = vpop.f32.mrf.mxu1 }
 0x149   :  { %v1486_v19 = vadd.f32 %v1485_v39, %v1484_v33  ;;  %v1961_v44 = vadd.f32 %v1960_v12, %v1959_v56  ;;  %v1823_v21 = vmul.f32 %v4205_v30, %v4205_v30  ;;  %v4224_v0 = vadd.f32 %v4110_v61, %v4061_v50 }
 0x14a   :  { %6199 = vst [vmem:[#allocation62_spill] sm:$0xff] %v4213_v18  ;;  %v1556_v45 = vadd.f32 %v1555_v63, %v1554_v51  ;;  %v1962_v31 = vsel %vm1332_vm1, %v1924_v2, 0.0  ;;  %v1491_v32 = vsel %vm1332_vm1, %v4194_v14, 0.0  ;;  %v1861_v1 = vadd.f32 %v1860_v20, %v1859_v49 }
 0x14b   :  { %6200 = vst [vmem:[#allocation63_spill] sm:$0xff] %v4224_v0  ;;  %v1927_v33 = vmul.f32 %v4213_v18, %v4213_v18  ;;  %v1487_v56 = vsel %vm1332_vm1, %v4205_v30, 0.0  ;;  %v1925_v12 = vmul.f32 %v4224_v0, %v4224_v0  ;;  %v1963_v50 = vadd.f32 %v1962_v31, %v1961_v44 }
 0x14c   :  { %v1866_v51 = vsel %vm1332_vm1, %v1825_v47, 0.0  ;;  %v1488_v39 = vadd.f32 %v1487_v56, %v1486_v19  ;;  %v1557_v2 = vsel %vm1332_vm1, %v4224_v0, 0.0  ;;  %v4244_v63 = vadd.f32 %v4110_v61, %v4072_v60  ;;  %v4255_v47 = vpop.f32.mrf.mxu0 }
 0x14d   :  { %v1862_v20 = vsel %vm1332_vm1, %v1823_v21, 0.0  ;;  %v1558_v49 = vadd.f32 %v1557_v2, %v1556_v45  ;;  %v4249_v7 = vadd.f32 %v4110_v61, %v4083_v37  ;;  %v4253_v44 = vadd.f32 %v4110_v61, %v4092_v6  ;;  %v4269_v2 = vpop.f32.mrf.mxu1 }
 0x14e   :  { %6201 = vst [vmem:[#allocation64_spill] sm:$0xff] %v4244_v63  ;;  %v1561_v19 = vsel %vm1332_vm1, %v4213_v18, 0.0  ;;  %v1863_v31 = vadd.f32 %v1862_v20, %v1861_v1  ;;  %v1964_v60 = vsel %vm1332_vm1, %v1925_v12, 0.0  ;;  %v4262_v21 = vadd.f32 %v4110_v61, %v4098_v13  ;;  %v4282_v0 = vpop.f32.mrf.mxu0 }
 0x14f   :  { %6202 = vst [vmem:[#allocation65_spill] sm:$0xff] %v4249_v7  ;;  %v1968_v45 = vsel %vm1332_vm1, %v1927_v33, 0.0  ;;  %v1965_v37 = vadd.f32 %v1964_v60, %v1963_v50  ;;  %v1489_v56 = vsel %vm1332_vm1, %v4253_v44, 0.0  ;;  %v1824_v6 = vmul.f32 %v4253_v44, %v4253_v44 }
 0x150   :  { %6203 = vst [vmem:[#allocation66_spill] sm:$0xff] %v4262_v21  ;;  %v1826_v1 = vmul.f32 %v4244_v63, %v4244_v63  ;;  %v1490_v20 = vadd.f32 %v1489_v56, %v1488_v39  ;;  %v1559_v12 = vsel %vm1332_vm1, %v4262_v21, 0.0  ;;  %v1926_v13 = vmul.f32 %v4262_v21, %v4262_v21 }
 0x151   :  { %v1493_v33 = vsel %vm1332_vm1, %v4244_v63, 0.0  ;;  %v1563_v50 = vsel %vm1332_vm1, %v4249_v7, 0.0  ;;  %v1864_v60 = vsel %vm1332_vm1, %v1824_v6, 0.0  ;;  %v1560_v18 = vadd.f32 %v1559_v12, %v1558_v49  ;;  %v4295_v49 = vpop.f32.mrf.mxu1 }
 0x152   :  { %v1928_v39 = vmul.f32 %v4249_v7, %v4249_v7  ;;  %v1492_v56 = vadd.f32 %v1491_v32, %v1490_v20  ;;  %v1865_v25 = vadd.f32 %v1864_v60, %v1863_v31  ;;  %v1966_v17 = vsel %vm1332_vm1, %v1926_v13, 0.0 }
 0x153   :  { %v1562_v23 = vadd.f32 %v1561_v19, %v1560_v18  ;;  %v1967_v21 = vadd.f32 %v1966_v17, %v1965_v37  ;;  %v4289_v63 = vadd.f32 %v4110_v61, %v4116_v48  ;;  %v4293_v14 = vadd.f32 %v4110_v61, %v4143_v55  ;;  %v4308_v19 = vpop.f32.mrf.mxu0 }
 0x154   :  { %v1868_v6 = vsel %vm1332_vm1, %v1826_v1, 0.0  ;;  %v1867_v12 = vadd.f32 %v1866_v51, %v1865_v25  ;;  %v1494_v7 = vadd.f32 %v1493_v33, %v1492_v56  ;;  %v4300_v32 = vadd.f32 %v4110_v61, %v4153_v46 }
 0x155   :  { %6204 = vst [vmem:[#allocation67_spill] sm:$0xff] %v4289_v63  ;;  %v1969_v18 = vadd.f32 %v1968_v45, %v1967_v21  ;;  %v4304_v17 = vadd.f32 %v4110_v61, %v4125_v27  ;;  %v1827_v48 = vmul.f32 %v4293_v14, %v4293_v14  ;;  %v1564_v55 = vadd.f32 %v1563_v50, %v1562_v23  ;;  %v4319_v23 = vpop.f32.mrf.mxu1  ;;  %v4337_v56 = vpop.f32.mrf.mxu0 }
 0x156   :  { %6205 = vst [vmem:[#allocation68_spill] sm:$0xff] %v4300_v32  ;;  %v1970_v31 = vsel %vm1332_vm1, %v1928_v39, 0.0  ;;  %v1495_v25 = vsel %vm1332_vm1, %v4293_v14, 0.0  ;;  %v1869_v51 = vadd.f32 %v1868_v6, %v1867_v12  ;;  %v1929_v46 = vmul.f32 %v4300_v32, %v4300_v32 }
 0x157   :  { %6206 = vst [vmem:[#allocation69_spill] sm:$0xff] %v4304_v17  ;;  %v1829_v21 = vmul.f32 %v4289_v63, %v4289_v63  ;;  %v1496_v27 = vadd.f32 %v1495_v25, %v1494_v7  ;;  %v1565_v45 = vsel %vm1332_vm1, %v4300_v32, 0.0  ;;  %v1971_v37 = vadd.f32 %v1970_v31, %v1969_v18  ;;  %v4353_v31 = vpop.f32.mrf.mxu1 }
 0x158   :  { %v1870_v1 = vsel %vm1332_vm1, %v1827_v48, 0.0  ;;  %v1566_v20 = vadd.f32 %v1565_v45, %v1564_v55  ;;  %v4324_v13 = vadd.f32 %v4110_v61, %v4176_v40  ;;  %v4328_v33 = vadd.f32 %v4110_v61, %v4200_v42 }
 0x159   :  { %v1931_v7 = vmul.f32 %v4304_v17, %v4304_v17  ;;  %v1871_v50 = vadd.f32 %v1870_v1, %v1869_v51  ;;  %v1972_v60 = vsel %vm1332_vm1, %v1929_v46, 0.0  ;;  %v4335_v39 = vadd.f32 %v4110_v61, %v4215_v43 }
 0x15a   :  { %6207 = vst [vmem:[#allocation70_spill] sm:$0xff] %v4328_v33  ;;  %v1973_v6 = vadd.f32 %v1972_v60, %v1971_v37  ;;  %v4341_v40 = vadd.f32 %v4110_v61, %v4186_v35  ;;  %v1497_v42 = vsel %vm1332_vm1, %v4328_v33, 0.0  ;;  %v1828_v12 = vmul.f32 %v4328_v33, %v4328_v33  ;;  %v963_v60 = vpop.f32.mrf.mxu0 }
 0x15b   :  { %6208 = vst [vmem:[#allocation71_spill] sm:$0xff] %v4335_v39  ;;  %v1499_v18 = vsel %vm1332_vm1, %v4289_v63, 0.0  ;;  %v1498_v48 = vadd.f32 %v1497_v42, %v1496_v27  ;;  %v1567_v43 = vsel %vm1332_vm1, %v4335_v39, 0.0  ;;  %v1930_v55 = vmul.f32 %v4335_v39, %v4335_v39 }
 0x15c   :  { %6209 = vst [vmem:[#allocation72_spill] sm:$0xff] %v4341_v40  ;;  %v1569_v35 = vsel %vm1332_vm1, %v4304_v17, 0.0  ;;  %v1830_v25 = vmul.f32 %v4324_v13, %v4324_v13  ;;  %v1872_v51 = vsel %vm1332_vm1, %v1828_v12, 0.0  ;;  %v1568_v46 = vadd.f32 %v1567_v43, %v1566_v20 }
 0x15d   :  { %v1874_v45 = vsel %vm1332_vm1, %v1829_v21, 0.0  ;;  %v1500_v27 = vadd.f32 %v1499_v18, %v1498_v48  ;;  %v1873_v37 = vadd.f32 %v1872_v51, %v1871_v50  ;;  %v1974_v1 = vsel %vm1332_vm1, %v1930_v55, 0.0  ;;  %v1285_v50 = vpop.f32.mrf.mxu1  ;;  %v4388_v55 = vpop.f32.mrf.mxu0 }
 0x15e   :  { %v1976_v42 = vsel %vm1332_vm1, %v1931_v7, 0.0  ;;  %v1932_v39 = vmul.f32 %v4341_v40, %v4341_v40  ;;  %v1570_v32 = vadd.f32 %v1569_v35, %v1568_v46  ;;  %v1975_v17 = vadd.f32 %v1974_v1, %v1973_v6 }
 0x15f   :  { %v1501_v63 = vsel %vm1332_vm1, %v4324_v13, 0.0  ;;  %v1875_v33 = vadd.f32 %v1874_v45, %v1873_v37  ;;  %v4369_v20 = vadd.f32 %v4110_v61, %v4226_v57  ;;  %v4373_v21 = vadd.f32 %v4110_v61, %v4255_v47 }
 0x160   :  { %v1876_v7 = vsel %vm1332_vm1, %v1830_v25, 0.0  ;;  %v1977_v12 = vadd.f32 %v1976_v42, %v1975_v17  ;;  %v1502_v18 = vadd.f32 %v1501_v63, %v1500_v27  ;;  %v4378_v6 = vadd.f32 %v4110_v61, %v4269_v2 }
 0x161   :  { %6210 = vst [vmem:[#allocation73_spill] sm:$0xff] %v4369_v20  ;;  %v1571_v48 = vsel %vm1332_vm1, %v4341_v40, 0.0  ;;  %v4384_v57 = vadd.f32 %v4110_v61, %v4237_v24  ;;  %v1831_v47 = vmul.f32 %v4373_v21, %v4373_v21  ;;  %v1877_v43 = vadd.f32 %v1876_v7, %v1875_v33  ;;  %v2992_v33 = vpop.f32.mrf.mxu1 }
 0x162   :  { %6211 = vst [vmem:[#allocation74_spill] sm:$0xff] %v4378_v6  ;;  %v1978_v17 = vsel %vm1332_vm1, %v1932_v39, 0.0  ;;  %v1503_v63 = vsel %vm1332_vm1, %v4373_v21, 0.0  ;;  %v1572_v2 = vadd.f32 %v1571_v48, %v1570_v32  ;;  %v1933_v35 = vmul.f32 %v4378_v6, %v4378_v6 }
 0x163   :  { %6212 = vst [vmem:[#allocation75_spill] sm:$0xff] %v4384_v57  ;;  %v1507_v25 = vsel %vm1332_vm1, %v4369_v20, 0.0  ;;  %v1833_v24 = vmul.f32 %v4369_v20, %v4369_v20  ;;  %v1504_v51 = vadd.f32 %v1503_v63, %v1502_v18  ;;  %v1979_v46 = vadd.f32 %v1978_v17, %v1977_v12  ;;  %v966_v12 = vpop.f32.mrf.mxu0  ;;  %v1288_v63 = vpop.f32.mrf.mxu1 }
 0x164   :  { %v1878_v45 = vsel %vm1332_vm1, %v1831_v47, 0.0  ;;  %v1573_v39 = vsel %vm1332_vm1, %v4378_v6, 0.0  ;;  %v4404_v32 = vadd.f32 %v4110_v61, %v4282_v0  ;;  %v4408_v27 = vadd.f32 %v4110_v61, %v4308_v19 }
 0x165   :  { %v1935_v37 = vmul.f32 %v4384_v57, %v4384_v57  ;;  %v1879_v1 = vadd.f32 %v1878_v45, %v1877_v43  ;;  %v1574_v42 = vadd.f32 %v1573_v39, %v1572_v2  ;;  %v4414_v7 = vadd.f32 %v4110_v61, %v4295_v49 }
 0x166   :  { %v1980_v18 = vsel %vm1332_vm1, %v1933_v35, 0.0  ;;  %v1505_v0 = vsel %vm1332_vm1, %v4408_v27, 0.0  ;;  %v1832_v48 = vmul.f32 %v4408_v27, %v4408_v27  ;;  %v4423_v19 = vadd.f32 %v4110_v61, %v4319_v23 }
 0x167   :  { %6213 = vst [vmem:[#allocation76_spill] sm:$0xff] %v4414_v7  ;;  %v1882_v47 = vsel %vm1332_vm1, %v1833_v24, 0.0  ;;  %v1577_v43 = vsel %vm1332_vm1, %v4384_v57, 0.0  ;;  %v1981_v49 = vadd.f32 %v1980_v18, %v1979_v46  ;;  %v1506_v17 = vadd.f32 %v1505_v0, %v1504_v51  ;;  %v2959_v57 = vpop.f32.mrf.mxu0 }
 0x168   :  { %6214 = vst [vmem:[#allocation77_spill] sm:$0xff] %v4423_v19  ;;  %v1834_v2 = vmul.f32 %v4404_v32, %v4404_v32  ;;  %v1880_v35 = vsel %vm1332_vm1, %v1832_v48, 0.0  ;;  %v1575_v45 = vsel %vm1332_vm1, %v4423_v19, 0.0  ;;  %v1934_v23 = vmul.f32 %v4423_v19, %v4423_v19 }
 0x169   :  { %v1984_v39 = vsel %vm1332_vm1, %v1935_v37, 0.0  ;;  %v1508_v24 = vadd.f32 %v1507_v25, %v1506_v17  ;;  %v1881_v6 = vadd.f32 %v1880_v35, %v1879_v1  ;;  %v1576_v40 = vadd.f32 %v1575_v45, %v1574_v42  ;;  %v2995_v37 = vpop.f32.mrf.mxu1 }
 0x16a   :  { %v1509_v51 = vsel %vm1332_vm1, %v4404_v32, 0.0  ;;  %v1936_v46 = vmul.f32 %v4414_v7, %v4414_v7  ;;  %v1982_v18 = vsel %vm1332_vm1, %v1934_v23, 0.0  ;;  %v4443_v0 = vadd.f32 %v4110_v61, %v4337_v56 }
 0x16b   :  { %v1883_v48 = vadd.f32 %v1882_v47, %v1881_v6  ;;  %v1578_v19 = vadd.f32 %v1577_v43, %v1576_v40  ;;  %v1983_v20 = vadd.f32 %v1982_v18, %v1981_v49  ;;  %v4446_v25 = vadd.f32 %v4110_v61, %v963_v60  ;;  %v979_v6 = vpop.f32.mrf.mxu0 }
 0x16c   :  { %6215 = vst [vmem:[#allocation78_spill] sm:$0xff] %v4443_v0  ;;  %v1884_v1 = vsel %vm1332_vm1, %v1834_v2, 0.0  ;;  %v1579_v42 = vsel %vm1332_vm1, %v4414_v7, 0.0  ;;  %v1510_v17 = vadd.f32 %v1509_v51, %v1508_v24  ;;  %v4452_v35 = vadd.f32 %v4110_v61, %v1285_v50 }
 0x16d   :  { %v1985_v45 = vadd.f32 %v1984_v39, %v1983_v20  ;;  %v4456_v56 = vadd.f32 %v4110_v61, %v4353_v31  ;;  %v1835_v40 = vmul.f32 %v4446_v25, %v4446_v25  ;;  %v1885_v60 = vadd.f32 %v1884_v1, %v1883_v48  ;;  %v1301_v39 = vpop.f32.mrf.mxu1 }
 0x16e   :  { %6216 = vst [vmem:[#allocation79_spill] sm:$0xff] %v4452_v35  ;;  %v1986_v47 = vsel %vm1332_vm1, %v1936_v46, 0.0  ;;  %v1511_v43 = vsel %vm1332_vm1, %v4446_v25, 0.0  ;;  %v1580_v49 = vadd.f32 %v1579_v42, %v1578_v19  ;;  %v1937_v50 = vmul.f32 %v4452_v35, %v4452_v35 }
 0x16f   :  { %6217 = vst [vmem:[#allocation80_spill] sm:$0xff] %v4456_v56  ;;  %v1515_v20 = vsel %vm1332_vm1, %v4443_v0, 0.0  ;;  %v1837_v31 = vmul.f32 %v4443_v0, %v4443_v0  ;;  %v1512_v2 = vadd.f32 %v1511_v43, %v1510_v17  ;;  %v1987_v23 = vadd.f32 %v1986_v47, %v1985_v45  ;;  %v2960_v17 = vpop.f32.mrf.mxu0 }
 0x170   :  { %v1886_v24 = vsel %vm1332_vm1, %v1835_v40, 0.0  ;;  %v1581_v51 = vsel %vm1332_vm1, %v4452_v35, 0.0  ;;  %v4474_v19 = vadd.f32 %v4110_v61, %v4388_v55  ;;  %v4477_v46 = vadd.f32 %v4110_v61, %v966_v12 }
 0x171   :  { %v1939_v18 = vmul.f32 %v4456_v56, %v4456_v56  ;;  %v1887_v48 = vadd.f32 %v1886_v24, %v1885_v60  ;;  %v1582_v1 = vadd.f32 %v1581_v51, %v1580_v49  ;;  %v4482_v42 = vadd.f32 %v4110_v61, %v2992_v33  ;;  %v2996_v49 = vpop.f32.mrf.mxu1 }
 0x172   :  { %6218 = vst [vmem:[#allocation81_spill] sm:$0xff] %v4477_v46  ;;  %v1988_v45 = vsel %vm1332_vm1, %v1937_v50, 0.0  ;;  %v1513_v40 = vsel %vm1332_vm1, %v4477_v46, 0.0  ;;  %v1836_v55 = vmul.f32 %v4477_v46, %v4477_v46  ;;  %v4490_v12 = vadd.f32 %v4110_v61, %v1288_v63 }
 0x173   :  { %6219 = vst [vmem:[#allocation82_spill] sm:$0xff] %v4482_v42  ;;  %v1890_v47 = vsel %vm1332_vm1, %v1837_v31, 0.0  ;;  %v1585_v60 = vsel %vm1332_vm1, %v4456_v56, 0.0  ;;  %v1989_v43 = vadd.f32 %v1988_v45, %v1987_v23  ;;  %v1514_v33 = vadd.f32 %v1513_v40, %v1512_v2  ;;  %v982_v56 = vpop.f32.mrf.mxu0 }
 0x174   :  { %6220 = vst [vmem:[#allocation83_spill] sm:$0xff] %v4490_v12  ;;  %v1838_v50 = vmul.f32 %v4474_v19, %v4474_v19  ;;  %v1888_v24 = vsel %vm1332_vm1, %v1836_v55, 0.0  ;;  %v1583_v51 = vsel %vm1332_vm1, %v4490_v12, 0.0  ;;  %v1938_v63 = vmul.f32 %v4490_v12, %v4490_v12 }
 0x175   :  { %v1992_v35 = vsel %vm1332_vm1, %v1939_v18, 0.0  ;;  %v1516_v31 = vadd.f32 %v1515_v20, %v1514_v33  ;;  %v1889_v7 = vadd.f32 %v1888_v24, %v1887_v48  ;;  %v1584_v0 = vadd.f32 %v1583_v51, %v1582_v1  ;;  %v1304_v20 = vpop.f32.mrf.mxu1 }
 0x176   :  { %v1517_v2 = vsel %vm1332_vm1, %v4474_v19, 0.0  ;;  %v1940_v23 = vmul.f32 %v4482_v42, %v4482_v42  ;;  %v1990_v45 = vsel %vm1332_vm1, %v1938_v63, 0.0  ;;  %v4509_v40 = vadd.f32 %v4110_v61, %v2959_v57 }
 0x177   :  { %v1891_v55 = vadd.f32 %v1890_v47, %v1889_v7  ;;  %v1586_v46 = vadd.f32 %v1585_v60, %v1584_v0  ;;  %v1991_v12 = vadd.f32 %v1990_v45, %v1989_v43  ;;  %v4512_v18 = vadd.f32 %v4110_v61, %v979_v6  ;;  %v2963_v6 = vpop.f32.mrf.mxu0 }
 0x178   :  { %6221 = vst [vmem:[#allocation84_spill] sm:$0xff] %v4509_v40  ;;  %v1892_v48 = vsel %vm1332_vm1, %v1838_v50, 0.0  ;;  %v1587_v1 = vsel %vm1332_vm1, %v4482_v42, 0.0  ;;  %v1518_v33 = vadd.f32 %v1517_v2, %v1516_v31  ;;  %v4518_v24 = vadd.f32 %v4110_v61, %v1301_v39 }
 0x179   :  { %6222 = vst [vmem:[#allocation85_spill] sm:$0xff] %v4512_v18  ;;  %v1993_v51 = vadd.f32 %v1992_v35, %v1991_v12  ;;  %v4521_v57 = vadd.f32 %v4110_v61, %v2995_v37  ;;  %v1839_v7 = vmul.f32 %v4512_v18, %v4512_v18  ;;  %v1893_v0 = vadd.f32 %v1892_v48, %v1891_v55  ;;  %v2999_v12 = vpop.f32.mrf.mxu1 }
 0x17a   :  { %6223 = vst [vmem:[#allocation86_spill] sm:$0xff] %v4518_v24  ;;  %v1994_v47 = vsel %vm1332_vm1, %v1940_v23, 0.0  ;;  %v1519_v60 = vsel %vm1332_vm1, %v4512_v18, 0.0  ;;  %v1588_v43 = vadd.f32 %v1587_v1, %v1586_v46  ;;  %v1941_v50 = vmul.f32 %v4518_v24, %v4518_v24  ;;  %v995_v1 = vpop.f32.mrf.mxu0 }
 0x17b   :  { %6224 = vst [vmem:[#allocation87_spill] sm:$0xff] %v4521_v57  ;;  %v1841_v35 = vmul.f32 %v4509_v40, %v4509_v40  ;;  %v1520_v39 = vadd.f32 %v1519_v60, %v1518_v33  ;;  %v1995_v37 = vadd.f32 %v1994_v47, %v1993_v51  ;;  %v1894_v63 = vsel %vm1332_vm1, %v1839_v7, 0.0  ;;  %v1317_v60 = vpop.f32.mrf.mxu1 }
 0x17c   :  { %v1589_v31 = vsel %vm1332_vm1, %v4518_v24, 0.0  ;;  %v4536_v2 = vadd.f32 %v4110_v61, %v2960_v17  ;;  %v4539_v23 = vadd.f32 %v4110_v61, %v982_v56  ;;  %v1943_v46 = vmul.f32 %v4521_v57, %v4521_v57 }
 0x17d   :  { %v1895_v45 = vadd.f32 %v1894_v63, %v1893_v0  ;;  %v1590_v55 = vadd.f32 %v1589_v31, %v1588_v43  ;;  %v4544_v48 = vadd.f32 %v4110_v61, %v2996_v49  ;;  %v1996_v33 = vsel %vm1332_vm1, %v1941_v50, 0.0 }
 0x17e   :  { %6225 = vst [vmem:[#allocation88_spill] sm:$0xff] %v4536_v2  ;;  %6226 = vst [vmem:[#allocation89_spill] sm:$0xff] %v4539_v23  ;;  %v1521_v51 = vsel %vm1332_vm1, %v4539_v23, 0.0  ;;  %v1840_v17 = vmul.f32 %v4539_v23, %v4539_v23  ;;  %v4552_v56 = vadd.f32 %v4110_v61, %v1304_v20  ;;  %v1523_v7 = vsel %vm1332_vm1, %v4509_v40, 0.0 }
 0x17f   :  { %6227 = vst [vmem:[#allocation90_spill] sm:$0xff] %v4544_v48  ;;  %v1593_v0 = vsel %vm1332_vm1, %v4521_v57, 0.0  ;;  %v1997_v49 = vadd.f32 %v1996_v33, %v1995_v37  ;;  %v1522_v47 = vadd.f32 %v1521_v51, %v1520_v39  ;;  %v1842_v43 = vmul.f32 %v4536_v2, %v4536_v2  ;;  %v2964_v57 = vpop.f32.mrf.mxu0 }
 0x180   :  { %6228 = vst [vmem:[#allocation91_spill] sm:$0xff] %v4552_v56  ;;  %v1896_v50 = vsel %vm1332_vm1, %v1840_v17, 0.0  ;;  %v1591_v63 = vsel %vm1332_vm1, %v4552_v56, 0.0  ;;  %v1942_v20 = vmul.f32 %v4552_v56, %v4552_v56  ;;  %v1898_v31 = vsel %vm1332_vm1, %v1841_v35, 0.0  ;;  %v3000_v35 = vpop.f32.mrf.mxu1 }
 0x181   :  { %v1524_v24 = vadd.f32 %v1523_v7, %v1522_v47  ;;  %v1897_v42 = vadd.f32 %v1896_v50, %v1895_v45  ;;  %v1592_v40 = vadd.f32 %v1591_v63, %v1590_v55  ;;  %v2000_v39 = vsel %vm1332_vm1, %v1943_v46, 0.0 }
 0x182   :  { %v1525_v37 = vsel %vm1332_vm1, %v4536_v2, 0.0  ;;  %v1944_v33 = vmul.f32 %v4544_v48, %v4544_v48  ;;  %v1998_v51 = vsel %vm1332_vm1, %v1942_v20, 0.0  ;;  %v4573_v56 = vadd.f32 %v4110_v61, %v995_v1  ;;  %v998_v1 = vpop.f32.mrf.mxu0  ;;  %v1320_v63 = vpop.f32.mrf.mxu1 }
 0x183   :  { %v1899_v17 = vadd.f32 %v1898_v31, %v1897_v42  ;;  %v1594_v23 = vadd.f32 %v1593_v0, %v1592_v40  ;;  %v1999_v18 = vadd.f32 %v1998_v51, %v1997_v49  ;;  %v1900_v45 = vsel %vm1332_vm1, %v1842_v43, 0.0 }
 0x184   :  { %6229 = vst [vmem:[#allocation92_spill] sm:$0xff] %v4573_v56  ;;  %v1595_v46 = vsel %vm1332_vm1, %v4544_v48, 0.0  ;;  %v1526_v55 = vadd.f32 %v1525_v37, %v1524_v24  ;;  %v4579_v7 = vadd.f32 %v4110_v61, %v1317_v60  ;;  %v4582_v50 = vadd.f32 %v4110_v61, %v2963_v6 }
 0x185   :  { %v2001_v47 = vadd.f32 %v2000_v39, %v1999_v18  ;;  %v1843_v42 = vmul.f32 %v4573_v56, %v4573_v56  ;;  %v1901_v40 = vadd.f32 %v1900_v45, %v1899_v17  ;;  %v2002_v0 = vsel %vm1332_vm1, %v1944_v33, 0.0 }
 0x186   :  { %6230 = vst [vmem:[#allocation93_spill] sm:$0xff] %v4579_v7  ;;  %6231 = vst [vmem:[#allocation94_spill] sm:$0xff] %v4582_v50  ;;  %v1527_v49 = vsel %vm1332_vm1, %v4573_v56, 0.0  ;;  %v1596_v43 = vadd.f32 %v1595_v46, %v1594_v23  ;;  %v1945_v24 = vmul.f32 %v4579_v7, %v4579_v7  ;;  %v4592_v60 = vadd.f32 %v4110_v61, %v2999_v12 }
 0x187   :  { %v1528_v18 = vadd.f32 %v1527_v49, %v1526_v55  ;;  %v2003_v6 = vadd.f32 %v2002_v0, %v2001_v47  ;;  %v1902_v20 = vsel %vm1332_vm1, %v1843_v42, 0.0  ;;  %v1597_v31 = vsel %vm1332_vm1, %v4579_v7, 0.0 }
 0x188   :  { %6232 = vst [vmem:[#allocation95_spill] sm:$0xff] %v4592_v60  ;;  %v4598_v39 = vadd.f32 %v4110_v61, %v2964_v57  ;;  %v4601_v37 = vadd.f32 %v4110_v61, %v998_v1  ;;  %v1845_v23 = vmul.f32 %v4582_v50, %v4582_v50  ;;  %v1903_v33 = vadd.f32 %v1902_v20, %v1901_v40 }
 0x189   :  { %v1598_v12 = vadd.f32 %v1597_v31, %v1596_v43  ;;  %v4606_v51 = vadd.f32 %v4110_v61, %v3000_v35  ;;  %v2004_v17 = vsel %vm1332_vm1, %v1945_v24, 0.0  ;;  %v4614_v46 = vadd.f32 %v4110_v61, %v1320_v63 }
 0x18a   :  { %6233 = vst [vmem:[#allocation96_spill] sm:$0xff] %v4598_v39  ;;  %6234 = vst [vmem:[#allocation97_spill] sm:$0xff] %v4601_v37  ;;  %v1529_v45 = vsel %vm1332_vm1, %v4601_v37, 0.0  ;;  %v1844_v57 = vmul.f32 %v4601_v37, %v4601_v37  ;;  %v1531_v55 = vsel %vm1332_vm1, %v4582_v50, 0.0  ;;  %v1947_v47 = vmul.f32 %v4592_v60, %v4592_v60 }
 0x18b   :  { %6235 = vst [vmem:[#allocation98_spill] sm:$0xff] %v4606_v51  ;;  %6236 = vst [vmem:[#allocation99_spill] sm:$0xff] %v4614_v46  ;;  %v2005_v42 = vadd.f32 %v2004_v17, %v2003_v6  ;;  %v1530_v35 = vadd.f32 %v1529_v45, %v1528_v18  ;;  %v1846_v40 = vmul.f32 %v4598_v39, %v4598_v39  ;;  %v1599_v0 = vsel %vm1332_vm1, %v4614_v46, 0.0 }
 0x18c   :  { %v1904_v1 = vsel %vm1332_vm1, %v1844_v57, 0.0  ;;  %v1946_v61 = vmul.f32 %v4614_v46, %v4614_v46  ;;  %v1601_v49 = vsel %vm1332_vm1, %v4592_v60, 0.0  ;;  %v1600_v63 = vadd.f32 %v1599_v0, %v1598_v12 }
 0x18d   :  { %v1532_v43 = vadd.f32 %v1531_v55, %v1530_v35  ;;  %v1905_v24 = vadd.f32 %v1904_v1, %v1903_v33  ;;  %v1906_v6 = vsel %vm1332_vm1, %v1845_v23, 0.0  ;;  %v1533_v18 = vsel %vm1332_vm1, %v4598_v39, 0.0 }
 0x18e   :  { %v1948_v20 = vmul.f32 %v4606_v51, %v4606_v51  ;;  %v2006_v31 = vsel %vm1332_vm1, %v1946_v61, 0.0  ;;  %v1602_v57 = vadd.f32 %v1601_v49, %v1600_v63  ;;  %v2008_v7 = vsel %vm1332_vm1, %v1947_v47, 0.0 }
 0x18f   :  { %v1534_v17 = vadd.f32 %v1533_v18, %v1532_v43  ;;  %v1907_v45 = vadd.f32 %v1906_v6, %v1905_v24  ;;  %v2007_v46 = vadd.f32 %v2006_v31, %v2005_v42  ;;  %v1908_v55 = vsel %vm1332_vm1, %v1846_v40, 0.0 }
 0x190   :  { %v1603_v33 = vsel %vm1332_vm1, %v4606_v51, 0.0  ;;  %v2010_v0 = vsel %vm1332_vm1, %v1948_v20, 0.0 }
 0x191   :  { %v1535_v23 = vrot.slane %v1534_v17, 4  ;;  %v1909_v12 = vadd.f32 %v1908_v55, %v1907_v45  ;;  %v1604_v35 = vadd.f32 %v1603_v33, %v1602_v57  ;;  %v2009_v1 = vadd.f32 %v2008_v7, %v2007_v46 }
 0x193   :  { %v1536_v60 = vadd.f32 %v1535_v23, %v1534_v17  ;;  %v1910_v48 = vrot.slane %v1909_v12, 4  ;;  %v1605_v61 = vrot.slane %v1604_v35, 4  ;;  %v2011_v43 = vadd.f32 %v2010_v0, %v2009_v1 }
 0x195   :  { %v1537_v24 = vrot.slane %v1536_v60, 2  ;;  %v1911_v49 = vadd.f32 %v1910_v48, %v1909_v12  ;;  %v1606_v42 = vadd.f32 %v1605_v61, %v1604_v35  ;;  %v2012_v63 = vrot.slane %v2011_v43, 4 }
 0x197   :  { %v1538_v47 = vadd.f32 %v1537_v24, %v1536_v60  ;;  %v1912_v6 = vrot.slane %v1911_v49, 2  ;;  %v1607_v40 = vrot.slane %v1606_v42, 2  ;;  %v2013_v18 = vadd.f32 %v2012_v63, %v2011_v43 }
 0x199   :  { %v1539_v31 = vrot.slane %v1538_v47, 1  ;;  %v1913_v51 = vadd.f32 %v1912_v6, %v1911_v49  ;;  %v1608_v39 = vadd.f32 %v1607_v40, %v1606_v42  ;;  %v2014_v45 = vrot.slane %v2013_v18, 2 }
 0x19a   :  { %v2031_v49 = vlaneseq }
 0x19b   :  { %v1540_v57 = vadd.f32 %v1539_v31, %v1538_v47  ;;  %v1914_v7 = vrot.slane %v1913_v51, 1  ;;  %v1609_v46 = vrot.slane %v1608_v39, 1  ;;  %v2015_v20 = vadd.f32 %v2014_v45, %v2013_v18 }
 0x19c   :  { %v2032_v42 = vshrl.u32 %v2031_v49, 7  ;;  %v6247_v49 = vld [vmem:[#allocation34_spill] sm:$0xff] }
 0x19d   :  { %v1541_v17 = vadd.f32 %v1540_v57, %v4100_v16  ;;  %v1915_v55 = vadd.f32 %v1914_v7, %v1913_v51  ;;  %v1610_v33 = vadd.f32 %v1609_v46, %v1608_v39  ;;  %v2016_v23 = vrot.slane %v2015_v20, 1  ;;  %v2023_v16 = vld [vmem:[%s5963_s3] sm:$0x1] }
 0x19e   :  { %v2033_v51 = vsub.s32 0, %v2032_v42 }
 0x19f   :  { %v1916_v48 = vadd.f32 %v1915_v55, %v4122_v38  ;;  %v1611_v12 = vadd.f32 %v1610_v33, %v1541_v17  ;;  %v2017_v60 = vadd.f32 %v2016_v23, %v2015_v20  ;;  %v2027_v38 = vld [vmem:[%s5964_s4] sm:$0x1]  ;;  %v6237_v17 = vld [vmem:[#allocation20_spill] sm:$0xff] }
 0x1a0   :  { %v6238_v55 = vld [vmem:[#allocation24_spill] sm:$0xff]  ;;  %v6239_v33 = vld [vmem:[#allocation18_spill] sm:$0xff] }
 0x1a1   :  { %v2018_v35 = vadd.f32 %v2017_v60, %v1916_v48  ;;  %v2019_v1 = vmul.f32 0.0009765625, %v1611_v12  ;;  %v6240_v23 = vld [vmem:[#allocation22_spill] sm:$0xff]  ;;  %v6241_v48 = vld [vmem:[#allocation28_spill] sm:$0xff]  ;;  %v6242_v12 = vld [vmem:[#allocation31_spill] sm:$0xff] }
 0x1a2   :  { %v6243_v60 = vld [vmem:[#allocation26_spill] sm:$0xff] }
 0x1a3   :  { %v2020_v0 = vmul.f32 0.0009765625, %v2018_v35  ;;  %v2021_v61 = vmul.f32 %v2019_v1, %v2019_v1  ;;  %v6244_v35 = vld [vmem:[#allocation30_spill] sm:$0xff] }
 0x1a5   :  { %v2022_v43 = vsub.f32 %v2020_v0, %v2021_v61  ;;  %v6245_v0 = vld [vmem:[#allocation36_spill] sm:$0xff] }
 0x1a7   :  { %v2024_v24 = vadd.f32 1e-05, %v2022_v43  ;;  %v6246_v43 = vld [vmem:[#allocation38_spill] sm:$0xff] }
 0x1a9   :  { %3067 = vrsqrt.f32 %v2024_v24 }
 0x1b6   :  { %v3068_v39 = vpop.eup %3067 }
 0x1b7   :  { %v2026_v63 = vmul.f32 %v3068_v39, %v2023_v16  ;;  %v6248_v16 = vld [vmem:[#allocation39_spill] sm:$0xff] }
 0x1b9   :  { %v2028_v47 = vmul.f32 %v2026_v63, %v2019_v1  ;;  %v4648_v6 = vrot.slane %v2026_v63, %v2033_v51  ;;  %v6249_v63 = vld [vmem:[#allocation44_spill] sm:$0xff] }
 0x1bb   :  { %v2029_v40 = vsub.f32 %v2027_v38, %v2028_v47  ;;  %v2036_v18 = vmul.f32 %v4648_v6, %v3378_v11  ;;  %v2037_v31 = vmul.f32 %v4648_v6, %v3408_v29  ;;  %v2038_v45 = vmul.f32 %v4648_v6, %v3368_v5  ;;  %v6250_v47 = vld [vmem:[#allocation46_spill] sm:$0xff] }
 0x1bc   :  { %v2039_v57 = vmul.f32 %v4648_v6, %v3384_v15  ;;  %v2040_v7 = vmul.f32 %v4648_v6, %v3442_v59  ;;  %v2041_v46 = vmul.f32 %v4648_v6, %v3468_v28  ;;  %v2042_v20 = vmul.f32 %v4648_v6, %v3419_v36 }
 0x1bd   :  { %v2043_v11 = vmul.f32 %v4648_v6, %v3460_v22  ;;  %v2044_v29 = vmul.f32 %v4648_v6, %v3502_v9  ;;  %v2045_v5 = vmul.f32 %v4648_v6, %v3536_v41  ;;  %v2046_v15 = vmul.f32 %v4648_v6, %v3490_v52 }
 0x1be   :  { %v2047_v59 = vmul.f32 %v4648_v6, %v3528_v34  ;;  %v2048_v28 = vmul.f32 %v4648_v6, %v3568_v8  ;;  %v2049_v36 = vmul.f32 %v4648_v6, %v3635_v26  ;;  %v2050_v22 = vmul.f32 %v4648_v6, %v3562_v3 }
 0x1bf   :  { %v2051_v9 = vmul.f32 %v4648_v6, %v3619_v10  ;;  %v2052_v41 = vmul.f32 %v4648_v6, %v6237_v17  ;;  %v2053_v52 = vmul.f32 %v4648_v6, %v6238_v55  ;;  %v2054_v34 = vmul.f32 %v4648_v6, %v6239_v33  ;;  %v6251_v55 = vld [vmem:[#allocation42_spill] sm:$0xff] }
 0x1c0   :  { %v2055_v8 = vmul.f32 %v4648_v6, %v6240_v23  ;;  %v2056_v26 = vmul.f32 %v4648_v6, %v6241_v48  ;;  %v2057_v3 = vmul.f32 %v4648_v6, %v6242_v12  ;;  %v2058_v10 = vmul.f32 %v4648_v6, %v6243_v60  ;;  %v6252_v23 = vld [vmem:[#allocation47_spill] sm:$0xff] }
 0x1c1   :  { %v2059_v1 = vmul.f32 %v4648_v6, %v6244_v35  ;;  %v2060_v61 = vmul.f32 %v4648_v6, %v6245_v0  ;;  %v2061_v24 = vmul.f32 %v4648_v6, %v6246_v43  ;;  %v2062_v42 = vmul.f32 %v4648_v6, %v6247_v49  ;;  %v6253_v60 = vld [vmem:[#allocation3_spill] sm:$0xff]  ;;  %v6254_v0 = vld [vmem:[#allocation5_spill] sm:$0xff]  ;;  %v6255_v49 = vld [vmem:[#allocation2_spill] sm:$0xff] }
 0x1c2   :  { %v2063_v39 = vmul.f32 %v4648_v6, %v6248_v16  ;;  %v2064_v38 = vmul.f32 %v4648_v6, %v6249_v63  ;;  %v2065_v17 = vmul.f32 %v4648_v6, %v6250_v47  ;;  %v2066_v33 = vmul.f32 %v4648_v6, %v6251_v55  ;;  %v6256_v63 = vld [vmem:[#allocation4_spill] sm:$0xff]  ;;  %v6257_v55 = vld [vmem:[#allocation7_spill] sm:$0xff] }
 0x1c3   :  { %v2067_v48 = vmul.f32 %v4648_v6, %v6252_v23  ;;  %v4714_v12 = vrot.slane %v2029_v40, %v2033_v51  ;;  %v4718_v35 = vmul.f32 %v4648_v6, %v6253_v60  ;;  %v4722_v43 = vmul.f32 %v4648_v6, %v6254_v0  ;;  %v6258_v40 = vld [vmem:[#allocation9_spill] sm:$0xff] }
 0x1c4   :  { %v4726_v16 = vmul.f32 %v4648_v6, %v6255_v49  ;;  %v4730_v47 = vmul.f32 %v4648_v6, %v6256_v63  ;;  %v4734_v51 = vmul.f32 %v4648_v6, %v6257_v55  ;;  %v4738_v23 = vmul.f32 %v4648_v6, %v6258_v40 }
 0x1c5   :  { %v4741_v60 = vadd.f32 %v4714_v12, %v2036_v18  ;;  %v4744_v0 = vadd.f32 %v4714_v12, %v2037_v31  ;;  %v4747_v49 = vadd.f32 %v4714_v12, %v2038_v45  ;;  %v4750_v63 = vadd.f32 %v4714_v12, %v2039_v57 }
 0x1c6   :  { %v4753_v50 = vadd.f32 %v4714_v12, %v2040_v7  ;;  %v4756_v55 = vadd.f32 %v4714_v12, %v2041_v46  ;;  %v4759_v40 = vadd.f32 %v4714_v12, %v2042_v20  ;;  %v4762_v18 = vadd.f32 %v4714_v12, %v2043_v11 }
 0x1c7   :  { %v4765_v31 = vadd.f32 %v4714_v12, %v2044_v29  ;;  %v4768_v45 = vadd.f32 %v4714_v12, %v2045_v5  ;;  %v4771_v57 = vadd.f32 %v4714_v12, %v2046_v15  ;;  %v4774_v7 = vadd.f32 %v4714_v12, %v2047_v59 }
 0x1c8   :  { %6259 = vst [vmem:[#allocation20_spill] sm:$0xff] %v4759_v40  ;;  %6260 = vst [vmem:[#allocation24_spill] sm:$0xff] %v4762_v18  ;;  %v4777_v46 = vadd.f32 %v4714_v12, %v2048_v28  ;;  %v4780_v20 = vadd.f32 %v4714_v12, %v2049_v36  ;;  %v4783_v11 = vadd.f32 %v4714_v12, %v2050_v22 }
 0x1c9   :  { %6261 = vst [vmem:[#allocation18_spill] sm:$0xff] %v4765_v31  ;;  %6262 = vst [vmem:[#allocation22_spill] sm:$0xff] %v4768_v45  ;;  %v4786_v29 = vadd.f32 %v4714_v12, %v2051_v9  ;;  %v4789_v5 = vadd.f32 %v4714_v12, %v2052_v41  ;;  %v4792_v15 = vadd.f32 %v4714_v12, %v2053_v52  ;;  %v6310_v45 = vld [vmem:[#allocation48_spill] sm:$0xff] }
 0x1ca   :  { %6263 = vst [vmem:[#allocation28_spill] sm:$0xff] %v4771_v57  ;;  %6264 = vst [vmem:[#allocation31_spill] sm:$0xff] %v4774_v7  ;;  %v4795_v59 = vadd.f32 %v4714_v12, %v2054_v34  ;;  %v4798_v28 = vadd.f32 %v4714_v12, %v2055_v8  ;;  %v4801_v36 = vadd.f32 %v4714_v12, %v2056_v26  ;;  %v6308_v7 = vld [vmem:[#allocation49_spill] sm:$0xff]  ;;  %v6309_v57 = vld [vmem:[#allocation43_spill] sm:$0xff] }
 0x1cb   :  { %6265 = vst [vmem:[#allocation26_spill] sm:$0xff] %v4777_v46  ;;  %6266 = vst [vmem:[#allocation30_spill] sm:$0xff] %v4780_v20  ;;  %v4804_v22 = vadd.f32 %v4714_v12, %v2057_v3  ;;  %v4807_v9 = vadd.f32 %v4714_v12, %v2058_v10  ;;  %v4810_v41 = vadd.f32 %v4714_v12, %v2059_v1  ;;  %v6306_v20 = vld [vmem:[#allocation40_spill] sm:$0xff]  ;;  %v6307_v46 = vld [vmem:[#allocation45_spill] sm:$0xff] }
 0x1cc   :  { %6267 = vst [vmem:[#allocation36_spill] sm:$0xff] %v4783_v11  ;;  %6268 = vst [vmem:[#allocation38_spill] sm:$0xff] %v4786_v29  ;;  %v4813_v52 = vadd.f32 %v4714_v12, %v2060_v61  ;;  %v4816_v34 = vadd.f32 %v4714_v12, %v2061_v24  ;;  %v4819_v8 = vadd.f32 %v4714_v12, %v2062_v42  ;;  %v6304_v29 = vld [vmem:[#allocation41_spill] sm:$0xff]  ;;  %v6305_v11 = vld [vmem:[#allocation35_spill] sm:$0xff] }
 0x1cd   :  { %6269 = vst [vmem:[#allocation34_spill] sm:$0xff] %v4789_v5  ;;  %6270 = vst [vmem:[#allocation39_spill] sm:$0xff] %v4792_v15  ;;  %v4822_v26 = vadd.f32 %v4714_v12, %v2063_v39  ;;  %v4825_v3 = vadd.f32 %v4714_v12, %v2064_v38  ;;  %v4828_v10 = vadd.f32 %v4714_v12, %v2065_v17  ;;  %v6286_v39 = vld [vmem:[#allocation8_spill] sm:$0xff]  ;;  %v6288_v17 = vld [vmem:[#allocation13_spill] sm:$0xff] }
 0x1ce   :  { %6271 = vst [vmem:[#allocation44_spill] sm:$0xff] %v4795_v59  ;;  %6272 = vst [vmem:[#allocation46_spill] sm:$0xff] %v4798_v28  ;;  %v4831_v1 = vadd.f32 %v4714_v12, %v2066_v33  ;;  %v4834_v61 = vadd.f32 %v4714_v12, %v2067_v48  ;;  %v2145_v38 = vmul.f32 %v4648_v6, %v6286_v39  ;;  %v6290_v48 = vld [vmem:[#allocation12_spill] sm:$0xff]  ;;  %v6300_v28 = vld [vmem:[#allocation33_spill] sm:$0xff] }
 0x1cf   :  { %6273 = vst [vmem:[#allocation42_spill] sm:$0xff] %v4801_v36  ;;  %6274 = vst [vmem:[#allocation47_spill] sm:$0xff] %v4804_v22  ;;  %v6285_v22 = vld [vmem:[#allocation6_spill] sm:$0xff]  ;;  %v2147_v33 = vmul.f32 %v4648_v6, %v6288_v17  ;;  %v2149_v24 = vmul.f32 %v4648_v6, %v6290_v48  ;;  %v6299_v36 = vld [vmem:[#allocation29_spill] sm:$0xff]  ;;  %v2238_v40 = vmul.f32 %v4648_v6, %v4120_v4 }
 0x1d0   :  { %6275 = vst [vmem:[#allocation3_spill] sm:$0xff] %v4807_v9  ;;  %6276 = vst [vmem:[#allocation5_spill] sm:$0xff] %v4810_v41  ;;  %v2144_v37 = vmul.f32 %v4648_v6, %v6285_v22  ;;  %v6297_v41 = vld [vmem:[#allocation19_spill] sm:$0xff]  ;;  %v6302_v15 = vld [vmem:[#allocation32_spill] sm:$0xff] }
 0x1d1   :  { %6277 = vst [vmem:[#allocation2_spill] sm:$0xff] %v4813_v52  ;;  %6278 = vst [vmem:[#allocation4_spill] sm:$0xff] %v4816_v34  ;;  %v6287_v52 = vld [vmem:[#allocation11_spill] sm:$0xff]  ;;  %v6296_v34 = vld [vmem:[#allocation25_spill] sm:$0xff]  ;;  %v2156_v48 = vmul.f32 %v4648_v6, %v6297_v41  ;;  %v2163_v41 = vmul.f32 %v4648_v6, %v6304_v29  ;;  %v4922_v29 = vadd.f32 %v4718_v35, %v4714_v12 }
 0x1d2   :  { %6279 = vst [vmem:[#allocation7_spill] sm:$0xff] %v4819_v8  ;;  %6280 = vst [vmem:[#allocation9_spill] sm:$0xff] %v4822_v26  ;;  %v2146_v56 = vmul.f32 %v4648_v6, %v6287_v52  ;;  %v6289_v26 = vld [vmem:[#allocation10_spill] sm:$0xff]  ;;  %v6295_v8 = vld [vmem:[#allocation21_spill] sm:$0xff]  ;;  %v4942_v35 = vadd.f32 %v4738_v23, %v4714_v12 }
 0x1d3   :  { %6281 = vst [vmem:[#allocation100_spill] sm:$0xff] %v4825_v3  ;;  %6282 = vst [vmem:[#allocation101_spill] sm:$0xff] %v4828_v10  ;;  %v2148_v2 = vmul.f32 %v4648_v6, %v6289_v26  ;;  %v6293_v10 = vld [vmem:[#allocation14_spill] sm:$0xff]  ;;  %v6294_v3 = vld [vmem:[#allocation16_spill] sm:$0xff]  ;;  %v2154_v17 = vmul.f32 %v4648_v6, %v6295_v8  ;;  %v2155_v26 = vmul.f32 %v4648_v6, %v6296_v34 }
 0x1d4   :  { %6283 = vst [vmem:[#allocation102_spill] sm:$0xff] %v4831_v1  ;;  %6284 = vst [vmem:[#allocation103_spill] sm:$0xff] %v4834_v61  ;;  %v6291_v1 = vld [vmem:[#allocation15_spill] sm:$0xff]  ;;  %v6292_v61 = vld [vmem:[#allocation17_spill] sm:$0xff]  ;;  %v2152_v39 = vmul.f32 %v4648_v6, %v6293_v10  ;;  %v2153_v52 = vmul.f32 %v4648_v6, %v6294_v3  ;;  %v2159_v10 = vmul.f32 %v4648_v6, %v6300_v28 }
 0x1d5   :  { %v2150_v42 = vmul.f32 %v4648_v6, %v6291_v1  ;;  %v2151_v22 = vmul.f32 %v4648_v6, %v6292_v61  ;;  %v6298_v9 = vld [vmem:[#allocation23_spill] sm:$0xff]  ;;  %v2158_v61 = vmul.f32 %v4648_v6, %v6299_v36  ;;  %v2161_v8 = vmul.f32 %v4648_v6, %v6302_v15  ;;  %v6303_v5 = vld [vmem:[#allocation37_spill] sm:$0xff] }
 0x1d6   :  { %v2157_v1 = vmul.f32 %v4648_v6, %v6298_v9  ;;  %v6301_v59 = vld [vmem:[#allocation27_spill] sm:$0xff]  ;;  %v2162_v34 = vmul.f32 %v4648_v6, %v6303_v5  ;;  %v2164_v9 = vmul.f32 %v4648_v6, %v6305_v11  ;;  %v2165_v36 = vmul.f32 %v4648_v6, %v6306_v20 }
 0x1d7   :  { %v2160_v3 = vmul.f32 %v4648_v6, %v6301_v59  ;;  %v2166_v28 = vmul.f32 %v4648_v6, %v6307_v46  ;;  %v2167_v59 = vmul.f32 %v4648_v6, %v6308_v7  ;;  %v2168_v15 = vmul.f32 %v4648_v6, %v6309_v57 }
 0x1d8   :  { %v2169_v5 = vmul.f32 %v4648_v6, %v6310_v45  ;;  %v4926_v11 = vadd.f32 %v4722_v43, %v4714_v12  ;;  %v4930_v46 = vadd.f32 %v4726_v16, %v4714_v12  ;;  %v4934_v7 = vadd.f32 %v4730_v47, %v4714_v12 }
 0x1d9   :  { %v4938_v57 = vadd.f32 %v4734_v51, %v4714_v12  ;;  %v4945_v45 = vadd.f32 %v2144_v37, %v4714_v12  ;;  %v4948_v43 = vadd.f32 %v2145_v38, %v4714_v12  ;;  %v4951_v16 = vadd.f32 %v2146_v56, %v4714_v12 }
 0x1da   :  { %v4954_v47 = vadd.f32 %v2147_v33, %v4714_v12  ;;  %v4957_v20 = vadd.f32 %v2148_v2, %v4714_v12  ;;  %v4960_v51 = vadd.f32 %v2149_v24, %v4714_v12  ;;  %v4963_v23 = vadd.f32 %v2150_v42, %v4714_v12 }
 0x1db   :  { %v4966_v37 = vadd.f32 %v2151_v22, %v4714_v12  ;;  %v4969_v38 = vadd.f32 %v2152_v39, %v4714_v12  ;;  %v4972_v56 = vadd.f32 %v2153_v52, %v4714_v12  ;;  %v4975_v33 = vadd.f32 %v2154_v17, %v4714_v12 }
 0x1dc   :  { %v4978_v2 = vadd.f32 %v2155_v26, %v4714_v12  ;;  %v4981_v24 = vadd.f32 %v2156_v48, %v4714_v12  ;;  %v4984_v42 = vadd.f32 %v2157_v1, %v4714_v12  ;;  %v4987_v22 = vadd.f32 %v2158_v61, %v4714_v12 }
 0x1dd   :  { %6311 = vst [vmem:[#allocation6_spill] sm:$0xff] %v4969_v38  ;;  %6312 = vst [vmem:[#allocation8_spill] sm:$0xff] %v4972_v56  ;;  %v4990_v39 = vadd.f32 %v2159_v10, %v4714_v12  ;;  %v4993_v52 = vadd.f32 %v2160_v3, %v4714_v12  ;;  %v4996_v17 = vadd.f32 %v2161_v8, %v4714_v12 }
 0x1de   :  { %6313 = vst [vmem:[#allocation11_spill] sm:$0xff] %v4975_v33  ;;  %6314 = vst [vmem:[#allocation13_spill] sm:$0xff] %v4978_v2  ;;  %v4999_v26 = vadd.f32 %v2162_v34, %v4714_v12  ;;  %v5002_v48 = vadd.f32 %v2163_v41, %v4714_v12  ;;  %v5005_v1 = vadd.f32 %v2164_v9, %v4714_v12  ;;  %v6346_v2 = vld [vmem:[#allocation96_spill] sm:$0xff] }
 0x1df   :  { %6315 = vst [vmem:[#allocation10_spill] sm:$0xff] %v4981_v24  ;;  %6316 = vst [vmem:[#allocation12_spill] sm:$0xff] %v4984_v42  ;;  %v5008_v61 = vadd.f32 %v2165_v36, %v4714_v12  ;;  %v5011_v10 = vadd.f32 %v2166_v28, %v4714_v12  ;;  %v5014_v3 = vadd.f32 %v2167_v59, %v4714_v12  ;;  %v6330_v36 = vld [vmem:[#allocation54_spill] sm:$0xff]  ;;  %v6333_v59 = vld [vmem:[#allocation64_spill] sm:$0xff] }
 0x1e0   :  { %6317 = vst [vmem:[#allocation15_spill] sm:$0xff] %v4987_v22  ;;  %6318 = vst [vmem:[#allocation17_spill] sm:$0xff] %v4990_v39  ;;  %v5017_v8 = vadd.f32 %v2168_v15, %v4714_v12  ;;  %v5020_v34 = vadd.f32 %v2169_v5, %v4714_v12  ;;  %v6329_v39 = vld [vmem:[#allocation51_spill] sm:$0xff]  ;;  %v2235_v28 = vmul.f32 %v4648_v6, %v6330_v36  ;;  %v6332_v5 = vld [vmem:[#allocation61_spill] sm:$0xff] }
 0x1e1   :  { %6319 = vst [vmem:[#allocation14_spill] sm:$0xff] %v4993_v52  ;;  %6320 = vst [vmem:[#allocation16_spill] sm:$0xff] %v4996_v17  ;;  %v2234_v31 = vmul.f32 %v4648_v6, %v6329_v39  ;;  %v2237_v15 = vmul.f32 %v4648_v6, %v4059_v54  ;;  %v2239_v41 = vmul.f32 %v4648_v6, %v4161_v58  ;;  %v6341_v17 = vld [vmem:[#allocation84_spill] sm:$0xff]  ;;  %v6344_v42 = vld [vmem:[#allocation97_spill] sm:$0xff] }
 0x1e2   :  { %6321 = vst [vmem:[#allocation21_spill] sm:$0xff] %v4999_v26  ;;  %6322 = vst [vmem:[#allocation25_spill] sm:$0xff] %v5002_v48  ;;  %v6331_v26 = vld [vmem:[#allocation50_spill] sm:$0xff]  ;;  %v2240_v9 = vmul.f32 %v4648_v6, %v4114_v62  ;;  %v2241_v39 = vmul.f32 %v4648_v6, %v4157_v53  ;;  %v2242_v36 = vmul.f32 %v4648_v6, %v4205_v30  ;;  %v6340_v48 = vld [vmem:[#allocation89_spill] sm:$0xff] }
 0x1e3   :  { %6323 = vst [vmem:[#allocation19_spill] sm:$0xff] %v5005_v1  ;;  %6324 = vst [vmem:[#allocation23_spill] sm:$0xff] %v5008_v61  ;;  %v2236_v18 = vmul.f32 %v4648_v6, %v6331_v26  ;;  %v2243_v26 = vmul.f32 %v4648_v6, %v4253_v44  ;;  %v2244_v54 = vmul.f32 %v4648_v6, %v6332_v5  ;;  %v6338_v61 = vld [vmem:[#allocation78_spill] sm:$0xff]  ;;  %v6339_v1 = vld [vmem:[#allocation85_spill] sm:$0xff] }
 0x1e4   :  { %6325 = vst [vmem:[#allocation29_spill] sm:$0xff] %v5011_v10  ;;  %6326 = vst [vmem:[#allocation33_spill] sm:$0xff] %v5014_v3  ;;  %v2245_v4 = vmul.f32 %v4648_v6, %v6333_v59  ;;  %v2246_v58 = vmul.f32 %v4648_v6, %v4293_v14  ;;  %v2249_v30 = vmul.f32 %v4648_v6, %v4324_v13  ;;  %v6336_v3 = vld [vmem:[#allocation73_spill] sm:$0xff]  ;;  %v6342_v52 = vld [vmem:[#allocation88_spill] sm:$0xff] }
 0x1e5   :  { %6327 = vst [vmem:[#allocation27_spill] sm:$0xff] %v5017_v8  ;;  %6328 = vst [vmem:[#allocation32_spill] sm:$0xff] %v5020_v34  ;;  %v6334_v34 = vld [vmem:[#allocation70_spill] sm:$0xff]  ;;  %v6335_v8 = vld [vmem:[#allocation67_spill] sm:$0xff]  ;;  %v2250_v44 = vmul.f32 %v4648_v6, %v4373_v21  ;;  %v2251_v5 = vmul.f32 %v4648_v6, %v4408_v27  ;;  %v2252_v59 = vmul.f32 %v4648_v6, %v6336_v3 }
 0x1e6   :  { %v2247_v62 = vmul.f32 %v4648_v6, %v6334_v34  ;;  %v2248_v53 = vmul.f32 %v4648_v6, %v6335_v8  ;;  %v2253_v14 = vmul.f32 %v4648_v6, %v4404_v32  ;;  %v2254_v34 = vmul.f32 %v4648_v6, %v4446_v25  ;;  %v6337_v10 = vld [vmem:[#allocation81_spill] sm:$0xff]  ;;  %v6343_v22 = vld [vmem:[#allocation92_spill] sm:$0xff]  ;;  %v6345_v24 = vld [vmem:[#allocation94_spill] sm:$0xff] }
 0x1e7   :  { %v2255_v8 = vmul.f32 %v4648_v6, %v6337_v10  ;;  %v2256_v13 = vmul.f32 %v4648_v6, %v6338_v61  ;;  %v2257_v21 = vmul.f32 %v4648_v6, %v4474_v19  ;;  %v2258_v27 = vmul.f32 %v4648_v6, %v6339_v1 }
 0x1e8   :  { %v2259_v3 = vmul.f32 %v4648_v6, %v6340_v48  ;;  %v2260_v32 = vmul.f32 %v4648_v6, %v6341_v17  ;;  %v2261_v25 = vmul.f32 %v4648_v6, %v6342_v52  ;;  %v2262_v10 = vmul.f32 %v4648_v6, %v6343_v22 }
 0x1e9   :  { %v2263_v61 = vmul.f32 %v4648_v6, %v6344_v42  ;;  %v2264_v19 = vmul.f32 %v4648_v6, %v6345_v24  ;;  %v2265_v1 = vmul.f32 %v4648_v6, %v6346_v2  ;;  %v5119_v48 = vadd.f32 %v2234_v31, %v4714_v12 }
 0x1ea   :  { %v5122_v17 = vadd.f32 %v2235_v28, %v4714_v12  ;;  %v5125_v52 = vadd.f32 %v2236_v18, %v4714_v12  ;;  %v5128_v22 = vadd.f32 %v2237_v15, %v4714_v12  ;;  %v5131_v42 = vadd.f32 %v2238_v40, %v4714_v12 }
 0x1eb   :  { %v5134_v24 = vadd.f32 %v2239_v41, %v4714_v12  ;;  %v5137_v2 = vadd.f32 %v2240_v9, %v4714_v12  ;;  %v5140_v31 = vadd.f32 %v2241_v39, %v4714_v12  ;;  %v5143_v28 = vadd.f32 %v2242_v36, %v4714_v12 }
 0x1ec   :  { %6347 = vst [vmem:[#allocation37_spill] sm:$0xff] %v5122_v17  ;;  %6348 = vst [vmem:[#allocation41_spill] sm:$0xff] %v5125_v52  ;;  %v5146_v18 = vadd.f32 %v2243_v26, %v4714_v12  ;;  %v5149_v15 = vadd.f32 %v2244_v54, %v4714_v12  ;;  %v5152_v40 = vadd.f32 %v2245_v4, %v4714_v12  ;;  %v6412_v52 = vmax.f32 %v4926_v11, 0.0 }
 0x1ed   :  { %6349 = vst [vmem:[#allocation35_spill] sm:$0xff] %v5128_v22  ;;  %6350 = vst [vmem:[#allocation40_spill] sm:$0xff] %v5131_v42  ;;  %v5155_v41 = vadd.f32 %v2246_v58, %v4714_v12  ;;  %v5158_v9 = vadd.f32 %v2247_v62, %v4714_v12  ;;  %v5161_v39 = vadd.f32 %v2248_v53, %v4714_v12  ;;  %v6408_v42 = vld [vmem:[#allocation95_spill] sm:$0xff]  ;;  %v6409_v22 = vld [vmem:[#allocation98_spill] sm:$0xff]  ;;  %v6414_v17 = vmax.f32 %v4930_v46, 0.0 }
 0x1ee   :  { %6351 = vst [vmem:[#allocation45_spill] sm:$0xff] %v5134_v24  ;;  %6352 = vst [vmem:[#allocation49_spill] sm:$0xff] %v5137_v2  ;;  %v5164_v36 = vadd.f32 %v2249_v30, %v4714_v12  ;;  %v5167_v26 = vadd.f32 %v2250_v44, %v4714_v12  ;;  %v5170_v54 = vadd.f32 %v2251_v5, %v4714_v12  ;;  %v6406_v2 = vld [vmem:[#allocation93_spill] sm:$0xff]  ;;  %v6407_v24 = vld [vmem:[#allocation99_spill] sm:$0xff]  ;;  %v6419_v11 = vmax.f32 %v4753_v50, 0.0 }
 0x1ef   :  { %6353 = vst [vmem:[#allocation43_spill] sm:$0xff] %v5140_v31  ;;  %6354 = vst [vmem:[#allocation48_spill] sm:$0xff] %v5143_v28  ;;  %v5173_v4 = vadd.f32 %v2252_v59, %v4714_v12  ;;  %v5176_v58 = vadd.f32 %v2253_v14, %v4714_v12  ;;  %v5179_v62 = vadd.f32 %v2254_v34, %v4714_v12  ;;  %v6404_v28 = vld [vmem:[#allocation87_spill] sm:$0xff]  ;;  %v6405_v31 = vld [vmem:[#allocation90_spill] sm:$0xff]  ;;  %v6421_v46 = vmax.f32 %v4756_v55, 0.0 }
 0x1f0   :  { %6355 = vst [vmem:[#allocation51_spill] sm:$0xff] %v5146_v18  ;;  %6356 = vst [vmem:[#allocation54_spill] sm:$0xff] %v5149_v15  ;;  %v5182_v53 = vadd.f32 %v2255_v8, %v4714_v12  ;;  %v5185_v30 = vadd.f32 %v2256_v13, %v4714_v12  ;;  %v5188_v44 = vadd.f32 %v2257_v21, %v4714_v12  ;;  %v6402_v15 = vld [vmem:[#allocation86_spill] sm:$0xff]  ;;  %v6403_v18 = vld [vmem:[#allocation91_spill] sm:$0xff]  ;;  %v6428_v50 = vmax.f32 %v4951_v16, 0.0 }
 0x1f1   :  { %6357 = vst [vmem:[#allocation50_spill] sm:$0xff] %v5152_v40  ;;  %6358 = vst [vmem:[#allocation61_spill] sm:$0xff] %v5155_v41  ;;  %v5191_v5 = vadd.f32 %v2258_v27, %v4714_v12  ;;  %v5194_v59 = vadd.f32 %v2259_v3, %v4714_v12  ;;  %v5197_v14 = vadd.f32 %v2260_v32, %v4714_v12  ;;  %v6400_v41 = vld [vmem:[#allocation80_spill] sm:$0xff]  ;;  %v6401_v40 = vld [vmem:[#allocation82_spill] sm:$0xff]  ;;  %v6431_v55 = vmax.f32 %v4954_v47, 0.0 }
 0x1f2   :  { %6359 = vst [vmem:[#allocation64_spill] sm:$0xff] %v5158_v9  ;;  %6360 = vst [vmem:[#allocation70_spill] sm:$0xff] %v5161_v39  ;;  %v5200_v34 = vadd.f32 %v2261_v25, %v4714_v12  ;;  %v5203_v8 = vadd.f32 %v2262_v10, %v4714_v12  ;;  %v5206_v13 = vadd.f32 %v2263_v61, %v4714_v12  ;;  %v6379_v25 = vld [vmem:[#allocation56_spill] sm:$0xff]  ;;  %v6381_v61 = vld [vmem:[#allocation55_spill] sm:$0xff] }
 0x1f3   :  { %6361 = vst [vmem:[#allocation67_spill] sm:$0xff] %v5164_v36  ;;  %6362 = vst [vmem:[#allocation73_spill] sm:$0xff] %v5167_v26  ;;  %v5209_v21 = vadd.f32 %v2264_v19, %v4714_v12  ;;  %v5212_v27 = vadd.f32 %v2265_v1, %v4714_v12  ;;  %v2331_v10 = vmul.f32 %v4648_v6, %v6379_v25  ;;  %v6383_v1 = vld [vmem:[#allocation59_spill] sm:$0xff]  ;;  %v6397_v36 = vld [vmem:[#allocation76_spill] sm:$0xff] }
 0x1f4   :  { %6363 = vst [vmem:[#allocation81_spill] sm:$0xff] %v5170_v54  ;;  %6364 = vst [vmem:[#allocation78_spill] sm:$0xff] %v5173_v4  ;;  %v2333_v19 = vmul.f32 %v4648_v6, %v6381_v61  ;;  %v2335_v3 = vmul.f32 %v4648_v6, %v6383_v1  ;;  %v6394_v4 = vld [vmem:[#allocation74_spill] sm:$0xff]  ;;  %v6395_v54 = vld [vmem:[#allocation77_spill] sm:$0xff] }
 0x1f5   :  { %6365 = vst [vmem:[#allocation85_spill] sm:$0xff] %v5176_v58  ;;  %6366 = vst [vmem:[#allocation89_spill] sm:$0xff] %v5179_v62  ;;  %v6392_v62 = vld [vmem:[#allocation69_spill] sm:$0xff]  ;;  %v6393_v58 = vld [vmem:[#allocation72_spill] sm:$0xff] }
 0x1f6   :  { %6367 = vst [vmem:[#allocation84_spill] sm:$0xff] %v5182_v53  ;;  %6368 = vst [vmem:[#allocation88_spill] sm:$0xff] %v5185_v30  ;;  %v6378_v53 = vld [vmem:[#allocation52_spill] sm:$0xff]  ;;  %v6391_v30 = vld [vmem:[#allocation71_spill] sm:$0xff] }
 0x1f7   :  { %6369 = vst [vmem:[#allocation92_spill] sm:$0xff] %v5188_v44  ;;  %6370 = vst [vmem:[#allocation97_spill] sm:$0xff] %v5191_v5  ;;  %v2330_v33 = vmul.f32 %v4648_v6, %v6378_v53  ;;  %v6380_v5 = vld [vmem:[#allocation53_spill] sm:$0xff]  ;;  %v6390_v44 = vld [vmem:[#allocation68_spill] sm:$0xff] }
 0x1f8   :  { %6371 = vst [vmem:[#allocation94_spill] sm:$0xff] %v5194_v59  ;;  %6372 = vst [vmem:[#allocation96_spill] sm:$0xff] %v5197_v14  ;;  %v2332_v56 = vmul.f32 %v4648_v6, %v6380_v5  ;;  %v6388_v14 = vld [vmem:[#allocation62_spill] sm:$0xff]  ;;  %v6389_v59 = vld [vmem:[#allocation65_spill] sm:$0xff]  ;;  %v2342_v1 = vmul.f32 %v4648_v6, %v6390_v44  ;;  %v2349_v44 = vmul.f32 %v4648_v6, %v6397_v36 }
 0x1f9   :  { %6373 = vst [vmem:[#allocation104_spill] sm:$0xff] %v5200_v34  ;;  %6374 = vst [vmem:[#allocation105_spill] sm:$0xff] %v5203_v8  ;;  %v6382_v34 = vld [vmem:[#allocation58_spill] sm:$0xff]  ;;  %v2340_v61 = vmul.f32 %v4648_v6, %v6388_v14  ;;  %v2347_v14 = vmul.f32 %v4648_v6, %v6395_v54  ;;  %v6396_v26 = vld [vmem:[#allocation75_spill] sm:$0xff]  ;;  %v2354_v54 = vmul.f32 %v4648_v6, %v6402_v15 }
 0x1fa   :  { %6375 = vst [vmem:[#allocation106_spill] sm:$0xff] %v5206_v13  ;;  %6376 = vst [vmem:[#allocation107_spill] sm:$0xff] %v5209_v21  ;;  %v2334_v38 = vmul.f32 %v4648_v6, %v6382_v34  ;;  %v6384_v21 = vld [vmem:[#allocation57_spill] sm:$0xff]  ;;  %v6386_v13 = vld [vmem:[#allocation63_spill] sm:$0xff]  ;;  %v2341_v34 = vmul.f32 %v4648_v6, %v6389_v59  ;;  %v2348_v59 = vmul.f32 %v4648_v6, %v6396_v26 }
 0x1fb   :  { %6377 = vst [vmem:[#allocation108_spill] sm:$0xff] %v5212_v27  ;;  %v2336_v32 = vmul.f32 %v4648_v6, %v6384_v21  ;;  %v6385_v27 = vld [vmem:[#allocation60_spill] sm:$0xff]  ;;  %v2338_v25 = vmul.f32 %v4648_v6, %v6386_v13  ;;  %v6387_v8 = vld [vmem:[#allocation66_spill] sm:$0xff]  ;;  %v2343_v21 = vmul.f32 %v4648_v6, %v6391_v30  ;;  %v2345_v13 = vmul.f32 %v4648_v6, %v6393_v58  ;;  %v6398_v39 = vld [vmem:[#allocation79_spill] sm:$0xff] }
 0x1fc   :  { %v2337_v53 = vmul.f32 %v4648_v6, %v6385_v27  ;;  %v2339_v5 = vmul.f32 %v4648_v6, %v6387_v8  ;;  %v2344_v27 = vmul.f32 %v4648_v6, %v6392_v62  ;;  %v2346_v8 = vmul.f32 %v4648_v6, %v6394_v4  ;;  %v6399_v9 = vld [vmem:[#allocation83_spill] sm:$0xff] }
 0x1fd   :  { %v2350_v30 = vmul.f32 %v4648_v6, %v6398_v39  ;;  %v2351_v62 = vmul.f32 %v4648_v6, %v6399_v9  ;;  %v2352_v58 = vmul.f32 %v4648_v6, %v6400_v41  ;;  %v2353_v4 = vmul.f32 %v4648_v6, %v6401_v40 }
 0x1fe   :  { %v2355_v26 = vmul.f32 %v4648_v6, %v6403_v18  ;;  %v2356_v36 = vmul.f32 %v4648_v6, %v6404_v28  ;;  %v2357_v39 = vmul.f32 %v4648_v6, %v6405_v31  ;;  %v2358_v9 = vmul.f32 %v4648_v6, %v6406_v2 }
 0x1ff   :  { %v2359_v41 = vmul.f32 %v4648_v6, %v6407_v24  ;;  %v2360_v40 = vmul.f32 %v4648_v6, %v6408_v42  ;;  %v2361_v15 = vmul.f32 %v4648_v6, %v6409_v22  ;;  %v5311_v18 = vadd.f32 %v2330_v33, %v4714_v12 }
 0x200   :  { %v5314_v28 = vadd.f32 %v2331_v10, %v4714_v12  ;;  %v5317_v31 = vadd.f32 %v2332_v56, %v4714_v12  ;;  %v5320_v2 = vadd.f32 %v2333_v19, %v4714_v12  ;;  %v5323_v24 = vadd.f32 %v2334_v38, %v4714_v12 }
 0x201   :  { %v5326_v42 = vadd.f32 %v2335_v3, %v4714_v12  ;;  %v5329_v6 = vadd.f32 %v2336_v32, %v4714_v12  ;;  %v5332_v33 = vadd.f32 %v2337_v53, %v4714_v12  ;;  %v5335_v22 = vadd.f32 %v2338_v25, %v4714_v12 }
 0x202   :  { %v5338_v56 = vadd.f32 %v2339_v5, %v4714_v12  ;;  %v5341_v10 = vadd.f32 %v2340_v61, %v4714_v12  ;;  %v5344_v38 = vadd.f32 %v2341_v34, %v4714_v12  ;;  %v5347_v3 = vadd.f32 %v2342_v1, %v4714_v12 }
 0x203   :  { %v5350_v32 = vadd.f32 %v2343_v21, %v4714_v12  ;;  %v5353_v19 = vadd.f32 %v2344_v27, %v4714_v12  ;;  %v5356_v53 = vadd.f32 %v2345_v13, %v4714_v12  ;;  %v5359_v25 = vadd.f32 %v2346_v8, %v4714_v12 }
 0x204   :  { %v5362_v5 = vadd.f32 %v2347_v14, %v4714_v12  ;;  %v5365_v61 = vadd.f32 %v2348_v59, %v4714_v12  ;;  %v5368_v34 = vadd.f32 %v2349_v44, %v4714_v12  ;;  %v5371_v1 = vadd.f32 %v2350_v30, %v4714_v12 }
 0x205   :  { %v5374_v21 = vadd.f32 %v2351_v62, %v4714_v12  ;;  %v5377_v27 = vadd.f32 %v2352_v58, %v4714_v12  ;;  %v5380_v13 = vadd.f32 %v2353_v4, %v4714_v12  ;;  %v5383_v8 = vadd.f32 %v2354_v54, %v4714_v12 }
 0x206   :  { %v5386_v14 = vadd.f32 %v2355_v26, %v4714_v12  ;;  %v5389_v59 = vadd.f32 %v2356_v36, %v4714_v12  ;;  %v5392_v44 = vadd.f32 %v2357_v39, %v4714_v12  ;;  %v5395_v30 = vadd.f32 %v2358_v9, %v4714_v12 }
 0x207   :  { %v5398_v62 = vadd.f32 %v2359_v41, %v4714_v12  ;;  %v5401_v58 = vadd.f32 %v2360_v40, %v4714_v12  ;;  %v5404_v4 = vadd.f32 %v2361_v15, %v4714_v12  ;;  %v6410_v36 = vmax.f32 %v4922_v29, 0.0 }
 0x208   :  { %v6411_v39 = vmax.f32 %v4741_v60, 0.0  ;;  %v6413_v41 = vmax.f32 %v4744_v0, 0.0  ;;  %v6415_v12 = vmax.f32 %v4747_v49, 0.0  ;;  %v6416_v26 = vmax.f32 %v4934_v7, 0.0 }
 0x209   :  { %v6417_v29 = vmax.f32 %v4750_v63, 0.0  ;;  %v6418_v60 = vmax.f32 %v4938_v57, 0.0  ;;  %v6420_v0 = vmax.f32 %v4942_v35, 0.0  ;;  %v6422_v49 = vmax.f32 %v4945_v45, 0.0 }
 0x20a   :  { %v5442_v54 = vmax.f32 %v6411_v39, %v6410_v36  ;;  %v5448_v9 = vmax.f32 %v6413_v41, %v6412_v52  ;;  %v5454_v40 = vmax.f32 %v6415_v12, %v6414_v17  ;;  %v6423_v17 = vld [vmem:[#allocation20_spill] sm:$0xff]  ;;  %v6425_v63 = vmax.f32 %v4948_v43, 0.0  ;;  %v6429_v12 = vld [vmem:[#allocation18_spill] sm:$0xff] }
 0x20b   :  { %v5460_v15 = vmax.f32 %v6417_v29, %v6416_v26  ;;  %v5466_v36 = vmax.f32 %v6419_v11, %v6418_v60  ;;  %v5472_v52 = vmax.f32 %v6421_v46, %v6420_v0  ;;  %v6424_v7 = vmax.f32 %v6423_v17, 0.0  ;;  %v6426_v26 = vld [vmem:[#allocation24_spill] sm:$0xff]  ;;  %v6432_v60 = vld [vmem:[#allocation22_spill] sm:$0xff] }
 0x20c   :  { %v6427_v57 = vmax.f32 %v6426_v26, 0.0  ;;  %v6430_v35 = vmax.f32 %v6429_v12, 0.0  ;;  %v6433_v45 = vmax.f32 %v6432_v60, 0.0  ;;  %v6434_v0 = vmax.f32 %v4957_v20, 0.0  ;;  %v6435_v46 = vld [vmem:[#allocation28_spill] sm:$0xff]  ;;  %v6448_v60 = vld [vmem:[#allocation6_spill] sm:$0xff] }
 0x20d   :  { %v5478_v39 = vmax.f32 %v6424_v7, %v6422_v49  ;;  %v6436_v43 = vmax.f32 %v6435_v46, 0.0  ;;  %v6437_v17 = vmax.f32 %v4960_v51, 0.0  ;;  %v6438_v7 = vld [vmem:[#allocation31_spill] sm:$0xff]  ;;  %v6440_v26 = vmax.f32 %v4963_v23, 0.0 }
 0x20e   :  { %v5484_v41 = vmax.f32 %v6427_v57, %v6425_v63  ;;  %v5490_v29 = vmax.f32 %v6430_v35, %v6428_v50  ;;  %v5496_v11 = vmax.f32 %v6433_v45, %v6431_v55  ;;  %v6439_v16 = vmax.f32 %v6438_v7, 0.0  ;;  %v6441_v57 = vld [vmem:[#allocation26_spill] sm:$0xff] }
 0x20f   :  { %v5502_v49 = vmax.f32 %v6436_v43, %v6434_v0  ;;  %v6442_v47 = vmax.f32 %v6441_v57, 0.0  ;;  %v6444_v12 = vmax.f32 %v4966_v37, 0.0  ;;  %v6445_v35 = vld [vmem:[#allocation30_spill] sm:$0xff]  ;;  %v6449_v45 = vmax.f32 %v6448_v60, 0.0  ;;  %v6450_v0 = vld [vmem:[#allocation36_spill] sm:$0xff] }
 0x210   :  { %v5508_v63 = vmax.f32 %v6439_v16, %v6437_v17  ;;  %v6446_v20 = vmax.f32 %v6445_v35, 0.0  ;;  %v6451_v51 = vmax.f32 %v6450_v0, 0.0  ;;  %v6453_v43 = vld [vmem:[#allocation8_spill] sm:$0xff]  ;;  %v6455_v7 = vld [vmem:[#allocation38_spill] sm:$0xff] }
 0x211   :  { %v5514_v50 = vmax.f32 %v6442_v47, %v6440_v26  ;;  %v6454_v17 = vmax.f32 %v6453_v43, 0.0  ;;  %v6456_v23 = vmax.f32 %v6455_v7, 0.0  ;;  %v6458_v26 = vld [vmem:[#allocation11_spill] sm:$0xff]  ;;  %v6460_v47 = vld [vmem:[#allocation34_spill] sm:$0xff] }
 0x212   :  { %v5520_v55 = vmax.f32 %v6446_v20, %v6444_v12  ;;  %v5526_v46 = vmax.f32 %v6451_v51, %v6449_v45  ;;  %v6459_v57 = vmax.f32 %v6458_v26, 0.0  ;;  %v6461_v37 = vmax.f32 %v6460_v47, 0.0  ;;  %v6463_v12 = vld [vmem:[#allocation13_spill] sm:$0xff]  ;;  %v6465_v20 = vld [vmem:[#allocation39_spill] sm:$0xff]  ;;  %v6468_v45 = vld [vmem:[#allocation10_spill] sm:$0xff] }
 0x213   :  { %6443 = vst [vmem:[#allocation52_spill] sm:$0xff] %v5514_v50  ;;  %v5532_v16 = vmax.f32 %v6456_v23, %v6454_v17  ;;  %v6464_v35 = vmax.f32 %v6463_v12, 0.0  ;;  %v6466_v60 = vmax.f32 %v6465_v20, 0.0  ;;  %v6469_v0 = vmax.f32 %v6468_v45, 0.0  ;;  %v6470_v51 = vld [vmem:[#allocation44_spill] sm:$0xff]  ;;  %v6475_v23 = vld [vmem:[#allocation46_spill] sm:$0xff] }
 0x214   :  { %6447 = vst [vmem:[#allocation56_spill] sm:$0xff] %v5520_v55  ;;  %6452 = vst [vmem:[#allocation53_spill] sm:$0xff] %v5526_v46  ;;  %v5538_v50 = vmax.f32 %v6461_v37, %v6459_v57  ;;  %v6471_v43 = vmax.f32 %v6470_v51, 0.0  ;;  %v6473_v17 = vld [vmem:[#allocation12_spill] sm:$0xff]  ;;  %v6476_v26 = vmax.f32 %v6475_v23, 0.0  ;;  %v6478_v57 = vld [vmem:[#allocation15_spill] sm:$0xff] }
 0x215   :  { %6457 = vst [vmem:[#allocation55_spill] sm:$0xff] %v5532_v16  ;;  %v5544_v55 = vmax.f32 %v6466_v60, %v6464_v35  ;;  %v6474_v7 = vmax.f32 %v6473_v17, 0.0  ;;  %v6479_v47 = vmax.f32 %v6478_v57, 0.0  ;;  %v6480_v37 = vld [vmem:[#allocation42_spill] sm:$0xff]  ;;  %v6483_v35 = vld [vmem:[#allocation17_spill] sm:$0xff]  ;;  %v6485_v60 = vld [vmem:[#allocation47_spill] sm:$0xff] }
 0x216   :  { %6462 = vst [vmem:[#allocation58_spill] sm:$0xff] %v5538_v50  ;;  %v5550_v46 = vmax.f32 %v6471_v43, %v6469_v0  ;;  %v6481_v12 = vmax.f32 %v6480_v37, 0.0  ;;  %v6484_v20 = vmax.f32 %v6483_v35, 0.0  ;;  %v6486_v45 = vmax.f32 %v6485_v60, 0.0  ;;  %v6488_v0 = vld [vmem:[#allocation14_spill] sm:$0xff]  ;;  %v6490_v43 = vld [vmem:[#allocation3_spill] sm:$0xff] }
 0x217   :  { %6467 = vst [vmem:[#allocation59_spill] sm:$0xff] %v5544_v55  ;;  %v5556_v16 = vmax.f32 %v6476_v26, %v6474_v7  ;;  %v6489_v51 = vmax.f32 %v6488_v0, 0.0  ;;  %v6491_v17 = vmax.f32 %v6490_v43, 0.0  ;;  %v6493_v7 = vld [vmem:[#allocation16_spill] sm:$0xff]  ;;  %v6495_v26 = vld [vmem:[#allocation5_spill] sm:$0xff] }
 0x218   :  { %6472 = vst [vmem:[#allocation57_spill] sm:$0xff] %v5550_v46  ;;  %v5562_v50 = vmax.f32 %v6481_v12, %v6479_v47  ;;  %v5568_v55 = vmax.f32 %v6486_v45, %v6484_v20  ;;  %v6494_v23 = vmax.f32 %v6493_v7, 0.0  ;;  %v6496_v57 = vmax.f32 %v6495_v26, 0.0  ;;  %v6498_v47 = vld [vmem:[#allocation21_spill] sm:$0xff]  ;;  %v6500_v12 = vld [vmem:[#allocation2_spill] sm:$0xff]  ;;  %v6505_v45 = vld [vmem:[#allocation4_spill] sm:$0xff] }
 0x219   :  { %6477 = vst [vmem:[#allocation60_spill] sm:$0xff] %v5556_v16  ;;  %v5574_v46 = vmax.f32 %v6491_v17, %v6489_v51  ;;  %v6499_v37 = vmax.f32 %v6498_v47, 0.0  ;;  %v6501_v35 = vmax.f32 %v6500_v12, 0.0  ;;  %v6503_v20 = vld [vmem:[#allocation25_spill] sm:$0xff]  ;;  %v6506_v0 = vmax.f32 %v6505_v45, 0.0  ;;  %v6508_v51 = vld [vmem:[#allocation19_spill] sm:$0xff] }
 0x21a   :  { %6482 = vst [vmem:[#allocation63_spill] sm:$0xff] %v5562_v50  ;;  %6487 = vst [vmem:[#allocation66_spill] sm:$0xff] %v5568_v55  ;;  %v5580_v16 = vmax.f32 %v6496_v57, %v6494_v23  ;;  %v6504_v60 = vmax.f32 %v6503_v20, 0.0  ;;  %v6509_v43 = vmax.f32 %v6508_v51, 0.0  ;;  %v6510_v17 = vld [vmem:[#allocation7_spill] sm:$0xff]  ;;  %v6515_v57 = vld [vmem:[#allocation9_spill] sm:$0xff] }
 0x21b   :  { %6492 = vst [vmem:[#allocation62_spill] sm:$0xff] %v5574_v46  ;;  %v5586_v50 = vmax.f32 %v6501_v35, %v6499_v37  ;;  %v6511_v7 = vmax.f32 %v6510_v17, 0.0  ;;  %v6513_v23 = vld [vmem:[#allocation23_spill] sm:$0xff]  ;;  %v6516_v47 = vmax.f32 %v6515_v57, 0.0  ;;  %v6518_v37 = vld [vmem:[#allocation29_spill] sm:$0xff]  ;;  %v6520_v35 = vld [vmem:[#allocation100_spill] sm:$0xff] }
 0x21c   :  { %6497 = vst [vmem:[#allocation65_spill] sm:$0xff] %v5580_v16  ;;  %v5592_v55 = vmax.f32 %v6506_v0, %v6504_v60  ;;  %v6514_v26 = vmax.f32 %v6513_v23, 0.0  ;;  %v6519_v12 = vmax.f32 %v6518_v37, 0.0  ;;  %v6521_v20 = vmax.f32 %v6520_v35, 0.0  ;;  %v6522_v60 = vld [vmem:[#allocation33_spill] sm:$0xff] }
 0x21d   :  { %6502 = vst [vmem:[#allocation68_spill] sm:$0xff] %v5586_v50  ;;  %v5598_v46 = vmax.f32 %v6511_v7, %v6509_v43  ;;  %v6523_v45 = vmax.f32 %v6522_v60, 0.0  ;;  %v6524_v0 = vld [vmem:[#allocation101_spill] sm:$0xff]  ;;  %v6526_v43 = vld [vmem:[#allocation27_spill] sm:$0xff]  ;;  %v6528_v7 = vld [vmem:[#allocation102_spill] sm:$0xff]  ;;  %v6536_v35 = vmax.f32 %v5119_v48, 0.0 }
 0x21e   :  { %6507 = vst [vmem:[#allocation71_spill] sm:$0xff] %v5592_v55  ;;  %v5604_v16 = vmax.f32 %v6516_v47, %v6514_v26  ;;  %v5610_v50 = vmax.f32 %v6521_v20, %v6519_v12  ;;  %v6525_v51 = vmax.f32 %v6524_v0, 0.0  ;;  %v6527_v17 = vmax.f32 %v6526_v43, 0.0  ;;  %v6530_v26 = vld [vmem:[#allocation32_spill] sm:$0xff]  ;;  %v6532_v47 = vld [vmem:[#allocation103_spill] sm:$0xff] }
 0x21f   :  { %6512 = vst [vmem:[#allocation69_spill] sm:$0xff] %v5598_v46  ;;  %v6529_v23 = vmax.f32 %v6528_v7, 0.0  ;;  %v6531_v57 = vmax.f32 %v6530_v26, 0.0  ;;  %v6533_v37 = vmax.f32 %v6532_v47, 0.0  ;;  %v6535_v12 = vmax.f32 %v5311_v18, 0.0  ;;  %v6544_v47 = vld [vmem:[#allocation35_spill] sm:$0xff] }
 0x220   :  { %6517 = vst [vmem:[#allocation72_spill] sm:$0xff] %v5604_v16  ;;  %v5616_v55 = vmax.f32 %v6525_v51, %v6523_v45  ;;  %v6537_v60 = vmax.f32 %v5314_v28, 0.0  ;;  %v6538_v45 = vld [vmem:[#allocation37_spill] sm:$0xff]  ;;  %v6540_v43 = vmax.f32 %v5317_v31, 0.0  ;;  %v6543_v26 = vmax.f32 %v5320_v2, 0.0 }
 0x221   :  { %v5622_v46 = vmax.f32 %v6529_v23, %v6527_v17  ;;  %v5628_v16 = vmax.f32 %v6533_v37, %v6531_v57  ;;  %v2458_v20 = vmax.f32 %v6536_v35, %v6535_v12  ;;  %v6539_v0 = vmax.f32 %v6538_v45, 0.0  ;;  %v6541_v17 = vld [vmem:[#allocation41_spill] sm:$0xff] }
 0x222   :  { %v6542_v7 = vmax.f32 %v6541_v17, 0.0  ;;  %v6545_v57 = vmax.f32 %v6544_v47, 0.0  ;;  %v6546_v18 = vmax.f32 %v5323_v24, 0.0  ;;  %v6549_v28 = vmax.f32 %v5326_v42, 0.0  ;;  %v6550_v35 = vld [vmem:[#allocation45_spill] sm:$0xff] }
 0x223   :  { %6534 = vst [vmem:[#allocation74_spill] sm:$0xff] %v5628_v16  ;;  %v2459_v51 = vmax.f32 %v6539_v0, %v6537_v60  ;;  %v6547_v16 = vld [vmem:[#allocation40_spill] sm:$0xff]  ;;  %v6551_v45 = vmax.f32 %v6550_v35, 0.0  ;;  %v6552_v31 = vmax.f32 %v5329_v6, 0.0  ;;  %v6553_v0 = vld [vmem:[#allocation49_spill] sm:$0xff]  ;;  %v6555_v2 = vmax.f32 %v5332_v33, 0.0 }
 0x224   :  { %v2460_v23 = vmax.f32 %v6542_v7, %v6540_v43  ;;  %v2461_v37 = vmax.f32 %v6545_v57, %v6543_v26  ;;  %v6548_v48 = vmax.f32 %v6547_v16, 0.0  ;;  %v6554_v17 = vmax.f32 %v6553_v0, 0.0  ;;  %v6556_v7 = vld [vmem:[#allocation43_spill] sm:$0xff]  ;;  %v6559_v57 = vld [vmem:[#allocation48_spill] sm:$0xff] }
 0x225   :  { %v2463_v60 = vmax.f32 %v6551_v45, %v6549_v28  ;;  %v6557_v47 = vmax.f32 %v6556_v7, 0.0  ;;  %v6558_v24 = vmax.f32 %v5335_v22, 0.0  ;;  %v6560_v16 = vmax.f32 %v6559_v57, 0.0  ;;  %v6565_v45 = vld [vmem:[#allocation54_spill] sm:$0xff] }
 0x226   :  { %v2462_v12 = vmax.f32 %v6548_v48, %v6546_v18  ;;  %v2464_v43 = vmax.f32 %v6554_v17, %v6552_v31  ;;  %v6561_v42 = vmax.f32 %v5338_v56, 0.0  ;;  %v6562_v48 = vld [vmem:[#allocation51_spill] sm:$0xff]  ;;  %v6564_v6 = vmax.f32 %v5341_v10, 0.0  ;;  %v6568_v17 = vld [vmem:[#allocation50_spill] sm:$0xff] }
 0x227   :  { %v2465_v26 = vmax.f32 %v6557_v47, %v6555_v2  ;;  %v2466_v18 = vmax.f32 %v6560_v16, %v6558_v24  ;;  %v6563_v35 = vmax.f32 %v6562_v48, 0.0  ;;  %v6566_v0 = vmax.f32 %v6565_v45, 0.0  ;;  %v6571_v47 = vld [vmem:[#allocation61_spill] sm:$0xff]  ;;  %v6574_v16 = vld [vmem:[#allocation64_spill] sm:$0xff] }
 0x228   :  { %v6567_v33 = vmax.f32 %v5344_v38, 0.0  ;;  %v6569_v7 = vmax.f32 %v6568_v17, 0.0  ;;  %v6570_v22 = vmax.f32 %v5347_v3, 0.0  ;;  %v6572_v57 = vmax.f32 %v6571_v47, 0.0 }
 0x229   :  { %v2467_v28 = vmax.f32 %v6563_v35, %v6561_v42  ;;  %v2468_v31 = vmax.f32 %v6566_v0, %v6564_v6  ;;  %v6573_v56 = vmax.f32 %v5350_v32, 0.0  ;;  %v6575_v48 = vmax.f32 %v6574_v16, 0.0  ;;  %v6577_v35 = vld [vmem:[#allocation70_spill] sm:$0xff]  ;;  %v6580_v0 = vld [vmem:[#allocation67_spill] sm:$0xff] }
 0x22a   :  { %v2469_v2 = vmax.f32 %v6569_v7, %v6567_v33  ;;  %v2470_v24 = vmax.f32 %v6572_v57, %v6570_v22  ;;  %v6576_v10 = vmax.f32 %v5353_v19, 0.0  ;;  %v6578_v45 = vmax.f32 %v6577_v35, 0.0  ;;  %v6583_v7 = vld [vmem:[#allocation73_spill] sm:$0xff] }
 0x22b   :  { %v2471_v42 = vmax.f32 %v6575_v48, %v6573_v56  ;;  %v6579_v38 = vmax.f32 %v5356_v53, 0.0  ;;  %v6581_v17 = vmax.f32 %v6580_v0, 0.0  ;;  %v6582_v3 = vmax.f32 %v5359_v25, 0.0  ;;  %v6586_v57 = vld [vmem:[#allocation81_spill] sm:$0xff]  ;;  %v6589_v48 = vld [vmem:[#allocation78_spill] sm:$0xff] }
 0x22c   :  { %v2472_v6 = vmax.f32 %v6578_v45, %v6576_v10  ;;  %v6584_v47 = vmax.f32 %v6583_v7, 0.0  ;;  %v6585_v32 = vmax.f32 %v5362_v5, 0.0  ;;  %v6587_v16 = vmax.f32 %v6586_v57, 0.0  ;;  %v6592_v45 = vld [vmem:[#allocation85_spill] sm:$0xff] }
 0x22d   :  { %v2473_v33 = vmax.f32 %v6581_v17, %v6579_v38  ;;  %v6588_v19 = vmax.f32 %v5365_v61, 0.0  ;;  %v6590_v35 = vmax.f32 %v6589_v48, 0.0  ;;  %v6591_v53 = vmax.f32 %v5368_v34, 0.0  ;;  %v6595_v17 = vld [vmem:[#allocation89_spill] sm:$0xff] }
 0x22e   :  { %v2474_v22 = vmax.f32 %v6584_v47, %v6582_v3  ;;  %v2475_v56 = vmax.f32 %v6587_v16, %v6585_v32  ;;  %v6593_v38 = vmax.f32 %v6592_v45, 0.0  ;;  %v6594_v25 = vmax.f32 %v5371_v1, 0.0  ;;  %v6598_v47 = vld [vmem:[#allocation84_spill] sm:$0xff] }
 0x22f   :  { %v5706_v10 = vmax.f32 %v6590_v35, %v6588_v19  ;;  %v6596_v3 = vmax.f32 %v6595_v17, 0.0  ;;  %v6597_v7 = vmax.f32 %v5374_v21, 0.0  ;;  %v6599_v61 = vmax.f32 %v6598_v47, 0.0  ;;  %v6601_v16 = vld [vmem:[#allocation88_spill] sm:$0xff] }
 0x230   :  { %v5712_v0 = vmax.f32 %v6593_v38, %v6591_v53  ;;  %v6600_v57 = vmax.f32 %v5377_v27, 0.0  ;;  %v6602_v34 = vmax.f32 %v6601_v16, 0.0  ;;  %v6603_v48 = vmax.f32 %v5380_v13, 0.0  ;;  %v6604_v35 = vld [vmem:[#allocation92_spill] sm:$0xff]  ;;  %v6607_v38 = vld [vmem:[#allocation97_spill] sm:$0xff] }
 0x231   :  { %v5718_v5 = vmax.f32 %v6596_v3, %v6594_v25  ;;  %v5724_v32 = vmax.f32 %v6599_v61, %v6597_v7  ;;  %v6605_v1 = vmax.f32 %v6604_v35, 0.0  ;;  %v6606_v45 = vmax.f32 %v5383_v8, 0.0  ;;  %v6610_v3 = vld [vmem:[#allocation94_spill] sm:$0xff]  ;;  %v6613_v61 = vld [vmem:[#allocation96_spill] sm:$0xff] }
 0x232   :  { %v5730_v19 = vmax.f32 %v6602_v34, %v6600_v57  ;;  %v6608_v21 = vmax.f32 %v6607_v38, 0.0  ;;  %v6609_v17 = vmax.f32 %v5386_v14, 0.0  ;;  %v6611_v27 = vmax.f32 %v6610_v3, 0.0  ;;  %v6616_v34 = vld [vmem:[#allocation104_spill] sm:$0xff] }
 0x233   :  { %v5736_v53 = vmax.f32 %v6605_v1, %v6603_v48  ;;  %v6612_v47 = vmax.f32 %v5389_v59, 0.0  ;;  %v6614_v13 = vmax.f32 %v6613_v61, 0.0  ;;  %v6615_v16 = vmax.f32 %v5392_v44, 0.0  ;;  %v6619_v1 = vld [vmem:[#allocation105_spill] sm:$0xff] }
 0x234   :  { %v5742_v25 = vmax.f32 %v6608_v21, %v6606_v45  ;;  %v5748_v7 = vmax.f32 %v6611_v27, %v6609_v17  ;;  %v6617_v8 = vmax.f32 %v6616_v34, 0.0  ;;  %v6618_v35 = vmax.f32 %v5395_v30, 0.0  ;;  %v6622_v21 = vld [vmem:[#allocation106_spill] sm:$0xff]  ;;  %v6625_v27 = vld [vmem:[#allocation107_spill] sm:$0xff] }
 0x235   :  { %v5754_v57 = vmax.f32 %v6614_v13, %v6612_v47  ;;  %v6620_v14 = vmax.f32 %v6619_v1, 0.0  ;;  %v6621_v38 = vmax.f32 %v5398_v62, 0.0  ;;  %v6623_v59 = vmax.f32 %v6622_v21, 0.0  ;;  %v6628_v13 = vld [vmem:[#allocation108_spill] sm:$0xff] }
 0x236   :  { %v5760_v48 = vmax.f32 %v6617_v8, %v6615_v16  ;;  %v6624_v3 = vmax.f32 %v5401_v58, 0.0  ;;  %v6626_v44 = vmax.f32 %v6625_v27, 0.0  ;;  %v6627_v61 = vmax.f32 %v5404_v4, 0.0 }
 0x237   :  { %v5766_v45 = vmax.f32 %v6620_v14, %v6618_v35  ;;  %v5772_v17 = vmax.f32 %v6623_v59, %v6621_v38  ;;  %v6629_v30 = vmax.f32 %v6628_v13, 0.0  ;;  %v2490_v34 = vmax.f32 %v5442_v54, %v2458_v20  ;;  %v6635_v20 = vld [vmem:[#allocation59_spill] sm:$0xff] }
 0x238   :  { %v5778_v47 = vmax.f32 %v6626_v44, %v6624_v3  ;;  %v2491_v62 = vmax.f32 %v5448_v9, %v2459_v51  ;;  %v2492_v8 = vmax.f32 %v5454_v40, %v2460_v23  ;;  %v2493_v35 = vmax.f32 %v5460_v15, %v2461_v37  ;;  %v6630_v40 = vld [vmem:[#allocation52_spill] sm:$0xff]  ;;  %v6636_v23 = vld [vmem:[#allocation57_spill] sm:$0xff] }
 0x239   :  { %v5784_v16 = vmax.f32 %v6629_v30, %v6627_v61  ;;  %v2494_v58 = vmax.f32 %v5466_v36, %v2462_v12  ;;  %v2495_v1 = vmax.f32 %v5472_v52, %v2463_v60  ;;  %v2496_v14 = vmax.f32 %v5478_v39, %v2464_v43  ;;  %2522 = vst.msk [vmem:[%s5965_s5] sm:$0xff] %vm1332_vm1, %v2490_v34  ;;  %v6631_v36 = vld [vmem:[#allocation56_spill] sm:$0xff]  ;;  %v6632_v39 = vld [vmem:[#allocation53_spill] sm:$0xff]  ;;  %v6638_v43 = vld [vmem:[#allocation63_spill] sm:$0xff] }
 0x23a   :  { %v2497_v4 = vmax.f32 %v5484_v41, %v2465_v26  ;;  %v2498_v38 = vmax.f32 %v5490_v29, %v2466_v18  ;;  %v2499_v21 = vmax.f32 %v5496_v11, %v2467_v28  ;;  %2523 = vst.msk [vmem:[%s5965_s5 + $0x8] sm:$0xff] %vm1332_vm1, %v2491_v62  ;;  %v2500_v54 = vmax.f32 %v5502_v49, %v2468_v31  ;;  %v6633_v29 = vld [vmem:[#allocation55_spill] sm:$0xff]  ;;  %v6634_v49 = vld [vmem:[#allocation58_spill] sm:$0xff]  ;;  %v6637_v12 = vld [vmem:[#allocation60_spill] sm:$0xff] }
 0x23b   :  { %v2501_v9 = vmax.f32 %v5508_v63, %v2469_v2  ;;  %v2502_v15 = vmax.f32 %v6630_v40, %v2470_v24  ;;  %v2503_v52 = vmax.f32 %v6631_v36, %v2471_v42  ;;  %2524 = vst.msk [vmem:[%s5965_s5 + $0x10] sm:$0xff] %vm1332_vm1, %v2492_v8  ;;  %2525 = vst.msk [vmem:[%s5965_s5 + $0x18] sm:$0xff] %vm1332_vm1, %v2493_v35  ;;  %v6639_v18 = vld [vmem:[#allocation66_spill] sm:$0xff]  ;;  %v6641_v24 = vld [vmem:[#allocation65_spill] sm:$0xff] }
 0x23c   :  { %2526 = vst.msk [vmem:[%s5965_s5 + $0x20] sm:$0xff] %vm1332_vm1, %v2494_v58  ;;  %2527 = vst.msk [vmem:[%s5965_s5 + $0x28] sm:$0xff] %vm1332_vm1, %v2495_v1  ;;  %v2504_v41 = vmax.f32 %v6632_v39, %v2472_v6  ;;  %v2505_v11 = vmax.f32 %v6633_v29, %v2473_v33  ;;  %v2506_v63 = vmax.f32 %v6634_v49, %v2474_v22  ;;  %v6640_v31 = vld [vmem:[#allocation62_spill] sm:$0xff]  ;;  %v6642_v6 = vld [vmem:[#allocation68_spill] sm:$0xff] }
 0x23d   :  { %v2507_v51 = vmax.f32 %v6635_v20, %v2475_v56  ;;  %2528 = vst.msk [vmem:[%s5965_s5 + $0x30] sm:$0xff] %vm1332_vm1, %v2496_v14  ;;  %2529 = vst.msk [vmem:[%s5965_s5 + $0x38] sm:$0xff] %vm1332_vm1, %v2497_v4  ;;  %v2508_v37 = vmax.f32 %v6636_v23, %v5706_v10  ;;  %v2509_v60 = vmax.f32 %v6637_v12, %v5712_v0  ;;  %v6643_v22 = vld [vmem:[#allocation71_spill] sm:$0xff]  ;;  %v6644_v10 = vld [vmem:[#allocation69_spill] sm:$0xff] }
 0x23e   :  { %2530 = vst.msk [vmem:[%s5965_s5 + $0x40] sm:$0xff] %vm1332_vm1, %v2498_v38  ;;  %2531 = vst.msk [vmem:[%s5965_s5 + $0x48] sm:$0xff] %vm1332_vm1, %v2499_v21  ;;  %v2510_v26 = vmax.f32 %v6638_v43, %v5718_v5  ;;  %v2511_v28 = vmax.f32 %v6639_v18, %v5724_v32  ;;  %v2512_v2 = vmax.f32 %v6640_v31, %v5730_v19  ;;  %v6645_v5 = vld [vmem:[#allocation72_spill] sm:$0xff] }
 0x23f   :  { %2532 = vst.msk [vmem:[%s5965_s5 + $0x50] sm:$0xff] %vm1332_vm1, %v2500_v54  ;;  %2533 = vst.msk [vmem:[%s5965_s5 + $0x58] sm:$0xff] %vm1332_vm1, %v2501_v9  ;;  %v2513_v42 = vmax.f32 %v6641_v24, %v5736_v53  ;;  %v2514_v33 = vmax.f32 %v6642_v6, %v5742_v25  ;;  %v2515_v56 = vmax.f32 %v6643_v22, %v5748_v7 }
 0x240   :  { %2534 = vst.msk [vmem:[%s5965_s5 + $0x60] sm:$0xff] %vm1332_vm1, %v2502_v15  ;;  %2535 = vst.msk [vmem:[%s5965_s5 + $0x68] sm:$0xff] %vm1332_vm1, %v2503_v52  ;;  %v2516_v0 = vmax.f32 %v6644_v10, %v5754_v57  ;;  %v2517_v32 = vmax.f32 %v6645_v5, %v5760_v48  ;;  %v2518_v19 = vmax.f32 %v5610_v50, %v5766_v45 }
 0x241   :  { %2536 = vst.msk [vmem:[%s5965_s5 + $0x70] sm:$0xff] %vm1332_vm1, %v2504_v41  ;;  %2537 = vst.msk [vmem:[%s5965_s5 + $0x78] sm:$0xff] %vm1332_vm1, %v2505_v11  ;;  %v2519_v53 = vmax.f32 %v5616_v55, %v5772_v17  ;;  %v2520_v50 = vmax.f32 %v5622_v46, %v5778_v47  ;;  %v6646_v55 = vld [vmem:[#allocation74_spill] sm:$0xff] }
 0x242   :  { %2538 = vst.msk [vmem:[%s5965_s5 + $0x80] sm:$0xff] %vm1332_vm1, %v2506_v63  ;;  %2539 = vst.msk [vmem:[%s5965_s5 + $0x88] sm:$0xff] %vm1332_vm1, %v2507_v51  ;;  %v2521_v25 = vmax.f32 %v6646_v55, %v5784_v16 }
 0x243   :  { %2540 = vst.msk [vmem:[%s5965_s5 + $0x90] sm:$0xff] %vm1332_vm1, %v2508_v37  ;;  %2541 = vst.msk [vmem:[%s5965_s5 + $0x98] sm:$0xff] %vm1332_vm1, %v2509_v60 }
 0x244   :  { %2542 = vst.msk [vmem:[%s5965_s5 + $0xa0] sm:$0xff] %vm1332_vm1, %v2510_v26  ;;  %2543 = vst.msk [vmem:[%s5965_s5 + $0xa8] sm:$0xff] %vm1332_vm1, %v2511_v28 }
 0x245   :  { %2544 = vst.msk [vmem:[%s5965_s5 + $0xb0] sm:$0xff] %vm1332_vm1, %v2512_v2  ;;  %2545 = vst.msk [vmem:[%s5965_s5 + $0xb8] sm:$0xff] %vm1332_vm1, %v2513_v42 }
 0x246   :  { %2546 = vst.msk [vmem:[%s5965_s5 + $0xc0] sm:$0xff] %vm1332_vm1, %v2514_v33  ;;  %2547 = vst.msk [vmem:[%s5965_s5 + $0xc8] sm:$0xff] %vm1332_vm1, %v2515_v56 }
 0x247   :  { %2548 = vst.msk [vmem:[%s5965_s5 + $0xd0] sm:$0xff] %vm1332_vm1, %v2516_v0  ;;  %2549 = vst.msk [vmem:[%s5965_s5 + $0xd8] sm:$0xff] %vm1332_vm1, %v2517_v32 }
 0x248   :  { %2550 = vst.msk [vmem:[%s5965_s5 + $0xe0] sm:$0xff] %vm1332_vm1, %v2518_v19  ;;  %2551 = vst.msk [vmem:[%s5965_s5 + $0xe8] sm:$0xff] %vm1332_vm1, %v2519_v53 }
 0x249   :  { %2552 = vst.msk [vmem:[%s5965_s5 + $0xf0] sm:$0xff] %vm1332_vm1, %v2520_v50  ;;  %2553 = vst.msk [vmem:[%s5965_s5 + $0xf8] sm:$0xff] %vm1332_vm1, %v2521_v25 }

// kernel: encoder.5
= control target key start
LH: loop header
LB: loop body
LE: loop exit
PB: predicated region body
PF: predicated region fallthrough
CT: control target
= control target key end

     0   :  { %vm440_vm0 = vcmask 523264   ;;  %s3918_s1 = inlined_call_operand.vmem [shape: bf16[576,64], index: 1, kind: input, shape index: {}]   ;;  %s3919_s0 = inlined_call_operand.vmem [shape: bf16[4,64,576], index: 0, kind: input, shape index: {}]   ;;  %s3920_s2 = inlined_call_operand.vmem [shape: f32[1,64], index: 2, kind: input, shape index: {}]   ;;  %s3921_s3 = inlined_call_operand.vmem [shape: f32[1,64], index: 3, kind: input, shape index: {}]   ;;  %s3922_s4 = inlined_call_operand.vmem [shape: f32[1,64], index: 4, kind: input, shape index: {}]   ;;  %s3923_s5 = inlined_call_operand.vmem [shape: f32[64,64], index: 5, kind: output, shape index: {}]  }
   0x1   :  { %v2809_v0 = vld [vmem:[%s3918_s1 + $0x78] sm:$0xff]   ;;  %v2832_v4 = vld [vmem:[%s3918_s1 + $0x70] sm:$0xff]   ;;  %v2856_v8 = vld [vmem:[%s3918_s1 + $0x68] sm:$0xff]  }
   0x2   :  { %v2814_v1 = vld [vmem:[%s3918_s1 + $0x38] sm:$0xff]   ;;  %2210 = vmatprep.subr.bf16.mxu0 %v2809_v0  ;;  %v2838_v5 = vld [vmem:[%s3918_s1 + $0x30] sm:$0xff]   ;;  %v2862_v9 = vld [vmem:[%s3918_s1 + $0x28] sm:$0xff]  }
   0x3   :  { %v2820_v2 = vld [vmem:[%s3918_s1 + $0xf8] sm:$0xff]   ;;  %2211 = vmatpush3.bf16.msra.mxu0 %v2814_v1  ;;  %v2844_v6 = vld [vmem:[%s3918_s1 + $0xf0] sm:$0xff]   ;;  %v2868_v10 = vld [vmem:[%s3918_s1 + $0xe8] sm:$0xff]  }
   0x4   :  { %v2826_v3 = vld [vmem:[%s3918_s1 + $0xb8] sm:$0xff]   ;;  %2250 = vmatprep.subr.bf16.mxu1 %v2820_v2  ;;  %2212 = vmatprep.subr.bf16.mxu0 %v2832_v4  ;;  %v2850_v7 = vld [vmem:[%s3918_s1 + $0xb0] sm:$0xff]   ;;  %v2874_v11 = vld [vmem:[%s3918_s1 + $0xa8] sm:$0xff]  }
   0x5   :  { %2251 = vmatpush3.bf16.msra.mxu1 %v2826_v3  ;;  %v2880_v12 = vld [vmem:[%s3918_s1 + $0x60] sm:$0xff]   ;;  %v2904_v16 = vld [vmem:[%s3918_s1 + $0x58] sm:$0xff]   ;;  %v2928_v20 = vld [vmem:[%s3918_s1 + $0x50] sm:$0xff]  }
   0x6   :  { %2252 = vmatprep.subr.bf16.mxu1 %v2844_v6  ;;  %v2886_v13 = vld [vmem:[%s3918_s1 + $0x20] sm:$0xff]   ;;  %v2910_v17 = vld [vmem:[%s3918_s1 + $0x18] sm:$0xff]   ;;  %v2934_v21 = vld [vmem:[%s3918_s1 + $0x10] sm:$0xff]  }
   0x7   :  { %2213 = vmatpush3.bf16.msra.mxu0 %v2838_v5  ;;  %v2892_v14 = vld [vmem:[%s3918_s1 + $0xe0] sm:$0xff]   ;;  %v2916_v18 = vld [vmem:[%s3918_s1 + $0xd8] sm:$0xff]   ;;  %v2940_v22 = vld [vmem:[%s3918_s1 + $0xd0] sm:$0xff]  }
   0x8   :  { %2214 = vmatprep.subr.bf16.mxu0 %v2856_v8  ;;  %v2898_v15 = vld [vmem:[%s3918_s1 + $0xa0] sm:$0xff]   ;;  %v2922_v19 = vld [vmem:[%s3918_s1 + $0x98] sm:$0xff]   ;;  %v2946_v23 = vld [vmem:[%s3918_s1 + $0x90] sm:$0xff]  }
   0x9   :  { %2253 = vmatpush3.bf16.msra.mxu1 %v2850_v7  ;;  %v2952_v24 = vld [vmem:[%s3918_s1 + $0x48] sm:$0xff]   ;;  %v2976_v28 = vld [vmem:[%s3918_s1 + $0x40] sm:$0xff]   ;;  %v3006_v34 = vld [vmem:[%s3918_s1 + $0x118] sm:$0xff]  }
   0xa   :  { %2254 = vmatprep.subr.bf16.mxu1 %v2868_v10  ;;  %v2958_v25 = vld [vmem:[%s3918_s1 + $0x8] sm:$0xff]   ;;  %v2982_v29 = vld [vmem:[%s3918_s1] sm:$0xff]   ;;  %v3024_v38 = vld [vmem:[%s3918_s1 + $0x110] sm:$0xff]  }
   0xb   :  { %2215 = vmatpush3.bf16.msra.mxu0 %v2862_v9  ;;  %v2964_v26 = vld [vmem:[%s3918_s1 + $0xc8] sm:$0xff]   ;;  %v2988_v30 = vld [vmem:[%s3918_s1 + $0xc0] sm:$0xff]   ;;  %v2676_v44 = vld [vmem:[%s3919_s0 + $0x5c] ss:$20 sps:$4 sm:$0xff]  }
   0xc   :  { %2216 = vmatprep.subr.bf16.mxu0 %v2880_v12  ;;  %v2970_v27 = vld [vmem:[%s3918_s1 + $0x88] sm:$0xff]   ;;  %v2657_v31 = vld [vmem:[%s3919_s0] ss:$20 sps:$4 sm:$0xff]   ;;  %v2659_v32 = vld [vmem:[%s3919_s0 + $0x4] ss:$20 sps:$4 sm:$0xff]  }
   0xd   :  { %2255 = vmatpush3.bf16.msra.mxu1 %v2874_v11  ;;  %v3001_v33 = vld [vmem:[%s3918_s1 + $0x80] sm:$0xff]   ;;  %485 = vmatprep.mubr.bf16.mxu0 %v2659_v32  ;;  %v2662_v35 = vld [vmem:[%s3919_s0 + $0x8] ss:$20 sps:$4 sm:$0xff]   ;;  %v2678_v48 = vld [vmem:[%s3919_s0 + $0x58] ss:$20 sps:$4 sm:$0xff]  }
   0xe   :  { %2256 = vmatprep.subr.bf16.mxu1 %v2892_v14  ;;  %v2664_v36 = vld [vmem:[%s3919_s0 + $0xc] ss:$20 sps:$4 sm:$0xff]   ;;  %v2669_v39 = vld [vmem:[%s3919_s0 + $0x34] ss:$20 sps:$4 sm:$0xff]   ;;  %v2671_v43 = vld [vmem:[%s3919_s0 + $0x30] ss:$20 sps:$4 sm:$0xff]  }
   0xf   :  { %2217 = vmatpush3.bf16.msra.mxu0 %v2886_v13  ;;  %v2665_v37 = vld [vmem:[%s3919_s0 + $0x2c] ss:$20 sps:$4 sm:$0xff]   ;;  %550 = vmatprep.mubr.bf16.mxu1 %v2664_v36  ;;  %v2667_v40 = vld [vmem:[%s3919_s0 + $0x28] ss:$20 sps:$4 sm:$0xff]   ;;  %v2674_v46 = vld [vmem:[%s3919_s0 + $0x50] ss:$20 sps:$4 sm:$0xff]  }
  0x10   :  { %2218 = vmatprep.subr.bf16.mxu0 %v2904_v16  ;;  %v2672_v41 = vld [vmem:[%s3919_s0 + $0x54] ss:$20 sps:$4 sm:$0xff]   ;;  %v3056_v45 = vld [vmem:[%s3918_s1 + $0x100] sm:$0xff]   ;;  %v2679_v47 = vld [vmem:[%s3919_s0 + $0x7c] ss:$20 sps:$4 sm:$0xff]  }
  0x11   :  { %2257 = vmatpush3.bf16.msra.mxu1 %v2898_v15  ;;  %v3042_v42 = vld [vmem:[%s3918_s1 + $0x108] sm:$0xff]   ;;  %v2683_v49 = vld [vmem:[%s3919_s0 + $0x84] ss:$20 sps:$4 sm:$0xff]   ;;  %v2685_v52 = vld [vmem:[%s3919_s0 + $0x80] ss:$20 sps:$4 sm:$0xff]  }
  0x12   :  { %2258 = vmatprep.subr.bf16.mxu1 %v2916_v18  ;;  %v2681_v50 = vld [vmem:[%s3919_s0 + $0x78] ss:$20 sps:$4 sm:$0xff]   ;;  %v2686_v51 = vld [vmem:[%s3919_s0 + $0x10] ss:$20 sps:$4 sm:$0xff]   ;;  %v2691_v55 = vld [vmem:[%s3919_s0 + $0x60] ss:$20 sps:$4 sm:$0xff]  }
  0x13   :  { %2219 = vmatpush3.bf16.msra.mxu0 %v2910_v17  ;;  %v2690_v53 = vld [vmem:[%s3919_s0 + $0xa4] ss:$20 sps:$4 sm:$0xff]   ;;  %v2688_v56 = vld [vmem:[%s3919_s0 + $0xa0] ss:$20 sps:$4 sm:$0xff]   ;;  %v2692_v58 = vld [vmem:[%s3919_s0 + $0x88] ss:$20 sps:$4 sm:$0xff]  }
  0x14   :  { %2220 = vmatprep.subr.bf16.mxu0 %v2928_v20  ;;  %v2687_v54 = vld [vmem:[%s3919_s0 + $0x38] ss:$20 sps:$4 sm:$0xff]   ;;  %v2695_v60 = vld [vmem:[%s3919_s0 + $0xc8] ss:$20 sps:$4 sm:$0xff]   ;;  %v2698_v62 = vld [vmem:[%s3919_s0 + $0xf0] ss:$20 sps:$4 sm:$0xff]  }
  0x15   :  { %2259 = vmatpush3.bf16.msra.mxu1 %v2922_v19  ;;  %v2693_v57 = vld [vmem:[%s3919_s0 + $0xcc] ss:$20 sps:$4 sm:$0xff]   ;;  %v2696_v61 = vld [vmem:[%s3919_s0 + $0xf4] ss:$20 sps:$4 sm:$0xff]   ;;  %v2699_v63 = vld [vmem:[%s3919_s0 + $0x11c] ss:$20 sps:$4 sm:$0xff]  }
  0x16   :  { %2260 = vmatprep.subr.bf16.mxu1 %v2940_v22  ;;  %v2704_v59 = vld [vmem:[%s3919_s0 + $0xac] ss:$20 sps:$4 sm:$0xff]   ;;  %v2705_v32 = vld [vmem:[%s3919_s0 + $0xb0] ss:$20 sps:$4 sm:$0xff]   ;;  %v2707_v36 = vld [vmem:[%s3919_s0 + $0xd4] ss:$20 sps:$4 sm:$0xff]  }
  0x17   :  { %2221 = vmatpush3.bf16.msra.mxu0 %v2934_v21 }
  0x18   :  { %2222 = vmatprep.subr.bf16.mxu0 %v2952_v24 }
  0x19   :  { %2261 = vmatpush3.bf16.msra.mxu1 %v2946_v23 }
  0x1a   :  { %2262 = vmatprep.subr.bf16.mxu1 %v2964_v26 }
  0x1b   :  { %2223 = vmatpush3.bf16.msra.mxu0 %v2958_v25 }
  0x1c   :  { %2224 = vmatprep.subr.bf16.mxu0 %v2976_v28 }
  0x1d   :  { %2263 = vmatpush3.bf16.msra.mxu1 %v2970_v27 }
  0x1e   :  { %2264 = vmatprep.subr.bf16.mxu1 %v2988_v30 }
  0x1f   :  { %2225 = vmatpush3.bf16.msra.mxu0 %v2982_v29 }
  0x20   :  { %2562 = vmatprep.subr.bf16.mxu0 %v3006_v34 }
  0x21   :  { %2265 = vmatpush3.bf16.msra.mxu1 %v3001_v33 }
  0x22   :  { %486 = vmatmul.mubr.bf16.vlgmr.msra.gmra.mxu0 %v2657_v31  ;;  %2298 = vmatprep.subr.bf16.mxu1 %v2809_v0  ;;  %v2701_v31 = vld [vmem:[%s3919_s0 + $0x118] ss:$20 sps:$4 sm:$0xff]  }
  0x23   :  { %2563 = vmatpush3.bf16.msra.mxu0 %v3006_v34  ;;  %493 = vmatprep.mubr.bf16.mxu0 %v2665_v37  ;;  %v2706_v37 = vld [vmem:[%s3919_s0 + $0xd8] ss:$20 sps:$4 sm:$0xff]  }
  0x24   :  { %551 = vmatmul.mubr.bf16.vlgmr.msra.gmra.mxu1 %v2662_v35  ;;  %2564 = vmatprep.subr.bf16.mxu0 %v3024_v38  ;;  %v2702_v35 = vld [vmem:[%s3919_s0 + $0xa8] ss:$20 sps:$4 sm:$0xff]  }
  0x25   :  { %2299 = vmatpush3.bf16.msra.mxu1 %v2814_v1  ;;  %558 = vmatprep.mubr.bf16.mxu1 %v2669_v39  ;;  %v2713_v39 = vld [vmem:[%s3919_s0 + $0x100] ss:$20 sps:$4 sm:$0xff]  }
  0x26   :  { %2300 = vmatprep.subr.bf16.mxu1 %v2832_v4 }
  0x27   :  { %2565 = vmatpush3.bf16.msra.mxu0 %v3024_v38 }
  0x28   :  { %2566 = vmatprep.subr.bf16.mxu0 %v3042_v42 }
  0x29   :  { %2301 = vmatpush3.bf16.msra.mxu1 %v2838_v5 }
  0x2a   :  { %494 = vmatmul.mubr.bf16.gmra.mxu0 %v2667_v40  ;;  %2302 = vmatprep.subr.bf16.mxu1 %v2856_v8  ;;  %v2709_v40 = vld [vmem:[%s3919_s0 + $0xd0] ss:$20 sps:$4 sm:$0xff]  }
  0x2b   :  { %501 = vmatprep.mubr.bf16.mxu0 %v2672_v41  ;;  %2567 = vmatpush3.bf16.msra.mxu0 %v3042_v42  ;;  %v2710_v41 = vld [vmem:[%s3919_s0 + $0xfc] ss:$20 sps:$4 sm:$0xff]  }
  0x2c   :  { %559 = vmatmul.mubr.bf16.gmra.mxu1 %v2671_v43  ;;  %2568 = vmatprep.subr.bf16.mxu0 %v3056_v45  ;;  %v2714_v43 = vld [vmem:[%s3919_s0 + $0x128] ss:$20 sps:$4 sm:$0xff]  }
  0x2d   :  { %2303 = vmatpush3.bf16.msra.mxu1 %v2862_v9  ;;  %566 = vmatprep.mubr.bf16.mxu1 %v2676_v44  ;;  %v2723_v44 = vld [vmem:[%s3919_s0 + $0x14c] ss:$20 sps:$4 sm:$0xff]  }
  0x2e   :  { %2304 = vmatprep.subr.bf16.mxu1 %v2880_v12 }
  0x2f   :  { %2569 = vmatpush3.bf16.msra.mxu0 %v3056_v45 }
  0x30   :  { %2338 = vmatprep.subr.bf16.mxu0 %v2820_v2 }
  0x31   :  { %2305 = vmatpush3.bf16.msra.mxu1 %v2886_v13 }
  0x32   :  { %502 = vmatmul.mubr.bf16.gmra.mxu0 %v2674_v46  ;;  %2306 = vmatprep.subr.bf16.mxu1 %v2904_v16  ;;  %v2712_v46 = vld [vmem:[%s3919_s0 + $0xf8] ss:$20 sps:$4 sm:$0xff]  }
  0x33   :  { %509 = vmatprep.mubr.bf16.mxu0 %v2679_v47  ;;  %v2715_v47 = vld [vmem:[%s3919_s0 + $0x124] ss:$20 sps:$4 sm:$0xff]  }
  0x34   :  { %567 = vmatmul.mubr.bf16.gmra.mxu1 %v2678_v48  ;;  %v2717_v48 = vld [vmem:[%s3919_s0 + $0x120] ss:$20 sps:$4 sm:$0xff]  }
  0x35   :  { %2307 = vmatpush3.bf16.msra.mxu1 %v2910_v17  ;;  %574 = vmatprep.mubr.bf16.mxu1 %v2683_v49  ;;  %v2720_v49 = vld [vmem:[%s3919_s0 + $0x144] ss:$20 sps:$4 sm:$0xff]  }
  0x36   :  { %2308 = vmatprep.subr.bf16.mxu1 %v2928_v20 }
  0x39   :  { %2309 = vmatpush3.bf16.msra.mxu1 %v2934_v21 }
  0x3a   :  { %510 = vmatmul.mubr.bf16.gmra.mxu0 %v2681_v50  ;;  %2310 = vmatprep.subr.bf16.mxu1 %v2952_v24  ;;  %v2718_v50 = vld [vmem:[%s3919_s0 + $0x140] ss:$20 sps:$4 sm:$0xff]  }
  0x3b   :  { %2570 = vmatprep.mubr.msk.bf16.mxu0 %vm440_vm0, %v2686_v51  ;;  %v2724_v51 = vld [vmem:[%s3919_s0 + $0x16c] ss:$20 sps:$4 sm:$0xff]  }
  0x3c   :  { %575 = vmatmul.mubr.bf16.gmra.mxu1 %v2685_v52  ;;  %v2721_v52 = vld [vmem:[%s3919_s0 + $0x148] ss:$20 sps:$4 sm:$0xff]  }
  0x3d   :  { %2311 = vmatpush3.bf16.msra.mxu1 %v2958_v25  ;;  %817 = vmatprep.mubr.bf16.mxu1 %v2690_v53  ;;  %v2727_v53 = vld [vmem:[%s3919_s0 + $0x174] ss:$20 sps:$4 sm:$0xff]  }
  0x3e   :  { %2312 = vmatprep.subr.bf16.mxu1 %v2976_v28 }
  0x41   :  { %2313 = vmatpush3.bf16.msra.mxu1 %v2982_v29 }
  0x42   :  { %2571 = vmatmul.mubr.msk.bf16.vlgmr.msra.gmra.mxu0 %vm440_vm0, %v2687_v54  ;;  %2578 = vmatprep.subr.bf16.mxu1 %v3006_v34  ;;  %v2726_v54 = vld [vmem:[%s3919_s0 + $0x168] ss:$20 sps:$4 sm:$0xff]  }
  0x43   :  { %2339 = vmatpush3.bf16.msra.mxu0 %v2826_v3  ;;  %2574 = vmatprep.mubr.msk.bf16.mxu0 %vm440_vm0, %v2691_v55  ;;  %v2730_v55 = vld [vmem:[%s3919_s0 + $0x194] ss:$20 sps:$4 sm:$0xff]  }
  0x44   :  { %2340 = vmatprep.subr.bf16.mxu0 %v2844_v6  ;;  %818 = vmatmul.mubr.bf16.vlgmr.msra.gmra.mxu1 %v2688_v56 }
  0x45   :  { %825 = vmatprep.mubr.bf16.mxu1 %v2693_v57  ;;  %2579 = vmatpush3.bf16.msra.mxu1 %v3006_v34 }
  0x46   :  { %2580 = vmatprep.subr.bf16.mxu1 %v3024_v38 }
  0x47   :  { %2341 = vmatpush3.bf16.msra.mxu0 %v2850_v7 }
  0x48   :  { %2342 = vmatprep.subr.bf16.mxu0 %v2868_v10 }
  0x49   :  { %2581 = vmatpush3.bf16.msra.mxu1 %v3024_v38 }
  0x4a   :  { %2575 = vmatmul.mubr.msk.bf16.gmra.mxu0 %vm440_vm0, %v2692_v58  ;;  %2582 = vmatprep.subr.bf16.mxu1 %v3042_v42 }
  0x4b   :  { %2343 = vmatpush3.bf16.msra.mxu0 %v2874_v11  ;;  %882 = vmatprep.mubr.bf16.mxu0 %v2704_v59 }
  0x4c   :  { %2344 = vmatprep.subr.bf16.mxu0 %v2892_v14  ;;  %826 = vmatmul.mubr.bf16.gmra.mxu1 %v2695_v60 }
  0x4d   :  { %833 = vmatprep.mubr.bf16.mxu1 %v2696_v61  ;;  %2583 = vmatpush3.bf16.msra.mxu1 %v3042_v42 }
  0x4e   :  { %2584 = vmatprep.subr.bf16.mxu1 %v3056_v45 }
  0x4f   :  { %2345 = vmatpush3.bf16.msra.mxu0 %v2898_v15 }
  0x50   :  { %2346 = vmatprep.subr.bf16.mxu0 %v2916_v18 }
  0x51   :  { %2585 = vmatpush3.bf16.msra.mxu1 %v3056_v45 }
  0x52   :  { %2426 = vmatprep.subr.bf16.mxu1 %v2820_v2 }
  0x53   :  { %2347 = vmatpush3.bf16.msra.mxu0 %v2922_v19 }
  0x54   :  { %2348 = vmatprep.subr.bf16.mxu0 %v2940_v22  ;;  %834 = vmatmul.mubr.bf16.gmra.mxu1 %v2698_v62 }
  0x55   :  { %841 = vmatprep.mubr.bf16.mxu1 %v2699_v63 }
  0x57   :  { %2349 = vmatpush3.bf16.msra.mxu0 %v2946_v23 }
  0x58   :  { %2350 = vmatprep.subr.bf16.mxu0 %v2964_v26 }
  0x5b   :  { %2351 = vmatpush3.bf16.msra.mxu0 %v2970_v27 }
  0x5c   :  { %2352 = vmatprep.subr.bf16.mxu0 %v2988_v30  ;;  %842 = vmatmul.mubr.bf16.gmra.mxu1 %v2701_v31 }
  0x5d   :  { %2586 = vmatprep.mubr.msk.bf16.mxu1 %vm440_vm0, %v2705_v32 }
  0x5f   :  { %2353 = vmatpush3.bf16.msra.mxu0 %v3001_v33 }
  0x60   :  { %2386 = vmatprep.subr.bf16.mxu0 %v2809_v0 }
  0x62   :  { %883 = vmatmul.mubr.bf16.vlgmr.msra.gmra.mxu0 %v2702_v35 }
  0x63   :  { %2387 = vmatpush3.bf16.msra.mxu0 %v2814_v1  ;;  %890 = vmatprep.mubr.bf16.mxu0 %v2707_v36 }
  0x64   :  { %2388 = vmatprep.subr.bf16.mxu0 %v2832_v4  ;;  %2587 = vmatmul.mubr.msk.bf16.vlgmr.msra.gmra.mxu1 %vm440_vm0, %v2706_v37 }
  0x65   :  { %2427 = vmatpush3.bf16.msra.mxu1 %v2826_v3  ;;  %2590 = vmatprep.mubr.msk.bf16.mxu1 %vm440_vm0, %v2713_v39 }
  0x66   :  { %2428 = vmatprep.subr.bf16.mxu1 %v2844_v6 }
  0x67   :  { %2389 = vmatpush3.bf16.msra.mxu0 %v2838_v5 }
  0x68   :  { %2390 = vmatprep.subr.bf16.mxu0 %v2856_v8 }
  0x69   :  { %2429 = vmatpush3.bf16.msra.mxu1 %v2850_v7 }
  0x6a   :  { %891 = vmatmul.mubr.bf16.gmra.mxu0 %v2709_v40  ;;  %2430 = vmatprep.subr.bf16.mxu1 %v2868_v10 }
  0x6b   :  { %2391 = vmatpush3.bf16.msra.mxu0 %v2862_v9  ;;  %898 = vmatprep.mubr.bf16.mxu0 %v2710_v41 }
  0x6c   :  { %2392 = vmatprep.subr.bf16.mxu0 %v2880_v12  ;;  %2591 = vmatmul.mubr.msk.bf16.gmra.mxu1 %vm440_vm0, %v2714_v43 }
  0x6d   :  { %2431 = vmatpush3.bf16.msra.mxu1 %v2874_v11  ;;  %1214 = vmatprep.mubr.bf16.mxu1 %v2723_v44 }
  0x6e   :  { %2432 = vmatprep.subr.bf16.mxu1 %v2892_v14 }
  0x6f   :  { %2393 = vmatpush3.bf16.msra.mxu0 %v2886_v13 }
  0x70   :  { %2394 = vmatprep.subr.bf16.mxu0 %v2904_v16 }
  0x71   :  { %2433 = vmatpush3.bf16.msra.mxu1 %v2898_v15 }
  0x72   :  { %899 = vmatmul.mubr.bf16.gmra.mxu0 %v2712_v46  ;;  %2434 = vmatprep.subr.bf16.mxu1 %v2916_v18 }
  0x73   :  { %2395 = vmatpush3.bf16.msra.mxu0 %v2910_v17  ;;  %906 = vmatprep.mubr.bf16.mxu0 %v2715_v47 }
  0x74   :  { %2396 = vmatprep.subr.bf16.mxu0 %v2928_v20 }
  0x75   :  { %2435 = vmatpush3.bf16.msra.mxu1 %v2922_v19 }
  0x76   :  { %2436 = vmatprep.subr.bf16.mxu1 %v2940_v22 }
  0x77   :  { %2397 = vmatpush3.bf16.msra.mxu0 %v2934_v21 }
  0x78   :  { %2398 = vmatprep.subr.bf16.mxu0 %v2952_v24 }
  0x79   :  { %2437 = vmatpush3.bf16.msra.mxu1 %v2946_v23 }
  0x7a   :  { %907 = vmatmul.mubr.bf16.gmra.mxu0 %v2717_v48  ;;  %2438 = vmatprep.subr.bf16.mxu1 %v2964_v26 }
  0x7b   :  { %2399 = vmatpush3.bf16.msra.mxu0 %v2958_v25  ;;  %1149 = vmatprep.mubr.bf16.mxu0 %v2720_v49 }
  0x7c   :  { %2400 = vmatprep.subr.bf16.mxu0 %v2976_v28 }
  0x7d   :  { %2439 = vmatpush3.bf16.msra.mxu1 %v2970_v27 }
  0x7e   :  { %2440 = vmatprep.subr.bf16.mxu1 %v2988_v30 }
  0x7f   :  { %2401 = vmatpush3.bf16.msra.mxu0 %v2982_v29 }
  0x80   :  { %2594 = vmatprep.subr.bf16.mxu0 %v3006_v34 }
  0x81   :  { %2441 = vmatpush3.bf16.msra.mxu1 %v3001_v33 }
  0x82   :  { %1150 = vmatmul.mubr.bf16.vlgmr.msra.gmra.mxu0 %v2718_v50  ;;  %2474 = vmatprep.subr.bf16.mxu1 %v2809_v0  ;;  %v2729_v0 = vld [vmem:[%s3919_s0 + $0x170] ss:$20 sps:$4 sm:$0xff]  }
  0x83   :  { %2595 = vmatpush3.bf16.msra.mxu0 %v3006_v34  ;;  %1157 = vmatprep.mubr.bf16.mxu0 %v2724_v51 }
  0x84   :  { %2596 = vmatprep.subr.bf16.mxu0 %v3024_v38  ;;  %1215 = vmatmul.mubr.bf16.vlgmr.msra.gmra.mxu1 %v2721_v52 }
  0x85   :  { %2475 = vmatpush3.bf16.msra.mxu1 %v2814_v1  ;;  %1222 = vmatprep.mubr.bf16.mxu1 %v2727_v53  ;;  %v2733_v1 = vld [vmem:[%s3919_s0 + $0x19c] ss:$20 sps:$4 sm:$0xff]  }
  0x86   :  { %2476 = vmatprep.subr.bf16.mxu1 %v2832_v4  ;;  %v2732_v4 = vld [vmem:[%s3919_s0 + $0x190] ss:$20 sps:$4 sm:$0xff]  }
  0x87   :  { %2597 = vmatpush3.bf16.msra.mxu0 %v3024_v38 }
  0x88   :  { %2598 = vmatprep.subr.bf16.mxu0 %v3042_v42 }
  0x89   :  { %2477 = vmatpush3.bf16.msra.mxu1 %v2838_v5  ;;  %v2736_v5 = vld [vmem:[%s3919_s0 + $0x1bc] ss:$20 sps:$4 sm:$0xff]  }
  0x8a   :  { %1158 = vmatmul.mubr.bf16.gmra.mxu0 %v2726_v54  ;;  %2478 = vmatprep.subr.bf16.mxu1 %v2856_v8  ;;  %v2735_v8 = vld [vmem:[%s3919_s0 + $0x198] ss:$20 sps:$4 sm:$0xff]  }
  0x8b   :  { %1165 = vmatprep.mubr.bf16.mxu0 %v2730_v55  ;;  %2599 = vmatpush3.bf16.msra.mxu0 %v3042_v42 }
  0x8c   :  { %1223 = vmatmul.mubr.bf16.gmra.mxu1 %v2729_v0  ;;  %2600 = vmatprep.subr.bf16.mxu0 %v3056_v45 }
  0x8d   :  { %2479 = vmatpush3.bf16.msra.mxu1 %v2862_v9  ;;  %1230 = vmatprep.mubr.bf16.mxu1 %v2733_v1  ;;  %v2739_v9 = vld [vmem:[%s3919_s0 + $0x1c4] ss:$20 sps:$4 sm:$0xff]  }
  0x8e   :  { %2480 = vmatprep.subr.bf16.mxu1 %v2880_v12  ;;  %v2738_v12 = vld [vmem:[%s3919_s0 + $0x1b8] ss:$20 sps:$4 sm:$0xff]  }
  0x8f   :  { %2601 = vmatpush3.bf16.msra.mxu0 %v3056_v45 }
  0x90   :  { %2514 = vmatprep.subr.bf16.mxu0 %v2820_v2  ;;  %v2742_v2 = vld [vmem:[%s3919_s0 + $0x150] ss:$20 sps:$4 sm:$0xff]  }
  0x91   :  { %2481 = vmatpush3.bf16.msra.mxu1 %v2886_v13  ;;  %v2741_v13 = vld [vmem:[%s3919_s0 + $0x1c0] ss:$20 sps:$4 sm:$0xff]  }
  0x92   :  { %1166 = vmatmul.mubr.bf16.gmra.mxu0 %v2732_v4  ;;  %2482 = vmatprep.subr.bf16.mxu1 %v2904_v16  ;;  %v2746_v16 = vld [vmem:[%s3919_s0 + $0x1e4] ss:$20 sps:$4 sm:$0xff]  }
  0x93   :  { %1173 = vmatprep.mubr.bf16.mxu0 %v2736_v5 }
  0x94   :  { %1231 = vmatmul.mubr.bf16.gmra.mxu1 %v2735_v8 }
  0x95   :  { %2483 = vmatpush3.bf16.msra.mxu1 %v2910_v17  ;;  %1238 = vmatprep.mubr.bf16.mxu1 %v2739_v9  ;;  %v2743_v17 = vld [vmem:[%s3919_s0 + $0x178] ss:$20 sps:$4 sm:$0xff]  }
  0x96   :  { %2484 = vmatprep.subr.bf16.mxu1 %v2928_v20  ;;  %v2747_v20 = vld [vmem:[%s3919_s0 + $0x1a0] ss:$20 sps:$4 sm:$0xff]  }
  0x99   :  { %2485 = vmatpush3.bf16.msra.mxu1 %v2934_v21  ;;  %v2744_v21 = vld [vmem:[%s3919_s0 + $0x1e0] ss:$20 sps:$4 sm:$0xff]  }
  0x9a   :  { %1174 = vmatmul.mubr.bf16.gmra.mxu0 %v2738_v12  ;;  %2486 = vmatprep.subr.bf16.mxu1 %v2952_v24  ;;  %v2749_v24 = vld [vmem:[%s3919_s0 + $0x20c] ss:$20 sps:$4 sm:$0xff]  }
  0x9b   :  { %2602 = vmatprep.mubr.msk.bf16.mxu0 %vm440_vm0, %v2742_v2 }
  0x9c   :  { %1239 = vmatmul.mubr.bf16.gmra.mxu1 %v2741_v13 }
  0x9d   :  { %2487 = vmatpush3.bf16.msra.mxu1 %v2958_v25  ;;  %1481 = vmatprep.mubr.bf16.mxu1 %v2746_v16  ;;  %v2748_v25 = vld [vmem:[%s3919_s0 + $0x1c8] ss:$20 sps:$4 sm:$0xff]  }
  0x9e   :  { %2488 = vmatprep.subr.bf16.mxu1 %v2976_v28  ;;  %v2752_v28 = vld [vmem:[%s3919_s0 + $0x234] ss:$20 sps:$4 sm:$0xff]  }
  0xa1   :  { %2489 = vmatpush3.bf16.msra.mxu1 %v2982_v29  ;;  %v2768_v29 = vld [vmem:[%s3919_s0 + $0x238] ss:$20 sps:$4 sm:$0xff]  }
  0xa2   :  { %2603 = vmatmul.mubr.msk.bf16.vlgmr.msra.gmra.mxu0 %vm440_vm0, %v2743_v17  ;;  %2610 = vmatprep.subr.bf16.mxu1 %v3006_v34 }
  0xa3   :  { %2515 = vmatpush3.bf16.msra.mxu0 %v2826_v3  ;;  %2606 = vmatprep.mubr.msk.bf16.mxu0 %vm440_vm0, %v2747_v20  ;;  %v2760_v3 = vld [vmem:[%s3919_s0 + $0x1ec] ss:$20 sps:$4 sm:$0xff]  }
  0xa4   :  { %2516 = vmatprep.subr.bf16.mxu0 %v2844_v6  ;;  %1482 = vmatmul.mubr.bf16.vlgmr.msra.gmra.mxu1 %v2744_v21  ;;  %v2751_v6 = vld [vmem:[%s3919_s0 + $0x208] ss:$20 sps:$4 sm:$0xff]  }
  0xa5   :  { %1489 = vmatprep.mubr.bf16.mxu1 %v2749_v24  ;;  %2611 = vmatpush3.bf16.msra.mxu1 %v3006_v34 }
  0xa6   :  { %2612 = vmatprep.subr.bf16.mxu1 %v3024_v38 }
  0xa7   :  { %2517 = vmatpush3.bf16.msra.mxu0 %v2850_v7  ;;  %v2754_v7 = vld [vmem:[%s3919_s0 + $0x230] ss:$20 sps:$4 sm:$0xff]  }
  0xa8   :  { %2518 = vmatprep.subr.bf16.mxu0 %v2868_v10  ;;  %v2755_v10 = vld [vmem:[%s3919_s0 + $0x25c] ss:$20 sps:$4 sm:$0xff]  }
  0xa9   :  { %2613 = vmatpush3.bf16.msra.mxu1 %v3024_v38  ;;  %v3405_v38 = vld [vmem:[%s3920_s2] ss:$0 sm:$0xff] }
  0xaa   :  { %2607 = vmatmul.mubr.msk.bf16.gmra.mxu0 %vm440_vm0, %v2748_v25  ;;  %2614 = vmatprep.subr.bf16.mxu1 %v3042_v42 }
  0xab   :  { %2519 = vmatpush3.bf16.msra.mxu0 %v2874_v11  ;;  %1546 = vmatprep.mubr.bf16.mxu0 %v2760_v3  ;;  %v2757_v11 = vld [vmem:[%s3919_s0 + $0x258] ss:$20 sps:$4 sm:$0xff]  }
  0xac   :  { %2520 = vmatprep.subr.bf16.mxu0 %v2892_v14  ;;  %1490 = vmatmul.mubr.bf16.gmra.mxu1 %v2751_v6  ;;  %v2761_v14 = vld [vmem:[%s3919_s0 + $0x1f0] ss:$20 sps:$4 sm:$0xff]  }
  0xad   :  { %1497 = vmatprep.mubr.bf16.mxu1 %v2752_v28  ;;  %2615 = vmatpush3.bf16.msra.mxu1 %v3042_v42 }
  0xae   :  { %2616 = vmatprep.subr.bf16.mxu1 %v3056_v45 }
  0xaf   :  { %2521 = vmatpush3.bf16.msra.mxu0 %v2898_v15  ;;  %v2758_v15 = vld [vmem:[%s3919_s0 + $0x1e8] ss:$20 sps:$4 sm:$0xff]  }
  0xb0   :  { %2522 = vmatprep.subr.bf16.mxu0 %v2916_v18  ;;  %v2763_v18 = vld [vmem:[%s3919_s0 + $0x214] ss:$20 sps:$4 sm:$0xff]  }
  0xb1   :  { %2617 = vmatpush3.bf16.msra.mxu1 %v3056_v45 }
  0xb3   :  { %2523 = vmatpush3.bf16.msra.mxu0 %v2922_v19  ;;  %v2762_v19 = vld [vmem:[%s3919_s0 + $0x218] ss:$20 sps:$4 sm:$0xff]  }
  0xb4   :  { %2524 = vmatprep.subr.bf16.mxu0 %v2940_v22  ;;  %1498 = vmatmul.mubr.bf16.gmra.mxu1 %v2754_v7  ;;  %v2769_v22 = vld [vmem:[%s3919_s0 + $0x240] ss:$20 sps:$4 sm:$0xff]  }
  0xb5   :  { %1505 = vmatprep.mubr.bf16.mxu1 %v2755_v10 }
  0xb7   :  { %2525 = vmatpush3.bf16.msra.mxu0 %v2946_v23  ;;  %v2765_v23 = vld [vmem:[%s3919_s0 + $0x210] ss:$20 sps:$4 sm:$0xff]  }
  0xb8   :  { %2526 = vmatprep.subr.bf16.mxu0 %v2964_v26  ;;  %v2766_v26 = vld [vmem:[%s3919_s0 + $0x23c] ss:$20 sps:$4 sm:$0xff]  }
  0xbb   :  { %2527 = vmatpush3.bf16.msra.mxu0 %v2970_v27  ;;  %v2770_v27 = vld [vmem:[%s3919_s0 + $0x268] ss:$20 sps:$4 sm:$0xff]  }
  0xbc   :  { %2528 = vmatprep.subr.bf16.mxu0 %v2988_v30  ;;  %1506 = vmatmul.mubr.bf16.gmra.mxu1 %v2757_v11  ;;  %v2771_v30 = vld [vmem:[%s3919_s0 + $0x264] ss:$20 sps:$4 sm:$0xff]  }
  0xbd   :  { %2618 = vmatprep.mubr.msk.bf16.mxu1 %vm440_vm0, %v2761_v14 }
  0xbf   :  { %2529 = vmatpush3.bf16.msra.mxu0 %v3001_v33  ;;  %v2773_v33 = vld [vmem:[%s3919_s0 + $0x260] ss:$20 sps:$4 sm:$0xff]  }
  0xc2   :  { %1547 = vmatmul.mubr.bf16.vlgmr.msra.gmra.mxu0 %v2758_v15 }
  0xc3   :  { %1554 = vmatprep.mubr.bf16.mxu0 %v2763_v18 }
  0xc4   :  { %2619 = vmatmul.mubr.msk.bf16.vlgmr.msra.gmra.mxu1 %vm440_vm0, %v2762_v19 }
  0xc5   :  { %2622 = vmatprep.mubr.msk.bf16.mxu1 %vm440_vm0, %v2769_v22 }
  0xca   :  { %1555 = vmatmul.mubr.bf16.gmra.mxu0 %v2765_v23 }
  0xcb   :  { %1562 = vmatprep.mubr.bf16.mxu0 %v2766_v26 }
  0xcc   :  { %2623 = vmatmul.mubr.msk.bf16.gmra.mxu1 %vm440_vm0, %v2770_v27 }
  0xd2   :  { %1563 = vmatmul.mubr.bf16.gmra.mxu0 %v2768_v29 }
  0xd3   :  { %1570 = vmatprep.mubr.bf16.mxu0 %v2771_v30 }
  0xda   :  { %1571 = vmatmul.mubr.bf16.gmra.mxu0 %v2773_v33 }
  0xe2   :  { %v2226_v34 = vpop.f32.mrf.mxu0 }
  0xe4   :  { %v2227_v42 = vpop.f32.mrf.mxu0  ;;  %v2266_v56 = vpop.f32.mrf.mxu1 }
  0xe5   :  { %v2228_v45 = vadd.f32 %v2227_v42, %v2226_v34 }
  0xe6   :  { %v2229_v57 = vpop.f32.mrf.mxu0  ;;  %v2267_v59 = vpop.f32.mrf.mxu1 }
  0xe7   :  { %v488_v58 = vadd.f32 %v2228_v45, %v3405_v38  ;;  %v2268_v60 = vadd.f32 %v2267_v59, %v2266_v56 }
  0xe8   :  { %v2230_v61 = vpop.f32.mrf.mxu0  ;;  %v2269_v63 = vpop.f32.mrf.mxu1 }
  0xe9   :  { %v2231_v62 = vadd.f32 %v2230_v61, %v2229_v57  ;;  %v553_v32 = vadd.f32 %v2268_v60, %v488_v58 }
  0xea   :  { %v2232_v31 = vpop.f32.mrf.mxu0  ;;  %v2270_v36 = vpop.f32.mrf.mxu1 }
  0xeb   :  { %v491_v35 = vadd.f32 %v2231_v62, %v3405_v38  ;;  %v2271_v37 = vadd.f32 %v2270_v36, %v2269_v63 }
  0xec   :  { %v2233_v39 = vpop.f32.mrf.mxu0  ;;  %v2272_v41 = vpop.f32.mrf.mxu1 }
  0xed   :  { %v2234_v40 = vadd.f32 %v2233_v39, %v2232_v31  ;;  %v556_v44 = vadd.f32 %v2271_v37, %v491_v35 }
  0xee   :  { %v2235_v43 = vpop.f32.mrf.mxu0  ;;  %v2273_v47 = vpop.f32.mrf.mxu1 }
  0xef   :  { %v496_v46 = vadd.f32 %v2234_v40, %v3405_v38  ;;  %v2274_v48 = vadd.f32 %v2273_v47, %v2272_v41 }
  0xf0   :  { %v2236_v49 = vpop.f32.mrf.mxu0  ;;  %v2275_v51 = vpop.f32.mrf.mxu1 }
  0xf1   :  { %v2237_v50 = vadd.f32 %v2236_v49, %v2235_v43  ;;  %v561_v53 = vadd.f32 %v2274_v48, %v496_v46 }
  0xf2   :  { %v2238_v52 = vpop.f32.mrf.mxu0  ;;  %v2276_v55 = vpop.f32.mrf.mxu1 }
  0xf3   :  { %v499_v54 = vadd.f32 %v2237_v50, %v3405_v38  ;;  %v2277_v0 = vadd.f32 %v2276_v55, %v2275_v51 }
  0xf4   :  { %v2239_v1 = vpop.f32.mrf.mxu0  ;;  %v2278_v5 = vpop.f32.mrf.mxu1 }
  0xf5   :  { %v2240_v4 = vadd.f32 %v2239_v1, %v2238_v52  ;;  %v564_v9 = vadd.f32 %v2277_v0, %v499_v54 }
  0xf6   :  { %v2241_v8 = vpop.f32.mrf.mxu0  ;;  %v2279_v2 = vpop.f32.mrf.mxu1 }
  0xf7   :  { %v504_v12 = vadd.f32 %v2240_v4, %v3405_v38  ;;  %v2280_v13 = vadd.f32 %v2279_v2, %v2278_v5 }
  0xf8   :  { %v2242_v16 = vpop.f32.mrf.mxu0  ;;  %v2281_v20 = vpop.f32.mrf.mxu1 }
  0xf9   :  { %v2243_v17 = vadd.f32 %v2242_v16, %v2241_v8  ;;  %v569_v24 = vadd.f32 %v2280_v13, %v504_v12 }
  0xfa   :  { %v2244_v21 = vpop.f32.mrf.mxu0  ;;  %v2282_v3 = vpop.f32.mrf.mxu1 }
  0xfb   :  { %v507_v25 = vadd.f32 %v2243_v17, %v3405_v38  ;;  %v2283_v6 = vadd.f32 %v2282_v3, %v2281_v20 }
  0xfc   :  { %v2245_v28 = vpop.f32.mrf.mxu0  ;;  %v2284_v10 = vpop.f32.mrf.mxu1 }
  0xfd   :  { %v2246_v7 = vadd.f32 %v2245_v28, %v2244_v21  ;;  %v572_v14 = vadd.f32 %v2283_v6, %v507_v25 }
  0xfe   :  { %v2247_v11 = vpop.f32.mrf.mxu0  ;;  %v2285_v18 = vpop.f32.mrf.mxu1 }
  0xff   :  { %v512_v15 = vadd.f32 %v2246_v7, %v3405_v38  ;;  %v2286_v19 = vadd.f32 %v2285_v18, %v2284_v10 }
 0x100   :  { %v2248_v22 = vpop.f32.mrf.mxu0  ;;  %v2287_v26 = vpop.f32.mrf.mxu1 }
 0x101   :  { %v2249_v23 = vadd.f32 %v2248_v22, %v2247_v11  ;;  %v577_v29 = vadd.f32 %v2286_v19, %v512_v15 }
 0x102   :  { %v2572_v27 = vpop.f32.mrf.mxu0  ;;  %v2288_v33 = vpop.f32.mrf.mxu1 }
 0x103   :  { %v515_v30 = vadd.f32 %v2249_v23, %v3405_v38  ;;  %v3415_v34 = vadd.f32 %v2572_v27, %v561_v53  ;;  %v2289_v42 = vadd.f32 %v2288_v33, %v2287_v26 }
 0x104   :  { %v617_v45 = vpop.f32.mrf.mxu0  ;;  %v2314_v57 = vpop.f32.mrf.mxu1 }
 0x105   :  { %v3417_v56 = vadd.f32 %v617_v45, %v553_v32  ;;  %v580_v59 = vadd.f32 %v2289_v42, %v515_v30  ;;  %v1733_v37 = vmul.f32 %v3415_v34, %v3415_v34 }
 0x106   :  { %v2573_v58 = vpop.f32.mrf.mxu0  ;;  %v2315_v61 = vpop.f32.mrf.mxu1 }
 0x107   :  { %v3419_v60 = vadd.f32 %v2573_v58, %v564_v9  ;;  %v3421_v62 = vadd.f32 %v2315_v61, %v2314_v57  ;;  %v1731_v31 = vmul.f32 %v3417_v56, %v3417_v56  ;;  %v1644_v39 = vsel %vm440_vm0, %v3417_v56, 0.0 }
 0x108   :  { %v620_v63 = vpop.f32.mrf.mxu0  ;;  %v2317_v36 = vpop.f32.mrf.mxu1  ;;  %v1742_v4 = vsel %vm440_vm0, %v1733_v37, 0.0 }
 0x109   :  { %v3425_v35 = vadd.f32 %v620_v63, %v556_v44  ;;  %v1647_v44 = vsel %vm440_vm0, %v3415_v34, 0.0  ;;  %v1739_v50 = vsel %vm440_vm0, %v1731_v31, 0.0  ;;  %v1734_v51 = vmul.f32 %v3419_v60, %v3419_v60 }
 0x10a   :  { %v2576_v32 = vpop.f32.mrf.mxu0  ;;  %v2318_v46 = vpop.f32.mrf.mxu1  ;;  %v1649_v5 = vsel %vm440_vm0, %v3419_v60, 0.0 }
 0x10b   :  { %v1645_v40 = vsel %vm440_vm0, %v3425_v35, 0.0  ;;  %v1732_v41 = vmul.f32 %v3425_v35, %v3425_v35  ;;  %v3435_v43 = vadd.f32 %v2576_v32, %v577_v29  ;;  %v3439_v48 = vadd.f32 %v2318_v46, %v2317_v36 }
 0x10c   :  { %v1646_v47 = vadd.f32 %v1645_v40, %v1644_v39  ;;  %v633_v49 = vpop.f32.mrf.mxu0  ;;  %v2320_v54 = vpop.f32.mrf.mxu1  ;;  %v1744_v20 = vsel %vm440_vm0, %v1734_v51, 0.0 }
 0x10d   :  { %v1740_v52 = vsel %vm440_vm0, %v1732_v41, 0.0  ;;  %v3445_v53 = vadd.f32 %v633_v49, %v569_v24  ;;  %v1737_v28 = vmul.f32 %v3435_v43, %v3435_v43 }
 0x10e   :  { %v1648_v55 = vadd.f32 %v1647_v44, %v1646_v47  ;;  %v1741_v0 = vadd.f32 %v1740_v52, %v1739_v50  ;;  %v2577_v1 = vpop.f32.mrf.mxu0  ;;  %v2321_v12 = vpop.f32.mrf.mxu1  ;;  %v820_v50 = vadd.f32 %v3421_v62, %v3405_v38 }
 0x10f   :  { %v1735_v8 = vmul.f32 %v3445_v53, %v3445_v53  ;;  %v3452_v9 = vadd.f32 %v2577_v1, %v580_v59  ;;  %v2322_v16 = vadd.f32 %v2321_v12, %v2320_v54  ;;  %v1651_v21 = vsel %vm440_vm0, %v3445_v53, 0.0 }
 0x110   :  { %v1743_v2 = vadd.f32 %v1742_v4, %v1741_v0  ;;  %v1650_v13 = vadd.f32 %v1649_v5, %v1648_v55  ;;  %v636_v17 = vpop.f32.mrf.mxu0  ;;  %v2323_v25 = vpop.f32.mrf.mxu1  ;;  %v1750_v33 = vsel %vm440_vm0, %v1737_v28, 0.0  ;;  %v823_v4 = vadd.f32 %v3439_v48, %v3405_v38 }
 0x111   :  { %v3457_v24 = vadd.f32 %v636_v17, %v572_v14  ;;  %v1746_v7 = vsel %vm440_vm0, %v1735_v8, 0.0  ;;  %v1655_v14 = vsel %vm440_vm0, %v3435_v43, 0.0  ;;  %v1738_v23 = vmul.f32 %v3452_v9, %v3452_v9 }
 0x112   :  { %v1652_v3 = vadd.f32 %v1651_v21, %v1650_v13  ;;  %v1745_v6 = vadd.f32 %v1744_v20, %v1743_v2  ;;  %v2324_v15 = vpop.f32.mrf.mxu1  ;;  %v1657_v42 = vsel %vm440_vm0, %v3452_v9, 0.0  ;;  %v828_v21 = vadd.f32 %v2322_v16, %v3405_v38 }
 0x113   :  { %v1653_v10 = vsel %vm440_vm0, %v3457_v24, 0.0  ;;  %v1736_v11 = vmul.f32 %v3457_v24, %v3457_v24  ;;  %v2325_v22 = vadd.f32 %v2324_v15, %v2323_v25  ;;  %v1752_v61 = vsel %vm440_vm0, %v1738_v23, 0.0 }
 0x114   :  { %v1747_v18 = vadd.f32 %v1746_v7, %v1745_v6  ;;  %v1654_v19 = vadd.f32 %v1653_v10, %v1652_v3  ;;  %v2326_v27 = vpop.f32.mrf.mxu1 }
 0x115   :  { %v1748_v26 = vsel %vm440_vm0, %v1736_v11, 0.0  ;;  %v831_v16 = vadd.f32 %v2325_v22, %v3405_v38 }
 0x116   :  { %v1656_v29 = vadd.f32 %v1655_v14, %v1654_v19  ;;  %v1749_v30 = vadd.f32 %v1748_v26, %v1747_v18  ;;  %v2327_v45 = vpop.f32.mrf.mxu1 }
 0x117   :  { %v2328_v59 = vadd.f32 %v2327_v45, %v2326_v27 }
 0x118   :  { %v3474_v57 = vadd.f32 %v1657_v42, %v1656_v29  ;;  %v1751_v58 = vadd.f32 %v1750_v33, %v1749_v30  ;;  %v2329_v63 = vpop.f32.mrf.mxu1 }
 0x11a   :  { %v3477_v31 = vadd.f32 %v1752_v61, %v1751_v58  ;;  %v2330_v36 = vpop.f32.mrf.mxu1  ;;  %v836_v61 = vadd.f32 %v2328_v59, %v3405_v38 }
 0x11b   :  { %v2331_v37 = vadd.f32 %v2330_v36, %v2329_v63 }
 0x11c   :  { %v2332_v32 = vpop.f32.mrf.mxu1 }
 0x11e   :  { %v2333_v39 = vpop.f32.mrf.mxu1 }
 0x11f   :  { %v3479_v40 = vadd.f32 %v2333_v39, %v2332_v32 }
 0x120   :  { %v2335_v41 = vpop.f32.mrf.mxu1 }
 0x122   :  { %v2354_v46 = vpop.f32.mrf.mxu0  ;;  %v2336_v44 = vpop.f32.mrf.mxu1 }
 0x123   :  { %v3481_v47 = vadd.f32 %v2336_v44, %v2335_v41 }
 0x124   :  { %v2355_v49 = vpop.f32.mrf.mxu0  ;;  %v2588_v52 = vpop.f32.mrf.mxu1 }
 0x125   :  { %v2356_v51 = vadd.f32 %v2355_v49, %v2354_v46 }
 0x126   :  { %v2357_v54 = vpop.f32.mrf.mxu0  ;;  %v949_v0 = vpop.f32.mrf.mxu1 }
 0x127   :  { %v885_v55 = vadd.f32 %v2356_v51, %v820_v50 }
 0x128   :  { %v2358_v1 = vpop.f32.mrf.mxu0  ;;  %v2589_v12 = vpop.f32.mrf.mxu1 }
 0x129   :  { %v2359_v5 = vadd.f32 %v2358_v1, %v2357_v54  ;;  %v3487_v8 = vadd.f32 %v949_v0, %v885_v55  ;;  %v839_v54 = vadd.f32 %v2331_v37, %v3405_v38  ;;  %v844_v37 = vadd.f32 %v3479_v40, %v3405_v38 }
 0x12a   :  { %v2360_v2 = vpop.f32.mrf.mxu0  ;;  %v952_v17 = vpop.f32.mrf.mxu1  ;;  %v847_v40 = vadd.f32 %v3481_v47, %v3405_v38 }
 0x12b   :  { %v888_v13 = vadd.f32 %v2359_v5, %v823_v4  ;;  %v1760_v62 = vmul.f32 %v3487_v8, %v3487_v8  ;;  %v1665_v48 = vsel %vm440_vm0, %v3487_v8, 0.0 }
 0x12c   :  { %v2361_v20 = vpop.f32.mrf.mxu0  ;;  %v2592_v28 = vpop.f32.mrf.mxu1 }
 0x12d   :  { %v2362_v25 = vadd.f32 %v2361_v20, %v2360_v2  ;;  %v3492_v3 = vadd.f32 %v952_v17, %v888_v13  ;;  %v1768_v19 = vsel %vm440_vm0, %v1760_v62, 0.0 }
 0x12e   :  { %v2363_v6 = vpop.f32.mrf.mxu0  ;;  %v965_v30 = vpop.f32.mrf.mxu1 }
 0x12f   :  { %v893_v7 = vadd.f32 %v2362_v25, %v828_v21  ;;  %v1666_v10 = vsel %vm440_vm0, %v3492_v3, 0.0  ;;  %v1761_v11 = vmul.f32 %v3492_v3, %v3492_v3 }
 0x130   :  { %v1667_v15 = vadd.f32 %v1666_v10, %v1665_v48  ;;  %v2364_v18 = vpop.f32.mrf.mxu0  ;;  %v2593_v46 = vpop.f32.mrf.mxu1 }
 0x131   :  { %v3502_v14 = vadd.f32 %v2588_v52, %v893_v7  ;;  %v1769_v23 = vsel %vm440_vm0, %v1761_v11, 0.0  ;;  %v2365_v26 = vadd.f32 %v2364_v18, %v2363_v6 }
 0x132   :  { %v1770_v27 = vadd.f32 %v1769_v23, %v1768_v19  ;;  %v2366_v29 = vpop.f32.mrf.mxu0  ;;  %v968_v5 = vpop.f32.mrf.mxu1 }
 0x133   :  { %v1762_v33 = vmul.f32 %v3502_v14, %v3502_v14  ;;  %v1668_v42 = vsel %vm440_vm0, %v3502_v14, 0.0  ;;  %v896_v45 = vadd.f32 %v2365_v26, %v831_v16  ;;  %v1659_v16 = vrot.slane %v3474_v57, 4 }
 0x134   :  { %v1669_v22 = vadd.f32 %v1668_v42, %v1667_v15  ;;  %v2367_v58 = vpop.f32.mrf.mxu0 }
 0x135   :  { %v1771_v63 = vsel %vm440_vm0, %v1762_v33, 0.0  ;;  %v3511_v36 = vadd.f32 %v2589_v12, %v896_v45  ;;  %v2368_v32 = vadd.f32 %v2367_v58, %v2366_v29 }
 0x136   :  { %v1772_v39 = vadd.f32 %v1771_v63, %v1770_v27  ;;  %v2369_v41 = vpop.f32.mrf.mxu0  ;;  %v1754_v27 = vrot.slane %v3477_v31, 4 }
 0x137   :  { %v1763_v44 = vmul.f32 %v3511_v36, %v3511_v36  ;;  %v901_v49 = vadd.f32 %v2368_v32, %v836_v61  ;;  %v1670_v50 = vsel %vm440_vm0, %v3511_v36, 0.0 }
 0x138   :  { %v2370_v51 = vpop.f32.mrf.mxu0  ;;  %v1671_v52 = vadd.f32 %v1670_v50, %v1669_v22  ;;  %v1660_v22 = vadd.f32 %v1659_v16, %v3474_v57  ;;  %v1755_v32 = vadd.f32 %v1754_v27, %v3477_v31 }
 0x139   :  { %v2371_v59 = vadd.f32 %v2370_v51, %v2369_v41  ;;  %v3518_v55 = vadd.f32 %v965_v30, %v901_v49  ;;  %v1773_v0 = vsel %vm440_vm0, %v1763_v44, 0.0 }
 0x13a   :  { %v1774_v1 = vadd.f32 %v1773_v0, %v1772_v39  ;;  %v2372_v4 = vpop.f32.mrf.mxu0  ;;  %v1661_v51 = vrot.slane %v1660_v22, 2 }
 0x13b   :  { %v1672_v12 = vsel %vm440_vm0, %v3518_v55, 0.0  ;;  %v1764_v2 = vmul.f32 %v3518_v55, %v3518_v55  ;;  %v904_v13 = vadd.f32 %v2371_v59, %v839_v54 }
 0x13c   :  { %v1673_v17 = vadd.f32 %v1672_v12, %v1671_v52  ;;  %v2373_v20 = vpop.f32.mrf.mxu0 }
 0x13d   :  { %v1775_v21 = vsel %vm440_vm0, %v1764_v2, 0.0  ;;  %v2374_v62 = vadd.f32 %v2373_v20, %v2372_v4  ;;  %v3528_v25 = vadd.f32 %v968_v5, %v904_v13  ;;  %v1662_v5 = vadd.f32 %v1661_v51, %v1660_v22 }
 0x13e   :  { %v1776_v6 = vadd.f32 %v1775_v21, %v1774_v1  ;;  %v2375_v48 = vpop.f32.mrf.mxu0 }
 0x13f   :  { %v909_v7 = vadd.f32 %v2374_v62, %v844_v37  ;;  %v1674_v10 = vsel %vm440_vm0, %v3528_v25, 0.0  ;;  %v1765_v11 = vmul.f32 %v3528_v25, %v3528_v25 }
 0x140   :  { %v1675_v15 = vadd.f32 %v1674_v10, %v1673_v17  ;;  %v2376_v18 = vpop.f32.mrf.mxu0 }
 0x141   :  { %v3537_v19 = vadd.f32 %v2592_v28, %v909_v7  ;;  %v1777_v23 = vsel %vm440_vm0, %v1765_v11, 0.0  ;;  %v2377_v26 = vadd.f32 %v2376_v18, %v2375_v48  ;;  %v1663_v48 = vrot.slane %v1662_v5, 1 }
 0x142   :  { %v1778_v29 = vadd.f32 %v1777_v23, %v1776_v6  ;;  %v2402_v30 = vpop.f32.mrf.mxu0 }
 0x143   :  { %v1766_v33 = vmul.f32 %v3537_v19, %v3537_v19  ;;  %v1676_v42 = vsel %vm440_vm0, %v3537_v19, 0.0  ;;  %v912_v45 = vadd.f32 %v2377_v26, %v847_v40  ;;  %v1664_v27 = vadd.f32 %v1663_v48, %v1662_v5 }
 0x144   :  { %v1677_v58 = vadd.f32 %v1676_v42, %v1675_v15  ;;  %v2403_v47 = vpop.f32.mrf.mxu0  ;;  %v2442_v63 = vpop.f32.mrf.mxu1 }
 0x145   :  { %v1779_v28 = vsel %vm440_vm0, %v1766_v33, 0.0  ;;  %v3547_v61 = vadd.f32 %v2593_v46, %v912_v45  ;;  %v1756_v46 = vrot.slane %v1755_v32, 2 }
 0x146   :  { %v1780_v39 = vadd.f32 %v1779_v28, %v1778_v29  ;;  %v2405_v41 = vpop.f32.mrf.mxu0  ;;  %v2443_v50 = vpop.f32.mrf.mxu1 }
 0x147   :  { %v1678_v44 = vsel %vm440_vm0, %v3547_v61, 0.0  ;;  %v1767_v49 = vmul.f32 %v3547_v61, %v3547_v61  ;;  %v1757_v20 = vadd.f32 %v1756_v46, %v1755_v32 }
 0x148   :  { %v1679_v57 = vadd.f32 %v1678_v44, %v1677_v58  ;;  %v2406_v52 = vpop.f32.mrf.mxu0  ;;  %v2445_v59 = vpop.f32.mrf.mxu1 }
 0x149   :  { %v1781_v54 = vsel %vm440_vm0, %v1767_v49, 0.0  ;;  %v1758_v15 = vrot.slane %v1757_v20, 1 }
 0x14a   :  { %v1680_v0 = vrot.slane %v1679_v57, 4  ;;  %v1782_v1 = vadd.f32 %v1781_v54, %v1780_v39  ;;  %v2408_v4 = vpop.f32.mrf.mxu0  ;;  %v2446_v31 = vpop.f32.mrf.mxu1 }
 0x14b   :  { %v1759_v22 = vadd.f32 %v1758_v15, %v1757_v20  ;;  %v2407_v20 = vadd.f32 %v2406_v52, %v2405_v41 }
 0x14c   :  { %v1681_v12 = vadd.f32 %v1680_v0, %v1679_v57  ;;  %v1783_v2 = vrot.slane %v1782_v1, 4  ;;  %v2409_v13 = vpop.f32.mrf.mxu0  ;;  %v2448_v17 = vpop.f32.mrf.mxu1  ;;  %v2404_v57 = vadd.f32 %v2403_v47, %v2402_v30 }
 0x14d   :  { %v1155_v47 = vadd.f32 %v2407_v20, %v3405_v38 }
 0x14e   :  { %v1682_v37 = vrot.slane %v1681_v12, 2  ;;  %v1784_v21 = vadd.f32 %v1783_v2, %v1782_v1  ;;  %v2411_v62 = vpop.f32.mrf.mxu0  ;;  %v2449_v6 = vpop.f32.mrf.mxu1  ;;  %v2410_v1 = vadd.f32 %v2409_v13, %v2408_v4  ;;  %v2444_v2 = vadd.f32 %v2443_v50, %v2442_v63 }
 0x14f   :  { %v2450_v15 = vadd.f32 %v2449_v6, %v2448_v17 }
 0x150   :  { %v1683_v7 = vadd.f32 %v1682_v37, %v1681_v12  ;;  %v1785_v10 = vrot.slane %v1784_v21, 2  ;;  %v2412_v11 = vpop.f32.mrf.mxu0  ;;  %v2451_v16 = vpop.f32.mrf.mxu1  ;;  %v1152_v12 = vadd.f32 %v2404_v57, %v3405_v38 }
 0x152   :  { %v1684_v18 = vrot.slane %v1683_v7, 1  ;;  %v1786_v40 = vadd.f32 %v1785_v10, %v1784_v21  ;;  %v2414_v23 = vpop.f32.mrf.mxu0  ;;  %v2452_v26 = vpop.f32.mrf.mxu1  ;;  %v2413_v21 = vadd.f32 %v2412_v11, %v2411_v62  ;;  %v1160_v10 = vadd.f32 %v2410_v1, %v3405_v38 }
 0x153   :  { %v1217_v30 = vadd.f32 %v2444_v2, %v1152_v12  ;;  %v2453_v13 = vadd.f32 %v2452_v26, %v2451_v16 }
 0x154   :  { %v1685_v29 = vadd.f32 %v1684_v18, %v1683_v7  ;;  %v1787_v33 = vrot.slane %v1786_v40, 1  ;;  %v2415_v42 = vpop.f32.mrf.mxu0  ;;  %v2454_v45 = vpop.f32.mrf.mxu1  ;;  %v1163_v4 = vadd.f32 %v2413_v21, %v3405_v38  ;;  %v1225_v62 = vadd.f32 %v2450_v15, %v1160_v10 }
 0x155   :  { %v2416_v18 = vadd.f32 %v2415_v42, %v2414_v23 }
 0x156   :  { %v3555_v58 = vadd.f32 %v1685_v29, %v1664_v27  ;;  %v1788_v28 = vadd.f32 %v1787_v33, %v1786_v40  ;;  %v2417_v32 = vpop.f32.mrf.mxu0  ;;  %v2455_v39 = vpop.f32.mrf.mxu1  ;;  %v2447_v29 = vadd.f32 %v2446_v31, %v2445_v59  ;;  %v1228_v59 = vadd.f32 %v2453_v13, %v1163_v4 }
 0x157   :  { %v1168_v41 = vadd.f32 %v2416_v18, %v3405_v38  ;;  %v2456_v52 = vadd.f32 %v2455_v39, %v2454_v45 }
 0x158   :  { %v3557_v44 = vadd.f32 %v1788_v28, %v1759_v22  ;;  %v2418_v49 = vpop.f32.mrf.mxu0  ;;  %v2457_v51 = vpop.f32.mrf.mxu1  ;;  %v1220_v16 = vadd.f32 %v2447_v29, %v1155_v47 }
 0x159   :  { %v2419_v6 = vadd.f32 %v2418_v49, %v2417_v32  ;;  %v1233_v49 = vadd.f32 %v2456_v52, %v1168_v41 }
 0x15a   :  { %v2420_v54 = vpop.f32.mrf.mxu0  ;;  %v2458_v46 = vpop.f32.mrf.mxu1 }
 0x15b   :  { %v2459_v1 = vadd.f32 %v2458_v46, %v2457_v51 }
 0x15c   :  { %v2421_v0 = vpop.f32.mrf.mxu0  ;;  %v2460_v5 = vpop.f32.mrf.mxu1 }
 0x15d   :  { %v2422_v63 = vadd.f32 %v2421_v0, %v2420_v54  ;;  %v1171_v0 = vadd.f32 %v2419_v6, %v3405_v38 }
 0x15e   :  { %v2423_v37 = vpop.f32.mrf.mxu0  ;;  %v2461_v48 = vpop.f32.mrf.mxu1 }
 0x15f   :  { %v1176_v26 = vadd.f32 %v2422_v63, %v3405_v38  ;;  %v2462_v28 = vadd.f32 %v2461_v48, %v2460_v5  ;;  %v1236_v63 = vadd.f32 %v2459_v1, %v1171_v0 }
 0x160   :  { %v2424_v7 = vpop.f32.mrf.mxu0  ;;  %v2463_v40 = vpop.f32.mrf.mxu1 }
 0x161   :  { %v2425_v23 = vadd.f32 %v2424_v7, %v2423_v37  ;;  %v1241_v10 = vadd.f32 %v2462_v28, %v1176_v26 }
 0x162   :  { %v2604_v27 = vpop.f32.mrf.mxu0  ;;  %v2464_v33 = vpop.f32.mrf.mxu1 }
 0x163   :  { %v3568_v22 = vadd.f32 %v2604_v27, %v1225_v62  ;;  %v1179_v12 = vadd.f32 %v2425_v23, %v3405_v38  ;;  %v2465_v2 = vadd.f32 %v2464_v33, %v2463_v40 }
 0x164   :  { %v1281_v50 = vpop.f32.mrf.mxu0  ;;  %v3566_v17 = vpop.f32.mrf.mxu1 }
 0x165   :  { %v3564_v11 = vadd.f32 %v1281_v50, %v1217_v30  ;;  %v1792_v5 = vmul.f32 %v3568_v22, %v3568_v22  ;;  %v1690_v51 = vsel %vm440_vm0, %v3568_v22, 0.0  ;;  %v1244_v13 = vadd.f32 %v2465_v2, %v1179_v12 }
 0x166   :  { %v2605_v42 = vpop.f32.mrf.mxu0  ;;  %v3570_v31 = vpop.f32.mrf.mxu1 }
 0x167   :  { %v1790_v45 = vmul.f32 %v3564_v11, %v3564_v11  ;;  %v3575_v39 = vadd.f32 %v2605_v42, %v1228_v59  ;;  %v1687_v20 = vsel %vm440_vm0, %v3564_v11, 0.0  ;;  %v1801_v50 = vsel %vm440_vm0, %v1792_v5, 0.0 }
 0x168   :  { %v1284_v57 = vpop.f32.mrf.mxu0  ;;  %v3579_v32 = vpop.f32.mrf.mxu1 }
 0x169   :  { %v3577_v54 = vadd.f32 %v1284_v57, %v1220_v16  ;;  %v1798_v18 = vsel %vm440_vm0, %v1790_v45, 0.0  ;;  %v1793_v40 = vmul.f32 %v3575_v39, %v3575_v39  ;;  %v1692_v41 = vsel %vm440_vm0, %v3575_v39, 0.0 }
 0x16a   :  { %v2608_v37 = vpop.f32.mrf.mxu0  ;;  %v3591_v7 = vpop.f32.mrf.mxu1 }
 0x16b   :  { %v1688_v21 = vsel %vm440_vm0, %v3577_v54, 0.0  ;;  %v1791_v48 = vmul.f32 %v3577_v54, %v3577_v54  ;;  %v3606_v52 = vadd.f32 %v2608_v37, %v1241_v10  ;;  %v1803_v16 = vsel %vm440_vm0, %v1793_v40, 0.0 }
 0x16c   :  { %v1689_v46 = vadd.f32 %v1688_v21, %v1687_v20  ;;  %v1297_v15 = vpop.f32.mrf.mxu0  ;;  %v3601_v47 = vpop.f32.mrf.mxu1 }
 0x16d   :  { %v1799_v27 = vsel %vm440_vm0, %v1791_v48, 0.0  ;;  %v3599_v30 = vadd.f32 %v1297_v15, %v1233_v49  ;;  %v1796_v1 = vmul.f32 %v3606_v52, %v3606_v52  ;;  %v1698_v48 = vsel %vm440_vm0, %v3606_v52, 0.0 }
 0x16e   :  { %v1691_v29 = vadd.f32 %v1690_v51, %v1689_v46  ;;  %v1800_v4 = vadd.f32 %v1799_v27, %v1798_v18  ;;  %v2609_v33 = vpop.f32.mrf.mxu0  ;;  %v2497_v6 = vpop.f32.mrf.mxu1 }
 0x16f   :  { %v1794_v62 = vmul.f32 %v3599_v30, %v3599_v30  ;;  %v1694_v26 = vsel %vm440_vm0, %v3599_v30, 0.0  ;;  %v3613_v28 = vadd.f32 %v2609_v33, %v1244_v13  ;;  %v1809_v40 = vsel %vm440_vm0, %v1796_v1, 0.0 }
 0x170   :  { %v1802_v23 = vadd.f32 %v1801_v50, %v1800_v4  ;;  %v1693_v42 = vadd.f32 %v1692_v41, %v1691_v29  ;;  %v1300_v59 = vpop.f32.mrf.mxu0  ;;  %v2499_v45 = vpop.f32.mrf.mxu1 }
 0x171   :  { %v3615_v57 = vadd.f32 %v1300_v59, %v1236_v63  ;;  %v1805_v12 = vsel %vm440_vm0, %v1794_v62, 0.0  ;;  %v1797_v51 = vmul.f32 %v3613_v28, %v3613_v28  ;;  %v1700_v27 = vsel %vm440_vm0, %v3613_v28, 0.0 }
 0x172   :  { %v1695_v49 = vadd.f32 %v1694_v26, %v1693_v42  ;;  %v1804_v0 = vadd.f32 %v1803_v16, %v1802_v23  ;;  %v2500_v5 = vpop.f32.mrf.mxu1 }
 0x173   :  { %v1696_v2 = vsel %vm440_vm0, %v3615_v57, 0.0  ;;  %v1795_v37 = vmul.f32 %v3615_v57, %v3615_v57  ;;  %v1811_v33 = vsel %vm440_vm0, %v1797_v51, 0.0 }
 0x174   :  { %v1806_v20 = vadd.f32 %v1805_v12, %v1804_v0  ;;  %v1697_v21 = vadd.f32 %v1696_v2, %v1695_v49  ;;  %v2502_v10 = vpop.f32.mrf.mxu1 }
 0x175   :  { %v1807_v46 = vsel %vm440_vm0, %v1795_v37, 0.0 }
 0x176   :  { %v1699_v15 = vadd.f32 %v1698_v48, %v1697_v21  ;;  %v1808_v18 = vadd.f32 %v1807_v46, %v1806_v20  ;;  %v2503_v29 = vpop.f32.mrf.mxu1 }
 0x178   :  { %v1701_v4 = vadd.f32 %v1700_v27, %v1699_v15  ;;  %v1810_v13 = vadd.f32 %v1809_v40, %v1808_v18  ;;  %v2505_v63 = vpop.f32.mrf.mxu1 }
 0x17a   :  { %v1702_v50 = vrot.slane %v1701_v4, 4  ;;  %v1812_v41 = vadd.f32 %v1811_v33, %v1810_v13  ;;  %v2506_v62 = vpop.f32.mrf.mxu1 }
 0x17c   :  { %v1703_v23 = vadd.f32 %v1702_v50, %v1701_v4  ;;  %v1813_v42 = vrot.slane %v1812_v41, 4  ;;  %v2508_v59 = vpop.f32.mrf.mxu1  ;;  %v2495_v50 = vadd.f32 %v3591_v7, %v3579_v32 }
 0x17e   :  { %v1704_v16 = vrot.slane %v1703_v23, 2  ;;  %v1814_v26 = vadd.f32 %v1813_v42, %v1812_v41  ;;  %v2509_v49 = vpop.f32.mrf.mxu1  ;;  %v2492_v41 = vadd.f32 %v3570_v31, %v3566_v17 }
 0x180   :  { %v1705_v0 = vadd.f32 %v1704_v16, %v1703_v23  ;;  %v1815_v1 = vrot.slane %v1814_v26, 2  ;;  %v3633_v12 = vpop.f32.mrf.mxu1  ;;  %v2498_v23 = vadd.f32 %v2497_v6, %v3601_v47 }
 0x182   :  { %v1706_v2 = vrot.slane %v1705_v0, 1  ;;  %v1816_v37 = vadd.f32 %v1815_v1, %v1814_v26  ;;  %v2530_v20 = vpop.f32.mrf.mxu0  ;;  %v3635_v21 = vpop.f32.mrf.mxu1  ;;  %v1487_v1 = vadd.f32 %v2495_v50, %v3405_v38 }
 0x184   :  { %v1707_v48 = vadd.f32 %v1706_v2, %v1705_v0  ;;  %v1817_v51 = vrot.slane %v1816_v37, 1  ;;  %v2531_v46 = vpop.f32.mrf.mxu0  ;;  %v2620_v15 = vpop.f32.mrf.mxu1  ;;  %v2501_v2 = vadd.f32 %v2500_v5, %v2499_v45 }
 0x186   :  { %v3638_v18 = vadd.f32 %v1707_v48, %v3555_v58  ;;  %v1818_v40 = vadd.f32 %v1817_v51, %v1816_v37  ;;  %v2533_v27 = vpop.f32.mrf.mxu0  ;;  %v1613_v4 = vpop.f32.mrf.mxu1  ;;  %v2532_v58 = vadd.f32 %v2531_v46, %v2530_v20  ;;  %v1492_v48 = vadd.f32 %v2498_v23, %v3405_v38 }
 0x187   :  { %v1495_v6 = vadd.f32 %v2501_v2, %v3405_v38 }
 0x188   :  { %v3641_v13 = vadd.f32 %v1818_v40, %v3557_v44  ;;  %v2534_v33 = vpop.f32.mrf.mxu0  ;;  %v2621_v16 = vpop.f32.mrf.mxu1  ;;  %v1484_v44 = vadd.f32 %v2492_v41, %v3405_v38 }
 0x189   :  { %v2535_v26 = vadd.f32 %v2534_v33, %v2533_v27  ;;  %v2504_v27 = vadd.f32 %v2503_v29, %v2502_v10 }
 0x18a   :  { %v2536_v42 = vpop.f32.mrf.mxu0  ;;  %v1616_v51 = vpop.f32.mrf.mxu1  ;;  %v1549_v40 = vadd.f32 %v2532_v58, %v1484_v44 }
 0x18b   :  { %v1552_v7 = vadd.f32 %v2535_v26, %v1487_v1  ;;  %v2507_v26 = vadd.f32 %v2506_v62, %v2505_v63 }
 0x18c   :  { %v2537_v0 = vpop.f32.mrf.mxu0  ;;  %v2624_v47 = vpop.f32.mrf.mxu1  ;;  %v3654_v5 = vadd.f32 %v1613_v4, %v1549_v40 }
 0x18d   :  { %v2538_v37 = vadd.f32 %v2537_v0, %v2536_v42  ;;  %v3652_v33 = vadd.f32 %v1616_v51, %v1552_v7  ;;  %v1500_v42 = vadd.f32 %v2504_v27, %v3405_v38  ;;  %v2510_v0 = vadd.f32 %v2509_v49, %v2508_v59 }
 0x18e   :  { %v2539_v32 = vpop.f32.mrf.mxu0  ;;  %v1629_v23 = vpop.f32.mrf.mxu1  ;;  %v1820_v4 = vmul.f32 %v3654_v5, %v3654_v5 }
 0x18f   :  { %v1557_v17 = vadd.f32 %v2538_v37, %v1492_v48  ;;  %v1821_v10 = vmul.f32 %v3652_v33, %v3652_v33  ;;  %v1503_v48 = vadd.f32 %v2507_v26, %v3405_v38  ;;  %v1710_v63 = vsel %vm440_vm0, %v3652_v33, 0.0 }
 0x190   :  { %v2540_v31 = vpop.f32.mrf.mxu0  ;;  %v2625_v44 = vpop.f32.mrf.mxu1  ;;  %v1508_v49 = vadd.f32 %v2510_v0, %v3405_v38 }
 0x191   :  { %v2541_v20 = vadd.f32 %v2540_v31, %v2539_v32  ;;  %v3656_v50 = vadd.f32 %v2620_v15, %v1557_v17  ;;  %v1829_v7 = vsel %vm440_vm0, %v1821_v10, 0.0  ;;  %v2513_v31 = vadd.f32 %v3635_v21, %v3633_v12 }
 0x192   :  { %v2542_v46 = vpop.f32.mrf.mxu0 }
 0x193   :  { %v1560_v45 = vadd.f32 %v2541_v20, %v1495_v6  ;;  %v1822_v15 = vmul.f32 %v3656_v50, %v3656_v50  ;;  %v1712_v32 = vsel %vm440_vm0, %v3656_v50, 0.0  ;;  %v1828_v6 = vsel %vm440_vm0, %v1820_v4, 0.0 }
 0x194   :  { %v2543_v41 = vpop.f32.mrf.mxu0  ;;  %v1830_v0 = vadd.f32 %v1829_v7, %v1828_v6  ;;  %v1511_v4 = vadd.f32 %v2513_v31, %v3405_v38 }
 0x195   :  { %v2544_v58 = vadd.f32 %v2543_v41, %v2542_v46  ;;  %v3661_v29 = vadd.f32 %v2621_v16, %v1560_v45  ;;  %v1709_v16 = vsel %vm440_vm0, %v3654_v5, 0.0  ;;  %v1831_v20 = vsel %vm440_vm0, %v1822_v15, 0.0  ;;  %v1632_v46 = vpop.f32.mrf.mxu1 }
 0x196   :  { %v2545_v1 = vpop.f32.mrf.mxu0  ;;  %v1711_v27 = vadd.f32 %v1710_v63, %v1709_v16  ;;  %v1832_v15 = vadd.f32 %v1831_v20, %v1830_v0 }
 0x197   :  { %v1565_v2 = vadd.f32 %v2544_v58, %v1500_v42  ;;  %v1823_v40 = vmul.f32 %v3661_v29, %v3661_v29  ;;  %v1714_v41 = vsel %vm440_vm0, %v3661_v29, 0.0 }
 0x198   :  { %v2546_v37 = vpop.f32.mrf.mxu0  ;;  %v1713_v58 = vadd.f32 %v1712_v32, %v1711_v27 }
 0x199   :  { %v3670_v62 = vadd.f32 %v1629_v23, %v1565_v2  ;;  %v2547_v59 = vadd.f32 %v2546_v37, %v2545_v1  ;;  %v1833_v21 = vsel %vm440_vm0, %v1823_v40, 0.0 }
 0x19a   :  { %v2548_v51 = vpop.f32.mrf.mxu0  ;;  %v1715_v37 = vadd.f32 %v1714_v41, %v1713_v58  ;;  %v1834_v7 = vadd.f32 %v1833_v21, %v1832_v15 }
 0x19b   :  { %v1568_v17 = vadd.f32 %v2547_v59, %v1503_v48  ;;  %v1824_v23 = vmul.f32 %v3670_v62, %v3670_v62  ;;  %v1716_v12 = vsel %vm440_vm0, %v3670_v62, 0.0 }
 0x19c   :  { %v2549_v45 = vpop.f32.mrf.mxu0  ;;  %v1717_v32 = vadd.f32 %v1716_v12, %v1715_v37 }
 0x19d   :  { %v3688_v42 = vadd.f32 %v1632_v46, %v1568_v17  ;;  %v2550_v26 = vadd.f32 %v2549_v45, %v2548_v51  ;;  %v1835_v63 = vsel %vm440_vm0, %v1824_v23, 0.0 }
 0x19e   :  { %v2551_v1 = vpop.f32.mrf.mxu0  ;;  %v1836_v31 = vadd.f32 %v1835_v63, %v1834_v7 }
 0x19f   :  { %v1825_v10 = vmul.f32 %v3688_v42, %v3688_v42  ;;  %v1573_v2 = vadd.f32 %v2550_v26, %v1508_v49  ;;  %v1718_v59 = vsel %vm440_vm0, %v3688_v42, 0.0 }
 0x1a0   :  { %v2552_v48 = vpop.f32.mrf.mxu0  ;;  %v1719_v6 = vadd.f32 %v1718_v59, %v1717_v32 }
 0x1a1   :  { %v3699_v16 = vadd.f32 %v2624_v47, %v1573_v2  ;;  %v2553_v51 = vadd.f32 %v2552_v48, %v2551_v1  ;;  %v1837_v40 = vsel %vm440_vm0, %v1825_v10, 0.0 }
 0x1a2   :  { %v1838_v47 = vadd.f32 %v1837_v40, %v1836_v31  ;;  %v1862_v31 = vlaneseq }
 0x1a3   :  { %v1720_v49 = vsel %vm440_vm0, %v3699_v16, 0.0  ;;  %v1826_v38 = vmul.f32 %v3699_v16, %v3699_v16  ;;  %v1576_v17 = vadd.f32 %v2553_v51, %v1511_v4 }
 0x1a4   :  { %v1721_v46 = vadd.f32 %v1720_v49, %v1719_v6  ;;  %v1863_v6 = vshrl.u32 %v1862_v31, 7 }
 0x1a5   :  { %v1839_v27 = vsel %vm440_vm0, %v1826_v38, 0.0  ;;  %v3707_v20 = vadd.f32 %v2625_v44, %v1576_v17 }
 0x1a6   :  { %v1840_v23 = vadd.f32 %v1839_v27, %v1838_v47  ;;  %v1854_v27 = vld [vmem:[%s3921_s3] sm:$0x1]  ;;  %v1864_v47 = vsub.s32 0, %v1863_v6 }
 0x1a7   :  { %v1722_v45 = vsel %vm440_vm0, %v3707_v20, 0.0  ;;  %v1827_v41 = vmul.f32 %v3707_v20, %v3707_v20 }
 0x1a8   :  { %v1723_v26 = vadd.f32 %v1722_v45, %v1721_v46 }
 0x1a9   :  { %v1841_v58 = vsel %vm440_vm0, %v1827_v41, 0.0 }
 0x1aa   :  { %v1724_v0 = vrot.slane %v1723_v26, 4  ;;  %v1842_v1 = vadd.f32 %v1841_v58, %v1840_v23 }
 0x1ac   :  { %v1725_v12 = vadd.f32 %v1724_v0, %v1723_v26  ;;  %v1843_v21 = vrot.slane %v1842_v1, 4 }
 0x1ae   :  { %v1726_v10 = vrot.slane %v1725_v12, 2  ;;  %v1844_v2 = vadd.f32 %v1843_v21, %v1842_v1 }
 0x1b0   :  { %v1727_v44 = vadd.f32 %v1726_v10, %v1725_v12  ;;  %v1845_v4 = vrot.slane %v1844_v2, 2 }
 0x1b2   :  { %v1728_v15 = vrot.slane %v1727_v44, 1  ;;  %v1846_v37 = vadd.f32 %v1845_v4, %v1844_v2 }
 0x1b4   :  { %v1729_v48 = vadd.f32 %v1728_v15, %v1727_v44  ;;  %v1847_v63 = vrot.slane %v1846_v37, 1 }
 0x1b6   :  { %v1730_v59 = vadd.f32 %v1729_v48, %v3638_v18  ;;  %v1848_v51 = vadd.f32 %v1847_v63, %v1846_v37  ;;  %v1858_v18 = vld [vmem:[%s3922_s4] sm:$0x1] }
 0x1b8   :  { %v1849_v32 = vadd.f32 %v1848_v51, %v3641_v13  ;;  %v1850_v7 = vmul.f32 0.00390625, %v1730_v59 }
 0x1ba   :  { %v1851_v40 = vmul.f32 0.00390625, %v1849_v32  ;;  %v1852_v49 = vmul.f32 %v1850_v7, %v1850_v7 }
 0x1bc   :  { %v1853_v38 = vsub.f32 %v1851_v40, %v1852_v49 }
 0x1be   :  { %v1855_v17 = vadd.f32 1e-05, %v1853_v38 }
 0x1c0   :  { %2774 = vrsqrt.f32 %v1855_v17 }
 0x1cd   :  { %v2775_v46 = vpop.eup %2774 }
 0x1ce   :  { %v1857_v45 = vmul.f32 %v2775_v46, %v1854_v27 }
 0x1d0   :  { %v1859_v13 = vmul.f32 %v1857_v45, %v1850_v7  ;;  %v3722_v41 = vrot.slane %v1857_v45, %v1864_v47 }
 0x1d2   :  { %v1860_v23 = vsub.f32 %v1858_v18, %v1859_v13  ;;  %v1867_v26 = vmul.f32 %v3722_v41, %v3417_v56  ;;  %v1868_v58 = vmul.f32 %v3722_v41, %v3425_v35  ;;  %v1869_v0 = vmul.f32 %v3722_v41, %v3415_v34 }
 0x1d3   :  { %v1870_v1 = vmul.f32 %v3722_v41, %v3419_v60  ;;  %v1871_v12 = vmul.f32 %v3722_v41, %v3445_v53  ;;  %v1872_v21 = vmul.f32 %v3722_v41, %v3457_v24  ;;  %v1873_v10 = vmul.f32 %v3722_v41, %v3435_v43 }
 0x1d4   :  { %v1874_v56 = vmul.f32 %v3722_v41, %v3452_v9  ;;  %v3740_v2 = vrot.slane %v1860_v23, %v1864_v47  ;;  %v1897_v34 = vmul.f32 %v3722_v41, %v3487_v8  ;;  %v1898_v60 = vmul.f32 %v3722_v41, %v3492_v3 }
 0x1d5   :  { %v1899_v35 = vmul.f32 %v3722_v41, %v3502_v14  ;;  %v1900_v53 = vmul.f32 %v3722_v41, %v3511_v36  ;;  %v1901_v43 = vmul.f32 %v3722_v41, %v3518_v55  ;;  %v1902_v9 = vmul.f32 %v3722_v41, %v3528_v25 }
 0x1d6   :  { %v3755_v24 = vadd.f32 %v3740_v2, %v1867_v26  ;;  %v3758_v8 = vadd.f32 %v3740_v2, %v1868_v58  ;;  %v3761_v3 = vadd.f32 %v3740_v2, %v1869_v0  ;;  %v3764_v14 = vadd.f32 %v3740_v2, %v1870_v1 }
 0x1d7   :  { %v3767_v36 = vadd.f32 %v3740_v2, %v1871_v12  ;;  %v3770_v55 = vadd.f32 %v3740_v2, %v1872_v21  ;;  %v3773_v25 = vadd.f32 %v3740_v2, %v1873_v10  ;;  %v3776_v44 = vadd.f32 %v3740_v2, %v1874_v56 }
 0x1d8   :  { %v1889_v4 = vmax.f32 %v3755_v24, 0.0  ;;  %v1890_v15 = vmax.f32 %v3758_v8, 0.0  ;;  %v1891_v37 = vmax.f32 %v3761_v3, 0.0  ;;  %v1892_v48 = vmax.f32 %v3764_v14, 0.0 }
 0x1d9   :  { %v1893_v63 = vmax.f32 %v3767_v36, 0.0  ;;  %v1894_v59 = vmax.f32 %v3770_v55, 0.0  ;;  %v1895_v51 = vmax.f32 %v3773_v25, 0.0  ;;  %v1896_v32 = vmax.f32 %v3776_v44, 0.0 }
 0x1da   :  { %v1903_v7 = vmul.f32 %v3722_v41, %v3537_v19  ;;  %v1904_v40 = vmul.f32 %v3722_v41, %v3547_v61  ;;  %v3791_v49 = vadd.f32 %v1897_v34, %v3740_v2  ;;  %v3794_v38 = vadd.f32 %v1898_v60, %v3740_v2 }
 0x1db   :  { %v3797_v17 = vadd.f32 %v1899_v35, %v3740_v2  ;;  %v3800_v31 = vadd.f32 %v1900_v53, %v3740_v2  ;;  %v3803_v6 = vadd.f32 %v1901_v43, %v3740_v2  ;;  %v3806_v19 = vadd.f32 %v1902_v9, %v3740_v2 }
 0x1dc   :  { %v3809_v61 = vadd.f32 %v1903_v7, %v3740_v2  ;;  %v3812_v27 = vadd.f32 %v1904_v40, %v3740_v2  ;;  %v1913_v47 = vmax.f32 %v3791_v49, 0.0  ;;  %v1914_v46 = vmax.f32 %v3794_v38, 0.0 }
 0x1dd   :  { %v1915_v45 = vmax.f32 %v3797_v17, 0.0  ;;  %v1916_v18 = vmax.f32 %v3800_v31, 0.0  ;;  %v1917_v13 = vmax.f32 %v3803_v6, 0.0  ;;  %v1918_v23 = vmax.f32 %v3806_v19, 0.0 }
 0x1de   :  { %v1919_v26 = vmax.f32 %v3809_v61, 0.0  ;;  %v1920_v58 = vmax.f32 %v3812_v27, 0.0  ;;  %v1921_v0 = vmul.f32 %v3722_v41, %v3564_v11  ;;  %v1922_v1 = vmul.f32 %v3722_v41, %v3577_v54 }
 0x1df   :  { %v1923_v12 = vmul.f32 %v3722_v41, %v3568_v22  ;;  %v1924_v21 = vmul.f32 %v3722_v41, %v3575_v39  ;;  %v1925_v10 = vmul.f32 %v3722_v41, %v3599_v30  ;;  %v1926_v56 = vmul.f32 %v3722_v41, %v3615_v57 }
 0x1e0   :  { %v1927_v34 = vmul.f32 %v3722_v41, %v3606_v52  ;;  %v1928_v11 = vmul.f32 %v3722_v41, %v3613_v28  ;;  %v1929_v54 = vadd.f32 %v1921_v0, %v3740_v2  ;;  %v1930_v60 = vadd.f32 %v1922_v1, %v3740_v2 }
 0x1e1   :  { %v1931_v22 = vadd.f32 %v1923_v12, %v3740_v2  ;;  %v1932_v39 = vadd.f32 %v1924_v21, %v3740_v2  ;;  %v1933_v35 = vadd.f32 %v1925_v10, %v3740_v2  ;;  %v1934_v30 = vadd.f32 %v1926_v56, %v3740_v2 }
 0x1e2   :  { %v1935_v57 = vadd.f32 %v1927_v34, %v3740_v2  ;;  %v1936_v53 = vadd.f32 %v1928_v11, %v3740_v2  ;;  %v1937_v52 = vmax.f32 %v1929_v54, 0.0  ;;  %v1938_v43 = vmax.f32 %v1930_v60, 0.0 }
 0x1e3   :  { %v1939_v9 = vmax.f32 %v1931_v22, 0.0  ;;  %v1940_v28 = vmax.f32 %v1932_v39, 0.0  ;;  %v1941_v7 = vmax.f32 %v1933_v35, 0.0  ;;  %v1942_v40 = vmax.f32 %v1934_v30, 0.0 }
 0x1e4   :  { %v1943_v49 = vmax.f32 %v1935_v57, 0.0  ;;  %v1944_v38 = vmax.f32 %v1936_v53, 0.0  ;;  %v1945_v17 = vmul.f32 %v3722_v41, %v3654_v5  ;;  %v1946_v31 = vmul.f32 %v3722_v41, %v3652_v33 }
 0x1e5   :  { %v1947_v6 = vmul.f32 %v3722_v41, %v3656_v50  ;;  %v1948_v19 = vmul.f32 %v3722_v41, %v3661_v29  ;;  %v1949_v61 = vmul.f32 %v3722_v41, %v3670_v62  ;;  %v1950_v27 = vmul.f32 %v3722_v41, %v3688_v42 }
 0x1e6   :  { %v1951_v0 = vmul.f32 %v3722_v41, %v3699_v16  ;;  %v1952_v5 = vmul.f32 %v3722_v41, %v3707_v20  ;;  %v1953_v33 = vadd.f32 %v1945_v17, %v3740_v2  ;;  %v1954_v1 = vadd.f32 %v1946_v31, %v3740_v2 }
 0x1e7   :  { %v1955_v50 = vadd.f32 %v1947_v6, %v3740_v2  ;;  %v1956_v29 = vadd.f32 %v1948_v19, %v3740_v2  ;;  %v1957_v12 = vadd.f32 %v1949_v61, %v3740_v2  ;;  %v1958_v62 = vadd.f32 %v1950_v27, %v3740_v2 }
 0x1e8   :  { %v1959_v42 = vadd.f32 %v1951_v0, %v3740_v2  ;;  %v1960_v21 = vadd.f32 %v1952_v5, %v3740_v2  ;;  %v1961_v16 = vmax.f32 %v1953_v33, 0.0  ;;  %v1962_v10 = vmax.f32 %v1954_v1, 0.0 }
 0x1e9   :  { %v1963_v56 = vmax.f32 %v1955_v50, 0.0  ;;  %v1964_v20 = vmax.f32 %v1956_v29, 0.0  ;;  %v1965_v41 = vmax.f32 %v1957_v12, 0.0  ;;  %v1966_v34 = vmax.f32 %v1958_v62, 0.0 }
 0x1ea   :  { %v1967_v11 = vmax.f32 %v1959_v42, 0.0  ;;  %v1968_v54 = vmax.f32 %v1960_v21, 0.0  ;;  %v1969_v60 = vmax.f32 %v1889_v4, %v1913_v47  ;;  %v1970_v22 = vmax.f32 %v1890_v15, %v1914_v46 }
 0x1eb   :  { %v1971_v39 = vmax.f32 %v1891_v37, %v1915_v45  ;;  %v1972_v2 = vmax.f32 %v1892_v48, %v1916_v18  ;;  %v1973_v35 = vmax.f32 %v1893_v63, %v1917_v13  ;;  %v1974_v30 = vmax.f32 %v1894_v59, %v1918_v23 }
 0x1ec   :  { %v1975_v57 = vmax.f32 %v1895_v51, %v1919_v26  ;;  %v1976_v24 = vmax.f32 %v1896_v32, %v1920_v58  ;;  %v1977_v8 = vmax.f32 %v1937_v52, %v1961_v16  ;;  %v1978_v4 = vmax.f32 %v1938_v43, %v1962_v10 }
 0x1ed   :  { %v1979_v15 = vmax.f32 %v1939_v9, %v1963_v56  ;;  %v1980_v3 = vmax.f32 %v1940_v28, %v1964_v20  ;;  %v1981_v37 = vmax.f32 %v1941_v7, %v1965_v41  ;;  %v1982_v47 = vmax.f32 %v1942_v40, %v1966_v34 }
 0x1ee   :  { %v1983_v14 = vmax.f32 %v1943_v49, %v1967_v11  ;;  %v1984_v48 = vmax.f32 %v1944_v38, %v1968_v54  ;;  %v1985_v46 = vmax.f32 %v1969_v60, %v1977_v8  ;;  %v1986_v36 = vmax.f32 %v1970_v22, %v1978_v4 }
 0x1ef   :  { %v1987_v63 = vmax.f32 %v1971_v39, %v1979_v15  ;;  %v1988_v45 = vmax.f32 %v1972_v2, %v1980_v3  ;;  %v1989_v55 = vmax.f32 %v1973_v35, %v1981_v37  ;;  %v1990_v59 = vmax.f32 %v1974_v30, %v1982_v47 }
 0x1f0   :  { %v1991_v18 = vmax.f32 %v1975_v57, %v1983_v14  ;;  %v1992_v25 = vmax.f32 %v1976_v24, %v1984_v48  ;;  %1993 = vst.msk [vmem:[%s3923_s5] sm:$0xff] %vm440_vm0, %v1985_v46  ;;  %1994 = vst.msk [vmem:[%s3923_s5 + $0x8] sm:$0xff] %vm440_vm0, %v1986_v36 }
 0x1f1   :  { %1995 = vst.msk [vmem:[%s3923_s5 + $0x10] sm:$0xff] %vm440_vm0, %v1987_v63  ;;  %1996 = vst.msk [vmem:[%s3923_s5 + $0x18] sm:$0xff] %vm440_vm0, %v1988_v45 }
 0x1f2   :  { %1997 = vst.msk [vmem:[%s3923_s5 + $0x20] sm:$0xff] %vm440_vm0, %v1989_v55  ;;  %1998 = vst.msk [vmem:[%s3923_s5 + $0x28] sm:$0xff] %vm440_vm0, %v1990_v59 }
 0x1f3   :  { %1999 = vst.msk [vmem:[%s3923_s5 + $0x30] sm:$0xff] %vm440_vm0, %v1991_v18  ;;  %2000 = vst.msk [vmem:[%s3923_s5 + $0x38] sm:$0xff] %vm440_vm0, %v1992_v25 }

// kernel: encoder.6
= control target key start
LH: loop header
LB: loop body
LE: loop exit
PB: predicated region body
PF: predicated region fallthrough
CT: control target
= control target key end

     0   :  { %v1484_v34 = vmov 0.0   ;;  %vm1485_vm0 = vmmov 0   ;;  %vm347_vm1 = vcmask 523264   ;;  %s2019_s1 = inlined_call_operand.vmem [shape: bf16[576,64], index: 1, kind: input, shape index: {}]   ;;  %s2020_s0 = inlined_call_operand.vmem [shape: bf16[4,16,576], index: 0, kind: input, shape index: {}]   ;;  %s2021_s2 = inlined_call_operand.vmem [shape: f32[1,64], index: 2, kind: input, shape index: {}]   ;;  %s2022_s3 = inlined_call_operand.vmem [shape: f32[1,64], index: 3, kind: input, shape index: {}]   ;;  %s2023_s4 = inlined_call_operand.vmem [shape: f32[1,64], index: 4, kind: input, shape index: {}]   ;;  %s2024_s5 = inlined_call_operand.vmem [shape: f32[16,64], index: 5, kind: output, shape index: {}]  }
   0x1   :  { %v1519_v0 = vld [vmem:[%s2019_s1 + $0x78] sm:$0xff]   ;;  %v1542_v4 = vld [vmem:[%s2019_s1 + $0x70] sm:$0xff]   ;;  %v1566_v8 = vld [vmem:[%s2019_s1 + $0x68] sm:$0xff]  }
   0x2   :  { %v1524_v1 = vld [vmem:[%s2019_s1 + $0xf8] sm:$0xff]   ;;  %1172 = vmatprep.subr.bf16.mxu0 %v1519_v0  ;;  %v1548_v5 = vld [vmem:[%s2019_s1 + $0xf0] sm:$0xff]   ;;  %v1572_v9 = vld [vmem:[%s2019_s1 + $0xe8] sm:$0xff]  }
   0x3   :  { %v1530_v2 = vld [vmem:[%s2019_s1 + $0x38] sm:$0xff]   ;;  %1194 = vmatprep.subr.bf16.mxu1 %v1524_v1  ;;  %v1554_v6 = vld [vmem:[%s2019_s1 + $0x30] sm:$0xff]   ;;  %v1578_v10 = vld [vmem:[%s2019_s1 + $0x28] sm:$0xff]  }
   0x4   :  { %v1536_v3 = vld [vmem:[%s2019_s1 + $0xb8] sm:$0xff]   ;;  %1173 = vmatpush3.bf16.msra.mxu0 %v1530_v2  ;;  %v1560_v7 = vld [vmem:[%s2019_s1 + $0xb0] sm:$0xff]   ;;  %v1584_v11 = vld [vmem:[%s2019_s1 + $0xa8] sm:$0xff]  }
   0x5   :  { %1195 = vmatpush3.bf16.msra.mxu1 %v1536_v3  ;;  %1174 = vmatprep.subr.bf16.mxu0 %v1542_v4  ;;  %v1590_v12 = vld [vmem:[%s2019_s1 + $0x60] sm:$0xff]   ;;  %v1614_v16 = vld [vmem:[%s2019_s1 + $0x58] sm:$0xff]   ;;  %v1638_v20 = vld [vmem:[%s2019_s1 + $0x50] sm:$0xff]  }
   0x6   :  { %1196 = vmatprep.subr.bf16.mxu1 %v1548_v5  ;;  %v1596_v13 = vld [vmem:[%s2019_s1 + $0xe0] sm:$0xff]   ;;  %v1620_v17 = vld [vmem:[%s2019_s1 + $0xd8] sm:$0xff]   ;;  %v1644_v21 = vld [vmem:[%s2019_s1 + $0xd0] sm:$0xff]  }
   0x7   :  { %v1602_v14 = vld [vmem:[%s2019_s1 + $0x20] sm:$0xff]   ;;  %v1626_v18 = vld [vmem:[%s2019_s1 + $0x18] sm:$0xff]   ;;  %v1650_v22 = vld [vmem:[%s2019_s1 + $0x10] sm:$0xff]  }
   0x8   :  { %1175 = vmatpush3.bf16.msra.mxu0 %v1554_v6  ;;  %v1608_v15 = vld [vmem:[%s2019_s1 + $0xa0] sm:$0xff]   ;;  %v1632_v19 = vld [vmem:[%s2019_s1 + $0x98] sm:$0xff]   ;;  %v1656_v23 = vld [vmem:[%s2019_s1 + $0x90] sm:$0xff]  }
   0x9   :  { %1197 = vmatpush3.bf16.msra.mxu1 %v1560_v7  ;;  %1176 = vmatprep.subr.bf16.mxu0 %v1566_v8  ;;  %v1662_v24 = vld [vmem:[%s2019_s1 + $0x48] sm:$0xff]   ;;  %v1686_v28 = vld [vmem:[%s2019_s1 + $0x40] sm:$0xff]   ;;  %v1725_v37 = vld [vmem:[%s2019_s1 + $0x118] sm:$0xff]  }
   0xa   :  { %1198 = vmatprep.subr.bf16.mxu1 %v1572_v9  ;;  %v1668_v25 = vld [vmem:[%s2019_s1 + $0xc8] sm:$0xff]   ;;  %v1692_v29 = vld [vmem:[%s2019_s1 + $0xc0] sm:$0xff]   ;;  %v1731_v38 = vld [vmem:[%s2019_s1 + $0x110] sm:$0xff]  }
   0xb   :  { %v1674_v26 = vld [vmem:[%s2019_s1 + $0x8] sm:$0xff]   ;;  %v1698_v30 = vld [vmem:[%s2019_s1] sm:$0xff]   ;;  %v1473_v48 = vld [vmem:[%s2020_s0 + $0x5c] ss:$20 sps:$4 sm:$0xff]  }
   0xc   :  { %1177 = vmatpush3.bf16.msra.mxu0 %v1578_v10  ;;  %v1680_v27 = vld [vmem:[%s2019_s1 + $0x88] sm:$0xff]   ;;  %v1704_v31 = vld [vmem:[%s2019_s1 + $0x80] sm:$0xff]   ;;  %v1477_v51 = vld [vmem:[%s2020_s0 + $0x7c] ss:$20 sps:$4 sm:$0xff]  }
   0xd   :  { %1199 = vmatpush3.bf16.msra.mxu1 %v1584_v11  ;;  %1178 = vmatprep.subr.bf16.mxu0 %v1590_v12  ;;  %v1450_v32 = vld [vmem:[%s2020_s0] ss:$20 sps:$4 sm:$0xff]   ;;  %v1452_v33 = vld [vmem:[%s2020_s0 + $0x4] ss:$20 sps:$4 sm:$0xff]   ;;  %v1453_v35 = vld [vmem:[%s2020_s0 + $0x8] ss:$20 sps:$4 sm:$0xff]  }
   0xe   :  { %1200 = vmatprep.subr.bf16.mxu1 %v1596_v13  ;;  %v1455_v36 = vld [vmem:[%s2020_s0 + $0xc] ss:$20 sps:$4 sm:$0xff]   ;;  %383 = vmatprep.mubr.bf16.mxu0 %v1452_v33  ;;  %v1460_v42 = vld [vmem:[%s2020_s0 + $0x10] ss:$20 sps:$4 sm:$0xff]   ;;  %v1466_v43 = vld [vmem:[%s2020_s0 + $0x34] ss:$20 sps:$4 sm:$0xff]  }
   0xf   :  { %424 = vmatprep.mubr.bf16.mxu1 %v1455_v36  ;;  %v1463_v39 = vld [vmem:[%s2020_s0 + $0x2c] ss:$20 sps:$4 sm:$0xff]   ;;  %v1461_v44 = vld [vmem:[%s2020_s0 + $0x28] ss:$20 sps:$4 sm:$0xff]   ;;  %v1464_v45 = vld [vmem:[%s2020_s0 + $0x30] ss:$20 sps:$4 sm:$0xff]  }
  0x10   :  { %1179 = vmatpush3.bf16.msra.mxu0 %v1602_v14  ;;  %v1745_v40 = vld [vmem:[%s2019_s1 + $0x108] sm:$0xff]   ;;  %v1754_v41 = vld [vmem:[%s2019_s1 + $0x100] sm:$0xff]  }
  0x11   :  { %1201 = vmatpush3.bf16.msra.mxu1 %v1608_v15  ;;  %1180 = vmatprep.subr.bf16.mxu0 %v1614_v16  ;;  %v1467_v46 = vld [vmem:[%s2020_s0 + $0x38] ss:$20 sps:$4 sm:$0xff]   ;;  %v1470_v47 = vld [vmem:[%s2020_s0 + $0x54] ss:$20 sps:$4 sm:$0xff]   ;;  %v1468_v49 = vld [vmem:[%s2020_s0 + $0x50] ss:$20 sps:$4 sm:$0xff]  }
  0x12   :  { %1202 = vmatprep.subr.bf16.mxu1 %v1620_v17  ;;  %v1471_v50 = vld [vmem:[%s2020_s0 + $0x58] ss:$20 sps:$4 sm:$0xff]   ;;  %v1474_v52 = vld [vmem:[%s2020_s0 + $0x60] ss:$20 sps:$4 sm:$0xff]   ;;  %v1481_v56 = vld [vmem:[%s2020_s0 + $0x88] ss:$20 sps:$4 sm:$0xff]  }
  0x13   :  { %v1480_v53 = vld [vmem:[%s2020_s0 + $0x84] ss:$20 sps:$4 sm:$0xff]   ;;  %v1478_v55 = vld [vmem:[%s2020_s0 + $0x80] ss:$20 sps:$4 sm:$0xff]  }
  0x14   :  { %1181 = vmatpush3.bf16.msra.mxu0 %v1626_v18  ;;  %v1475_v54 = vld [vmem:[%s2020_s0 + $0x78] ss:$20 sps:$4 sm:$0xff]   ;;  %v1931_v59 = vld [vmem:[%s2021_s2] ss:$0 sm:$0xff] }
  0x15   :  { %1203 = vmatpush3.bf16.msra.mxu1 %v1632_v19  ;;  %1182 = vmatprep.subr.bf16.mxu0 %v1638_v20 }
  0x16   :  { %1204 = vmatprep.subr.bf16.mxu1 %v1644_v21 }
  0x18   :  { %1183 = vmatpush3.bf16.msra.mxu0 %v1650_v22 }
  0x19   :  { %1205 = vmatpush3.bf16.msra.mxu1 %v1656_v23  ;;  %1184 = vmatprep.subr.bf16.mxu0 %v1662_v24 }
  0x1a   :  { %1206 = vmatprep.subr.bf16.mxu1 %v1668_v25 }
  0x1c   :  { %1185 = vmatpush3.bf16.msra.mxu0 %v1674_v26 }
  0x1d   :  { %1207 = vmatpush3.bf16.msra.mxu1 %v1680_v27  ;;  %1186 = vmatprep.subr.bf16.mxu0 %v1686_v28 }
  0x1e   :  { %1208 = vmatprep.subr.bf16.mxu1 %v1692_v29 }
  0x20   :  { %1187 = vmatpush3.bf16.msra.mxu0 %v1698_v30 }
  0x21   :  { %1209 = vmatpush3.bf16.msra.mxu1 %v1704_v31  ;;  %1368 = vmatprep.subr.bf16.mxu0 %v1484_v34 }
  0x22   :  { %1221 = vmatprep.subr.bf16.mxu1 %v1519_v0 }
  0x23   :  { %384 = vmatmul.mubr.bf16.vlgmr.msra.gmra.mxu0 %v1450_v32 }
  0x24   :  { %425 = vmatmul.mubr.bf16.vlgmr.msra.gmra.mxu1 %v1453_v35  ;;  %1369 = vmatpush3.bf16.msra.mxu0 %v1725_v37 }
  0x25   :  { %1222 = vmatpush3.bf16.msra.mxu1 %v1530_v2  ;;  %1370 = vmatprep.subr.bf16.mxu0 %v1484_v34 }
  0x26   :  { %1223 = vmatprep.subr.bf16.mxu1 %v1542_v4  ;;  %1376 = vmatprep.mubr.msk.bf16.mxu0 %vm1485_vm0, %v1484_v34 }
  0x27   :  { %541 = vmatprep.mubr.bf16.mxu1 %v1463_v39 }
  0x28   :  { %1371 = vmatpush3.bf16.msra.mxu0 %v1731_v38 }
  0x29   :  { %1224 = vmatpush3.bf16.msra.mxu1 %v1554_v6  ;;  %1372 = vmatprep.subr.bf16.mxu0 %v1484_v34 }
  0x2a   :  { %1225 = vmatprep.subr.bf16.mxu1 %v1566_v8 }
  0x2c   :  { %1373 = vmatpush3.bf16.msra.mxu0 %v1745_v40 }
  0x2d   :  { %1226 = vmatpush3.bf16.msra.mxu1 %v1578_v10  ;;  %1374 = vmatprep.subr.bf16.mxu0 %v1484_v34 }
  0x2e   :  { %1227 = vmatprep.subr.bf16.mxu1 %v1590_v12 }
  0x30   :  { %1375 = vmatpush3.bf16.msra.mxu0 %v1754_v41 }
  0x31   :  { %1228 = vmatpush3.bf16.msra.mxu1 %v1602_v14  ;;  %1243 = vmatprep.subr.bf16.mxu0 %v1524_v1 }
  0x32   :  { %1229 = vmatprep.subr.bf16.mxu1 %v1614_v16 }
  0x33   :  { %1377 = vmatmul.mubr.msk.bf16.vlgmr.msra.gmra.mxu0 %vm347_vm1, %v1460_v42 }
  0x34   :  { %1244 = vmatpush3.bf16.msra.mxu0 %v1536_v3  ;;  %582 = vmatprep.mubr.bf16.mxu0 %v1466_v43 }
  0x35   :  { %1230 = vmatpush3.bf16.msra.mxu1 %v1626_v18  ;;  %1245 = vmatprep.subr.bf16.mxu0 %v1548_v5 }
  0x36   :  { %1231 = vmatprep.subr.bf16.mxu1 %v1638_v20 }
  0x38   :  { %1246 = vmatpush3.bf16.msra.mxu0 %v1560_v7 }
  0x39   :  { %1232 = vmatpush3.bf16.msra.mxu1 %v1650_v22  ;;  %1247 = vmatprep.subr.bf16.mxu0 %v1572_v9 }
  0x3a   :  { %1233 = vmatprep.subr.bf16.mxu1 %v1662_v24 }
  0x3c   :  { %1248 = vmatpush3.bf16.msra.mxu0 %v1584_v11 }
  0x3d   :  { %1234 = vmatpush3.bf16.msra.mxu1 %v1674_v26  ;;  %1249 = vmatprep.subr.bf16.mxu0 %v1596_v13 }
  0x3e   :  { %1235 = vmatprep.subr.bf16.mxu1 %v1686_v28 }
  0x40   :  { %1250 = vmatpush3.bf16.msra.mxu0 %v1608_v15 }
  0x41   :  { %1236 = vmatpush3.bf16.msra.mxu1 %v1698_v30  ;;  %1251 = vmatprep.subr.bf16.mxu0 %v1620_v17 }
  0x42   :  { %1380 = vmatprep.subr.bf16.mxu1 %v1484_v34 }
  0x44   :  { %542 = vmatmul.mubr.bf16.vlgmr.msra.gmra.mxu1 %v1461_v44  ;;  %1252 = vmatpush3.bf16.msra.mxu0 %v1632_v19 }
  0x45   :  { %1381 = vmatpush3.bf16.msra.mxu1 %v1725_v37  ;;  %1253 = vmatprep.subr.bf16.mxu0 %v1644_v21 }
  0x46   :  { %1382 = vmatprep.subr.bf16.mxu1 %v1484_v34  ;;  %1388 = vmatprep.mubr.msk.bf16.mxu1 %vm1485_vm0, %v1484_v34 }
  0x48   :  { %1254 = vmatpush3.bf16.msra.mxu0 %v1656_v23 }
  0x49   :  { %1383 = vmatpush3.bf16.msra.mxu1 %v1731_v38  ;;  %1255 = vmatprep.subr.bf16.mxu0 %v1668_v25 }
  0x4a   :  { %1384 = vmatprep.subr.bf16.mxu1 %v1484_v34 }
  0x4c   :  { %1256 = vmatpush3.bf16.msra.mxu0 %v1680_v27 }
  0x4d   :  { %1385 = vmatpush3.bf16.msra.mxu1 %v1745_v40  ;;  %1257 = vmatprep.subr.bf16.mxu0 %v1692_v29 }
  0x4e   :  { %1386 = vmatprep.subr.bf16.mxu1 %v1484_v34 }
  0x50   :  { %1258 = vmatpush3.bf16.msra.mxu0 %v1704_v31 }
  0x51   :  { %1387 = vmatpush3.bf16.msra.mxu1 %v1754_v41  ;;  %1270 = vmatprep.subr.bf16.mxu0 %v1519_v0 }
  0x52   :  { %1292 = vmatprep.subr.bf16.mxu1 %v1524_v1 }
  0x53   :  { %583 = vmatmul.mubr.bf16.vlgmr.msra.gmra.mxu0 %v1464_v45 }
  0x54   :  { %1389 = vmatmul.mubr.msk.bf16.vlgmr.msra.gmra.mxu1 %vm347_vm1, %v1467_v46  ;;  %1271 = vmatpush3.bf16.msra.mxu0 %v1530_v2 }
  0x55   :  { %1293 = vmatpush3.bf16.msra.mxu1 %v1536_v3  ;;  %1272 = vmatprep.subr.bf16.mxu0 %v1542_v4 }
  0x56   :  { %1294 = vmatprep.subr.bf16.mxu1 %v1548_v5  ;;  %699 = vmatprep.mubr.bf16.mxu0 %v1470_v47 }
  0x57   :  { %740 = vmatprep.mubr.bf16.mxu1 %v1473_v48 }
  0x58   :  { %1273 = vmatpush3.bf16.msra.mxu0 %v1554_v6 }
  0x59   :  { %1295 = vmatpush3.bf16.msra.mxu1 %v1560_v7  ;;  %1274 = vmatprep.subr.bf16.mxu0 %v1566_v8 }
  0x5a   :  { %1296 = vmatprep.subr.bf16.mxu1 %v1572_v9 }
  0x5c   :  { %1275 = vmatpush3.bf16.msra.mxu0 %v1578_v10 }
  0x5d   :  { %1297 = vmatpush3.bf16.msra.mxu1 %v1584_v11  ;;  %1276 = vmatprep.subr.bf16.mxu0 %v1590_v12 }
  0x5e   :  { %1298 = vmatprep.subr.bf16.mxu1 %v1596_v13 }
  0x60   :  { %1277 = vmatpush3.bf16.msra.mxu0 %v1602_v14 }
  0x61   :  { %1299 = vmatpush3.bf16.msra.mxu1 %v1608_v15  ;;  %1278 = vmatprep.subr.bf16.mxu0 %v1614_v16 }
  0x62   :  { %1300 = vmatprep.subr.bf16.mxu1 %v1620_v17 }
  0x64   :  { %1279 = vmatpush3.bf16.msra.mxu0 %v1626_v18 }
  0x65   :  { %1301 = vmatpush3.bf16.msra.mxu1 %v1632_v19  ;;  %1280 = vmatprep.subr.bf16.mxu0 %v1638_v20 }
  0x66   :  { %1302 = vmatprep.subr.bf16.mxu1 %v1644_v21 }
  0x68   :  { %1281 = vmatpush3.bf16.msra.mxu0 %v1650_v22 }
  0x69   :  { %1303 = vmatpush3.bf16.msra.mxu1 %v1656_v23  ;;  %1282 = vmatprep.subr.bf16.mxu0 %v1662_v24 }
  0x6a   :  { %1304 = vmatprep.subr.bf16.mxu1 %v1668_v25 }
  0x6c   :  { %1283 = vmatpush3.bf16.msra.mxu0 %v1674_v26 }
  0x6d   :  { %1305 = vmatpush3.bf16.msra.mxu1 %v1680_v27  ;;  %1284 = vmatprep.subr.bf16.mxu0 %v1686_v28 }
  0x6e   :  { %1306 = vmatprep.subr.bf16.mxu1 %v1692_v29 }
  0x70   :  { %1285 = vmatpush3.bf16.msra.mxu0 %v1698_v30 }
  0x71   :  { %1307 = vmatpush3.bf16.msra.mxu1 %v1704_v31  ;;  %1392 = vmatprep.subr.bf16.mxu0 %v1484_v34 }
  0x72   :  { %1319 = vmatprep.subr.bf16.mxu1 %v1519_v0 }
  0x73   :  { %700 = vmatmul.mubr.bf16.vlgmr.msra.gmra.mxu0 %v1468_v49 }
  0x74   :  { %741 = vmatmul.mubr.bf16.vlgmr.msra.gmra.mxu1 %v1471_v50  ;;  %1393 = vmatpush3.bf16.msra.mxu0 %v1725_v37 }
  0x75   :  { %1320 = vmatpush3.bf16.msra.mxu1 %v1530_v2  ;;  %1394 = vmatprep.subr.bf16.mxu0 %v1484_v34 }
  0x76   :  { %1321 = vmatprep.subr.bf16.mxu1 %v1542_v4  ;;  %1400 = vmatprep.mubr.msk.bf16.mxu0 %vm1485_vm0, %v1484_v34 }
  0x77   :  { %857 = vmatprep.mubr.bf16.mxu1 %v1477_v51 }
  0x78   :  { %1395 = vmatpush3.bf16.msra.mxu0 %v1731_v38 }
  0x79   :  { %1322 = vmatpush3.bf16.msra.mxu1 %v1554_v6  ;;  %1396 = vmatprep.subr.bf16.mxu0 %v1484_v34 }
  0x7a   :  { %1323 = vmatprep.subr.bf16.mxu1 %v1566_v8 }
  0x7c   :  { %1397 = vmatpush3.bf16.msra.mxu0 %v1745_v40 }
  0x7d   :  { %1324 = vmatpush3.bf16.msra.mxu1 %v1578_v10  ;;  %1398 = vmatprep.subr.bf16.mxu0 %v1484_v34 }
  0x7e   :  { %1325 = vmatprep.subr.bf16.mxu1 %v1590_v12 }
  0x80   :  { %1399 = vmatpush3.bf16.msra.mxu0 %v1754_v41 }
  0x81   :  { %1326 = vmatpush3.bf16.msra.mxu1 %v1602_v14  ;;  %1341 = vmatprep.subr.bf16.mxu0 %v1524_v1 }
  0x82   :  { %1327 = vmatprep.subr.bf16.mxu1 %v1614_v16 }
  0x83   :  { %1401 = vmatmul.mubr.msk.bf16.vlgmr.msra.gmra.mxu0 %vm347_vm1, %v1474_v52 }
  0x84   :  { %1342 = vmatpush3.bf16.msra.mxu0 %v1536_v3  ;;  %898 = vmatprep.mubr.bf16.mxu0 %v1480_v53 }
  0x85   :  { %1328 = vmatpush3.bf16.msra.mxu1 %v1626_v18  ;;  %1343 = vmatprep.subr.bf16.mxu0 %v1548_v5 }
  0x86   :  { %1329 = vmatprep.subr.bf16.mxu1 %v1638_v20 }
  0x88   :  { %1344 = vmatpush3.bf16.msra.mxu0 %v1560_v7 }
  0x89   :  { %1330 = vmatpush3.bf16.msra.mxu1 %v1650_v22  ;;  %1345 = vmatprep.subr.bf16.mxu0 %v1572_v9 }
  0x8a   :  { %1331 = vmatprep.subr.bf16.mxu1 %v1662_v24 }
  0x8c   :  { %1346 = vmatpush3.bf16.msra.mxu0 %v1584_v11 }
  0x8d   :  { %1332 = vmatpush3.bf16.msra.mxu1 %v1674_v26  ;;  %1347 = vmatprep.subr.bf16.mxu0 %v1596_v13 }
  0x8e   :  { %1333 = vmatprep.subr.bf16.mxu1 %v1686_v28 }
  0x90   :  { %1348 = vmatpush3.bf16.msra.mxu0 %v1608_v15 }
  0x91   :  { %1334 = vmatpush3.bf16.msra.mxu1 %v1698_v30  ;;  %1349 = vmatprep.subr.bf16.mxu0 %v1620_v17 }
  0x92   :  { %1404 = vmatprep.subr.bf16.mxu1 %v1484_v34 }
  0x94   :  { %858 = vmatmul.mubr.bf16.vlgmr.msra.gmra.mxu1 %v1475_v54  ;;  %1350 = vmatpush3.bf16.msra.mxu0 %v1632_v19 }
  0x95   :  { %1405 = vmatpush3.bf16.msra.mxu1 %v1725_v37  ;;  %1351 = vmatprep.subr.bf16.mxu0 %v1644_v21 }
  0x96   :  { %1406 = vmatprep.subr.bf16.mxu1 %v1484_v34  ;;  %1412 = vmatprep.mubr.msk.bf16.mxu1 %vm1485_vm0, %v1484_v34 }
  0x98   :  { %1352 = vmatpush3.bf16.msra.mxu0 %v1656_v23 }
  0x99   :  { %1407 = vmatpush3.bf16.msra.mxu1 %v1731_v38  ;;  %1353 = vmatprep.subr.bf16.mxu0 %v1668_v25 }
  0x9a   :  { %1408 = vmatprep.subr.bf16.mxu1 %v1484_v34 }
  0x9c   :  { %1354 = vmatpush3.bf16.msra.mxu0 %v1680_v27 }
  0x9d   :  { %1409 = vmatpush3.bf16.msra.mxu1 %v1745_v40  ;;  %1355 = vmatprep.subr.bf16.mxu0 %v1692_v29 }
  0x9e   :  { %1410 = vmatprep.subr.bf16.mxu1 %v1484_v34 }
  0xa0   :  { %1356 = vmatpush3.bf16.msra.mxu0 %v1704_v31 }
  0xa1   :  { %1411 = vmatpush3.bf16.msra.mxu1 %v1754_v41 }
  0xa3   :  { %899 = vmatmul.mubr.bf16.vlgmr.msra.gmra.mxu0 %v1478_v55 }
  0xa4   :  { %1413 = vmatmul.mubr.msk.bf16.vlgmr.msra.gmra.mxu1 %vm347_vm1, %v1481_v56 }
  0xe3   :  { %v1188_v57 = vpop.f32.mrf.mxu0 }
  0xe4   :  { %v1210_v58 = vpop.f32.mrf.mxu1 }
  0xe5   :  { %v1189_v60 = vpop.f32.mrf.mxu0 }
  0xe6   :  { %v1190_v61 = vadd.f32 %v1189_v60, %v1188_v57  ;;  %v1211_v62 = vpop.f32.mrf.mxu1 }
  0xe7   :  { %v1212_v63 = vadd.f32 %v1211_v62, %v1210_v58  ;;  %v1191_v0 = vpop.f32.mrf.mxu0 }
  0xe8   :  { %v386_v1 = vadd.f32 %v1190_v61, %v1931_v59  ;;  %v1213_v2 = vpop.f32.mrf.mxu1 }
  0xe9   :  { %v1192_v3 = vpop.f32.mrf.mxu0 }
  0xea   :  { %v1193_v4 = vadd.f32 %v1192_v3, %v1191_v0  ;;  %v1214_v5 = vpop.f32.mrf.mxu1  ;;  %v427_v6 = vadd.f32 %v1212_v63, %v386_v1 }
  0xeb   :  { %v1215_v7 = vadd.f32 %v1214_v5, %v1213_v2 }
  0xec   :  { %v389_v8 = vadd.f32 %v1193_v4, %v1931_v59 }
  0xee   :  { %v430_v9 = vadd.f32 %v1215_v7, %v389_v8 }
  0xf3   :  { %v467_v10 = vpop.f32.mrf.mxu0 }
  0xf4   :  { %v1935_v11 = vadd.f32 %v467_v10, %v427_v6 }
  0xf5   :  { %v1378_v12 = vpop.f32.mrf.mxu0 }
  0xf6   :  { %v987_v14 = vmul.f32 %v1935_v11, %v1935_v11  ;;  %v948_v17 = vsel %vm347_vm1, %v1935_v11, 0.0 }
  0xf7   :  { %v470_v13 = vpop.f32.mrf.mxu0 }
  0xf8   :  { %v1939_v15 = vadd.f32 %v470_v13, %v430_v9  ;;  %v989_v21 = vsel %vm347_vm1, %v987_v14, 0.0 }
  0xf9   :  { %v1379_v16 = vpop.f32.mrf.mxu0 }
  0xfa   :  { %v949_v18 = vsel %vm347_vm1, %v1939_v15, 0.0  ;;  %v988_v19 = vmul.f32 %v1939_v15, %v1939_v15 }
  0xfb   :  { %v950_v20 = vadd.f32 %v949_v18, %v948_v17 }
  0xfc   :  { %v990_v22 = vsel %vm347_vm1, %v988_v19, 0.0 }
  0xfd   :  { %v991_v23 = vadd.f32 %v990_v22, %v989_v21  ;;  %v951_v39 = vrot.slane %v950_v20, 4 }
  0xff   :  { %v992_v45 = vrot.slane %v991_v23, 4  ;;  %v952_v47 = vadd.f32 %v951_v39, %v950_v20 }
 0x101   :  { %v993_v50 = vadd.f32 %v992_v45, %v991_v23  ;;  %v953_v54 = vrot.slane %v952_v47, 2 }
 0x103   :  { %v994_v58 = vrot.slane %v993_v50, 2  ;;  %v954_v62 = vadd.f32 %v953_v54, %v952_v47 }
 0x104   :  { %v1237_v24 = vpop.f32.mrf.mxu1 }
 0x105   :  { %v995_v1 = vadd.f32 %v994_v58, %v993_v50  ;;  %v955_v4 = vrot.slane %v954_v62, 1 }
 0x106   :  { %v1238_v25 = vpop.f32.mrf.mxu1 }
 0x107   :  { %v1239_v26 = vadd.f32 %v1238_v25, %v1237_v24  ;;  %v996_v7 = vrot.slane %v995_v1, 1  ;;  %v956_v10 = vadd.f32 %v955_v4, %v954_v62 }
 0x108   :  { %v1240_v27 = vpop.f32.mrf.mxu1 }
 0x109   :  { %v544_v33 = vadd.f32 %v1239_v26, %v1931_v59  ;;  %v997_v14 = vadd.f32 %v996_v7, %v995_v1 }
 0x10a   :  { %v1241_v28 = vpop.f32.mrf.mxu1 }
 0x10b   :  { %v1242_v29 = vadd.f32 %v1241_v28, %v1240_v27 }
 0x10d   :  { %v547_v41 = vadd.f32 %v1242_v29, %v1931_v59 }
 0x113   :  { %v1259_v30 = vpop.f32.mrf.mxu0 }
 0x114   :  { %v625_v31 = vpop.f32.mrf.mxu1 }
 0x115   :  { %v1260_v32 = vpop.f32.mrf.mxu0 }
 0x116   :  { %v1261_v34 = vadd.f32 %v1260_v32, %v1259_v30  ;;  %v1390_v35 = vpop.f32.mrf.mxu1 }
 0x117   :  { %v1262_v36 = vpop.f32.mrf.mxu0 }
 0x118   :  { %v585_v37 = vadd.f32 %v1261_v34, %v544_v33  ;;  %v628_v38 = vpop.f32.mrf.mxu1 }
 0x119   :  { %v1263_v40 = vpop.f32.mrf.mxu0 }
 0x11a   :  { %v1951_v42 = vadd.f32 %v625_v31, %v585_v37  ;;  %v1264_v43 = vadd.f32 %v1263_v40, %v1262_v36  ;;  %v1391_v44 = vpop.f32.mrf.mxu1 }
 0x11c   :  { %v588_v46 = vadd.f32 %v1264_v43, %v547_v41  ;;  %v998_v48 = vmul.f32 %v1951_v42, %v1951_v42  ;;  %v957_v51 = vsel %vm347_vm1, %v1951_v42, 0.0 }
 0x11e   :  { %v1955_v49 = vadd.f32 %v628_v38, %v588_v46  ;;  %v1000_v56 = vsel %vm347_vm1, %v998_v48, 0.0 }
 0x120   :  { %v958_v52 = vsel %vm347_vm1, %v1955_v49, 0.0  ;;  %v999_v53 = vmul.f32 %v1955_v49, %v1955_v49 }
 0x121   :  { %v959_v55 = vadd.f32 %v958_v52, %v957_v51 }
 0x122   :  { %v1001_v57 = vsel %vm347_vm1, %v999_v53, 0.0 }
 0x123   :  { %v960_v60 = vrot.slane %v959_v55, 4  ;;  %v1002_v61 = vadd.f32 %v1001_v57, %v1000_v56 }
 0x125   :  { %v961_v63 = vadd.f32 %v960_v60, %v959_v55  ;;  %v1003_v0 = vrot.slane %v1002_v61, 4 }
 0x127   :  { %v962_v2 = vrot.slane %v961_v63, 2  ;;  %v1004_v3 = vadd.f32 %v1003_v0, %v1002_v61 }
 0x129   :  { %v963_v5 = vadd.f32 %v962_v2, %v961_v63  ;;  %v1005_v6 = vrot.slane %v1004_v3, 2 }
 0x12b   :  { %v964_v8 = vrot.slane %v963_v5, 1  ;;  %v1006_v9 = vadd.f32 %v1005_v6, %v1004_v3 }
 0x12d   :  { %v965_v12 = vadd.f32 %v964_v8, %v963_v5  ;;  %v1007_v13 = vrot.slane %v1006_v9, 1 }
 0x12f   :  { %v1008_v16 = vadd.f32 %v1007_v13, %v1006_v9  ;;  %v1965_v17 = vadd.f32 %v965_v12, %v956_v10 }
 0x131   :  { %v1967_v18 = vadd.f32 %v1008_v16, %v997_v14 }
 0x133   :  { %v1286_v19 = vpop.f32.mrf.mxu0 }
 0x134   :  { %v1308_v23 = vpop.f32.mrf.mxu1 }
 0x135   :  { %v1287_v20 = vpop.f32.mrf.mxu0 }
 0x136   :  { %v1309_v26 = vpop.f32.mrf.mxu1  ;;  %v1288_v32 = vadd.f32 %v1287_v20, %v1286_v19 }
 0x137   :  { %v1289_v21 = vpop.f32.mrf.mxu0  ;;  %v1310_v36 = vadd.f32 %v1309_v26, %v1308_v23 }
 0x138   :  { %v1311_v29 = vpop.f32.mrf.mxu1  ;;  %v702_v35 = vadd.f32 %v1288_v32, %v1931_v59 }
 0x139   :  { %v1290_v22 = vpop.f32.mrf.mxu0 }
 0x13a   :  { %v1291_v30 = vadd.f32 %v1290_v22, %v1289_v21  ;;  %v1312_v31 = vpop.f32.mrf.mxu1  ;;  %v743_v39 = vadd.f32 %v1310_v36, %v702_v35 }
 0x13b   :  { %v1313_v34 = vadd.f32 %v1312_v31, %v1311_v29 }
 0x13c   :  { %v705_v33 = vadd.f32 %v1291_v30, %v1931_v59 }
 0x13e   :  { %v746_v37 = vadd.f32 %v1313_v34, %v705_v33 }
 0x143   :  { %v783_v24 = vpop.f32.mrf.mxu0 }
 0x144   :  { %v1973_v41 = vadd.f32 %v783_v24, %v743_v39 }
 0x145   :  { %v1402_v25 = vpop.f32.mrf.mxu0 }
 0x146   :  { %v1010_v45 = vmul.f32 %v1973_v41, %v1973_v41  ;;  %v967_v48 = vsel %vm347_vm1, %v1973_v41, 0.0 }
 0x147   :  { %v786_v27 = vpop.f32.mrf.mxu0 }
 0x148   :  { %v1971_v40 = vadd.f32 %v786_v27, %v746_v37  ;;  %v1012_v52 = vsel %vm347_vm1, %v1010_v45, 0.0 }
 0x149   :  { %v1403_v28 = vpop.f32.mrf.mxu0 }
 0x14a   :  { %v1011_v44 = vmul.f32 %v1971_v40, %v1971_v40  ;;  %v968_v46 = vsel %vm347_vm1, %v1971_v40, 0.0 }
 0x14b   :  { %v969_v51 = vadd.f32 %v968_v46, %v967_v48 }
 0x14c   :  { %v1013_v50 = vsel %vm347_vm1, %v1011_v44, 0.0 }
 0x14d   :  { %v1014_v55 = vadd.f32 %v1013_v50, %v1012_v52  ;;  %v970_v58 = vrot.slane %v969_v51, 4 }
 0x14f   :  { %v1015_v1 = vrot.slane %v1014_v55, 4  ;;  %v971_v5 = vadd.f32 %v970_v58, %v969_v51  ;;  %v1046_v58 = vlaneseq }
 0x151   :  { %v1016_v12 = vadd.f32 %v1015_v1, %v1014_v55  ;;  %v972_v14 = vrot.slane %v971_v5, 2 }
 0x153   :  { %v1017_v20 = vrot.slane %v1016_v12, 2  ;;  %v973_v24 = vadd.f32 %v972_v14, %v971_v5 }
 0x154   :  { %v1335_v38 = vpop.f32.mrf.mxu1 }
 0x155   :  { %v1018_v27 = vadd.f32 %v1017_v20, %v1016_v12  ;;  %v974_v30 = vrot.slane %v973_v24, 1 }
 0x156   :  { %v1336_v43 = vpop.f32.mrf.mxu1 }
 0x157   :  { %v1337_v53 = vadd.f32 %v1336_v43, %v1335_v38  ;;  %v1019_v33 = vrot.slane %v1018_v27, 1  ;;  %v975_v36 = vadd.f32 %v974_v30, %v973_v24 }
 0x158   :  { %v1338_v47 = vpop.f32.mrf.mxu1 }
 0x159   :  { %v860_v61 = vadd.f32 %v1337_v53, %v1931_v59  ;;  %v1020_v39 = vadd.f32 %v1019_v33, %v1018_v27  ;;  %v976_v45 = vadd.f32 %v975_v36, %v1965_v17 }
 0x15a   :  { %v1339_v54 = vpop.f32.mrf.mxu1 }
 0x15b   :  { %v1340_v62 = vadd.f32 %v1339_v54, %v1338_v47  ;;  %v1021_v48 = vadd.f32 %v1020_v39, %v1967_v18  ;;  %v1042_v18 = vld [vmem:[%s2023_s4] sm:$0x1] }
 0x15d   :  { %v863_v7 = vadd.f32 %v1340_v62, %v1931_v59 }
 0x163   :  { %v1357_v56 = vpop.f32.mrf.mxu0 }
 0x164   :  { %v941_v57 = vpop.f32.mrf.mxu1 }
 0x165   :  { %v1358_v60 = vpop.f32.mrf.mxu0 }
 0x166   :  { %v1359_v63 = vadd.f32 %v1358_v60, %v1357_v56  ;;  %v1414_v0 = vpop.f32.mrf.mxu1  ;;  %v1047_v60 = vshrl.u32 %v1046_v58, 7 }
 0x167   :  { %v1360_v2 = vpop.f32.mrf.mxu0 }
 0x168   :  { %v901_v3 = vadd.f32 %v1359_v63, %v860_v61  ;;  %v944_v4 = vpop.f32.mrf.mxu1  ;;  %v1038_v61 = vld [vmem:[%s2022_s3] sm:$0x1]  ;;  %v1048_v17 = vsub.s32 0, %v1047_v60 }
 0x169   :  { %v1361_v6 = vpop.f32.mrf.mxu0 }
 0x16a   :  { %v1987_v8 = vadd.f32 %v941_v57, %v901_v3  ;;  %v1362_v9 = vadd.f32 %v1361_v6, %v1360_v2  ;;  %v1415_v10 = vpop.f32.mrf.mxu1 }
 0x16c   :  { %v904_v13 = vadd.f32 %v1362_v9, %v863_v7  ;;  %v1022_v16 = vmul.f32 %v1987_v8, %v1987_v8  ;;  %v977_v21 = vsel %vm347_vm1, %v1987_v8, 0.0 }
 0x16e   :  { %v945_v19 = vadd.f32 %v944_v4, %v904_v13  ;;  %v1024_v25 = vsel %vm347_vm1, %v1022_v16, 0.0 }
 0x170   :  { %v978_v22 = vsel %vm347_vm1, %v945_v19, 0.0  ;;  %v1023_v23 = vmul.f32 %v945_v19, %v945_v19 }
 0x171   :  { %v979_v59 = vadd.f32 %v978_v22, %v977_v21 }
 0x172   :  { %v1025_v26 = vsel %vm347_vm1, %v1023_v23, 0.0 }
 0x173   :  { %v980_v28 = vrot.slane %v979_v59, 4  ;;  %v1026_v29 = vadd.f32 %v1025_v26, %v1024_v25 }
 0x175   :  { %v981_v31 = vadd.f32 %v980_v28, %v979_v59  ;;  %v1027_v32 = vrot.slane %v1026_v29, 4 }
 0x177   :  { %v982_v34 = vrot.slane %v981_v31, 2  ;;  %v1028_v35 = vadd.f32 %v1027_v32, %v1026_v29 }
 0x179   :  { %v983_v37 = vadd.f32 %v982_v34, %v981_v31  ;;  %v1029_v38 = vrot.slane %v1028_v35, 2 }
 0x17b   :  { %v984_v43 = vrot.slane %v983_v37, 1  ;;  %v1030_v44 = vadd.f32 %v1029_v38, %v1028_v35 }
 0x17d   :  { %v985_v46 = vadd.f32 %v984_v43, %v983_v37  ;;  %v1031_v47 = vrot.slane %v1030_v44, 1 }
 0x17f   :  { %v986_v50 = vadd.f32 %v985_v46, %v976_v45  ;;  %v1032_v51 = vadd.f32 %v1031_v47, %v1030_v44 }
 0x181   :  { %v1033_v52 = vadd.f32 %v1032_v51, %v1021_v48  ;;  %v1034_v53 = vmul.f32 0.015625, %v986_v50 }
 0x183   :  { %v1035_v54 = vmul.f32 0.015625, %v1033_v52  ;;  %v1036_v55 = vmul.f32 %v1034_v53, %v1034_v53 }
 0x185   :  { %v1037_v56 = vsub.f32 %v1035_v54, %v1036_v55 }
 0x187   :  { %v1039_v57 = vadd.f32 1e-05, %v1037_v56 }
 0x189   :  { %1482 = vrsqrt.f32 %v1039_v57 }
 0x196   :  { %v1483_v62 = vpop.eup %1482 }
 0x197   :  { %v1041_v63 = vmul.f32 %v1483_v62, %v1038_v61 }
 0x199   :  { %v1043_v0 = vmul.f32 %v1041_v63, %v1034_v53  ;;  %v1049_v1 = vrot.slane %v1041_v63, %v1048_v17 }
 0x19b   :  { %v1044_v2 = vsub.f32 %v1042_v18, %v1043_v0  ;;  %v1051_v3 = vmul.f32 %v1049_v1, %v1935_v11  ;;  %v1052_v4 = vmul.f32 %v1049_v1, %v1939_v15  ;;  %v1063_v5 = vmul.f32 %v1049_v1, %v1951_v42 }
 0x19c   :  { %v1064_v6 = vmul.f32 %v1049_v1, %v1955_v49  ;;  %v1069_v9 = vmul.f32 %v1049_v1, %v1973_v41  ;;  %v1070_v10 = vmul.f32 %v1049_v1, %v1971_v40  ;;  %v1075_v12 = vmul.f32 %v1049_v1, %v1987_v8 }
 0x19d   :  { %v1057_v7 = vrot.slane %v1044_v2, %v1048_v17  ;;  %v1076_v13 = vmul.f32 %v1049_v1, %v945_v19 }
 0x19f   :  { %v1059_v14 = vadd.f32 %v1057_v7, %v1051_v3  ;;  %v1060_v16 = vadd.f32 %v1057_v7, %v1052_v4  ;;  %v1065_v20 = vadd.f32 %v1063_v5, %v1057_v7  ;;  %v1066_v21 = vadd.f32 %v1064_v6, %v1057_v7 }
 0x1a0   :  { %v1071_v22 = vadd.f32 %v1069_v9, %v1057_v7  ;;  %v1072_v11 = vadd.f32 %v1070_v10, %v1057_v7  ;;  %v1077_v23 = vadd.f32 %v1075_v12, %v1057_v7  ;;  %v1078_v15 = vadd.f32 %v1076_v13, %v1057_v7 }
 0x1a1   :  { %v1061_v24 = vmax.f32 %v1059_v14, 0.0  ;;  %v1062_v42 = vmax.f32 %v1060_v16, 0.0  ;;  %v1067_v59 = vmax.f32 %v1065_v20, 0.0  ;;  %v1068_v49 = vmax.f32 %v1066_v21, 0.0 }
 0x1a2   :  { %v1073_v25 = vmax.f32 %v1071_v22, 0.0  ;;  %v1074_v26 = vmax.f32 %v1072_v11, 0.0  ;;  %v1079_v41 = vmax.f32 %v1077_v23, 0.0  ;;  %v1080_v27 = vmax.f32 %v1078_v15, 0.0 }
 0x1a3   :  { %v1081_v40 = vmax.f32 %v1061_v24, %v1067_v59  ;;  %v1082_v28 = vmax.f32 %v1062_v42, %v1068_v49 }
 0x1a4   :  { %v1083_v8 = vmax.f32 %v1073_v25, %v1079_v41  ;;  %v1084_v19 = vmax.f32 %v1074_v26, %v1080_v27 }
 0x1a6   :  { %v1085_v29 = vmax.f32 %v1081_v40, %v1083_v8  ;;  %v1086_v30 = vmax.f32 %v1082_v28, %v1084_v19 }
 0x1a8   :  { %1087 = vst.msk [vmem:[%s2024_s5] sm:$0xff] %vm347_vm1, %v1085_v29  ;;  %1088 = vst.msk [vmem:[%s2024_s5 + $0x8] sm:$0xff] %vm347_vm1, %v1086_v30 }

// kernel: encoder.7
= control target key start
LH: loop header
LB: loop body
LE: loop exit
PB: predicated region body
PF: predicated region fallthrough
CT: control target
= control target key end

     0   :  { %v109_v29 = vlaneseq  ;;  %v1424_v35 = vmov 1983009808   ;;  %v1425_v37 = vmov 0.0   ;;  %s1899_s0 = inlined_call_operand.vmem [shape: bf16[4,4,576], index: 0, kind: input, shape index: {}]   ;;  %s1900_s1 = inlined_call_operand.vmem [shape: bf16[576,64], index: 1, kind: input, shape index: {}]   ;;  %s1901_s2 = inlined_call_operand.vmem [shape: f32[1,64], index: 2, kind: input, shape index: {}]   ;;  %s1902_s3 = inlined_call_operand.vmem [shape: f32[1,64], index: 3, kind: input, shape index: {}]   ;;  %s1903_s4 = inlined_call_operand.vmem [shape: f32[1,64], index: 4, kind: input, shape index: {}]   ;;  %s1904_s5 = inlined_call_operand.hbm [shape: f32[4,64], index: 5, kind: output, shape index: {}]  }
   0x1   :  { %v1461_v0 = vld [vmem:[%s1900_s1 + $0x78] sm:$0xff]   ;;  %v1484_v4 = vld [vmem:[%s1900_s1 + $0x70] sm:$0xff]   ;;  %v1508_v8 = vld [vmem:[%s1900_s1 + $0x68] sm:$0xff]   ;;  %v107_v36 = vunpack.c.l.s4 %v1424_v35 }
   0x2   :  { %v1466_v1 = vld [vmem:[%s1900_s1 + $0xf8] sm:$0xff]   ;;  %1112 = vmatprep.subr.bf16.mxu0 %v1461_v0  ;;  %v1490_v5 = vld [vmem:[%s1900_s1 + $0xf0] sm:$0xff]   ;;  %v1514_v9 = vld [vmem:[%s1900_s1 + $0xe8] sm:$0xff]   ;;  %v1652_v34 = vshrl.u32 %v109_v29, 7 }
   0x3   :  { %v1472_v2 = vld [vmem:[%s1900_s1 + $0x38] sm:$0xff]   ;;  %1134 = vmatprep.subr.bf16.mxu1 %v1466_v1  ;;  %v1496_v6 = vld [vmem:[%s1900_s1 + $0x30] sm:$0xff]   ;;  %v1520_v10 = vld [vmem:[%s1900_s1 + $0x28] sm:$0xff]   ;;  %v108_v38 = vunpack.c.0.s8 %v107_v36 }
   0x4   :  { %v1478_v3 = vld [vmem:[%s1900_s1 + $0xb8] sm:$0xff]   ;;  %1113 = vmatpush3.bf16.msra.mxu0 %v1472_v2  ;;  %v1502_v7 = vld [vmem:[%s1900_s1 + $0xb0] sm:$0xff]   ;;  %v1526_v11 = vld [vmem:[%s1900_s1 + $0xa8] sm:$0xff]  }
   0x5   :  { %1135 = vmatpush3.bf16.msra.mxu1 %v1478_v3  ;;  %1114 = vmatprep.subr.bf16.mxu0 %v1484_v4  ;;  %v1532_v12 = vld [vmem:[%s1900_s1 + $0x60] sm:$0xff]   ;;  %v1556_v16 = vld [vmem:[%s1900_s1 + $0x58] sm:$0xff]   ;;  %v1580_v20 = vld [vmem:[%s1900_s1 + $0x50] sm:$0xff]   ;;  %v1661_v41 = vsub.s32 %v108_v38, %v1652_v34 }
   0x6   :  { %1136 = vmatprep.subr.bf16.mxu1 %v1490_v5  ;;  %v1538_v13 = vld [vmem:[%s1900_s1 + $0xe0] sm:$0xff]   ;;  %v1562_v17 = vld [vmem:[%s1900_s1 + $0xd8] sm:$0xff]   ;;  %v1586_v21 = vld [vmem:[%s1900_s1 + $0xd0] sm:$0xff]  }
   0x7   :  { %v1544_v14 = vld [vmem:[%s1900_s1 + $0x20] sm:$0xff]   ;;  %v1568_v18 = vld [vmem:[%s1900_s1 + $0x18] sm:$0xff]   ;;  %v1592_v22 = vld [vmem:[%s1900_s1 + $0x10] sm:$0xff]  }
   0x8   :  { %1115 = vmatpush3.bf16.msra.mxu0 %v1496_v6  ;;  %v1550_v15 = vld [vmem:[%s1900_s1 + $0xa0] sm:$0xff]   ;;  %v1574_v19 = vld [vmem:[%s1900_s1 + $0x98] sm:$0xff]   ;;  %v1598_v23 = vld [vmem:[%s1900_s1 + $0x90] sm:$0xff]  }
   0x9   :  { %1137 = vmatpush3.bf16.msra.mxu1 %v1502_v7  ;;  %1116 = vmatprep.subr.bf16.mxu0 %v1508_v8  ;;  %v1604_v24 = vld [vmem:[%s1900_s1 + $0x48] sm:$0xff]   ;;  %v1628_v28 = vld [vmem:[%s1900_s1 + $0x40] sm:$0xff]  }
   0xa   :  { %1138 = vmatprep.subr.bf16.mxu1 %v1514_v9  ;;  %v1610_v25 = vld [vmem:[%s1900_s1 + $0xc8] sm:$0xff]   ;;  %v1634_v30 = vld [vmem:[%s1900_s1 + $0xc0] sm:$0xff]  }
   0xb   :  { %v1616_v26 = vld [vmem:[%s1900_s1 + $0x8] sm:$0xff]   ;;  %v1640_v31 = vld [vmem:[%s1900_s1] sm:$0xff]  }
   0xc   :  { %1117 = vmatpush3.bf16.msra.mxu0 %v1520_v10  ;;  %v1622_v27 = vld [vmem:[%s1900_s1 + $0x88] sm:$0xff]   ;;  %v1646_v32 = vld [vmem:[%s1900_s1 + $0x80] sm:$0xff]  }
   0xd   :  { %1139 = vmatpush3.bf16.msra.mxu1 %v1526_v11  ;;  %1118 = vmatprep.subr.bf16.mxu0 %v1532_v12  ;;  %v95_v33 = vld [vmem:[%s1899_s0] sm:$0xff]  ;;  %v1100_v40 = vld [vmem:[%s1899_s0 + $0xa] sm:$0xff] }
   0xe   :  { %1140 = vmatprep.subr.bf16.mxu1 %v1538_v13  ;;  %v105_v39 = vcombine.high %v95_v33, %v95_v33 }
  0x10   :  { %1119 = vmatpush3.bf16.msra.mxu0 %v1544_v14 }
  0x11   :  { %1141 = vmatpush3.bf16.msra.mxu1 %v1550_v15  ;;  %1120 = vmatprep.subr.bf16.mxu0 %v1556_v16 }
  0x12   :  { %1142 = vmatprep.subr.bf16.mxu1 %v1562_v17 }
  0x14   :  { %1121 = vmatpush3.bf16.msra.mxu0 %v1568_v18 }
  0x15   :  { %1143 = vmatpush3.bf16.msra.mxu1 %v1574_v19  ;;  %1122 = vmatprep.subr.bf16.mxu0 %v1580_v20 }
  0x16   :  { %1144 = vmatprep.subr.bf16.mxu1 %v1586_v21 }
  0x18   :  { %1123 = vmatpush3.bf16.msra.mxu0 %v1592_v22 }
  0x19   :  { %1145 = vmatpush3.bf16.msra.mxu1 %v1598_v23  ;;  %1124 = vmatprep.subr.bf16.mxu0 %v1604_v24 }
  0x1a   :  { %1146 = vmatprep.subr.bf16.mxu1 %v1610_v25 }
  0x1c   :  { %1125 = vmatpush3.bf16.msra.mxu0 %v1616_v26 }
  0x1d   :  { %1147 = vmatpush3.bf16.msra.mxu1 %v1622_v27  ;;  %1126 = vmatprep.subr.bf16.mxu0 %v1628_v28 }
  0x1e   :  { %1148 = vmatprep.subr.bf16.mxu1 %v1634_v30 }
  0x20   :  { %1127 = vmatpush3.bf16.msra.mxu0 %v1640_v31 }
  0x21   :  { %1149 = vmatpush3.bf16.msra.mxu1 %v1646_v32  ;;  %1308 = vmatprep.subr.bf16.mxu0 %v1425_v37 }
  0x22   :  { %1161 = vmatprep.subr.bf16.mxu1 %v1461_v0 }
  0x23   :  { %10 = vsyncpa [#allocation3], 0  ;;  %v112_v42 = vrot.slane %v95_v33, %v1661_v41  ;;  %v119_v43 = vrot.slane %v105_v39, %v1661_v41  ;;  %v485_v44 = vrot.slane %v1100_v40, %v1661_v41  ;;  %v1669_v47 = vld [vmem:[%s1900_s1 + $0x118] sm:$0xff]   ;;  %v1676_v49 = vld [vmem:[%s1900_s1 + $0x110] sm:$0xff]   ;;  %vm1426_vm0 = vmmov 0  }
  0x24   :  { %v1687_v50 = vld [vmem:[%s1900_s1 + $0x108] sm:$0xff]   ;;  %v478_v51 = vcombine.high %v1100_v40, %v1100_v40  ;;  %v1696_v52 = vld [vmem:[%s1900_s1 + $0x100] sm:$0xff]   ;;  %vm349_vm1 = vcmask 523264   ;;  %v1104_v56 = vld [vmem:[%s1899_s0 + $0x14] sm:$0xff]  ;;  %vm941_vm2 = vcmask 519168  }
  0x25   :  { %v120_v45 = vcombine.high %v112_v42, %v112_v42  ;;  %v121_v46 = vcombine.high %v119_v43, %v119_v43  ;;  %v493_v48 = vcombine.high %v485_v44, %v485_v44  ;;  %v1062_v54 = vld.sshfl [vmem:[%s1899_s0 + $0x8] sm:$0x3 pattern:$0x76325410]  ;;  %v634_v57 = vcombine.high %v1104_v56, %v1104_v56  ;;  %v1108_v63 = vld [vmem:[%s1899_s0 + $0x1e] sm:$0xff] }
  0x26   :  { %v492_v53 = vrot.slane %v478_v51, %v1661_v41  ;;  %v641_v58 = vrot.slane %v1104_v56, %v1661_v41  ;;  %v1102_v60 = vld.sshfl [vmem:[%s1899_s0 + $0x12] sm:$0x3 pattern:$0x76325410]  ;;  %v797_v29 = vrot.slane %v1108_v63, %v1661_v41 }
  0x27   :  { %385 = vmatprep.mubr.bf16.mxu0 %v120_v45  ;;  %425 = vmatprep.mubr.bf16.mxu1 %v121_v46  ;;  %v648_v59 = vrot.slane %v634_v57, %v1661_v41 }
  0x28   :  { %386 = vmatmul.mubr.bf16.vlgmr.msra.gmra.mxu0 %v112_v42  ;;  %426 = vmatmul.mubr.bf16.vlgmr.msra.gmra.mxu1 %v119_v43  ;;  %v494_v55 = vcombine.high %v492_v53, %v492_v53  ;;  %v649_v61 = vcombine.high %v641_v58, %v641_v58  ;;  %v805_v33 = vcombine.high %v797_v29, %v797_v29 }
  0x29   :  { %1309 = vmatpush3.bf16.msra.mxu0 %v1669_v47  ;;  %1162 = vmatpush3.bf16.msra.mxu1 %v1472_v2  ;;  %v650_v62 = vcombine.high %v648_v59, %v648_v59 }
  0x2a   :  { %1310 = vmatprep.subr.bf16.mxu0 %v1425_v37  ;;  %1163 = vmatprep.subr.bf16.mxu1 %v1484_v4 }
  0x2b   :  { %1316 = vmatprep.mubr.msk.bf16.mxu0 %vm1426_vm0, %v1425_v37  ;;  %541 = vmatprep.mubr.bf16.mxu1 %v493_v48 }
  0x2d   :  { %1311 = vmatpush3.bf16.msra.mxu0 %v1676_v49  ;;  %1164 = vmatpush3.bf16.msra.mxu1 %v1496_v6 }
  0x2e   :  { %1312 = vmatprep.subr.bf16.mxu0 %v1425_v37  ;;  %1165 = vmatprep.subr.bf16.mxu1 %v1508_v8 }
  0x31   :  { %1313 = vmatpush3.bf16.msra.mxu0 %v1687_v50  ;;  %1166 = vmatpush3.bf16.msra.mxu1 %v1520_v10 }
  0x32   :  { %1314 = vmatprep.subr.bf16.mxu0 %v1425_v37  ;;  %1167 = vmatprep.subr.bf16.mxu1 %v1532_v12 }
  0x35   :  { %1315 = vmatpush3.bf16.msra.mxu0 %v1696_v52  ;;  %1168 = vmatpush3.bf16.msra.mxu1 %v1544_v14 }
  0x36   :  { %1169 = vmatprep.subr.bf16.mxu1 %v1556_v16  ;;  %1183 = vmatprep.subr.bf16.mxu0 %v1466_v1 }
  0x38   :  { %1317 = vmatmul.mubr.msk.bf16.vlgmr.msra.gmra.mxu0 %vm349_vm1, %v1062_v54 }
  0x39   :  { %1170 = vmatpush3.bf16.msra.mxu1 %v1568_v18  ;;  %1184 = vmatpush3.bf16.msra.mxu0 %v1478_v3 }
  0x3a   :  { %1171 = vmatprep.subr.bf16.mxu1 %v1580_v20  ;;  %1185 = vmatprep.subr.bf16.mxu0 %v1490_v5 }
  0x3b   :  { %581 = vmatprep.mubr.bf16.mxu0 %v494_v55 }
  0x3d   :  { %1172 = vmatpush3.bf16.msra.mxu1 %v1592_v22  ;;  %1186 = vmatpush3.bf16.msra.mxu0 %v1502_v7 }
  0x3e   :  { %1173 = vmatprep.subr.bf16.mxu1 %v1604_v24  ;;  %1187 = vmatprep.subr.bf16.mxu0 %v1514_v9 }
  0x41   :  { %1174 = vmatpush3.bf16.msra.mxu1 %v1616_v26  ;;  %1188 = vmatpush3.bf16.msra.mxu0 %v1526_v11 }
  0x42   :  { %1175 = vmatprep.subr.bf16.mxu1 %v1628_v28  ;;  %1189 = vmatprep.subr.bf16.mxu0 %v1538_v13 }
  0x45   :  { %1176 = vmatpush3.bf16.msra.mxu1 %v1640_v31  ;;  %1190 = vmatpush3.bf16.msra.mxu0 %v1550_v15 }
  0x46   :  { %1191 = vmatprep.subr.bf16.mxu0 %v1562_v17  ;;  %1320 = vmatprep.subr.bf16.mxu1 %v1425_v37 }
  0x48   :  { %542 = vmatmul.mubr.bf16.vlgmr.msra.gmra.mxu1 %v485_v44 }
  0x49   :  { %1192 = vmatpush3.bf16.msra.mxu0 %v1574_v19  ;;  %1321 = vmatpush3.bf16.msra.mxu1 %v1669_v47 }
  0x4a   :  { %1193 = vmatprep.subr.bf16.mxu0 %v1586_v21  ;;  %1322 = vmatprep.subr.bf16.mxu1 %v1425_v37 }
  0x4b   :  { %1328 = vmatprep.mubr.msk.bf16.mxu1 %vm1426_vm0, %v1425_v37 }
  0x4d   :  { %1194 = vmatpush3.bf16.msra.mxu0 %v1598_v23  ;;  %1323 = vmatpush3.bf16.msra.mxu1 %v1676_v49 }
  0x4e   :  { %1195 = vmatprep.subr.bf16.mxu0 %v1610_v25  ;;  %1324 = vmatprep.subr.bf16.mxu1 %v1425_v37 }
  0x51   :  { %1196 = vmatpush3.bf16.msra.mxu0 %v1622_v27  ;;  %1325 = vmatpush3.bf16.msra.mxu1 %v1687_v50 }
  0x52   :  { %1197 = vmatprep.subr.bf16.mxu0 %v1634_v30  ;;  %1326 = vmatprep.subr.bf16.mxu1 %v1425_v37 }
  0x55   :  { %1198 = vmatpush3.bf16.msra.mxu0 %v1646_v32  ;;  %1327 = vmatpush3.bf16.msra.mxu1 %v1696_v52 }
  0x56   :  { %1210 = vmatprep.subr.bf16.mxu0 %v1461_v0  ;;  %1232 = vmatprep.subr.bf16.mxu1 %v1466_v1 }
  0x58   :  { %582 = vmatmul.mubr.bf16.vlgmr.msra.gmra.mxu0 %v492_v53  ;;  %1329 = vmatmul.mubr.msk.bf16.vlgmr.msra.gmra.mxu1 %vm349_vm1, %v1102_v60 }
  0x59   :  { %1211 = vmatpush3.bf16.msra.mxu0 %v1472_v2  ;;  %1233 = vmatpush3.bf16.msra.mxu1 %v1478_v3 }
  0x5a   :  { %1212 = vmatprep.subr.bf16.mxu0 %v1484_v4  ;;  %1234 = vmatprep.subr.bf16.mxu1 %v1490_v5 }
  0x5b   :  { %697 = vmatprep.mubr.bf16.mxu0 %v649_v61  ;;  %737 = vmatprep.mubr.bf16.mxu1 %v650_v62 }
  0x5d   :  { %1213 = vmatpush3.bf16.msra.mxu0 %v1496_v6  ;;  %1235 = vmatpush3.bf16.msra.mxu1 %v1502_v7 }
  0x5e   :  { %1214 = vmatprep.subr.bf16.mxu0 %v1508_v8  ;;  %1236 = vmatprep.subr.bf16.mxu1 %v1514_v9 }
  0x61   :  { %1215 = vmatpush3.bf16.msra.mxu0 %v1520_v10  ;;  %1237 = vmatpush3.bf16.msra.mxu1 %v1526_v11 }
  0x62   :  { %1216 = vmatprep.subr.bf16.mxu0 %v1532_v12  ;;  %1238 = vmatprep.subr.bf16.mxu1 %v1538_v13 }
  0x65   :  { %1217 = vmatpush3.bf16.msra.mxu0 %v1544_v14  ;;  %1239 = vmatpush3.bf16.msra.mxu1 %v1550_v15 }
  0x66   :  { %1218 = vmatprep.subr.bf16.mxu0 %v1556_v16  ;;  %1240 = vmatprep.subr.bf16.mxu1 %v1562_v17 }
  0x69   :  { %1219 = vmatpush3.bf16.msra.mxu0 %v1568_v18  ;;  %1241 = vmatpush3.bf16.msra.mxu1 %v1574_v19 }
  0x6a   :  { %1220 = vmatprep.subr.bf16.mxu0 %v1580_v20  ;;  %1242 = vmatprep.subr.bf16.mxu1 %v1586_v21 }
  0x6d   :  { %1221 = vmatpush3.bf16.msra.mxu0 %v1592_v22  ;;  %1243 = vmatpush3.bf16.msra.mxu1 %v1598_v23 }
  0x6e   :  { %1222 = vmatprep.subr.bf16.mxu0 %v1604_v24  ;;  %1244 = vmatprep.subr.bf16.mxu1 %v1610_v25 }
  0x71   :  { %1223 = vmatpush3.bf16.msra.mxu0 %v1616_v26  ;;  %1245 = vmatpush3.bf16.msra.mxu1 %v1622_v27 }
  0x72   :  { %1224 = vmatprep.subr.bf16.mxu0 %v1628_v28  ;;  %1246 = vmatprep.subr.bf16.mxu1 %v1634_v30 }
  0x75   :  { %1225 = vmatpush3.bf16.msra.mxu0 %v1640_v31  ;;  %1247 = vmatpush3.bf16.msra.mxu1 %v1646_v32 }
  0x76   :  { %1332 = vmatprep.subr.bf16.mxu0 %v1425_v37  ;;  %1259 = vmatprep.subr.bf16.mxu1 %v1461_v0  ;;  %v790_v0 = vcombine.high %v1108_v63, %v1108_v63 }
  0x78   :  { %698 = vmatmul.mubr.bf16.vlgmr.msra.gmra.mxu0 %v641_v58  ;;  %738 = vmatmul.mubr.bf16.vlgmr.msra.gmra.mxu1 %v648_v59 }
  0x79   :  { %1333 = vmatpush3.bf16.msra.mxu0 %v1669_v47  ;;  %1260 = vmatpush3.bf16.msra.mxu1 %v1472_v2  ;;  %v804_v2 = vrot.slane %v790_v0, %v1661_v41 }
  0x7a   :  { %1334 = vmatprep.subr.bf16.mxu0 %v1425_v37  ;;  %1261 = vmatprep.subr.bf16.mxu1 %v1484_v4  ;;  %v1106_v4 = vld.sshfl [vmem:[%s1899_s0 + $0x1c] sm:$0x3 pattern:$0x76325410] }
  0x7b   :  { %1340 = vmatprep.mubr.msk.bf16.mxu0 %vm1426_vm0, %v1425_v37  ;;  %853 = vmatprep.mubr.bf16.mxu1 %v805_v33 }
  0x7d   :  { %1335 = vmatpush3.bf16.msra.mxu0 %v1676_v49  ;;  %1262 = vmatpush3.bf16.msra.mxu1 %v1496_v6  ;;  %v806_v6 = vcombine.high %v804_v2, %v804_v2 }
  0x7e   :  { %1336 = vmatprep.subr.bf16.mxu0 %v1425_v37  ;;  %1263 = vmatprep.subr.bf16.mxu1 %v1508_v8 }
  0x81   :  { %1337 = vmatpush3.bf16.msra.mxu0 %v1687_v50  ;;  %1264 = vmatpush3.bf16.msra.mxu1 %v1520_v10 }
  0x82   :  { %1338 = vmatprep.subr.bf16.mxu0 %v1425_v37  ;;  %1265 = vmatprep.subr.bf16.mxu1 %v1532_v12 }
  0x85   :  { %1339 = vmatpush3.bf16.msra.mxu0 %v1696_v52  ;;  %1266 = vmatpush3.bf16.msra.mxu1 %v1544_v14 }
  0x86   :  { %1267 = vmatprep.subr.bf16.mxu1 %v1556_v16  ;;  %1281 = vmatprep.subr.bf16.mxu0 %v1466_v1  ;;  %v1110_v1 = vld.sshfl [vmem:[%s1899_s0 + $0x26] sm:$0x3 pattern:$0x76325410] }
  0x88   :  { %1341 = vmatmul.mubr.msk.bf16.vlgmr.msra.gmra.mxu0 %vm349_vm1, %v1106_v4 }
  0x89   :  { %1268 = vmatpush3.bf16.msra.mxu1 %v1568_v18  ;;  %1282 = vmatpush3.bf16.msra.mxu0 %v1478_v3 }
  0x8a   :  { %1269 = vmatprep.subr.bf16.mxu1 %v1580_v20  ;;  %1283 = vmatprep.subr.bf16.mxu0 %v1490_v5 }
  0x8b   :  { %893 = vmatprep.mubr.bf16.mxu0 %v806_v6 }
  0x8d   :  { %1270 = vmatpush3.bf16.msra.mxu1 %v1592_v22  ;;  %1284 = vmatpush3.bf16.msra.mxu0 %v1502_v7  ;;  %v1850_v7 = vld [vmem:[%s1901_s2] ss:$0 sm:$0xff] }
  0x8e   :  { %1271 = vmatprep.subr.bf16.mxu1 %v1604_v24  ;;  %1285 = vmatprep.subr.bf16.mxu0 %v1514_v9 }
  0x91   :  { %1272 = vmatpush3.bf16.msra.mxu1 %v1616_v26  ;;  %1286 = vmatpush3.bf16.msra.mxu0 %v1526_v11 }
  0x92   :  { %1273 = vmatprep.subr.bf16.mxu1 %v1628_v28  ;;  %1287 = vmatprep.subr.bf16.mxu0 %v1538_v13 }
  0x95   :  { %1274 = vmatpush3.bf16.msra.mxu1 %v1640_v31  ;;  %1288 = vmatpush3.bf16.msra.mxu0 %v1550_v15 }
  0x96   :  { %1289 = vmatprep.subr.bf16.mxu0 %v1562_v17  ;;  %1344 = vmatprep.subr.bf16.mxu1 %v1425_v37 }
  0x98   :  { %854 = vmatmul.mubr.bf16.vlgmr.msra.gmra.mxu1 %v797_v29 }
  0x99   :  { %1290 = vmatpush3.bf16.msra.mxu0 %v1574_v19  ;;  %1345 = vmatpush3.bf16.msra.mxu1 %v1669_v47 }
  0x9a   :  { %1291 = vmatprep.subr.bf16.mxu0 %v1586_v21  ;;  %1346 = vmatprep.subr.bf16.mxu1 %v1425_v37 }
  0x9b   :  { %1352 = vmatprep.mubr.msk.bf16.mxu1 %vm1426_vm0, %v1425_v37 }
  0x9d   :  { %1292 = vmatpush3.bf16.msra.mxu0 %v1598_v23  ;;  %1347 = vmatpush3.bf16.msra.mxu1 %v1676_v49 }
  0x9e   :  { %1293 = vmatprep.subr.bf16.mxu0 %v1610_v25  ;;  %1348 = vmatprep.subr.bf16.mxu1 %v1425_v37 }
  0xa1   :  { %1294 = vmatpush3.bf16.msra.mxu0 %v1622_v27  ;;  %1349 = vmatpush3.bf16.msra.mxu1 %v1687_v50 }
  0xa2   :  { %1295 = vmatprep.subr.bf16.mxu0 %v1634_v30  ;;  %1350 = vmatprep.subr.bf16.mxu1 %v1425_v37 }
  0xa5   :  { %1296 = vmatpush3.bf16.msra.mxu0 %v1646_v32  ;;  %1351 = vmatpush3.bf16.msra.mxu1 %v1696_v52 }
  0xa8   :  { %894 = vmatmul.mubr.bf16.vlgmr.msra.gmra.mxu0 %v804_v2  ;;  %1353 = vmatmul.mubr.msk.bf16.vlgmr.msra.gmra.mxu1 %vm349_vm1, %v1110_v1 }
  0xe8   :  { %v1128_v3 = vpop.f32.mrf.mxu0  ;;  %v1150_v5 = vpop.f32.mrf.mxu1 }
  0xea   :  { %v1129_v8 = vpop.f32.mrf.mxu0  ;;  %v1151_v9 = vpop.f32.mrf.mxu1 }
  0xeb   :  { %v1130_v10 = vadd.f32 %v1129_v8, %v1128_v3  ;;  %v1152_v11 = vadd.f32 %v1151_v9, %v1150_v5 }
  0xec   :  { %v1131_v12 = vpop.f32.mrf.mxu0  ;;  %v1153_v13 = vpop.f32.mrf.mxu1 }
  0xed   :  { %v388_v14 = vadd.f32 %v1130_v10, %v1850_v7 }
  0xee   :  { %v1132_v15 = vpop.f32.mrf.mxu0  ;;  %v1154_v16 = vpop.f32.mrf.mxu1 }
  0xef   :  { %v428_v17 = vadd.f32 %v1152_v11, %v388_v14 }
  0xf8   :  { %v467_v18 = vpop.f32.mrf.mxu0 }
  0xf9   :  { %v1853_v19 = vadd.f32 %v467_v18, %v428_v17 }
  0xfa   :  { %v1318_v20 = vpop.f32.mrf.mxu0 }
  0xfb   :  { %v973_v28 = vmul.f32 %v1853_v19, %v1853_v19  ;;  %v942_v30 = vsel %vm941_vm2, %v1853_v19, 0.0 }
  0xfc   :  { %v470_v21 = vpop.f32.mrf.mxu0  ;;  %v943_v32 = vrot.slane %v942_v30, 4 }
  0xfd   :  { %v974_v31 = vsel %vm941_vm2, %v973_v28, 0.0 }
  0xfe   :  { %v1319_v22 = vpop.f32.mrf.mxu0  ;;  %v975_v37 = vrot.slane %v974_v31, 4  ;;  %v944_v42 = vadd.f32 %v943_v32, %v942_v30 }
 0x100   :  { %v976_v46 = vadd.f32 %v975_v37, %v974_v31  ;;  %v945_v50 = vrot.slane %v944_v42, 2 }
 0x102   :  { %v977_v53 = vrot.slane %v976_v46, 2  ;;  %v946_v56 = vadd.f32 %v945_v50, %v944_v42 }
 0x104   :  { %v978_v59 = vadd.f32 %v977_v53, %v976_v46  ;;  %v947_v62 = vrot.slane %v946_v56, 1 }
 0x106   :  { %v979_v33 = vrot.slane %v978_v59, 1  ;;  %v948_v4 = vadd.f32 %v947_v62, %v946_v56 }
 0x108   :  { %v1177_v23 = vpop.f32.mrf.mxu1  ;;  %v980_v3 = vadd.f32 %v979_v33, %v978_v59 }
 0x10a   :  { %v1178_v24 = vpop.f32.mrf.mxu1 }
 0x10b   :  { %v1179_v25 = vadd.f32 %v1178_v24, %v1177_v23 }
 0x10c   :  { %v1180_v26 = vpop.f32.mrf.mxu1 }
 0x10d   :  { %v544_v40 = vadd.f32 %v1179_v25, %v1850_v7 }
 0x10e   :  { %v1181_v27 = vpop.f32.mrf.mxu1 }
 0x118   :  { %v1199_v35 = vpop.f32.mrf.mxu0  ;;  %v623_v36 = vpop.f32.mrf.mxu1 }
 0x11a   :  { %v1200_v38 = vpop.f32.mrf.mxu0  ;;  %v1330_v39 = vpop.f32.mrf.mxu1 }
 0x11b   :  { %v1201_v41 = vadd.f32 %v1200_v38, %v1199_v35 }
 0x11c   :  { %v1202_v43 = vpop.f32.mrf.mxu0  ;;  %v626_v44 = vpop.f32.mrf.mxu1 }
 0x11d   :  { %v584_v45 = vadd.f32 %v1201_v41, %v544_v40 }
 0x11e   :  { %v1203_v47 = vpop.f32.mrf.mxu0  ;;  %v1331_v48 = vpop.f32.mrf.mxu1 }
 0x11f   :  { %v1861_v49 = vadd.f32 %v623_v36, %v584_v45 }
 0x121   :  { %v949_v51 = vsel %vm941_vm2, %v1861_v49, 0.0  ;;  %v981_v52 = vmul.f32 %v1861_v49, %v1861_v49 }
 0x122   :  { %v950_v54 = vrot.slane %v949_v51, 4 }
 0x123   :  { %v982_v55 = vsel %vm941_vm2, %v981_v52, 0.0 }
 0x124   :  { %v951_v57 = vadd.f32 %v950_v54, %v949_v51  ;;  %v983_v58 = vrot.slane %v982_v55, 4 }
 0x126   :  { %v952_v60 = vrot.slane %v951_v57, 2  ;;  %v984_v61 = vadd.f32 %v983_v58, %v982_v55 }
 0x128   :  { %v953_v63 = vadd.f32 %v952_v60, %v951_v57  ;;  %v985_v29 = vrot.slane %v984_v61, 2 }
 0x12a   :  { %v954_v0 = vrot.slane %v953_v63, 1  ;;  %v986_v2 = vadd.f32 %v985_v29, %v984_v61 }
 0x12c   :  { %v955_v6 = vadd.f32 %v954_v0, %v953_v63  ;;  %v987_v1 = vrot.slane %v986_v2, 1 }
 0x12e   :  { %v988_v5 = vadd.f32 %v987_v1, %v986_v2  ;;  %v1868_v8 = vadd.f32 %v955_v6, %v948_v4 }
 0x130   :  { %v1870_v9 = vadd.f32 %v988_v5, %v980_v3 }
 0x138   :  { %v1226_v10 = vpop.f32.mrf.mxu0  ;;  %v1248_v11 = vpop.f32.mrf.mxu1 }
 0x13a   :  { %v1227_v12 = vpop.f32.mrf.mxu0  ;;  %v1249_v13 = vpop.f32.mrf.mxu1 }
 0x13b   :  { %v1228_v23 = vadd.f32 %v1227_v12, %v1226_v10  ;;  %v1250_v25 = vadd.f32 %v1249_v13, %v1248_v11 }
 0x13c   :  { %v1229_v14 = vpop.f32.mrf.mxu0  ;;  %v1251_v15 = vpop.f32.mrf.mxu1 }
 0x13d   :  { %v700_v24 = vadd.f32 %v1228_v23, %v1850_v7 }
 0x13e   :  { %v1230_v16 = vpop.f32.mrf.mxu0  ;;  %v1252_v17 = vpop.f32.mrf.mxu1 }
 0x13f   :  { %v740_v27 = vadd.f32 %v1250_v25, %v700_v24  ;;  %v1012_v25 = vld [vmem:[%s1902_s3] sm:$0x1]  ;;  %s1427_s3 = smov [#allocation2]  }
 0x148   :  { %v779_v18 = vpop.f32.mrf.mxu0 }
 0x149   :  { %v1873_v30 = vadd.f32 %v779_v18, %v740_v27 }
 0x14a   :  { %v1342_v20 = vpop.f32.mrf.mxu0 }
 0x14b   :  { %v990_v35 = vmul.f32 %v1873_v30, %v1873_v30  ;;  %v957_v36 = vsel %vm941_vm2, %v1873_v30, 0.0 }
 0x14c   :  { %v782_v21 = vpop.f32.mrf.mxu0  ;;  %v958_v38 = vrot.slane %v957_v36, 4 }
 0x14d   :  { %v991_v37 = vsel %vm941_vm2, %v990_v35, 0.0 }
 0x14e   :  { %v1343_v22 = vpop.f32.mrf.mxu0  ;;  %v992_v39 = vrot.slane %v991_v37, 4  ;;  %v959_v41 = vadd.f32 %v958_v38, %v957_v36 }
 0x150   :  { %v993_v44 = vadd.f32 %v992_v39, %v991_v37  ;;  %v960_v50 = vrot.slane %v959_v41, 2 }
 0x152   :  { %v994_v54 = vrot.slane %v993_v44, 2  ;;  %v961_v58 = vadd.f32 %v960_v50, %v959_v41 }
 0x154   :  { %v995_v61 = vadd.f32 %v994_v54, %v993_v44  ;;  %v962_v29 = vrot.slane %v961_v58, 1 }
 0x156   :  { %v996_v0 = vrot.slane %v995_v61, 1  ;;  %v963_v6 = vadd.f32 %v962_v29, %v961_v58 }
 0x158   :  { %v1275_v26 = vpop.f32.mrf.mxu1  ;;  %v997_v5 = vadd.f32 %v996_v0, %v995_v61  ;;  %v964_v12 = vadd.f32 %v963_v6, %v1868_v8 }
 0x15a   :  { %v1276_v28 = vpop.f32.mrf.mxu1  ;;  %v998_v15 = vadd.f32 %v997_v5, %v1870_v9  ;;  %v1016_v9 = vld [vmem:[%s1903_s4] sm:$0x1]  ;;  %s1053_s4 = sshll.u32 %s1427_s3, 4  ;;  %s1054_s4 = int_to_ptr.vmem [resolvable:$true] %s1053_s4 }
 0x15b   :  { %v1277_v40 = vadd.f32 %v1276_v28, %v1275_v26  ;;  %v1022_v26 = vsub.s32 0, %v1652_v34  ;;  %s1402_s9 = scalar_lea.vmem %s1054_s4, 64  ;;  %p1407_p1 = scmp.lt.s32.totalorder %s1054_s4, %s1054_s4 }
 0x15c   :  { %v1278_v31 = vpop.f32.mrf.mxu1  ;;  %p1403_p0 = scmp.ne.s32.totalorder %s1054_s4, %s1402_s9  ;;  %p1408_p2 = scmp.lt.s32.totalorder %s1402_s9, %s1402_s9 }
 0x15d   :  { %v856_v47 = vadd.f32 %v1277_v40, %v1850_v7 }
 0x15e   :  { %v1279_v32 = vpop.f32.mrf.mxu1  ;;  %p1409_p3 = por %p1408_p2, %p1407_p1 }
 0x160   :  { %p1410_p4 = pnand %p1409_p3, %p1403_p0 }
 0x168   :  { %v1297_v42 = vpop.f32.mrf.mxu0  ;;  %v935_v43 = vpop.f32.mrf.mxu1 }
 0x16a   :  { %v1298_v45 = vpop.f32.mrf.mxu0  ;;  %v1354_v46 = vpop.f32.mrf.mxu1 }
 0x16b   :  { %v1299_v48 = vadd.f32 %v1298_v45, %v1297_v42 }
 0x16c   :  { %v1300_v51 = vpop.f32.mrf.mxu0  ;;  %v938_v52 = vpop.f32.mrf.mxu1 }
 0x16d   :  { %v896_v53 = vadd.f32 %v1299_v48, %v856_v47 }
 0x16e   :  { %v1301_v55 = vpop.f32.mrf.mxu0  ;;  %v1355_v56 = vpop.f32.mrf.mxu1 }
 0x16f   :  { %v936_v57 = vadd.f32 %v935_v43, %v896_v53 }
 0x171   :  { %v965_v59 = vsel %vm941_vm2, %v936_v57, 0.0  ;;  %v999_v60 = vmul.f32 %v936_v57, %v936_v57 }
 0x172   :  { %v966_v62 = vrot.slane %v965_v59, 4 }
 0x173   :  { %v1000_v63 = vsel %vm941_vm2, %v999_v60, 0.0 }
 0x174   :  { %v967_v33 = vadd.f32 %v966_v62, %v965_v59  ;;  %v1001_v7 = vrot.slane %v1000_v63, 4 }
 0x176   :  { %v968_v2 = vrot.slane %v967_v33, 2  ;;  %v1002_v4 = vadd.f32 %v1001_v7, %v1000_v63 }
 0x178   :  { %v969_v1 = vadd.f32 %v968_v2, %v967_v33  ;;  %v1003_v3 = vrot.slane %v1002_v4, 2 }
 0x17a   :  { %v970_v10 = vrot.slane %v969_v1, 1  ;;  %v1004_v11 = vadd.f32 %v1003_v3, %v1002_v4 }
 0x17c   :  { %v971_v13 = vadd.f32 %v970_v10, %v969_v1  ;;  %v1005_v14 = vrot.slane %v1004_v11, 1 }
 0x17e   :  { %v972_v16 = vadd.f32 %v971_v13, %v964_v12  ;;  %v1006_v17 = vadd.f32 %v1005_v14, %v1004_v11 }
 0x180   :  { %v1007_v18 = vadd.f32 %v1006_v17, %v998_v15  ;;  %v1008_v20 = vmul.f32 0.0625, %v972_v16 }
 0x182   :  { %v1009_v21 = vmul.f32 0.0625, %v1007_v18  ;;  %v1010_v22 = vmul.f32 %v1008_v20, %v1008_v20 }
 0x184   :  { %v1011_v23 = vsub.f32 %v1009_v21, %v1010_v22 }
 0x186   :  { %v1013_v24 = vadd.f32 1e-05, %v1011_v23 }
 0x188   :  { %1400 = vrsqrt.f32 %v1013_v24 }
 0x195   :  { %v1401_v8 = vpop.eup %1400 }
 0x196   :  { %v1015_v27 = vmul.f32 %v1401_v8, %v1012_v25 }
 0x198   :  { %v1017_v28 = vmul.f32 %v1015_v27, %v1008_v20  ;;  %v1023_v31 = vrot.slane %v1015_v27, %v1022_v26 }
 0x19a   :  { %v1018_v32 = vsub.f32 %v1016_v9, %v1017_v28  ;;  %v1025_v35 = vmul.f32 %v1023_v31, %v1853_v19  ;;  %v1034_v36 = vmul.f32 %v1023_v31, %v1861_v49  ;;  %v1040_v37 = vmul.f32 %v1023_v31, %v936_v57 }
 0x19b   :  { %v1037_v39 = vmul.f32 %v1023_v31, %v1873_v30 }
 0x19c   :  { %v1030_v38 = vrot.slane %v1018_v32, %v1022_v26 }
 0x19e   :  { %v1032_v40 = vadd.f32 %v1030_v38, %v1025_v35  ;;  %v1035_v41 = vadd.f32 %v1034_v36, %v1030_v38  ;;  %v1038_v34 = vadd.f32 %v1037_v39, %v1030_v38  ;;  %v1041_v42 = vadd.f32 %v1040_v37, %v1030_v38 }
 0x1a0   :  { %v1033_v43 = vmax.f32 %v1032_v40, 0.0  ;;  %v1036_v44 = vmax.f32 %v1035_v41, 0.0  ;;  %v1039_v45 = vmax.f32 %v1038_v34, 0.0  ;;  %v1042_v46 = vmax.f32 %v1041_v42, 0.0 }
 0x1a2   :  { %v1043_v47 = vmax.f32 %v1033_v43, %v1036_v44  ;;  %v1044_v48 = vmax.f32 %v1039_v45, %v1042_v46 }
 0x1a4   :  { %v1045_v50 = vmax.f32 %v1043_v47, %v1044_v48 }
 0x1a6   :  { %1046 = vst.msk [vmem:[#allocation2] sm:$0xf] %vm941_vm2, %v1045_v50 }
 0x1a7   :  { %1413 = shalt.err (!%p1410_p4)
}
 0x1a8   :  { %1056 = dma.vmem_to_hbm [thread:$0]  %s1054_s4, 64, %s1904_s5, [#allocation3]  }
 0x1a9   :  { %1422 = dma.done.wait [#allocation3], 64  }
 0x1aa   :  { %1423 = vsyncadd [#allocation3], 4294967232 }
 0x1ab   :  { %1060 = vsyncpa [#allocation3], 1 }

</bundles_post_ra>
